<compile_context>
chip_gen: v7x
topology: tpu7x:2x2x1
jax: 0.10.0
libtpu: 0.0.40
codegen_flags: <defaults>
</compile_context>

<pallas_src>
import math

import jax
import jax.numpy as jnp
from jax.experimental import pallas as pl
from jax.experimental.pallas import tpu as pltpu


def _pick_channel_tile(C, C_fm, H, W, itemsize, budget_bytes=512 * 1024):
    """Largest channel tile that divides both C and C_fm and keeps one
    sub-band block <= budget_bytes (so double-buffered pipeline buffers +
    intermediates stay well inside the default scoped VMEM on all chips)."""
    tc = math.gcd(C, C_fm)
    while tc > 1 and tc * H * W * itemsize > budget_bytes:
        f = next(d for d in range(2, tc + 1) if tc % d == 0)
        tc //= f
    return max(tc, 1)


def _make_kernel(TC, H, W, n_idwt_blocks):
    def kernel(ll_ref, lh_ref, hl_ref, hh_ref, fm_ref, out_ref):
        b = pl.program_id(1)

        @pl.when(b < n_idwt_blocks)
        def _idwt():
            # Upcast to f32 for the mix (no-op for f32 inputs; keeps v5e off
            # emulated bf16 VALU). Coefficients are exactly +-0.5.
            ll = ll_ref[0].astype(jnp.float32)
            lh = lh_ref[0].astype(jnp.float32)
            hl = hl_ref[0].astype(jnp.float32)
            hh = hh_ref[0].astype(jnp.float32)

            # Haar butterfly: 8 adds + 4 muls.
            s = ll + hl
            t = ll - hl
            u = lh + hh
            v = lh - hh
            a = 0.5 * (s + u)   # -> (2i,   2j)
            bq = 0.5 * (s - u)  # -> (2i,   2j+1)
            cq = 0.5 * (t + v)  # -> (2i+1, 2j)
            d = 0.5 * (t - v)   # -> (2i+1, 2j+1)

            # Column interleave (lane dim W -> 2W), then row interleave
            # (sublane dim H -> 2H), all in VMEM.
            top = jnp.stack([a, bq], axis=-1).reshape(TC, H, 2 * W)
            bot = jnp.stack([cq, d], axis=-1).reshape(TC, H, 2 * W)
            full = jnp.stack([top, bot], axis=2).reshape(TC, 2 * H, 2 * W)
            out_ref[0] = full.astype(out_ref.dtype)

        @pl.when(b >= n_idwt_blocks)
        def _copy_feature_map():
            out_ref[0] = fm_ref[0]

    return kernel


def upsampling_idwt(LL, LH, HL, HH, feature_map):
    """Pallas implementation of UpSamplingIDWT.forward (haar wavelet).

    Args (all NCHW):
      LL, LH, HL, HH: (N, C, H, W) sub-bands.
      feature_map:    (N, C_fm, 2H, 2W).
    Returns:
      (N, C + C_fm, 2H, 2W)
    """
    N, C, H, W = LL.shape
    Nf, C_fm, H2, W2 = feature_map.shape
    assert (Nf, H2, W2) == (N, 2 * H, 2 * W)
    dtype = LL.dtype
    assert feature_map.dtype == dtype
    itemsize = jnp.dtype(dtype).itemsize

    TC = _pick_channel_tile(C, C_fm, H, W, itemsize)
    n_idwt = C // TC
    n_fm = C_fm // TC
    n_blocks = n_idwt + n_fm

    # Sub-band blocks: valid index for every grid step; clamped to the last
    # IDWT block during the feature-map phase so the pipeline re-uses the
    # already-resident block (no re-fetch).
    sub_spec = pl.BlockSpec(
        (1, TC, H, W),
        lambda n, b: (n, jnp.minimum(b, n_idwt - 1), 0, 0))
    # Feature-map blocks: clamped to block 0 during the IDWT phase (fetched
    # once per n, then re-used when the copy phase starts).
    fm_spec = pl.BlockSpec(
        (1, TC, 2 * H, 2 * W),
        lambda n, b: (n, jnp.maximum(b - n_idwt, 0), 0, 0))
    # Output channel blocks line up with the grid: first n_idwt blocks are the
    # IDWT result, the rest are the concatenated feature map.
    out_spec = pl.BlockSpec(
        (1, TC, 2 * H, 2 * W),
        lambda n, b: (n, b, 0, 0))

    kernel = _make_kernel(TC, H, W, n_idwt)

    bytes_accessed = (4 * N * C * H * W          # sub-bands in
                      + N * C_fm * 4 * H * W     # feature map in
                      + N * (C + C_fm) * 4 * H * W) * itemsize  # output
    cost = pl.CostEstimate(flops=12 * N * C * H * W,
                           transcendentals=0,
                           bytes_accessed=bytes_accessed)

    return pl.pallas_call(
        kernel,
        out_shape=jax.ShapeDtypeStruct((N, C + C_fm, 2 * H, 2 * W), dtype),
        grid=(N, n_blocks),
        in_specs=[sub_spec, sub_spec, sub_spec, sub_spec, fm_spec],
        out_specs=out_spec,
        compiler_params=pltpu.CompilerParams(
            dimension_semantics=("parallel", "parallel")),
        cost_estimate=cost,
    )(LL, LH, HL, HH, feature_map)


def _reference(LL, LH, HL, HH, feature_map):
    """Pure-JAX reference for the haar IDWT + concat."""
    a = 0.5 * (LL + LH + HL + HH)
    b = 0.5 * (LL - LH + HL - HH)
    c = 0.5 * (LL + LH - HL - HH)
    d = 0.5 * (LL - LH - HL + HH)
    N, C, H, W = LL.shape
    out = jnp.zeros((N, C, 2 * H, 2 * W), LL.dtype)
    out = out.at[:, :, 0::2, 0::2].set(a)
    out = out.at[:, :, 0::2, 1::2].set(b)
    out = out.at[:, :, 1::2, 0::2].set(c)
    out = out.at[:, :, 1::2, 1::2].set(d)
    return jnp.concatenate([out, feature_map], axis=1)


if __name__ == "__main__":
    key = jax.random.PRNGKey(0)
    k_ll, k_lh, k_hl, k_hh, k_fm = jax.random.split(key, 5)

    N, C, H, W = 2, 4, 8, 8          # sub-band spatial = 8 -> output spatial = 16
    C_fm = 4
    LL = jax.random.normal(k_ll, (N, C, H, W), dtype=jnp.float32)
    LH = jax.random.normal(k_lh, (N, C, H, W), dtype=jnp.float32)
    HL = jax.random.normal(k_hl, (N, C, H, W), dtype=jnp.float32)
    HH = jax.random.normal(k_hh, (N, C, H, W), dtype=jnp.float32)
    feature_map = jax.random.normal(k_fm, (N, C_fm, 2 * H, 2 * W), dtype=jnp.float32)

    out = jax.jit(upsampling_idwt)(LL, LH, HL, HH, feature_map)
    out = jax.block_until_ready(out)

    ref = _reference(LL, LH, HL, HH, feature_map)
    assert out.shape == (N, C + C_fm, 2 * H, 2 * W), out.shape
    assert jnp.allclose(out, ref, atol=1e-5, rtol=1e-5), "mismatch vs reference"

    print("KERNEL_OK")
</pallas_src>

<mosaic_0001>
module attributes {stable_mosaic.version = 11 : i64} {
  func.func @kernel(%arg0: i32, %arg1: i32, %arg2: memref<1x4x8x8xf32, #tpu.memory_space<vmem>>, %arg3: memref<1x4x8x8xf32, #tpu.memory_space<vmem>>, %arg4: memref<1x4x8x8xf32, #tpu.memory_space<vmem>>, %arg5: memref<1x4x8x8xf32, #tpu.memory_space<vmem>>, %arg6: memref<1x4x16x16xf32, #tpu.memory_space<vmem>>, %arg7: memref<1x4x16x16xf32, #tpu.memory_space<vmem>>) attributes {dimension_semantics = [#tpu.dimension_semantics<parallel>, #tpu.dimension_semantics<parallel>], iteration_bounds = array<i64: 2, 2>, scalar_prefetch = 0 : i64, scratch_operands = 0 : i64, tpu.core_type = #tpu.core_type<tc>, window_params = [{transform_indices = @transform_0, window_bounds = array<i64: 1, 4, 8, 8>}, {transform_indices = @transform_1, window_bounds = array<i64: 1, 4, 8, 8>}, {transform_indices = @transform_2, window_bounds = array<i64: 1, 4, 8, 8>}, {transform_indices = @transform_3, window_bounds = array<i64: 1, 4, 8, 8>}, {transform_indices = @transform_4, window_bounds = array<i64: 1, 4, 16, 16>}, {transform_indices = @transform_5, window_bounds = array<i64: 1, 4, 16, 16>}]} {
    %c1_i32 = arith.constant 1 : i32
    %0 = arith.cmpi slt, %arg1, %c1_i32 : i32
    %1 = arith.extui %0 : i1 to i32
    %c0_i32 = arith.constant 0 : i32
    %2 = arith.cmpi ne, %1, %c0_i32 : i32
    scf.if %2 {
      %c0 = arith.constant 0 : index
      %c0_2 = arith.constant 0 : index
      %c0_3 = arith.constant 0 : index
      %c0_4 = arith.constant 0 : index
      %6 = vector.load %arg2[%c0, %c0_2, %c0_3, %c0_4] : memref<1x4x8x8xf32, #tpu.memory_space<vmem>>, vector<1x4x8x8xf32>
      %7 = vector.shape_cast %6 : vector<1x4x8x8xf32> to vector<4x8x8xf32>
      %c0_5 = arith.constant 0 : index
      %c0_6 = arith.constant 0 : index
      %c0_7 = arith.constant 0 : index
      %c0_8 = arith.constant 0 : index
      %8 = vector.load %arg3[%c0_5, %c0_6, %c0_7, %c0_8] : memref<1x4x8x8xf32, #tpu.memory_space<vmem>>, vector<1x4x8x8xf32>
      %9 = vector.shape_cast %8 : vector<1x4x8x8xf32> to vector<4x8x8xf32>
      %c0_9 = arith.constant 0 : index
      %c0_10 = arith.constant 0 : index
      %c0_11 = arith.constant 0 : index
      %c0_12 = arith.constant 0 : index
      %10 = vector.load %arg4[%c0_9, %c0_10, %c0_11, %c0_12] : memref<1x4x8x8xf32, #tpu.memory_space<vmem>>, vector<1x4x8x8xf32>
      %11 = vector.shape_cast %10 : vector<1x4x8x8xf32> to vector<4x8x8xf32>
      %c0_13 = arith.constant 0 : index
      %c0_14 = arith.constant 0 : index
      %c0_15 = arith.constant 0 : index
      %c0_16 = arith.constant 0 : index
      %12 = vector.load %arg5[%c0_13, %c0_14, %c0_15, %c0_16] : memref<1x4x8x8xf32, #tpu.memory_space<vmem>>, vector<1x4x8x8xf32>
      %13 = vector.shape_cast %12 : vector<1x4x8x8xf32> to vector<4x8x8xf32>
      %14 = arith.addf %7, %11 : vector<4x8x8xf32>
      %15 = arith.subf %7, %11 : vector<4x8x8xf32>
      %16 = arith.addf %9, %13 : vector<4x8x8xf32>
      %17 = arith.subf %9, %13 : vector<4x8x8xf32>
      %18 = arith.addf %14, %16 : vector<4x8x8xf32>
      %cst = arith.constant 5.000000e-01 : f32
      %19 = vector.broadcast %cst : f32 to vector<4x8x8xf32>
      %20 = arith.mulf %19, %18 : vector<4x8x8xf32>
      %21 = arith.subf %14, %16 : vector<4x8x8xf32>
      %cst_17 = arith.constant 5.000000e-01 : f32
      %22 = vector.broadcast %cst_17 : f32 to vector<4x8x8xf32>
      %23 = arith.mulf %22, %21 : vector<4x8x8xf32>
      %24 = arith.addf %15, %17 : vector<4x8x8xf32>
      %cst_18 = arith.constant 5.000000e-01 : f32
      %25 = vector.broadcast %cst_18 : f32 to vector<4x8x8xf32>
      %26 = arith.mulf %25, %24 : vector<4x8x8xf32>
      %27 = arith.subf %15, %17 : vector<4x8x8xf32>
      %cst_19 = arith.constant 5.000000e-01 : f32
      %28 = vector.broadcast %cst_19 : f32 to vector<4x8x8xf32>
      %29 = arith.mulf %28, %27 : vector<4x8x8xf32>
      %30 = vector.shape_cast %20 : vector<4x8x8xf32> to vector<4x8x8x1xf32>
      %31 = vector.shape_cast %23 : vector<4x8x8xf32> to vector<4x8x8x1xf32>
      %32 = tpu.concatenate %30, %31 in 3 : vector<4x8x8x1xf32>, vector<4x8x8x1xf32> -> vector<4x8x8x2xf32>
      %33 = vector.shape_cast %32 : vector<4x8x8x2xf32> to vector<4x8x16xf32>
      %34 = vector.shape_cast %26 : vector<4x8x8xf32> to vector<4x8x8x1xf32>
      %35 = vector.shape_cast %29 : vector<4x8x8xf32> to vector<4x8x8x1xf32>
      %36 = tpu.concatenate %34, %35 in 3 : vector<4x8x8x1xf32>, vector<4x8x8x1xf32> -> vector<4x8x8x2xf32>
      %37 = vector.shape_cast %36 : vector<4x8x8x2xf32> to vector<4x8x16xf32>
      %38 = vector.shape_cast %33 : vector<4x8x16xf32> to vector<4x8x1x16xf32>
      %39 = vector.shape_cast %37 : vector<4x8x16xf32> to vector<4x8x1x16xf32>
      %40 = tpu.concatenate %38, %39 in 2 : vector<4x8x1x16xf32>, vector<4x8x1x16xf32> -> vector<4x8x2x16xf32>
      %41 = vector.shape_cast %40 : vector<4x8x2x16xf32> to vector<4x16x16xf32>
      %c0_20 = arith.constant 0 : index
      %c0_21 = arith.constant 0 : index
      %c0_22 = arith.constant 0 : index
      %c0_23 = arith.constant 0 : index
      %42 = vector.load %arg7[%c0_20, %c0_21, %c0_22, %c0_23] : memref<1x4x16x16xf32, #tpu.memory_space<vmem>>, vector<1x4x16x16xf32>
      %43 = vector.shape_cast %42 : vector<1x4x16x16xf32> to vector<4x16x16xf32>
      %44 = vector.shape_cast %41 : vector<4x16x16xf32> to vector<1x4x16x16xf32>
      tpu.vector_store %arg7[%c0_20, %c0_21, %c0_22, %c0_23], %44 {strides = array<i32>} : memref<1x4x16x16xf32, #tpu.memory_space<vmem>>, vector<1x4x16x16xf32>,
    } else {
    }
    %c1_i32_0 = arith.constant 1 : i32
    %3 = arith.cmpi sge, %arg1, %c1_i32_0 : i32
    %4 = arith.extui %3 : i1 to i32
    %c0_i32_1 = arith.constant 0 : i32
    %5 = arith.cmpi ne, %4, %c0_i32_1 : i32
    scf.if %5 {
      %c0 = arith.constant 0 : index
      %c0_2 = arith.constant 0 : index
      %c0_3 = arith.constant 0 : index
      %c0_4 = arith.constant 0 : index
      %6 = vector.load %arg6[%c0, %c0_2, %c0_3, %c0_4] : memref<1x4x16x16xf32, #tpu.memory_space<vmem>>, vector<1x4x16x16xf32>
      %7 = vector.shape_cast %6 : vector<1x4x16x16xf32> to vector<4x16x16xf32>
      %c0_5 = arith.constant 0 : index
      %c0_6 = arith.constant 0 : index
      %c0_7 = arith.constant 0 : index
      %c0_8 = arith.constant 0 : index
      %8 = vector.load %arg7[%c0_5, %c0_6, %c0_7, %c0_8] : memref<1x4x16x16xf32, #tpu.memory_space<vmem>>, vector<1x4x16x16xf32>
      %9 = vector.shape_cast %8 : vector<1x4x16x16xf32> to vector<4x16x16xf32>
      %10 = vector.shape_cast %7 : vector<4x16x16xf32> to vector<1x4x16x16xf32>
      tpu.vector_store %arg7[%c0_5, %c0_6, %c0_7, %c0_8], %10 {strides = array<i32>} : memref<1x4x16x16xf32, #tpu.memory_space<vmem>>, vector<1x4x16x16xf32>,
    } else {
    }
    return
  }
  func.func @transform_0(%arg0: i32, %arg1: i32) -> (i32, i32, i32, i32) {
    %c0_i32 = arith.constant 0 : i32
    %0 = arith.minsi %arg1, %c0_i32 : i32
    %c0_i32_0 = arith.constant 0 : i32
    %c0_i32_1 = arith.constant 0 : i32
    %c0_i32_2 = arith.constant 0 : i32
    return %arg0, %0, %c0_i32_0, %c0_i32_1 : i32, i32, i32, i32
  }
  func.func @transform_1(%arg0: i32, %arg1: i32) -> (i32, i32, i32, i32) {
    %c0_i32 = arith.constant 0 : i32
    %0 = arith.minsi %arg1, %c0_i32 : i32
    %c0_i32_0 = arith.constant 0 : i32
    %c0_i32_1 = arith.constant 0 : i32
    %c0_i32_2 = arith.constant 0 : i32
    return %arg0, %0, %c0_i32_0, %c0_i32_1 : i32, i32, i32, i32
  }
  func.func @transform_2(%arg0: i32, %arg1: i32) -> (i32, i32, i32, i32) {
    %c0_i32 = arith.constant 0 : i32
    %0 = arith.minsi %arg1, %c0_i32 : i32
    %c0_i32_0 = arith.constant 0 : i32
    %c0_i32_1 = arith.constant 0 : i32
    %c0_i32_2 = arith.constant 0 : i32
    return %arg0, %0, %c0_i32_0, %c0_i32_1 : i32, i32, i32, i32
  }
  func.func @transform_3(%arg0: i32, %arg1: i32) -> (i32, i32, i32, i32) {
    %c0_i32 = arith.constant 0 : i32
    %0 = arith.minsi %arg1, %c0_i32 : i32
    %c0_i32_0 = arith.constant 0 : i32
    %c0_i32_1 = arith.constant 0 : i32
    %c0_i32_2 = arith.constant 0 : i32
    return %arg0, %0, %c0_i32_0, %c0_i32_1 : i32, i32, i32, i32
  }
  func.func @transform_4(%arg0: i32, %arg1: i32) -> (i32, i32, i32, i32) {
    %c1_i32 = arith.constant 1 : i32
    %0 = arith.subi %arg1, %c1_i32 : i32
    %c0_i32 = arith.constant 0 : i32
    %1 = arith.maxsi %0, %c0_i32 : i32
    %c0_i32_0 = arith.constant 0 : i32
    %c0_i32_1 = arith.constant 0 : i32
    %c0_i32_2 = arith.constant 0 : i32
    return %arg0, %1, %c0_i32_0, %c0_i32_1 : i32, i32, i32, i32
  }
  func.func @transform_5(%arg0: i32, %arg1: i32) -> (i32, i32, i32, i32) {
    %c0_i32 = arith.constant 0 : i32
    %c0_i32_0 = arith.constant 0 : i32
    %c0_i32_1 = arith.constant 0 : i32
    return %arg0, %arg1, %c0_i32, %c0_i32_0 : i32, i32, i32, i32
  }
}

</mosaic_0001>

<bundles_post_ra>
// kernel: upsampling_idwt.1
= control target key start
LH: loop header
LB: loop body
LE: loop exit
PB: predicated region body
PF: predicated region fallthrough
CT: control target
= control target key end

     0   :  { %s14308_s0 = inlined_call_operand.hbm [shape: f32[2,4,8,8], index: 0, kind: input, shape index: {}]   ;;  %s14309_s1 = inlined_call_operand.hbm [shape: f32[2,4,8,8], index: 1, kind: input, shape index: {}]   ;;  %s14310_s2 = inlined_call_operand.hbm [shape: f32[2,4,8,8], index: 2, kind: input, shape index: {}]   ;;  %s14311_s3 = inlined_call_operand.hbm [shape: f32[2,4,8,8], index: 3, kind: input, shape index: {}]   ;;  %s14312_s4 = inlined_call_operand.hbm [shape: f32[2,4,16,16], index: 4, kind: input, shape index: {}]   ;;  %s14313_s5 = inlined_call_operand.hbm [shape: f32[2,8,16,16], index: 5, kind: output, shape index: {}]  }
   0x1   :  { %14457 = sst [smem:[#allocation459_spill]] %s14309_s1 }
   0x2   :  { %14458 = sst [smem:[#allocation460_spill]] %s14311_s3 }
   0x3   :  { %14459 = sst [smem:[#allocation461_spill]] %s14313_s5 }
   0x4   :  { %10 = vsyncpa [#allocation3], 0 }
   0x5   :  { %12 = vsyncpa [#allocation3 + $0x1], 0 }
   0x6   :  { %13 = vsyncpa [#allocation6], 0 }
   0x7   :  { %15 = vsyncpa [#allocation6 + $0x1], 0 }
   0x8   :  { %16 = vsyncpa [#allocation9], 0 }
   0x9   :  { %18 = vsyncpa [#allocation9 + $0x1], 0 }
   0xa   :  { %19 = vsyncpa [#allocation4], 0 }
   0xb   :  { %21 = vsyncpa [#allocation4 + $0x1], 0  ;;  %s8002_s18 = smov 0   ;;  %s8004_s19 = smov 0  }
   0xc   :  { %s8006_s20 = smov 0   ;;  %s8008_s21 = smov 0  }
   0xd   :  { %s8010_s22 = smov 0   ;;  %s8012_s23 = smov 0  }
   0xe   :  { %s8014_s24 = smov 0   ;;  %s8016_s25 = smov 0  }
   0xf   :  { %s8018_s26 = smov 0   ;;  %s8020_s27 = smov 0  }
  0x10   :  { %s8022_s28 = smov 0   ;;  %s8024_s29 = smov 0  }
  0x11   :  { %s8026_s30 = smov 0   ;;  %s8028_s6 = smov 0  }
  0x12 LB: > { %14460 = sst [smem:[#allocation17_spill]] %s7898_s18  ;;  %s8071_s7 = sadd.s32 4294967295, %s7950_s6   ;;  %s7950_s6 = sphi %s8028_s6, %s27_s6   ;;  %s7946_s30 = sphi %s8026_s30, %s15699_s30   ;;  %s7942_s29 = sphi %s8024_s29, %s15698_s29   ;;  %s7938_s28 = sphi %s8022_s28, %s15697_s28   ;;  %s7934_s27 = sphi %s8020_s27, %s15687_s27   ;;  %s7930_s26 = sphi %s8018_s26, %s15696_s26   ;;  %s7926_s25 = sphi %s8016_s25, %s15695_s25   ;;  %s7922_s24 = sphi %s8014_s24, %s15694_s24   ;;  %s7918_s23 = sphi %s8012_s23, %s15693_s23   ;;  %s7914_s22 = sphi %s8010_s22, %s15692_s22   ;;  %s7910_s21 = sphi %s8008_s21, %s15691_s21   ;;  %s7906_s20 = sphi %s8006_s20, %s15684_s20   ;;  %s7902_s19 = sphi %s8004_s19, %s15683_s19   ;;  %s7898_s18 = sphi %s8002_s18, %s15682_s18  }
  0x13   : > { %14461 = sst [smem:[#allocation18_spill]] %s7902_s19  ;;  %s7435_s8 = sadd.s32 4294967294, %s7950_s6  }
  0x14   : > { %14462 = sst [smem:[#allocation19_spill]] %s7906_s20  ;;  %s36_s9 = sadd.s32 1, %s7942_s29 }
  0x15   : > { %14463 = sst [smem:[#allocation20_spill]] %s7926_s25  ;;  %s39_s10 = sadd.s32 1, %s7946_s30 }
  0x16   : > { %14464 = sst [smem:[#allocation21_spill]] %s7934_s27  ;;  %p37_p0 = scmp.ge.s32.totalorder %s36_s9, 2 }
  0x17   : > { %14465 = sst [smem:[#allocation22_spill]] %s7938_s28  ;;  %s52_s11 = sadd.s32 1, %s7930_s26 }
  0x18   : > { %14466 = sst [smem:[#allocation23_spill]] %s7942_s29  ;;  %p59_p1 = scmp.ne.s32.totalorder %s7930_s26, %s7926_s25 }
  0x19   : > { %s15701_s9 = smov (%p37_p0, %s36_s9), 0  ;;  %s15703_s10 = smov (!%p37_p0, %s39_s10), %s7946_s30 }
  0x1a   : > { %14467 = sst [smem:[#allocation24_spill]] %s15701_s9  ;;  %p41_p2 = scmp.ge.s32.totalorder %s15703_s10, 2 }
  0x1b   : > { %p14327_p3 = scmp.eq.s32.totalorder %s7950_s6, 0  ;;  %p65_p4 = scmp.ne.s32.totalorder %s7926_s25, %s7922_s24 }
  0x1c   : > { %s15705_s10 = smov (%p41_p2, %s15703_s10), 0  ;;  %p14326_p6 = scmp.eq.s32.totalorder %s8071_s7, 0 }
  0x1d   : > { %14468 = sst [smem:[#allocation25_spill]] %s15705_s10  ;;  %s8088_s12 = ssub.s32 %s7946_s30, %s15705_s10 }
  0x1e   : > { %p8092_p5 = por %p14327_p3, %p59_p1  ;;  %s206_s14 = ssub.s32 %s7942_s29, %s15701_s9 }
  0x1f   : > { %p14325_p7 = scmp.eq.s32.totalorder %s8088_s12, 0  ;;  %p8102_p8 = por %p14326_p6, %p65_p4 }
  0x20   : > { %s207_s16 = sor.u32 %s206_s14, %s8088_s12  ;;  %s210_s17 = sadd.s32 1, %s7906_s20 }
  0x21   : > { %s14470_s15 = scalar_select %p8102_p8, 1, 0 }
  0x22   : > { %s8111_s24 = scalar_select %p14325_p7, %s7930_s26, %s52_s11  }
  0x23   : > { %14471 = sst [smem:[#allocation26_spill]] %s14470_s15  ;;  %p208_p9 = scmp.eq.s32.totalorder %s207_s16, 0 }
  0x24   : > { %14472 = sst [smem:[#allocation27_spill]] %s8111_s24  ;;  %p220_p10 = scmp.ne.s32.totalorder %s7906_s20, %s7902_s19 }
  0x25   : > { %p221_p11 = scmp.eq.s32.totalorder %s8071_s7, 3  ;;  %p226_p12 = scmp.ne.s32.totalorder %s7902_s19, %s7898_s18 }
  0x26   : > { %s8119_s10 = scalar_select %p208_p9, %s7906_s20, %s210_s17  }
  0x27   : > { %p8121_p13 = por %p221_p11, %p220_p10  ;;  %p227_p0 = scmp.eq.s32.totalorder %s7435_s8, 3 }
  0x28   : > { %14473 = sst [smem:[#allocation28_spill]] %s8119_s10  ;;  %p14324_p1 = scmp.lt.s32.totalorder %s7950_s6, 4 }
  0x29   : > { %s14474_s9 = scalar_select %p8121_p13, 1, 0 }
  0x2a   : > { %p8126_p2 = por %p227_p0, %p226_p12  ;;  %s14318_s11 = sand.u32 1, %s7930_s26  }
  0x2b   : > { %14475 = sst [smem:[#allocation29_spill]] %s14474_s9  ;;  %s8133_s16 = sshll.u32 %s14318_s11, 5 }
  0x2c   : > { %s14476_s14 = scalar_select %p8126_p2, 1, 0 }
  0x2d   : > { %p8139_p4 = pnand %p14324_p1, %p8092_p5  ;;  %s8144_s29 = sshll.u32 %s7946_s30, 9 }
  0x2e   : > { %14477 = sst [smem:[#allocation30_spill]] %s14476_s14  ;;  %s14328_s8 = sand.u32 1, %s7950_s6  }
  0x2f   : > { %s14479_s1 = sld [smem:[#allocation459_spill]]  ;;  %s276_s13 = scalar_lea.vmem [#allocation5], %s8133_s16 }
  0x30   : > { %s287_s11 = sshll.u32 %s276_s13, 4  ;;  %s8159_s14 = scalar_lea.sflag [#allocation6], %s14328_s8  ;;  %s8154_s11 = int_to_ptr.vmem [resolvable:$true] %s287_s11 }
  0x31   : > { %p8165_p10 = pneg %p8139_p4 }
  0x35   : > { %s8151_s20 = scalar_lea.hbm %s14479_s1, %s8144_s29  ;;  %s7645_s13 = scalar_lea.hbm %s14479_s1, 1024 }
  0x36   : > { %s7640_s18 = scalar_lea.hbm %s8151_s20, 512  ;;  %p7646_p0 = scmp.lt.u32.totalorder %s8151_s20, %s14479_s1 }
  0x37   : > { %p7641_p9 = scmp.ne.s32.totalorder %s8151_s20, %s7640_s18  ;;  %p7647_p1 = scmp.lt.u32.totalorder %s7645_s13, %s7640_s18 }
  0x38   : > { %p7649_p6 = scmp.lt.u32.totalorder %s7640_s18, %s8151_s20 }
  0x39   : > { %p7643_p11 = pnand %p8165_p10, %p7641_p9  ;;  %p7648_p7 = por %p7647_p1, %p7646_p0 }
  0x3b   : > { %p7644_p12 = pneg %p7643_p11  ;;  %p7650_p3 = por %p7649_p6, %p7648_p7 }
  0x3d   : > { %p7651_p5 = pnand %p7650_p3, %p7644_p12 }
  0x3f   : > { %7654 = shalt.err (!%p7651_p5)
}
  0x40   : > { %s7655_s8 = scalar_lea.vmem %s8154_s11, 512  ;;  %s7952_s10 = smov [#allocation5]  }
  0x41   : > { %p7656_p9 = scmp.ne.s32.totalorder %s8154_s11, %s7655_s8  ;;  %s7660_s24 = sshll.u32 %s7952_s10, 4  ;;  %s7661_s24 = int_to_ptr.vmem [resolvable:$false] %s7660_s24 }
  0x42   : > { %s7662_s28 = scalar_lea.vmem %s7661_s24, 1024  ;;  %p7663_p13 = scmp.lt.s32.totalorder %s8154_s11, %s7661_s24 }
  0x43   : > { %p7658_p11 = pnand %p7656_p9, %p8165_p10  ;;  %p7664_p8 = scmp.lt.s32.totalorder %s7662_s28, %s7655_s8 }
  0x45   : > { %p7659_p2 = pneg %p7658_p11  ;;  %p7665_p1 = por %p7664_p8, %p7663_p13 }
  0x47   : > { %p7666_p0 = pnand %p7665_p1, %p7659_p2 }
  0x49   : > { %7669 = shalt.err (!%p7666_p0)
}
  0x4a   : > { %s14331_s18 = smov 128   ;;  %s14333_s9 = smov 8  }
  0x4b   : > { %7498 = dma.hbm_to_vmem [thread:$0]  (!%p8139_p4), %s8151_s20, 512, %s8154_s11, %s8159_s14, %s14331_s18, %s14331_s18, %s14333_s9  }
  0x4c   : > { %p372_p3 = scmp.lt.s32.totalorder %s7950_s6, 5  ;;  %s14481_s3 = sld [smem:[#allocation460_spill]] }
  0x4d   : > { %p14482_p6 = scmp.ge.s32.totalorder %s7950_s6, 1  ;;  %s326_s28 = scalar_lea.vmem [#allocation8], %s8133_s16 }
  0x4e   : > { %s337_s1 = sshll.u32 %s326_s28, 4  ;;  %s14485_s20 = sand.u32 1, %s7950_s6   ;;  %s8206_s1 = int_to_ptr.vmem [resolvable:$true] %s337_s1 }
  0x4f   : > { %p8201_p7 = pnand %p14482_p6, %p372_p3  ;;  %s8210_s11 = scalar_lea.sflag [#allocation9], %s14485_s20 }
  0x50   : > { %14486 = sst [smem:[#allocation32_spill]] %s8210_s11 }
  0x51   : > { %s14483_s24 = scalar_select %p8201_p7, 1, 0 }
  0x52   : > { %s8197_s10 = scalar_lea.hbm %s14481_s3, %s8144_s29  ;;  %s7675_s9 = scalar_lea.hbm %s14481_s3, 1024 }
  0x53   : > { %14484 = sst [smem:[#allocation31_spill]] %s14483_s24  ;;  %s7670_s18 = scalar_lea.hbm %s8197_s10, 512 }
  0x54   : > { %p7671_p8 = scmp.ne.s32.totalorder %s8197_s10, %s7670_s18  ;;  %p7676_p5 = scmp.lt.u32.totalorder %s8197_s10, %s14481_s3 }
  0x55   : > { %p7677_p12 = scmp.lt.u32.totalorder %s7675_s9, %s7670_s18  ;;  %p7679_p11 = scmp.lt.u32.totalorder %s7670_s18, %s8197_s10 }
  0x56   : > { %p7673_p13 = pnand %p7671_p8, %p8165_p10 }
  0x57   : > { %p7678_p9 = por %p7677_p12, %p7676_p5 }
  0x58   : > { %p7674_p2 = pneg %p7673_p13 }
  0x59   : > { %p7680_p1 = por %p7679_p11, %p7678_p9 }
  0x5b   : > { %p7681_p0 = pnand %p7680_p1, %p7674_p2 }
  0x5d   : > { %7684 = shalt.err (!%p7681_p0)
}
  0x5e   : > { %s7685_s28 = scalar_lea.vmem %s8206_s1, 512  ;;  %s7955_s20 = smov [#allocation8]  }
  0x5f   : > { %p7686_p3 = scmp.ne.s32.totalorder %s8206_s1, %s7685_s28  ;;  %s7690_s8 = sshll.u32 %s7955_s20, 4  ;;  %s7691_s8 = int_to_ptr.vmem [resolvable:$false] %s7690_s8 }
  0x60   : > { %s7692_s19 = scalar_lea.vmem %s7691_s8, 1024  ;;  %p7693_p13 = scmp.lt.s32.totalorder %s8206_s1, %s7691_s8 }
  0x61   : > { %p7688_p6 = pnand %p7686_p3, %p8165_p10  ;;  %p7694_p7 = scmp.lt.s32.totalorder %s7692_s19, %s7685_s28 }
  0x63   : > { %p7689_p8 = pneg %p7688_p6  ;;  %p7695_p5 = por %p7694_p7, %p7693_p13 }
  0x65   : > { %p7696_p12 = pnand %p7695_p5, %p7689_p8 }
  0x67   : > { %7699 = shalt.err (!%p7696_p12)
}
  0x68   : > { %s14487_s27 = smov 8   ;;  %s14488_s18 = smov 128  }
  0x69   : > { %7504 = dma.hbm_to_vmem [thread:$0]  (!%p8139_p4), %s8197_s10, 512, %s8206_s1, %s8210_s11, %s14488_s18, %s14488_s18, %s14487_s27  }
  0x6a   : > { %s8241_s28 = scalar_lea.hbm %s14308_s0, %s8144_s29  ;;  %s251_s20 = scalar_lea.vmem [#allocation2], %s8133_s16 }
  0x6b   : > { %s262_s8 = sshll.u32 %s251_s20, 4  ;;  %s8250_s15 = scalar_lea.hbm %s14310_s2, %s8144_s29  ;;  %s8244_s8 = int_to_ptr.vmem [resolvable:$true] %s262_s8 }
  0x6c   : > { %s14489_s25 = sand.u32 1, %s7930_s26   ;;  %s7700_s10 = scalar_lea.hbm %s8241_s28, 512 }
  0x6d   : > { %s8254_s1 = scalar_lea.sflag [#allocation3], %s14489_s25  ;;  %p7701_p7 = scmp.ne.s32.totalorder %s8241_s28, %s7700_s10 }
  0x6e   : > { %s7705_s24 = scalar_lea.hbm %s14308_s0, 1024  ;;  %p7706_p11 = scmp.lt.u32.totalorder %s8241_s28, %s14308_s0 }
  0x6f   : > { %p7703_p2 = pnand %p7701_p7, %p8165_p10  ;;  %p7707_p1 = scmp.lt.u32.totalorder %s7705_s24, %s7700_s10 }
  0x70   : > { %p7709_p3 = scmp.lt.u32.totalorder %s7700_s10, %s8241_s28 }
  0x71   : > { %p7704_p9 = pneg %p7703_p2  ;;  %p7708_p0 = por %p7707_p1, %p7706_p11 }
  0x73   : > { %p7710_p6 = por %p7709_p3, %p7708_p0 }
  0x75   : > { %p7711_p8 = pnand %p7710_p6, %p7704_p9 }
  0x77   : > { %7714 = shalt.err (!%p7711_p8)
}
  0x78   : > { %s7715_s3 = scalar_lea.vmem %s8244_s8, 512  ;;  %s7956_s25 = smov [#allocation2]  }
  0x79   : > { %p7716_p13 = scmp.ne.s32.totalorder %s8244_s8, %s7715_s3  ;;  %s7720_s29 = sshll.u32 %s7956_s25, 4  ;;  %s7721_s29 = int_to_ptr.vmem [resolvable:$false] %s7720_s29 }
  0x7a   : > { %s7722_s11 = scalar_lea.vmem %s7721_s29, 1024  ;;  %p7723_p7 = scmp.lt.s32.totalorder %s8244_s8, %s7721_s29 }
  0x7b   : > { %p7718_p5 = pnand %p7716_p13, %p8165_p10  ;;  %p7724_p2 = scmp.lt.s32.totalorder %s7722_s11, %s7715_s3 }
  0x7d   : > { %p7719_p12 = pneg %p7718_p5  ;;  %p7725_p11 = por %p7724_p2, %p7723_p7 }
  0x7f   : > { %p7726_p1 = pnand %p7725_p11, %p7719_p12 }
  0x81   : > { %7729 = shalt.err (!%p7726_p1)
}
  0x82   : > { %7495 = dma.hbm_to_vmem [thread:$0]  (!%p8139_p4), %s8241_s28, 512, %s8244_s8, %s8254_s1, %s14488_s18, %s14488_s18, %s14487_s27  }
  0x83   : > { %s301_s24 = scalar_lea.vmem [#allocation7], %s8133_s16  ;;  %s7730_s10 = scalar_lea.hbm %s8250_s15, 512 }
  0x84   : > { %s312_s19 = sshll.u32 %s301_s24, 4  ;;  %p7731_p9 = scmp.ne.s32.totalorder %s8250_s15, %s7730_s10  ;;  %s8282_s19 = int_to_ptr.vmem [resolvable:$true] %s312_s19 }
  0x85   : > { %s7735_s20 = scalar_lea.hbm %s14310_s2, 1024  ;;  %p7736_p6 = scmp.lt.u32.totalorder %s8250_s15, %s14310_s2 }
  0x86   : > { %p7733_p0 = pnand %p7731_p9, %p8165_p10  ;;  %p7737_p8 = scmp.lt.u32.totalorder %s7735_s20, %s7730_s10 }
  0x87   : > { %p7739_p5 = scmp.lt.u32.totalorder %s7730_s10, %s8250_s15 }
  0x88   : > { %p7734_p3 = pneg %p7733_p0  ;;  %p7738_p13 = por %p7737_p8, %p7736_p6 }
  0x8a   : > { %p7740_p12 = por %p7739_p5, %p7738_p13 }
  0x8c   : > { %p7741_p7 = pnand %p7740_p12, %p7734_p3 }
  0x8e   : > { %7744 = shalt.err (!%p7741_p7)
}
  0x8f   : > { %s7745_s16 = scalar_lea.vmem %s8282_s19, 512  ;;  %s7957_s28 = smov [#allocation7]  }
  0x90   : > { %p7746_p2 = scmp.ne.s32.totalorder %s8282_s19, %s7745_s16  ;;  %s7750_s8 = sshll.u32 %s7957_s28, 4  ;;  %s7751_s8 = int_to_ptr.vmem [resolvable:$false] %s7750_s8 }
  0x91   : > { %s7752_s1 = scalar_lea.vmem %s7751_s8, 1024  ;;  %p7753_p9 = scmp.lt.s32.totalorder %s8282_s19, %s7751_s8 }
  0x92   : > { %p7748_p11 = pnand %p7746_p2, %p8165_p10  ;;  %p7754_p0 = scmp.lt.s32.totalorder %s7752_s1, %s7745_s16 }
  0x94   : > { %p7749_p1 = pneg %p7748_p11  ;;  %p7755_p6 = por %p7754_p0, %p7753_p9 }
  0x96   : > { %p7756_p8 = pnand %p7755_p6, %p7749_p1 }
  0x98   : > { %7759 = shalt.err (!%p7756_p8)
}
  0x99   : > { %7501 = dma.hbm_to_vmem [thread:$0]  (!%p8139_p4), %s8250_s15, 512, %s8282_s19, %s8159_s14, %s14488_s18, %s14488_s18, %s14487_s27  }
  0x9a   : > { %s182_s5 = sadd.s32 1, %s7918_s23  ;;  %p189_p10 = scmp.ne.s32.totalorder %s7918_s23, %s7914_s22 }
  0x9b   : > { %p14490_p3 = scmp.eq.s32.totalorder %s7950_s6, 0  ;;  %p195_p5 = scmp.ne.s32.totalorder %s7914_s22, %s7910_s21 }
  0x9c   : > { %s349_s17 = sand.u32 1, %s7918_s23   ;;  %p14491_p12 = scmp.eq.s32.totalorder %s8071_s7, 0 }
  0x9d   : > { %p191_p13 = por %p189_p10, %p14490_p3  ;;  %s7456_s11 = sshll.u32 %s349_s17, 6 }
  0x9e   : > { %p8319_p7 = por %p195_p5, %p14491_p12  ;;  %p14493_p2 = scmp.eq.s32.totalorder %s8088_s12, 0 }
  0x9f   : > { %s351_s10 = scalar_lea.vmem [#allocation10], %s7456_s11  ;;  %s7895_s15 = sshll.u32 %s7946_s30, 10 }
  0xa0   : > { %s8326_s24 = scalar_select %p14493_p2, %s7918_s23, %s182_s5  }
  0xa1   : > { %s364_s9 = sshll.u32 %s351_s10, 4  ;;  %p14494_p4 = scmp.lt.s32.totalorder %s7950_s6, 4  ;;  %s8328_s9 = int_to_ptr.vmem [resolvable:$true] %s364_s9 }
  0xa2   : > { %s8340_s13 = scalar_lea.hbm %s14312_s4, %s7895_s15  ;;  %s7765_s25 = scalar_lea.hbm %s14312_s4, 2048 }
  0xa3   : > { %p8333_p11 = pnand %p14494_p4, %p191_p13  ;;  %s7760_s12 = scalar_lea.hbm %s8340_s13, 1024 }
  0xa4   : > { %p7761_p1 = scmp.ne.s32.totalorder %s8340_s13, %s7760_s12  ;;  %p7766_p8 = scmp.lt.u32.totalorder %s8340_s13, %s14312_s4 }
  0xa5   : > { %p7762_p9 = pneg %p8333_p11  ;;  %p7767_p10 = scmp.lt.u32.totalorder %s7765_s25, %s7760_s12 }
  0xa6   : > { %p7769_p13 = scmp.lt.u32.totalorder %s7760_s12, %s8340_s13 }
  0xa7   : > { %p7763_p0 = pnand %p7762_p9, %p7761_p1  ;;  %p7768_p3 = por %p7767_p10, %p7766_p8 }
  0xa9   : > { %p7764_p6 = pneg %p7763_p0  ;;  %p7770_p5 = por %p7769_p13, %p7768_p3 }
  0xab   : > { %p7771_p12 = pnand %p7770_p5, %p7764_p6 }
  0xad   : > { %7774 = shalt.err (!%p7771_p12)
}
  0xae   : > { %s7775_s8 = scalar_lea.vmem %s8328_s9, 1024  ;;  %s7958_s1 = smov [#allocation10]  }
  0xaf   : > { %p7776_p2 = scmp.ne.s32.totalorder %s8328_s9, %s7775_s8  ;;  %s7780_s5 = sshll.u32 %s7958_s1, 4  ;;  %s7781_s5 = int_to_ptr.vmem [resolvable:$false] %s7780_s5 }
  0xb0   : > { %s7782_s17 = scalar_lea.vmem %s7781_s5, 2048  ;;  %p7783_p0 = scmp.lt.s32.totalorder %s8328_s9, %s7781_s5 }
  0xb1   : > { %p7778_p4 = pnand %p7776_p2, %p7762_p9  ;;  %p7784_p8 = scmp.lt.s32.totalorder %s7782_s17, %s7775_s8 }
  0xb3   : > { %p7779_p1 = pneg %p7778_p4  ;;  %p7785_p10 = por %p7784_p8, %p7783_p0 }
  0xb5   : > { %p7786_p3 = pnand %p7785_p10, %p7779_p1 }
  0xb7   : > { %7789 = shalt.err (!%p7786_p3)
}
  0xb8   : > { %s14496_s11 = sld [smem:[#allocation32_spill]]  ;;  %s14497_s10 = sld [smem:[#allocation31_spill]] }
  0xbe   : > { %7507 = dma.hbm_to_vmem [thread:$0]  (!%p8333_p11), %s8340_s13, 1024, %s8328_s9, %s14496_s11, %s14488_s18, %s14488_s18, %s14487_s27  }
  0xbf   : > { %p14498_p9 = scmp.ne.s32.totalorder %s14497_s10, 0 }
  0xc0   : > { %s14499_s15 = sld [smem:[#allocation20_spill]] (!%p14498_p9)  ;;  %s14500_s21 = sld [smem:[#allocation26_spill]] (!%p14498_p9) }
  0xc1   : > { %376 = sbr.rel (%p14498_p9) target bundleno = 1579 (0x62b), region = 40 }
  0xc6   : > { %s378_s19 = sand.u32 (!%p14498_p9), 1, %s14499_s15   ;;  %p14501_p6 = scmp.ne.s32.totalorder (!%p14498_p9), %s14500_s21, 0 }
  0xc7   : > { %s7463_s12 = sshll.u32 (!%p14498_p9), %s378_s19, 5  ;;  %s379_s20 = scalar_lea.sflag (!%p14498_p9), [#allocation3], %s378_s19 }
  0xc8   : > { %s8374_s3 = scalar_lea.vmem [#allocation2], %s7463_s12 }
  0xc9   : > { %7875 = dma.done.wait (%p14501_p6), %s379_s20, 512  }
  0xca   : > { %7877 = vsyncadd (%p14501_p6), %s379_s20, 4294966784  ;;  %s387_s14 = sand.u32 1, %s8071_s7   ;;  %s8381_s27 = scalar_lea.vmem [#allocation5], %s7463_s12 }
  0xcb   : > { %s388_s25 = scalar_lea.sflag [#allocation6], %s387_s14 }
  0xcc   : > { %7879 = dma.done.wait (%p14501_p6), %s388_s25, 1024  }
  0xcd   : > { %7881 = vsyncadd (%p14501_p6), %s388_s25, 4294966272  ;;  %s8387_s18 = scalar_lea.vmem [#allocation7], %s7463_s12  ;;  %s406_s9 = scalar_lea.sflag [#allocation9], %s387_s14 }
  0xce   : > { %s8389_s13 = scalar_lea.vmem [#allocation8], %s7463_s12 }
  0xcf   : > { %7883 = dma.done.wait (%p14501_p6), %s406_s9, 512  }
  0xd0   : > { %7885 = vsyncadd (%p14501_p6), %s406_s9, 4294966784  ;;  %s416_s7 = sand.u32 1, %s7914_s22  }
  0xd1   : > { %s7467_s16 = sshll.u32 %s416_s7, 6 }
  0xd2   : > { %s8396_s28 = scalar_lea.vmem [#allocation10], %s7467_s16 }
  0xd3   : > { %7887 = dma.done.wait (%p8319_p7), %s406_s9, 1024  }
  0xd4   : > { %7889 = vsyncadd (%p8319_p7), %s406_s9, 4294966272  ;;  %s14502_s8 = sld [smem:[#allocation18_spill]]  ;;  %s14503_s11 = sld [smem:[#allocation21_spill]] }
  0xda   : > { %s462_s1 = sand.u32 1, %s14502_s8   ;;  %p7469_p11 = scmp.ge.s32.totalorder %s14503_s11, 1 }
  0xdb   : > { %s7468_s5 = sshll.u32 %s462_s1, 6 }
  0xdc   : > { %s8405_s17 = scalar_lea.vmem [#allocation11], %s7468_s5  ;;  %485 = sbr.rel (%p7469_p11) target bundleno = 1535 (0x5ff), region = 64 }
  0xe3   : > { %v486_v0 = vld [vmem:[%s8374_s3] sm:$0xff]  ;;  %v550_v3 = vlaneseq  ;;  %v487_v13 = vld [vmem:[%s8374_s3 + $0x8] sm:$0xff]  ;;  %v8435_v17 = vld [vmem:[%s8374_s3 + $0x10] sm:$0xff]  ;;  %vm998_vm0 = vcmask 7168   ;;  %s7962_s29 = smov 2   ;;  %s7963_s10 = smov 4  }
  0xe4   : > { %v490_v1 = vld [vmem:[%s8381_s27] sm:$0xff]  ;;  %v491_v14 = vld [vmem:[%s8381_s27 + $0x8] sm:$0xff]  ;;  %v492_v21 = vld [vmem:[%s8381_s27 + $0x10] sm:$0xff]  ;;  %s7964_s15 = smov 6   ;;  %s7965_s21 = smov 8   ;;  %vm3975_vm1 = vcmask 15360  }
  0xe5   : > { %v494_v2 = vld [vmem:[%s8387_s18] sm:$0xff]  ;;  %v8416_v7 = vshrl.u32 %v550_v3, 7  ;;  %v495_v15 = vld [vmem:[%s8387_s18 + $0x8] sm:$0xff]  ;;  %v496_v22 = vld [vmem:[%s8387_s18 + $0x10] sm:$0xff]  ;;  %s7966_s19 = smov 10   ;;  %s7967_s12 = smov 12  }
  0xe6   : > { %v498_v4 = vld [vmem:[%s8389_s13] sm:$0xff]  ;;  %v8412_v5 = vadd.f32 %v494_v2, %v486_v0  ;;  %v8418_v8 = vsub.f32 %v486_v0, %v494_v2  ;;  %v499_v16 = vld [vmem:[%s8389_s13 + $0x8] sm:$0xff]  ;;  %v500_v23 = vld [vmem:[%s8389_s13 + $0x10] sm:$0xff]  ;;  %v8448_v26 = vadd.f32 %v495_v15, %v487_v13  ;;  %v8453_v28 = vadd.f32 %v496_v22, %v8435_v17  ;;  %s7968_s20 = smov 14  }
  0xe7   : > { %v8414_v6 = vadd.f32 %v498_v4, %v490_v1  ;;  %v8420_v9 = vsub.f32 %v490_v1, %v498_v4  ;;  %v8425_v11 = vsub.s32 2, %v8416_v7  ;;  %v8428_v12 = vsub.s32 0, %v8416_v7  ;;  %v8458_v30 = vld [vmem:[%s8374_s3 + $0x18] sm:$0xff] }
  0xe8   : > { %v8438_v19 = vsub.s32 3, %v8416_v7  ;;  %v8441_v20 = vsub.s32 1, %v8416_v7  ;;  %v8450_v27 = vadd.f32 %v499_v16, %v491_v14  ;;  %v8455_v29 = vadd.f32 %v500_v23, %v492_v21  ;;  %v8461_v31 = vld [vmem:[%s8381_s27 + $0x18] sm:$0xff] }
  0xe9   : > { %v518_v10 = vadd.f32 %v8414_v6, %v8412_v5  ;;  %v8466_v34 = vsub.s32 5, %v8416_v7  ;;  %v8469_v35 = vsub.s32 4, %v8416_v7  ;;  %v8472_v36 = vld [vmem:[%s8387_s18 + $0x18] sm:$0xff]  ;;  %v526_v38 = vsub.f32 %v8412_v5, %v8414_v6 }
  0xea   : > { %v8475_v37 = vld [vmem:[%s8389_s13 + $0x18] sm:$0xff]  ;;  %v527_v39 = vsub.f32 %v8448_v26, %v8450_v27  ;;  %v528_v40 = vsub.f32 %v8453_v28, %v8455_v29  ;;  %v8485_v41 = vadd.f32 %v8420_v9, %v8418_v8  ;;  %v8488_v42 = vsub.s32 7, %v8416_v7 }
  0xeb   : > { %v522_v18 = vmul.f32 0.5, %v518_v10  ;;  %v8492_v43 = vadd.f32 %v8472_v36, %v8458_v30  ;;  %v8496_v44 = vadd.f32 %v8475_v37, %v8461_v31  ;;  %v8501_v47 = vsub.s32 6, %v8416_v7 }
  0xec   : > { %v519_v48 = vadd.f32 %v8450_v27, %v8448_v26  ;;  %v520_v59 = vadd.f32 %v8455_v29, %v8453_v28  ;;  %v8517_v60 = vsub.f32 %v487_v13, %v495_v15  ;;  %v8519_v61 = vsub.f32 %v491_v14, %v499_v16 }
  0xed   : > { %v567_v24 = vrot.slane %v522_v18, %v8425_v11  ;;  %v553_v25 = vrot.slane %v522_v18, %v8428_v12  ;;  %v574_v32 = vrot.slane %v522_v18, %v8438_v19  ;;  %v560_v33 = vrot.slane %v522_v18, %v8441_v20 }
  0xee   : > { %v588_v45 = vrot.slane %v522_v18, %v8466_v34  ;;  %v581_v46 = vrot.slane %v522_v18, %v8469_v35  ;;  %v529_v49 = vsub.f32 %v8492_v43, %v8496_v44  ;;  %v602_v50 = vrot.slane %v522_v18, %v8488_v42 }
  0xef   : > { %569 = vbcast.lane.b32.xlu1 %v567_v24, 256  ;;  %555 = vbcast.lane.b32.xlu0 %v553_v25, 256  ;;  %v595_v51 = vrot.slane %v522_v18, %v8501_v47  ;;  %v523_v52 = vmul.f32 0.5, %v519_v48  ;;  %v8524_v63 = vadd.f32 %v8519_v61, %v8517_v60  ;;  %v524_v1 = vmul.f32 0.5, %v520_v59 }
  0xf0   : > { %v8528_v2 = vsub.f32 %v8435_v17, %v496_v22  ;;  %v8530_v3 = vsub.f32 %v492_v21, %v500_v23  ;;  %v521_v18 = vadd.f32 %v8496_v44, %v8492_v43  ;;  %v8548_v24 = vsub.f32 %v8458_v30, %v8472_v36 }
  0xf1   : > { %v616_v53 = vrot.slane %v523_v52, %v8441_v20  ;;  %v609_v54 = vrot.slane %v523_v52, %v8428_v12  ;;  %v630_v55 = vrot.slane %v523_v52, %v8438_v19  ;;  %v623_v56 = vrot.slane %v523_v52, %v8425_v11 }
  0xf2   : > { %v644_v57 = vrot.slane %v523_v52, %v8466_v34  ;;  %v637_v58 = vrot.slane %v523_v52, %v8469_v35  ;;  %v658_v62 = vrot.slane %v523_v52, %v8488_v42  ;;  %v651_v0 = vrot.slane %v523_v52, %v8501_v47 }
  0xf3   : > { %576 = vbcast.lane.b32.xlu1 %v574_v32, 256  ;;  %562 = vbcast.lane.b32.xlu0 %v560_v33, 256  ;;  %v8534_v4 = vadd.f32 %v8530_v3, %v8528_v2  ;;  %v672_v10 = vrot.slane %v524_v1, %v8441_v20  ;;  %v665_v13 = vrot.slane %v524_v1, %v8428_v12  ;;  %v525_v23 = vmul.f32 0.5, %v521_v18 }
  0xf4   : > { %v686_v14 = vrot.slane %v524_v1, %v8438_v19  ;;  %v679_v15 = vrot.slane %v524_v1, %v8425_v11  ;;  %v700_v16 = vrot.slane %v524_v1, %v8466_v34  ;;  %v693_v17 = vrot.slane %v524_v1, %v8469_v35 }
  0xf5   : > { %v714_v21 = vrot.slane %v524_v1, %v8488_v42  ;;  %v707_v22 = vrot.slane %v524_v1, %v8501_v47  ;;  %v8552_v25 = vsub.f32 %v8461_v31, %v8475_v37  ;;  %v728_v33 = vrot.slane %v525_v23, %v8441_v20 }
  0xf6   : > { %v735_v30 = vrot.slane %v525_v23, %v8425_v11  ;;  %v756_v31 = vrot.slane %v525_v23, %v8466_v34  ;;  %v749_v36 = vrot.slane %v525_v23, %v8469_v35  ;;  %v770_v37 = vrot.slane %v525_v23, %v8488_v42 }
  0xf7   : > { %590 = vbcast.lane.b32.xlu1 %v588_v45, 256  ;;  %583 = vbcast.lane.b32.xlu0 %v581_v46, 256  ;;  %v8556_v32 = vadd.f32 %v8552_v25, %v8548_v24  ;;  %v721_v45 = vrot.slane %v525_v23, %v8428_v12  ;;  %v742_v46 = vrot.slane %v525_v23, %v8438_v19  ;;  %vm4008_vm2 = vcmask 31744  }
  0xf8   : > { %v763_v48 = vrot.slane %v525_v23, %v8501_v47  ;;  %vm4041_vm3 = vcmask 48128   ;;  %vm4074_vm4 = vcmask 64512   ;;  %vm4107_vm5 = vcmask 80896  }
  0xf9   : > { %vm4140_vm6 = vcmask 97280   ;;  %vm4173_vm7 = vcmask 113664   ;;  %vm6990_vm8 = vcmask 1040384   ;;  %vm7199_vm9 = vcmask 130048  }
  0xfb   : > { %604 = vbcast.lane.b32.xlu1 %v602_v50, 256  ;;  %597 = vbcast.lane.b32.xlu0 %v595_v51, 256  ;;  %v530_v50 = vmul.f32 0.5, %v526_v38 }
  0xfd   : > { %v784_v51 = vrot.slane %v530_v50, %v8441_v20  ;;  %v777_v52 = vrot.slane %v530_v50, %v8428_v12  ;;  %v812_v5 = vrot.slane %v530_v50, %v8466_v34  ;;  %v805_v6 = vrot.slane %v530_v50, %v8469_v35 }
  0xfe   : > { %v826_v38 = vrot.slane %v530_v50, %v8488_v42 }
  0xff   : > { %618 = vbcast.lane.b32.xlu1 %v616_v53, 256  ;;  %611 = vbcast.lane.b32.xlu0 %v609_v54, 256  ;;  %v542_v53 = vsub.f32 %v8418_v8, %v8420_v9  ;;  %v798_v54 = vrot.slane %v530_v50, %v8438_v19 }
 0x103   : > { %632 = vbcast.lane.b32.xlu1 %v630_v55, 256  ;;  %625 = vbcast.lane.b32.xlu0 %v623_v56, 256  ;;  %v791_v55 = vrot.slane %v530_v50, %v8425_v11  ;;  %v819_v56 = vrot.slane %v530_v50, %v8501_v47  ;;  %v538_v50 = vmul.f32 0.5, %v8485_v41 }
 0x105   : > { %v1055_v41 = vrot.slane %v538_v50, %v8438_v19 }
 0x107   : > { %646 = vbcast.lane.b32.xlu1 %v644_v57, 256  ;;  %639 = vbcast.lane.b32.xlu0 %v637_v58, 256  ;;  %v531_v57 = vmul.f32 0.5, %v527_v39 }
 0x109   : > { %v840_v58 = vrot.slane %v531_v57, %v8441_v20  ;;  %v833_v59 = vrot.slane %v531_v57, %v8428_v12  ;;  %v868_v26 = vrot.slane %v531_v57, %v8466_v34  ;;  %v861_v27 = vrot.slane %v531_v57, %v8469_v35 }
 0x10a   : > { %v882_v39 = vrot.slane %v531_v57, %v8488_v42 }
 0x10b   : > { %660 = vbcast.lane.b32.xlu1 %v658_v62, 256  ;;  %653 = vbcast.lane.b32.xlu0 %v651_v0, 256  ;;  %v854_v62 = vrot.slane %v531_v57, %v8438_v19  ;;  %v847_v0 = vrot.slane %v531_v57, %v8425_v11 }
 0x10f   : > { %674 = vbcast.lane.b32.xlu1 %v672_v10, 256  ;;  %667 = vbcast.lane.b32.xlu0 %v665_v13, 256  ;;  %v875_v10 = vrot.slane %v531_v57, %v8501_v47  ;;  %v532_v13 = vmul.f32 0.5, %v528_v40 }
 0x111   : > { %v924_v18 = vrot.slane %v532_v13, %v8466_v34  ;;  %v938_v29 = vrot.slane %v532_v13, %v8488_v42  ;;  %v931_v40 = vrot.slane %v532_v13, %v8501_v47 }
 0x113   : > { %688 = vbcast.lane.b32.xlu1 %v686_v14, 256  ;;  %681 = vbcast.lane.b32.xlu0 %v679_v15, 256  ;;  %v896_v14 = vrot.slane %v532_v13, %v8441_v20  ;;  %v889_v15 = vrot.slane %v532_v13, %v8428_v12 }
 0x117   : > { %702 = vbcast.lane.b32.xlu1 %v700_v16, 256  ;;  %695 = vbcast.lane.b32.xlu0 %v693_v17, 256  ;;  %v910_v16 = vrot.slane %v532_v13, %v8438_v19  ;;  %v903_v17 = vrot.slane %v532_v13, %v8425_v11 }
 0x11b   : > { %716 = vbcast.lane.b32.xlu1 %v714_v21, 256  ;;  %709 = vbcast.lane.b32.xlu0 %v707_v22, 256  ;;  %v917_v21 = vrot.slane %v532_v13, %v8469_v35  ;;  %v533_v22 = vmul.f32 0.5, %v529_v49 }
 0x11d   : > { %v952_v23 = vrot.slane %v533_v22, %v8441_v20  ;;  %v980_v43 = vrot.slane %v533_v22, %v8466_v34  ;;  %v973_v44 = vrot.slane %v533_v22, %v8469_v35 }
 0x11f   : > { %730 = vbcast.lane.b32.xlu1 %v728_v33, 256  ;;  %723 = vbcast.lane.b32.xlu0 %v721_v45, 256  ;;  %v945_v33 = vrot.slane %v533_v22, %v8428_v12  ;;  %v966_v45 = vrot.slane %v533_v22, %v8438_v19 }
 0x123   : > { %744 = vbcast.lane.b32.xlu1 %v742_v46, 256  ;;  %737 = vbcast.lane.b32.xlu0 %v735_v30, 256  ;;  %v959_v46 = vrot.slane %v533_v22, %v8425_v11 }
 0x127   : > { %758 = vbcast.lane.b32.xlu1 %v756_v31, 256  ;;  %751 = vbcast.lane.b32.xlu0 %v749_v36, 256 }
 0x12b   : > { %772 = vbcast.lane.b32.xlu1 %v770_v37, 256  ;;  %765 = vbcast.lane.b32.xlu0 %v763_v48, 256  ;;  %v994_v37 = vrot.slane %v533_v22, %v8488_v42  ;;  %v987_v48 = vrot.slane %v533_v22, %v8501_v47 }
 0x12f   : > { %786 = vbcast.lane.b32.xlu1 %v784_v51, 256  ;;  %779 = vbcast.lane.b32.xlu0 %v777_v52, 256 }
 0x133   : > { %800 = vbcast.lane.b32.xlu1 %v798_v54, 256  ;;  %793 = vbcast.lane.b32.xlu0 %v791_v55, 256  ;;  %v1041_v55 = vrot.slane %v538_v50, %v8441_v20 }
 0x137   : > { %814 = vbcast.lane.b32.xlu1 %v812_v5, 256  ;;  %807 = vbcast.lane.b32.xlu0 %v805_v6, 256  ;;  %v1034_v5 = vrot.slane %v538_v50, %v8428_v12 }
 0x13b   : > { %828 = vbcast.lane.b32.xlu1 %v826_v38, 256  ;;  %821 = vbcast.lane.b32.xlu0 %v819_v56, 256  ;;  %v1048_v56 = vrot.slane %v538_v50, %v8425_v11 }
 0x13f   : > { %842 = vbcast.lane.b32.xlu1 %v840_v58, 256  ;;  %835 = vbcast.lane.b32.xlu0 %v833_v59, 256  ;;  %v1069_v59 = vrot.slane %v538_v50, %v8466_v34 }
 0x143   : > { %856 = vbcast.lane.b32.xlu1 %v854_v62, 256  ;;  %849 = vbcast.lane.b32.xlu0 %v847_v0, 256  ;;  %v1062_v62 = vrot.slane %v538_v50, %v8469_v35 }
 0x147   : > { %870 = vbcast.lane.b32.xlu1 %v868_v26, 256  ;;  %863 = vbcast.lane.b32.xlu0 %v861_v27, 256  ;;  %v1083_v27 = vrot.slane %v538_v50, %v8488_v42 }
 0x14b   : > { %884 = vbcast.lane.b32.xlu1 %v882_v39, 256  ;;  %877 = vbcast.lane.b32.xlu0 %v875_v10, 256  ;;  %v1076_v39 = vrot.slane %v538_v50, %v8501_v47  ;;  %v539_v10 = vmul.f32 0.5, %v8524_v63 }
 0x14d   : > { %v1104_v63 = vrot.slane %v539_v10, %v8425_v11  ;;  %v1125_v22 = vrot.slane %v539_v10, %v8466_v34 }
 0x14f   : > { %898 = vbcast.lane.b32.xlu1 %v896_v14, 256  ;;  %891 = vbcast.lane.b32.xlu0 %v889_v15, 256  ;;  %v1097_v15 = vrot.slane %v539_v10, %v8441_v20 }
 0x153   : > { %912 = vbcast.lane.b32.xlu1 %v910_v16, 256  ;;  %905 = vbcast.lane.b32.xlu0 %v903_v17, 256  ;;  %v1090_v16 = vrot.slane %v539_v10, %v8428_v12 }
 0x157   : > { %926 = vbcast.lane.b32.xlu1 %v924_v18, 256  ;;  %919 = vbcast.lane.b32.xlu0 %v917_v21, 256  ;;  %v1111_v21 = vrot.slane %v539_v10, %v8438_v19 }
 0x15b   : > { %940 = vbcast.lane.b32.xlu1 %v938_v29, 256  ;;  %933 = vbcast.lane.b32.xlu0 %v931_v40, 256 }
 0x15f   : > { %954 = vbcast.lane.b32.xlu1 %v952_v23, 256  ;;  %947 = vbcast.lane.b32.xlu0 %v945_v33, 256  ;;  %v1118_v23 = vrot.slane %v539_v10, %v8469_v35 }
 0x161   : > { %v8612_v30 = vpop.permute.xlu1 %569  ;;  %v8614_v31 = vpop.permute.xlu0 %555 }
 0x163   : > { %968 = vbcast.lane.b32.xlu1 %v966_v45, 256  ;;  %961 = vbcast.lane.b32.xlu0 %v959_v46, 256  ;;  %v1139_v46 = vrot.slane %v539_v10, %v8488_v42 }
 0x165   : > { %v8618_v49 = vpop.permute.xlu1 %576  ;;  %v8620_v36 = vpop.permute.xlu0 %562 }
 0x167   : > { %982 = vbcast.lane.b32.xlu1 %v980_v43, 256  ;;  %975 = vbcast.lane.b32.xlu0 %v973_v44, 256  ;;  %v1132_v43 = vrot.slane %v539_v10, %v8501_v47  ;;  %v540_v44 = vmul.f32 0.5, %v8534_v4 }
 0x169   : > { %v8625_v51 = vpop.permute.xlu1 %590  ;;  %v8627_v52 = vpop.permute.xlu0 %583  ;;  %v1153_v50 = vrot.slane %v540_v44, %v8441_v20  ;;  %v1160_v4 = vrot.slane %v540_v44, %v8425_v11 }
 0x16b   : > { %996 = vbcast.lane.b32.xlu1 %v994_v37, 256  ;;  %989 = vbcast.lane.b32.xlu0 %v987_v48, 256 }
 0x16d   : > { %v8633_v6 = vpop.permute.xlu1 %604  ;;  %v8635_v38 = vpop.permute.xlu0 %597 }
 0x16f   : > { %1043 = vbcast.lane.b32.xlu1 %v1041_v55, 256  ;;  %1036 = vbcast.lane.b32.xlu0 %v1034_v5, 256  ;;  %v1146_v55 = vrot.slane %v540_v44, %v8428_v12 }
 0x171   : > { %v8639_v57 = vpop.permute.xlu1 %618  ;;  %v8641_v58 = vpop.permute.xlu0 %611 }
 0x173   : > { %1057 = vbcast.lane.b32.xlu1 %v1055_v41, 256  ;;  %1050 = vbcast.lane.b32.xlu0 %v1048_v56, 256  ;;  %v1167_v56 = vrot.slane %v540_v44, %v8438_v19 }
 0x175   : > { %v8645_v0 = vpop.permute.xlu1 %632  ;;  %v8647_v26 = vpop.permute.xlu0 %625 }
 0x177   : > { %1071 = vbcast.lane.b32.xlu1 %v1069_v59, 256  ;;  %1064 = vbcast.lane.b32.xlu0 %v1062_v62, 256 }
 0x179   : > { %v8652_v13 = vpop.permute.xlu1 %646  ;;  %v8654_v14 = vpop.permute.xlu0 %639 }
 0x17b   : > { %1085 = vbcast.lane.b32.xlu1 %v1083_v27, 256  ;;  %1078 = vbcast.lane.b32.xlu0 %v1076_v39, 256  ;;  %v1181_v27 = vrot.slane %v540_v44, %v8466_v34  ;;  %v1174_v39 = vrot.slane %v540_v44, %v8469_v35 }
 0x17d   : > { %v8658_v17 = vpop.permute.xlu1 %660  ;;  %v8660_v18 = vpop.permute.xlu0 %653 }
 0x17f   : > { %1099 = vbcast.lane.b32.xlu1 %v1097_v15, 256  ;;  %1092 = vbcast.lane.b32.xlu0 %v1090_v16, 256  ;;  %v1195_v16 = vrot.slane %v540_v44, %v8488_v42 }
 0x181   : > { %v8664_v29 = vpop.permute.xlu1 %674  ;;  %v8666_v40 = vpop.permute.xlu0 %667 }
 0x183   : > { %1113 = vbcast.lane.b32.xlu1 %v1111_v21, 256  ;;  %1106 = vbcast.lane.b32.xlu0 %v1104_v63, 256  ;;  %v1188_v21 = vrot.slane %v540_v44, %v8501_v47  ;;  %v541_v63 = vmul.f32 0.5, %v8556_v32 }
 0x185   : > { %v8670_v33 = vpop.permute.xlu1 %688  ;;  %v8672_v45 = vpop.permute.xlu0 %681  ;;  %v1223_v44 = vrot.slane %v541_v63, %v8438_v19  ;;  %v1216_v32 = vrot.slane %v541_v63, %v8425_v11  ;;  %v1244_v54 = vrot.slane %v541_v63, %v8501_v47 }
 0x186   : > { %14504 = vst [vmem:[#allocation33_spill] sm:$0xff] %v8672_v45 }
 0x187   : > { %1127 = vbcast.lane.b32.xlu1 %v1125_v22, 256  ;;  %1120 = vbcast.lane.b32.xlu0 %v1118_v23, 256 }
 0x189   : > { %v8677_v37 = vpop.permute.xlu1 %702  ;;  %v8679_v48 = vpop.permute.xlu0 %695 }
 0x18a   : > { %14505 = vst [vmem:[#allocation34_spill] sm:$0xff] %v8677_v37  ;;  %14506 = vst [vmem:[#allocation35_spill] sm:$0xff] %v8679_v48 }
 0x18b   : > { %1141 = vbcast.lane.b32.xlu1 %v1139_v46, 256  ;;  %1134 = vbcast.lane.b32.xlu0 %v1132_v43, 256  ;;  %v1209_v46 = vrot.slane %v541_v63, %v8441_v20  ;;  %v1202_v43 = vrot.slane %v541_v63, %v8428_v12 }
 0x18d   : > { %v8683_v5 = vpop.permute.xlu1 %716  ;;  %v8685_v41 = vpop.permute.xlu0 %709 }
 0x18e   : > { %14507 = vst [vmem:[#allocation36_spill] sm:$0xff] %v8683_v5  ;;  %14508 = vst [vmem:[#allocation37_spill] sm:$0xff] %v8685_v41 }
 0x18f   : > { %1155 = vbcast.lane.b32.xlu1 %v1153_v50, 256  ;;  %1148 = vbcast.lane.b32.xlu0 %v1146_v55, 256 }
 0x191   : > { %v8689_v59 = vpop.permute.xlu1 %730  ;;  %v8691_v62 = vpop.permute.xlu0 %723 }
 0x192   : > { %14509 = vst [vmem:[#allocation38_spill] sm:$0xff] %v8689_v59  ;;  %14510 = vst [vmem:[#allocation39_spill] sm:$0xff] %v8691_v62 }
 0x193   : > { %1169 = vbcast.lane.b32.xlu1 %v1167_v56, 256  ;;  %1162 = vbcast.lane.b32.xlu0 %v1160_v4, 256 }
 0x195   : > { %v8695_v10 = vpop.permute.xlu1 %744  ;;  %v8697_v15 = vpop.permute.xlu0 %737 }
 0x196   : > { %14511 = vst [vmem:[#allocation40_spill] sm:$0xff] %v8695_v10  ;;  %14512 = vst [vmem:[#allocation41_spill] sm:$0xff] %v8697_v15 }
 0x197   : > { %1183 = vbcast.lane.b32.xlu1 %v1181_v27, 256  ;;  %1176 = vbcast.lane.b32.xlu0 %v1174_v39, 256  ;;  %v1237_v27 = vrot.slane %v541_v63, %v8466_v34  ;;  %v1230_v39 = vrot.slane %v541_v63, %v8469_v35 }
 0x199   : > { %v8702_v22 = vpop.permute.xlu1 %758  ;;  %v8704_v23 = vpop.permute.xlu0 %751 }
 0x19a   : > { %14513 = vst [vmem:[#allocation42_spill] sm:$0xff] %v8702_v22  ;;  %14514 = vst [vmem:[#allocation43_spill] sm:$0xff] %v8704_v23 }
 0x19b   : > { %1197 = vbcast.lane.b32.xlu1 %v1195_v16, 256  ;;  %1190 = vbcast.lane.b32.xlu0 %v1188_v21, 256 }
 0x19d   : > { %v8708_v50 = vpop.permute.xlu1 %772  ;;  %v8710_v55 = vpop.permute.xlu0 %765 }
 0x19e   : > { %14515 = vst [vmem:[#allocation44_spill] sm:$0xff] %v8708_v50  ;;  %14516 = vst [vmem:[#allocation45_spill] sm:$0xff] %v8710_v55 }
 0x19f   : > { %1211 = vbcast.lane.b32.xlu1 %v1209_v46, 256  ;;  %1204 = vbcast.lane.b32.xlu0 %v1202_v43, 256  ;;  %v1251_v46 = vrot.slane %v541_v63, %v8488_v42  ;;  %v546_v43 = vmul.f32 0.5, %v542_v53 }
 0x1a1   : > { %v8714_v56 = vpop.permute.xlu1 %786  ;;  %v8716_v4 = vpop.permute.xlu0 %779  ;;  %v1258_v1 = vrot.slane %v546_v43, %v8428_v12  ;;  %v1279_v8 = vrot.slane %v546_v43, %v8438_v19  ;;  %v1272_v9 = vrot.slane %v546_v43, %v8425_v11  ;;  %v1300_v22 = vrot.slane %v546_v43, %v8501_v47 }
 0x1a3   : > { %1225 = vbcast.lane.b32.xlu1 %v1223_v44, 256  ;;  %1218 = vbcast.lane.b32.xlu0 %v1216_v32, 256  ;;  %v1265_v32 = vrot.slane %v546_v43, %v8441_v20 }
 0x1a5   : > { %v8720_v16 = vpop.permute.xlu1 %800  ;;  %v8722_v21 = vpop.permute.xlu0 %793 }
 0x1a7   : > { %1239 = vbcast.lane.b32.xlu1 %v1237_v27, 256  ;;  %1232 = vbcast.lane.b32.xlu0 %v1230_v39, 256  ;;  %v1293_v39 = vrot.slane %v546_v43, %v8466_v34 }
 0x1a9   : > { %v8729_v44 = vpop.permute.xlu1 %814  ;;  %v8731_v28 = vpop.permute.xlu0 %807 }
 0x1ab   : > { %1253 = vbcast.lane.b32.xlu1 %v1251_v46, 256  ;;  %1246 = vbcast.lane.b32.xlu0 %v1244_v54, 256  ;;  %v1286_v54 = vrot.slane %v546_v43, %v8469_v35 }
 0x1ad   : > { %v8735_v27 = vpop.permute.xlu1 %828  ;;  %v8737_v55 = vpop.permute.xlu0 %821 }
 0x1af   : > { %1267 = vbcast.lane.b32.xlu1 %v1265_v32, 256  ;;  %1260 = vbcast.lane.b32.xlu0 %v1258_v1, 256  ;;  %v1307_v32 = vrot.slane %v546_v43, %v8488_v42  ;;  %v14517_v1 = vsub.f32 %v8517_v60, %v8519_v61 }
 0x1b1   : > { %v8741_v53 = vpop.permute.xlu1 %842  ;;  %v8743_v63 = vpop.permute.xlu0 %835  ;;  %v547_v23 = vmul.f32 0.5, %v14517_v1 }
 0x1b3   : > { %1281 = vbcast.lane.b32.xlu1 %v1279_v8, 256  ;;  %1274 = vbcast.lane.b32.xlu0 %v1272_v9, 256  ;;  %v1321_v9 = vrot.slane %v547_v23, %v8441_v20  ;;  %v1314_v10 = vrot.slane %v547_v23, %v8428_v12  ;;  %v1335_v60 = vrot.slane %v547_v23, %v8438_v19 }
 0x1b4   : > { %v1328_v61 = vrot.slane %v547_v23, %v8425_v11  ;;  %v1356_v5 = vrot.slane %v547_v23, %v8501_v47 }
 0x1b5   : > { %v8747_v46 = vpop.permute.xlu1 %856  ;;  %v8749_v50 = vpop.permute.xlu0 %849 }
 0x1b7   : > { %1295 = vbcast.lane.b32.xlu1 %v1293_v39, 256  ;;  %1288 = vbcast.lane.b32.xlu0 %v1286_v54, 256 }
 0x1b9   : > { %v8756_v8 = vpop.permute.xlu1 %870  ;;  %v8758_v15 = vpop.permute.xlu0 %863 }
 0x1bb   : > { %1309 = vbcast.lane.b32.xlu1 %v1307_v32, 256  ;;  %1302 = vbcast.lane.b32.xlu0 %v1300_v22, 256  ;;  %v1349_v32 = vrot.slane %v547_v23, %v8466_v34  ;;  %v1342_v22 = vrot.slane %v547_v23, %v8469_v35 }
 0x1bd   : > { %v8762_v39 = vpop.permute.xlu1 %884  ;;  %v8764_v62 = vpop.permute.xlu0 %877 }
 0x1bf   : > { %1323 = vbcast.lane.b32.xlu1 %v1321_v9, 256  ;;  %1316 = vbcast.lane.b32.xlu0 %v1314_v10, 256  ;;  %v1363_v9 = vrot.slane %v547_v23, %v8488_v42  ;;  %v14519_v10 = vsub.f32 %v8528_v2, %v8530_v3 }
 0x1c1   : > { %v8768_v43 = vpop.permute.xlu1 %898  ;;  %v8770_v54 = vpop.permute.xlu0 %891  ;;  %v548_v41 = vmul.f32 0.5, %v14519_v10 }
 0x1c3   : > { %1337 = vbcast.lane.b32.xlu1 %v1335_v60, 256  ;;  %1330 = vbcast.lane.b32.xlu0 %v1328_v61, 256  ;;  %v1377_v61 = vrot.slane %v548_v41, %v8441_v20  ;;  %v1370_v37 = vrot.slane %v548_v41, %v8428_v12  ;;  %v1391_v2 = vrot.slane %v548_v41, %v8438_v19 }
 0x1c4   : > { %v1384_v3 = vrot.slane %v548_v41, %v8425_v11 }
 0x1c5   : > { %v8774_v1 = vpop.permute.xlu1 %912  ;;  %v8776_v59 = vpop.permute.xlu0 %905 }
 0x1c6   : > { %14518 = vst [vmem:[#allocation46_spill] sm:$0xff] %v8776_v59 }
 0x1c7   : > { %1351 = vbcast.lane.b32.xlu1 %v1349_v32, 256  ;;  %1344 = vbcast.lane.b32.xlu0 %v1342_v22, 256 }
 0x1c9   : > { %v8783_v60 = vpop.permute.xlu1 %926  ;;  %v8785_v48 = vpop.permute.xlu0 %919 }
 0x1ca   : > { %14520 = vst [vmem:[#allocation47_spill] sm:$0xff] %v8783_v60  ;;  %14521 = vst [vmem:[#allocation48_spill] sm:$0xff] %v8785_v48  ;;  %v7960_v60 = vmov 1934713408  }
 0x1cb   : > { %1365 = vbcast.lane.b32.xlu1 %v1363_v9, 256  ;;  %1358 = vbcast.lane.b32.xlu0 %v1356_v5, 256  ;;  %v1405_v9 = vrot.slane %v548_v41, %v8466_v34  ;;  %v1398_v5 = vrot.slane %v548_v41, %v8469_v35  ;;  %v1528_v59 = vunpack.c.l.s4 %v7960_v60  ;;  %v8832_v60 = vsel %vm998_vm0, %v8620_v36, %v8714_v56 }
 0x1cd   : > { %v8789_v32 = vpop.permute.xlu1 %940  ;;  %v8791_v45 = vpop.permute.xlu0 %933 }
 0x1ce   : > { %14522 = vst [vmem:[#allocation49_spill] sm:$0xff] %v8789_v32  ;;  %14523 = vst [vmem:[#allocation50_spill] sm:$0xff] %v8791_v45 }
 0x1cf   : > { %1379 = vbcast.lane.b32.xlu1 %v1377_v61, 256  ;;  %1372 = vbcast.lane.b32.xlu0 %v1370_v37, 256  ;;  %v1419_v61 = vrot.slane %v548_v41, %v8488_v42  ;;  %v14528_v37 = vsub.f32 %v8548_v24, %v8552_v25 }
 0x1d1   : > { %v8795_v23 = vpop.permute.xlu1 %954  ;;  %v8797_v22 = vpop.permute.xlu0 %947  ;;  %v549_v45 = vmul.f32 0.5, %v14528_v37 }
 0x1d2   : > { %14524 = vst [vmem:[#allocation51_spill] sm:$0xff] %v8795_v23  ;;  %14525 = vst [vmem:[#allocation52_spill] sm:$0xff] %v8797_v22  ;;  %v1412_v22 = vrot.slane %v548_v41, %v8501_v47 }
 0x1d3   : > { %1393 = vbcast.lane.b32.xlu1 %v1391_v2, 256  ;;  %1386 = vbcast.lane.b32.xlu0 %v1384_v3, 256  ;;  %v7959_v2 = vmov 1983009808   ;;  %v1447_v41 = vrot.slane %v549_v45, %v8438_v19  ;;  %v8837_v19 = vsel %vm998_vm0, %v8614_v31, %v8716_v4  ;;  %v1468_v4 = vrot.slane %v549_v45, %v8501_v47 }
 0x1d4   : > { %v1513_v23 = vunpack.c.l.s4 %v7959_v2  ;;  %v8891_v47 = vsel %vm998_vm0, %v8625_v51, %v8729_v44 }
 0x1d5   : > { %v8801_v10 = vpop.permute.xlu1 %968  ;;  %v8803_v32 = vpop.permute.xlu0 %961 }
 0x1d6   : > { %14526 = vst [vmem:[#allocation53_spill] sm:$0xff] %v8801_v10  ;;  %14527 = vst [vmem:[#allocation54_spill] sm:$0xff] %v8803_v32  ;;  %v1433_v10 = vrot.slane %v549_v45, %v8441_v20  ;;  %v1514_v32 = vunpack.c.0.s8 %v1513_v23  ;;  %v1529_v20 = vunpack.c.0.s8 %v1528_v59  ;;  %v1454_v59 = vrot.slane %v549_v45, %v8469_v35 }
 0x1d7   : > { %1407 = vbcast.lane.b32.xlu1 %v1405_v9, 256  ;;  %1400 = vbcast.lane.b32.xlu0 %v1398_v5, 256  ;;  %v1426_v9 = vrot.slane %v549_v45, %v8428_v12  ;;  %v1440_v5 = vrot.slane %v549_v45, %v8425_v11  ;;  %v1461_v11 = vrot.slane %v549_v45, %v8466_v34 }
 0x1d8   : > { %v8859_v34 = vsel %vm998_vm0, %v8618_v49, %v8720_v16  ;;  %v1475_v35 = vrot.slane %v549_v45, %v8488_v42  ;;  %v8896_v45 = vsel %vm998_vm0, %v8627_v52, %v8731_v28 }
 0x1d9   : > { %v8810_v48 = vpop.permute.xlu1 %982  ;;  %v8812_v3 = vpop.permute.xlu0 %975 }
 0x1db   : > { %1421 = vbcast.lane.b32.xlu1 %v1419_v61, 256  ;;  %1414 = vbcast.lane.b32.xlu0 %v1412_v22, 256  ;;  %v8823_v61 = vsub.s32 %v1514_v32, %v8416_v7  ;;  %v8842_v32 = vsub.s32 %v1529_v20, %v8416_v7  ;;  %v8864_v7 = vsel %vm998_vm0, %v8612_v30, %v8722_v21  ;;  %v14393_v21 = vmov 0.0  }
 0x1dc   : > { %v8925_v20 = vsel %vm998_vm0, %v8633_v6, %v8735_v27 }
 0x1dd   : > { %v8816_v24 = vpop.permute.xlu1 %996  ;;  %v8818_v25 = vpop.permute.xlu0 %989  ;;  %14529 = vst [vmem:[#allocation55_spill] sm:$0xff] %v8823_v61  ;;  %v8846_v23 = vrot.slane %v8832_v60, %v8823_v61  ;;  %v8854_v31 = vrot.slane %v8837_v19, %v8823_v61  ;;  %v8874_v37 = vrot.slane %v8859_v34, %v8823_v61  ;;  %v8886_v42 = vrot.slane %v8864_v7, %v8823_v61 }
 0x1de   : > { %v8942_v6 = vrot.slane %v8925_v20, %v8823_v61 }
 0x1df   : > { %1435 = vbcast.lane.b32.xlu1 %v1433_v10, 256  ;;  %1428 = vbcast.lane.b32.xlu0 %v1426_v9, 256  ;;  %v8870_v10 = vrot.slane %v8846_v23, %v8842_v32  ;;  %v8882_v30 = vrot.slane %v8854_v31, %v8842_v32  ;;  %v8902_v9 = vrot.slane %v8874_v37, %v8842_v32 }
 0x1e0   : > { %v8916_v52 = vrot.slane %v8886_v42, %v8842_v32 }
 0x1e1   : > { %v8825_v22 = vpop.permute.xlu1 %1043  ;;  %v8827_v12 = vpop.permute.xlu0 %1036  ;;  %14534 = vst [vmem:[#allocation60_spill] sm:$0xff] %v8870_v10  ;;  %14537 = vst [vmem:[#allocation63_spill] sm:$0xff] %v8882_v30  ;;  %v1605_v2 = vcombine.high %v8870_v10, %v14393_v21  ;;  %v1556_v28 = vcombine.high %v8882_v30, %v14393_v21  ;;  %v8974_v30 = vrot.slane %v8942_v6, %v8842_v32 }
 0x1e2   : > { %14530 = vst [vmem:[#allocation56_spill] sm:$0xff] %v8825_v22  ;;  %14531 = vst [vmem:[#allocation57_spill] sm:$0xff] %v8827_v12 }
 0x1e3   : > { %1449 = vbcast.lane.b32.xlu1 %v1447_v41, 256  ;;  %1442 = vbcast.lane.b32.xlu0 %v1440_v5, 256  ;;  %14538 = vst [vmem:[#allocation64_spill] sm:$0xff] %v8902_v9  ;;  %v8906_v41 = vrot.slane %v8891_v47, %v8823_v61  ;;  %14541 = vst [vmem:[#allocation67_spill] sm:$0xff] %v8916_v52  ;;  %v8920_v5 = vrot.slane %v8896_v45, %v8823_v61 }
 0x1e4   : > { %14546 = vst [vmem:[#allocation72_spill] sm:$0xff] %v8974_v30 }
 0x1e5   : > { %v8848_v36 = vpop.permute.xlu1 %1057  ;;  %v8850_v56 = vpop.permute.xlu0 %1050 }
 0x1e6   : > { %14532 = vst [vmem:[#allocation58_spill] sm:$0xff] %v8848_v36  ;;  %14533 = vst [vmem:[#allocation59_spill] sm:$0xff] %v8850_v56  ;;  %v14587_v36 = vld [vmem:[#allocation50_spill] sm:$0xff] }
 0x1e7   : > { %1463 = vbcast.lane.b32.xlu1 %v1461_v11, 256  ;;  %1456 = vbcast.lane.b32.xlu0 %v1454_v59, 256  ;;  %v8930_v11 = vsel %vm998_vm0, %v8635_v38, %v8737_v55  ;;  %v1703_v59 = vcombine.high %v8902_v9, %v14393_v21  ;;  %v1654_v55 = vcombine.high %v8916_v52, %v14393_v21 }
 0x1e8   : > { %v8966_v9 = vsel %vm998_vm0, %v8641_v58, %v8743_v63 }
 0x1e9   : > { %v8876_v49 = vpop.permute.xlu1 %1071  ;;  %v8878_v16 = vpop.permute.xlu0 %1064 }
 0x1ea   : > { %14535 = vst [vmem:[#allocation61_spill] sm:$0xff] %v8876_v49  ;;  %14536 = vst [vmem:[#allocation62_spill] sm:$0xff] %v8878_v16 }
 0x1eb   : > { %1477 = vbcast.lane.b32.xlu1 %v1475_v35, 256  ;;  %1470 = vbcast.lane.b32.xlu0 %v1468_v4, 256  ;;  %v8938_v35 = vrot.slane %v8906_v41, %v8842_v32  ;;  %v8952_v4 = vrot.slane %v8920_v5, %v8842_v32 }
 0x1ed   : > { %v8908_v51 = vpop.permute.xlu1 %1085  ;;  %v8910_v44 = vpop.permute.xlu0 %1078  ;;  %14542 = vst [vmem:[#allocation68_spill] sm:$0xff] %v8938_v35  ;;  %14545 = vst [vmem:[#allocation71_spill] sm:$0xff] %v8952_v4  ;;  %v1801_v52 = vcombine.high %v8938_v35, %v14393_v21  ;;  %v1752_v58 = vcombine.high %v8952_v4, %v14393_v21  ;;  %v9002_v35 = vsel %vm998_vm0, %v8647_v26, %v8749_v50 }
 0x1ee   : > { %14539 = vst [vmem:[#allocation65_spill] sm:$0xff] %v8908_v51  ;;  %14540 = vst [vmem:[#allocation66_spill] sm:$0xff] %v8910_v44  ;;  %v1899_v4 = vcombine.high %v8974_v30, %v14393_v21  ;;  %v9038_v30 = vsel %vm998_vm0, %v8654_v14, %v8758_v15  ;;  %v14577_v51 = vld [vmem:[#allocation48_spill] sm:$0xff] }
 0x1ef   : > { %3113 = vrot.lane.b32.xlu1 %v1605_v2, %s7962_s29  ;;  %3111 = vrot.lane.b32.xlu0 %v1556_v28, %s7962_s29  ;;  %v8956_v2 = vrot.slane %v8930_v11, %v8823_v61  ;;  %v8961_v28 = vsel %vm998_vm0, %v8639_v57, %v8741_v53 }
 0x1f0   : > { %v8978_v57 = vrot.slane %v8961_v28, %v8823_v61 }
 0x1f1   : > { %v8944_v27 = vpop.permute.xlu1 %1099  ;;  %v8946_v38 = vpop.permute.xlu0 %1092  ;;  %v8988_v63 = vrot.slane %v8956_v2, %v8842_v32 }
 0x1f2   : > { %14543 = vst [vmem:[#allocation69_spill] sm:$0xff] %v8944_v27  ;;  %14544 = vst [vmem:[#allocation70_spill] sm:$0xff] %v8946_v38 }
 0x1f3   : > { %3117 = vrot.lane.b32.xlu1 %v1703_v59, %s7962_s29  ;;  %3115 = vrot.lane.b32.xlu0 %v1654_v55, %s7962_s29  ;;  %14549 = vst [vmem:[#allocation75_spill] sm:$0xff] %v8988_v63  ;;  %v8992_v59 = vrot.slane %v8966_v9, %v8823_v61  ;;  %v8997_v55 = vsel %vm998_vm0, %v8645_v0, %v8747_v46 }
 0x1f4   : > { %v9014_v0 = vrot.slane %v8997_v55, %v8823_v61  ;;  %v1850_v26 = vcombine.high %v8988_v63, %v14393_v21 }
 0x1f5   : > { %v8980_v53 = vpop.permute.xlu1 %1113  ;;  %v8982_v10 = vpop.permute.xlu0 %1106  ;;  %v9024_v50 = vrot.slane %v8992_v59, %v8842_v32 }
 0x1f6   : > { %14547 = vst [vmem:[#allocation73_spill] sm:$0xff] %v8980_v53  ;;  %14548 = vst [vmem:[#allocation74_spill] sm:$0xff] %v8982_v10  ;;  %v9010_v10 = vrot.slane %v8978_v57, %v8842_v32 }
 0x1f7   : > { %3121 = vrot.lane.b32.xlu1 %v1801_v52, %s7962_s29  ;;  %3119 = vrot.lane.b32.xlu0 %v1752_v58, %s7962_s29  ;;  %14553 = vst [vmem:[#allocation79_spill] sm:$0xff] %v9024_v50  ;;  %v9028_v52 = vrot.slane %v9002_v35, %v8823_v61  ;;  %v9033_v58 = vsel %vm998_vm0, %v8652_v13, %v8756_v8 }
 0x1f8   : > { %14550 = vst [vmem:[#allocation76_spill] sm:$0xff] %v9010_v10  ;;  %v1997_v63 = vcombine.high %v9010_v10, %v14393_v21  ;;  %v9050_v13 = vrot.slane %v9033_v58, %v8823_v61  ;;  %v1948_v14 = vcombine.high %v9024_v50, %v14393_v21  ;;  %v9074_v10 = vsel %vm998_vm0, %v8660_v18, %v8764_v62 }
 0x1f9   : > { %v9016_v46 = vpop.permute.xlu1 %1127  ;;  %v9018_v53 = vpop.permute.xlu0 %1120  ;;  %v9060_v15 = vrot.slane %v9028_v52, %v8842_v32 }
 0x1fa   : > { %14551 = vst [vmem:[#allocation77_spill] sm:$0xff] %v9016_v46  ;;  %14552 = vst [vmem:[#allocation78_spill] sm:$0xff] %v9018_v53  ;;  %v9046_v53 = vrot.slane %v9014_v0, %v8842_v32 }
 0x1fb   : > { %3125 = vrot.lane.b32.xlu1 %v1899_v4, %s7962_s29  ;;  %3123 = vrot.lane.b32.xlu0 %v1850_v26, %s7962_s29  ;;  %14557 = vst [vmem:[#allocation83_spill] sm:$0xff] %v9060_v15  ;;  %v9064_v4 = vrot.slane %v9038_v30, %v8823_v61  ;;  %v9069_v26 = vsel %vm998_vm0, %v8658_v17, %v8762_v39 }
 0x1fc   : > { %14554 = vst [vmem:[#allocation80_spill] sm:$0xff] %v9046_v53  ;;  %v2095_v50 = vcombine.high %v9046_v53, %v14393_v21  ;;  %v9086_v17 = vrot.slane %v9069_v26, %v8823_v61  ;;  %v2046_v18 = vcombine.high %v9060_v15, %v14393_v21  ;;  %v9110_v53 = vsel %vm998_vm0, %v8666_v40, %v8770_v54 }
 0x1fd   : > { %v9052_v8 = vpop.permute.xlu1 %1141  ;;  %v9054_v46 = vpop.permute.xlu0 %1134  ;;  %v9096_v62 = vrot.slane %v9064_v4, %v8842_v32 }
 0x1fe   : > { %14555 = vst [vmem:[#allocation81_spill] sm:$0xff] %v9052_v8  ;;  %14556 = vst [vmem:[#allocation82_spill] sm:$0xff] %v9054_v46  ;;  %v9082_v46 = vrot.slane %v9050_v13, %v8842_v32 }
 0x1ff   : > { %3129 = vrot.lane.b32.xlu1 %v1997_v63, %s7962_s29  ;;  %3127 = vrot.lane.b32.xlu0 %v1948_v14, %s7962_s29  ;;  %14561 = vst [vmem:[#allocation87_spill] sm:$0xff] %v9096_v62  ;;  %v9100_v63 = vrot.slane %v9074_v10, %v8823_v61  ;;  %v9105_v14 = vsel %vm998_vm0, %v8664_v29, %v8768_v43 }
 0x200   : > { %14558 = vst [vmem:[#allocation84_spill] sm:$0xff] %v9082_v46  ;;  %v2193_v15 = vcombine.high %v9082_v46, %v14393_v21  ;;  %v9122_v29 = vrot.slane %v9105_v14, %v8823_v61  ;;  %v2144_v40 = vcombine.high %v9096_v62, %v14393_v21  ;;  %v14567_v46 = vld [vmem:[#allocation46_spill] sm:$0xff] }
 0x201   : > { %v9088_v39 = vpop.permute.xlu1 %1155  ;;  %v9090_v8 = vpop.permute.xlu0 %1148  ;;  %v9132_v54 = vrot.slane %v9100_v63, %v8842_v32 }
 0x202   : > { %14559 = vst [vmem:[#allocation85_spill] sm:$0xff] %v9088_v39  ;;  %14560 = vst [vmem:[#allocation86_spill] sm:$0xff] %v9090_v8  ;;  %v9118_v8 = vrot.slane %v9086_v17, %v8842_v32  ;;  %v9154_v38 = vrot.slane %v9122_v29, %v8842_v32 }
 0x203   : > { %3133 = vrot.lane.b32.xlu1 %v2095_v50, %s7962_s29  ;;  %3131 = vrot.lane.b32.xlu0 %v2046_v18, %s7962_s29  ;;  %14565 = vst [vmem:[#allocation91_spill] sm:$0xff] %v9132_v54  ;;  %v9136_v50 = vrot.slane %v9110_v53, %v8823_v61  ;;  %v9141_v18 = vsel %vm998_vm0, %v8670_v33, %v8774_v1 }
 0x204   : > { %14562 = vst [vmem:[#allocation88_spill] sm:$0xff] %v9118_v8  ;;  %14566 = vst [vmem:[#allocation92_spill] sm:$0xff] %v9141_v18  ;;  %v2291_v62 = vcombine.high %v9118_v8, %v14393_v21  ;;  %v9158_v33 = vrot.slane %v9141_v18, %v8823_v61  ;;  %v14575_v8 = vld [vmem:[#allocation34_spill] sm:$0xff] }
 0x205   : > { %v9124_v43 = vpop.permute.xlu1 %1169  ;;  %v9126_v39 = vpop.permute.xlu0 %1162 }
 0x206   : > { %14563 = vst [vmem:[#allocation89_spill] sm:$0xff] %v9124_v43  ;;  %14564 = vst [vmem:[#allocation90_spill] sm:$0xff] %v9126_v39  ;;  %v14568_v43 = vld [vmem:[#allocation33_spill] sm:$0xff]  ;;  %v9190_v16 = vrot.slane %v9158_v33, %v8842_v32 }
 0x207   : > { %v9146_v39 = vsel %vm998_vm0, %v14568_v43, %v14567_v46  ;;  %3137 = vrot.lane.b32.xlu1 %v2193_v15, %s7962_s29  ;;  %3135 = vrot.lane.b32.xlu0 %v2144_v40, %s7962_s29  ;;  %14570 = vst [vmem:[#allocation33_spill] sm:$0xff] %v9154_v38  ;;  %v2242_v46 = vcombine.high %v9132_v54, %v14393_v21  ;;  %v14574_v40 = vld [vmem:[#allocation47_spill] sm:$0xff] }
 0x208   : > { %14569 = vst [vmem:[#allocation46_spill] sm:$0xff] %v9146_v39  ;;  %v9168_v15 = vrot.slane %v9136_v50, %v8842_v32  ;;  %v9172_v43 = vrot.slane %v9146_v39, %v8823_v61  ;;  %v9177_v44 = vsel %vm998_vm0, %v14575_v8, %v14574_v40  ;;  %v2389_v54 = vcombine.high %v9154_v38, %v14393_v21  ;;  %v14585_v38 = vld [vmem:[#allocation36_spill] sm:$0xff]  ;;  %v14607_v39 = vld [vmem:[#allocation54_spill] sm:$0xff] }
 0x209   : > { %v9160_v1 = vpop.permute.xlu1 %1183  ;;  %v9162_v27 = vpop.permute.xlu0 %1176  ;;  %14576 = vst [vmem:[#allocation47_spill] sm:$0xff] %v9177_v44  ;;  %14580 = vst [vmem:[#allocation48_spill] sm:$0xff] %v9190_v16  ;;  %v9194_v8 = vrot.slane %v9177_v44, %v8823_v61 }
 0x20a   : > { %14571 = vst [vmem:[#allocation93_spill] sm:$0xff] %v9160_v1  ;;  %14572 = vst [vmem:[#allocation94_spill] sm:$0xff] %v9162_v27  ;;  %v14578_v1 = vld [vmem:[#allocation35_spill] sm:$0xff] }
 0x20b   : > { %14573 = vst [vmem:[#allocation95_spill] sm:$0xff] %v9168_v15  ;;  %v9182_v27 = vsel %vm998_vm0, %v14578_v1, %v14577_v51  ;;  %3141 = vrot.lane.b32.xlu1 %v2291_v62, %s7962_s29  ;;  %3139 = vrot.lane.b32.xlu0 %v2242_v46, %s7962_s29  ;;  %v2340_v51 = vcombine.high %v9168_v15, %v14393_v21  ;;  %v14584_v46 = vld [vmem:[#allocation49_spill] sm:$0xff] }
 0x20c   : > { %14579 = vst [vmem:[#allocation34_spill] sm:$0xff] %v9182_v27  ;;  %v9204_v62 = vrot.slane %v9172_v43, %v8842_v32  ;;  %v9208_v1 = vrot.slane %v9182_v27, %v8823_v61  ;;  %v9213_v56 = vsel %vm998_vm0, %v14585_v38, %v14584_v46  ;;  %v2487_v15 = vcombine.high %v9190_v16, %v14393_v21  ;;  %v14595_v16 = vld [vmem:[#allocation38_spill] sm:$0xff]  ;;  %v14597_v27 = vld [vmem:[#allocation52_spill] sm:$0xff] }
 0x20d   : > { %v9196_v40 = vpop.permute.xlu1 %1197  ;;  %v9198_v49 = vpop.permute.xlu0 %1190  ;;  %14586 = vst [vmem:[#allocation49_spill] sm:$0xff] %v9213_v56  ;;  %v9226_v12 = vrot.slane %v9194_v8, %v8842_v32  ;;  %v9230_v38 = vrot.slane %v9213_v56, %v8823_v61 }
 0x20e   : > { %14581 = vst [vmem:[#allocation35_spill] sm:$0xff] %v9196_v40  ;;  %14582 = vst [vmem:[#allocation96_spill] sm:$0xff] %v9198_v49  ;;  %v14588_v40 = vld [vmem:[#allocation37_spill] sm:$0xff] }
 0x20f   : > { %14583 = vst [vmem:[#allocation97_spill] sm:$0xff] %v9204_v62  ;;  %v9218_v49 = vsel %vm998_vm0, %v14588_v40, %v14587_v36  ;;  %3145 = vrot.lane.b32.xlu1 %v2389_v54, %s7962_s29  ;;  %3143 = vrot.lane.b32.xlu0 %v2340_v51, %s7962_s29  ;;  %14590 = vst [vmem:[#allocation50_spill] sm:$0xff] %v9226_v12  ;;  %v2438_v36 = vcombine.high %v9204_v62, %v14393_v21  ;;  %v14594_v51 = vld [vmem:[#allocation51_spill] sm:$0xff] }
 0x210   : > { %14589 = vst [vmem:[#allocation36_spill] sm:$0xff] %v9218_v49  ;;  %v9240_v54 = vrot.slane %v9208_v1, %v8842_v32  ;;  %v9244_v40 = vrot.slane %v9218_v49, %v8823_v61  ;;  %v9249_v56 = vsel %vm998_vm0, %v14595_v16, %v14594_v51  ;;  %v2585_v62 = vcombine.high %v9226_v12, %v14393_v21  ;;  %v14604_v12 = vld [vmem:[#allocation40_spill] sm:$0xff] }
 0x211   : > { %v9232_v46 = vpop.permute.xlu1 %1211  ;;  %v9234_v22 = vpop.permute.xlu0 %1204  ;;  %14596 = vst [vmem:[#allocation51_spill] sm:$0xff] %v9249_v56  ;;  %v9262_v49 = vrot.slane %v9230_v38, %v8842_v32  ;;  %v9266_v16 = vrot.slane %v9249_v56, %v8823_v61 }
 0x212   : > { %14591 = vst [vmem:[#allocation37_spill] sm:$0xff] %v9232_v46  ;;  %14592 = vst [vmem:[#allocation98_spill] sm:$0xff] %v9234_v22  ;;  %v14598_v46 = vld [vmem:[#allocation39_spill] sm:$0xff] }
 0x213   : > { %14593 = vst [vmem:[#allocation99_spill] sm:$0xff] %v9240_v54  ;;  %v9254_v22 = vsel %vm998_vm0, %v14598_v46, %v14597_v27  ;;  %3149 = vrot.lane.b32.xlu1 %v2487_v15, %s7962_s29  ;;  %3147 = vrot.lane.b32.xlu0 %v2438_v36, %s7962_s29  ;;  %14600 = vst [vmem:[#allocation52_spill] sm:$0xff] %v9262_v49  ;;  %v2536_v27 = vcombine.high %v9240_v54, %v14393_v21  ;;  %v14603_v36 = vld [vmem:[#allocation53_spill] sm:$0xff] }
 0x214   : > { %14599 = vst [vmem:[#allocation38_spill] sm:$0xff] %v9254_v22  ;;  %v9274_v15 = vrot.slane %v9244_v40, %v8842_v32  ;;  %v9278_v46 = vrot.slane %v9254_v22, %v8823_v61  ;;  %v9283_v44 = vsel %vm998_vm0, %v14604_v12, %v14603_v36  ;;  %v2683_v54 = vcombine.high %v9262_v49, %v14393_v21 }
 0x215   : > { %v9268_v51 = vpop.permute.xlu1 %1225  ;;  %14605 = vst [vmem:[#allocation53_spill] sm:$0xff] %v9283_v44  ;;  %v9285_v56 = vpop.permute.xlu0 %1218  ;;  %v9298_v22 = vrot.slane %v9266_v16, %v8842_v32  ;;  %v9302_v12 = vrot.slane %v9283_v44, %v8823_v61 }
 0x216   : > { %14601 = vst [vmem:[#allocation39_spill] sm:$0xff] %v9268_v51  ;;  %14602 = vst [vmem:[#allocation100_spill] sm:$0xff] %v9274_v15  ;;  %v14608_v51 = vld [vmem:[#allocation41_spill] sm:$0xff] }
 0x217   : > { %14606 = vst [vmem:[#allocation40_spill] sm:$0xff] %v9285_v56  ;;  %v9290_v18 = vsel %vm998_vm0, %v14608_v51, %v14607_v39  ;;  %3153 = vrot.lane.b32.xlu1 %v2585_v62, %s7962_s29  ;;  %3151 = vrot.lane.b32.xlu0 %v2536_v27, %s7962_s29  ;;  %14610 = vst [vmem:[#allocation41_spill] sm:$0xff] %v9298_v22  ;;  %v2634_v39 = vcombine.high %v9274_v15, %v14393_v21  ;;  %v14613_v27 = vld [vmem:[#allocation42_spill] sm:$0xff] }
 0x218   : > { %14609 = vst [vmem:[#allocation54_spill] sm:$0xff] %v9290_v18  ;;  %v9310_v62 = vrot.slane %v9278_v46, %v8842_v32  ;;  %v9314_v51 = vrot.slane %v9290_v18, %v8823_v61  ;;  %v9319_v49 = vsel %vm998_vm0, %v14613_v27, %v8810_v48  ;;  %v2781_v15 = vcombine.high %v9298_v22, %v14393_v21 }
 0x219   : > { %v9304_v36 = vpop.permute.xlu1 %1239  ;;  %14614 = vst [vmem:[#allocation42_spill] sm:$0xff] %v9319_v49  ;;  %v9321_v56 = vpop.permute.xlu0 %1232  ;;  %v9334_v18 = vrot.slane %v9302_v12, %v8842_v32  ;;  %v9338_v48 = vrot.slane %v9319_v49, %v8823_v61 }
 0x21a   : > { %14611 = vst [vmem:[#allocation101_spill] sm:$0xff] %v9304_v36  ;;  %14612 = vst [vmem:[#allocation102_spill] sm:$0xff] %v9310_v62  ;;  %v14616_v36 = vld [vmem:[#allocation43_spill] sm:$0xff] }
 0x21b   : > { %14615 = vst [vmem:[#allocation103_spill] sm:$0xff] %v9321_v56  ;;  %v9326_v44 = vsel %vm998_vm0, %v14616_v36, %v8812_v3  ;;  %3157 = vrot.lane.b32.xlu1 %v2683_v54, %s7962_s29  ;;  %3155 = vrot.lane.b32.xlu0 %v2634_v39, %s7962_s29  ;;  %14618 = vst [vmem:[#allocation104_spill] sm:$0xff] %v9334_v18  ;;  %v2732_v3 = vcombine.high %v9310_v62, %v14393_v21  ;;  %v14621_v39 = vld [vmem:[#allocation44_spill] sm:$0xff] }
 0x21c   : > { %14617 = vst [vmem:[#allocation43_spill] sm:$0xff] %v9326_v44  ;;  %v9346_v54 = vrot.slane %v9314_v51, %v8842_v32  ;;  %v9350_v36 = vrot.slane %v9326_v44, %v8823_v61  ;;  %v9355_v22 = vsel %vm998_vm0, %v14621_v39, %v8816_v24  ;;  %v2879_v62 = vcombine.high %v9334_v18, %v14393_v21 }
 0x21d   : > { %v9340_v27 = vpop.permute.xlu1 %1253  ;;  %14622 = vst [vmem:[#allocation44_spill] sm:$0xff] %v9355_v22  ;;  %v9357_v56 = vpop.permute.xlu0 %1246  ;;  %v9370_v44 = vrot.slane %v9338_v48, %v8842_v32  ;;  %v9374_v24 = vrot.slane %v9355_v22, %v8823_v61 }
 0x21e   : > { %14619 = vst [vmem:[#allocation105_spill] sm:$0xff] %v9340_v27  ;;  %14620 = vst [vmem:[#allocation106_spill] sm:$0xff] %v9346_v54  ;;  %v14624_v27 = vld [vmem:[#allocation45_spill] sm:$0xff] }
 0x21f   : > { %14623 = vst [vmem:[#allocation107_spill] sm:$0xff] %v9357_v56  ;;  %v9362_v49 = vsel %vm998_vm0, %v14624_v27, %v8818_v25  ;;  %3161 = vrot.lane.b32.xlu1 %v2781_v15, %s7962_s29  ;;  %3159 = vrot.lane.b32.xlu0 %v2732_v3, %s7962_s29  ;;  %14626 = vst [vmem:[#allocation108_spill] sm:$0xff] %v9370_v44  ;;  %v2830_v25 = vcombine.high %v9346_v54, %v14393_v21 }
 0x220   : > { %14625 = vst [vmem:[#allocation45_spill] sm:$0xff] %v9362_v49  ;;  %v9382_v15 = vrot.slane %v9350_v36, %v8842_v32  ;;  %v9386_v27 = vrot.slane %v9362_v49, %v8823_v61  ;;  %v2977_v18 = vcombine.high %v9370_v44, %v14393_v21  ;;  %v9396_v54 = vrot.slane %v9374_v24, %v8842_v32 }
 0x221   : > { %v9376_v39 = vpop.permute.xlu1 %1267  ;;  %v9388_v3 = vpop.permute.xlu0 %1260 }
 0x222   : > { %14627 = vst [vmem:[#allocation109_spill] sm:$0xff] %v9376_v39  ;;  %14628 = vst [vmem:[#allocation110_spill] sm:$0xff] %v9382_v15  ;;  %v2928_v39 = vcombine.high %v9382_v15, %v14393_v21  ;;  %v9404_v49 = vrot.slane %v9386_v27, %v8842_v32  ;;  %v1526_v15 = vcombine.high %v8854_v31, %v14393_v21 }
 0x223   : > { %14629 = vst [vmem:[#allocation111_spill] sm:$0xff] %v9388_v3  ;;  %3165 = vrot.lane.b32.xlu1 %v2879_v62, %s7962_s29  ;;  %3163 = vrot.lane.b32.xlu0 %v2830_v25, %s7962_s29  ;;  %14630 = vst [vmem:[#allocation112_spill] sm:$0xff] %v9396_v54  ;;  %v1575_v62 = vcombine.high %v8846_v23, %v14393_v21  ;;  %v3075_v25 = vcombine.high %v9396_v54, %v14393_v21 }
 0x224   : > { %14632 = vst [vmem:[#allocation114_spill] sm:$0xff] %v9404_v49  ;;  %v1673_v23 = vcombine.high %v8874_v37, %v14393_v21  ;;  %v9432_v54 = vrot.slane %v1526_v15, %v8842_v32  ;;  %v1624_v31 = vcombine.high %v8886_v42, %v14393_v21  ;;  %v1771_v37 = vcombine.high %v8906_v41, %v14393_v21 }
 0x225   : > { %v9398_v56 = vpop.permute.xlu1 %1281  ;;  %v9406_v3 = vpop.permute.xlu0 %1274  ;;  %v1722_v42 = vcombine.high %v8920_v5, %v14393_v21  ;;  %v1869_v41 = vcombine.high %v8942_v6, %v14393_v21  ;;  %v1820_v5 = vcombine.high %v8956_v2, %v14393_v21  ;;  %v1967_v6 = vcombine.high %v8978_v57, %v14393_v21 }
 0x226   : > { %14631 = vst [vmem:[#allocation113_spill] sm:$0xff] %v9398_v56  ;;  %14633 = vst [vmem:[#allocation115_spill] sm:$0xff] %v9406_v3  ;;  %v3026_v56 = vcombine.high %v9404_v49, %v14393_v21  ;;  %v1918_v2 = vcombine.high %v8992_v59, %v14393_v21  ;;  %v2065_v57 = vcombine.high %v9014_v0, %v14393_v21 }
 0x227   : > { %3169 = vrot.lane.b32.xlu1 %v2977_v18, %s7962_s29  ;;  %3167 = vrot.lane.b32.xlu0 %v2928_v39, %s7962_s29  ;;  %v9425_v18 = vrot.slane %v1575_v62, %v8842_v32  ;;  %v9450_v62 = vrot.slane %v1624_v31, %v8842_v32  ;;  %v9468_v31 = vrot.slane %v1722_v42, %v8842_v32 }
 0x228   : > { %v9486_v42 = vrot.slane %v1820_v5, %v8842_v32  ;;  %v9504_v5 = vrot.slane %v1918_v2, %v8842_v32  ;;  %v2016_v59 = vcombine.high %v9028_v52, %v14393_v21  ;;  %v2163_v0 = vcombine.high %v9050_v13, %v14393_v21 }
 0x229   : > { %v9414_v44 = vpop.permute.xlu1 %1295  ;;  %v9420_v22 = vpop.permute.xlu0 %1288  ;;  %v2114_v52 = vcombine.high %v9064_v4, %v14393_v21  ;;  %v2261_v13 = vcombine.high %v9086_v17, %v14393_v21  ;;  %v2212_v4 = vcombine.high %v9100_v63, %v14393_v21  ;;  %v2359_v17 = vcombine.high %v9122_v29, %v14393_v21 }
 0x22a   : > { %14634 = vst [vmem:[#allocation116_spill] sm:$0xff] %v9414_v44  ;;  %14635 = vst [vmem:[#allocation117_spill] sm:$0xff] %v9420_v22  ;;  %v9522_v2 = vrot.slane %v2016_v59, %v8842_v32  ;;  %v2310_v63 = vcombine.high %v9136_v50, %v14393_v21  ;;  %v2457_v29 = vcombine.high %v9158_v33, %v14393_v21  ;;  %v14741_v44 = vld [vmem:[#allocation43_spill] sm:$0xff] }
 0x22b   : > { %3173 = vrot.lane.b32.xlu1 %v3075_v25, %s7962_s29  ;;  %3171 = vrot.lane.b32.xlu0 %v3026_v56, %s7962_s29  ;;  %v9443_v56 = vrot.slane %v1673_v23, %v8842_v32  ;;  %v9461_v23 = vrot.slane %v1771_v37, %v8842_v32  ;;  %v9479_v37 = vrot.slane %v1869_v41, %v8842_v32 }
 0x22c   : > { %v9497_v41 = vrot.slane %v1967_v6, %v8842_v32  ;;  %v9515_v6 = vrot.slane %v2065_v57, %v8842_v32  ;;  %v9533_v57 = vrot.slane %v2163_v0, %v8842_v32  ;;  %v9540_v59 = vrot.slane %v2114_v52, %v8842_v32 }
 0x22d   : > { %v9429_v39 = vpop.permute.xlu1 %1309  ;;  %v9436_v49 = vpop.permute.xlu0 %1302  ;;  %v9551_v0 = vrot.slane %v2261_v13, %v8842_v32  ;;  %v9558_v52 = vrot.slane %v2212_v4, %v8842_v32  ;;  %v9569_v13 = vrot.slane %v2359_v17, %v8842_v32  ;;  %v9576_v4 = vrot.slane %v2310_v63, %v8842_v32 }
 0x22e   : > { %14636 = vst [vmem:[#allocation118_spill] sm:$0xff] %v9429_v39  ;;  %14637 = vst [vmem:[#allocation119_spill] sm:$0xff] %v9436_v49  ;;  %v2408_v50 = vcombine.high %v9172_v43, %v14393_v21  ;;  %v9587_v17 = vrot.slane %v2457_v29, %v8842_v32  ;;  %v2555_v33 = vcombine.high %v9194_v8, %v14393_v21 }
 0x22f   : > { %3241 = vrot.lane.b32.xlu1 %v9425_v18, %s7963_s10  ;;  %3239 = vrot.lane.b32.xlu0 %v9432_v54, %s7963_s10  ;;  %v2506_v43 = vcombine.high %v9208_v1, %v14393_v21  ;;  %v2653_v8 = vcombine.high %v9230_v38, %v14393_v21  ;;  %v2604_v1 = vcombine.high %v9244_v40, %v14393_v21 }
 0x230   : > { %v9594_v63 = vrot.slane %v2408_v50, %v8842_v32  ;;  %v9605_v29 = vrot.slane %v2555_v33, %v8842_v32  ;;  %v2751_v38 = vcombine.high %v9266_v16, %v14393_v21  ;;  %v2702_v40 = vcombine.high %v9278_v46, %v14393_v21 }
 0x231   : > { %v9447_v15 = vpop.permute.xlu1 %1323  ;;  %v9454_v25 = vpop.permute.xlu0 %1316  ;;  %v9612_v50 = vrot.slane %v2506_v43, %v8842_v32  ;;  %v9623_v33 = vrot.slane %v2653_v8, %v8842_v32  ;;  %v9630_v43 = vrot.slane %v2604_v1, %v8842_v32  ;;  %v2849_v16 = vcombine.high %v9302_v12, %v14393_v21 }
 0x232   : > { %14638 = vst [vmem:[#allocation120_spill] sm:$0xff] %v9447_v15  ;;  %14639 = vst [vmem:[#allocation121_spill] sm:$0xff] %v9454_v25  ;;  %v9641_v8 = vrot.slane %v2751_v38, %v8842_v32  ;;  %v9648_v1 = vrot.slane %v2702_v40, %v8842_v32  ;;  %v2800_v46 = vcombine.high %v9314_v51, %v14393_v21 }
 0x233   : > { %3245 = vrot.lane.b32.xlu1 %v9443_v56, %s7963_s10  ;;  %3243 = vrot.lane.b32.xlu0 %v9450_v62, %s7963_s10  ;;  %v9659_v38 = vrot.slane %v2849_v16, %v8842_v32  ;;  %v2947_v12 = vcombine.high %v9338_v48, %v14393_v21  ;;  %v2898_v51 = vcombine.high %v9350_v36, %v14393_v21 }
 0x234   : > { %v9666_v40 = vrot.slane %v2800_v46, %v8842_v32  ;;  %v3045_v48 = vcombine.high %v9374_v24, %v14393_v21  ;;  %v2996_v36 = vcombine.high %v9386_v27, %v14393_v21  ;;  %v2883_v3 = vcombine.high %v14741_v44, %v14393_v21 }
 0x235   : > { %v9465_v15 = vpop.permute.xlu1 %1337  ;;  %v9472_v25 = vpop.permute.xlu0 %1330  ;;  %v9677_v16 = vrot.slane %v2947_v12, %v8842_v32  ;;  %v9684_v46 = vrot.slane %v2898_v51, %v8842_v32 }
 0x236   : > { %14640 = vst [vmem:[#allocation122_spill] sm:$0xff] %v9465_v15  ;;  %14641 = vst [vmem:[#allocation123_spill] sm:$0xff] %v9472_v25  ;;  %v9695_v12 = vrot.slane %v3045_v48, %v8842_v32 }
 0x237   : > { %3249 = vrot.lane.b32.xlu1 %v9461_v23, %s7963_s10  ;;  %3247 = vrot.lane.b32.xlu0 %v9468_v31, %s7963_s10 }
 0x239   : > { %v9483_v15 = vpop.permute.xlu1 %1351  ;;  %v9490_v25 = vpop.permute.xlu0 %1344 }
 0x23a   : > { %14642 = vst [vmem:[#allocation124_spill] sm:$0xff] %v9483_v15  ;;  %14643 = vst [vmem:[#allocation125_spill] sm:$0xff] %v9490_v25 }
 0x23b   : > { %3253 = vrot.lane.b32.xlu1 %v9479_v37, %s7963_s10  ;;  %3251 = vrot.lane.b32.xlu0 %v9486_v42, %s7963_s10 }
 0x23d   : > { %v9501_v15 = vpop.permute.xlu1 %1365  ;;  %v9508_v25 = vpop.permute.xlu0 %1358 }
 0x23e   : > { %14644 = vst [vmem:[#allocation126_spill] sm:$0xff] %v9501_v15  ;;  %14645 = vst [vmem:[#allocation127_spill] sm:$0xff] %v9508_v25 }
 0x23f   : > { %3257 = vrot.lane.b32.xlu1 %v9497_v41, %s7963_s10  ;;  %3255 = vrot.lane.b32.xlu0 %v9504_v5, %s7963_s10 }
 0x241   : > { %v9519_v15 = vpop.permute.xlu1 %1379  ;;  %v9526_v25 = vpop.permute.xlu0 %1372 }
 0x242   : > { %14646 = vst [vmem:[#allocation128_spill] sm:$0xff] %v9519_v15  ;;  %14647 = vst [vmem:[#allocation129_spill] sm:$0xff] %v9526_v25 }
 0x243   : > { %3261 = vrot.lane.b32.xlu1 %v9515_v6, %s7963_s10  ;;  %3259 = vrot.lane.b32.xlu0 %v9522_v2, %s7963_s10 }
 0x245   : > { %v9537_v15 = vpop.permute.xlu1 %1393  ;;  %v9544_v25 = vpop.permute.xlu0 %1386 }
 0x246   : > { %14648 = vst [vmem:[#allocation130_spill] sm:$0xff] %v9537_v15  ;;  %14649 = vst [vmem:[#allocation131_spill] sm:$0xff] %v9544_v25 }
 0x247   : > { %3265 = vrot.lane.b32.xlu1 %v9533_v57, %s7963_s10  ;;  %3263 = vrot.lane.b32.xlu0 %v9540_v59, %s7963_s10 }
 0x249   : > { %v9555_v15 = vpop.permute.xlu1 %1407  ;;  %v9562_v25 = vpop.permute.xlu0 %1400 }
 0x24a   : > { %14650 = vst [vmem:[#allocation132_spill] sm:$0xff] %v9555_v15  ;;  %14651 = vst [vmem:[#allocation133_spill] sm:$0xff] %v9562_v25 }
 0x24b   : > { %3269 = vrot.lane.b32.xlu1 %v9551_v0, %s7963_s10  ;;  %3267 = vrot.lane.b32.xlu0 %v9558_v52, %s7963_s10 }
 0x24d   : > { %v9573_v15 = vpop.permute.xlu1 %1421  ;;  %v9580_v25 = vpop.permute.xlu0 %1414 }
 0x24e   : > { %14652 = vst [vmem:[#allocation134_spill] sm:$0xff] %v9573_v15  ;;  %14653 = vst [vmem:[#allocation135_spill] sm:$0xff] %v9580_v25 }
 0x24f   : > { %3273 = vrot.lane.b32.xlu1 %v9569_v13, %s7963_s10  ;;  %3271 = vrot.lane.b32.xlu0 %v9576_v4, %s7963_s10 }
 0x251   : > { %v9591_v15 = vpop.permute.xlu1 %1435  ;;  %v9598_v25 = vpop.permute.xlu0 %1428 }
 0x252   : > { %14654 = vst [vmem:[#allocation136_spill] sm:$0xff] %v9591_v15  ;;  %14655 = vst [vmem:[#allocation137_spill] sm:$0xff] %v9598_v25 }
 0x253   : > { %3277 = vrot.lane.b32.xlu1 %v9587_v17, %s7963_s10  ;;  %3275 = vrot.lane.b32.xlu0 %v9594_v63, %s7963_s10 }
 0x255   : > { %v9609_v15 = vpop.permute.xlu1 %1449  ;;  %v9616_v25 = vpop.permute.xlu0 %1442 }
 0x256   : > { %14656 = vst [vmem:[#allocation138_spill] sm:$0xff] %v9609_v15  ;;  %14657 = vst [vmem:[#allocation139_spill] sm:$0xff] %v9616_v25 }
 0x257   : > { %3281 = vrot.lane.b32.xlu1 %v9605_v29, %s7963_s10  ;;  %3279 = vrot.lane.b32.xlu0 %v9612_v50, %s7963_s10 }
 0x259   : > { %v9627_v15 = vpop.permute.xlu1 %1463  ;;  %v9634_v25 = vpop.permute.xlu0 %1456 }
 0x25a   : > { %14658 = vst [vmem:[#allocation140_spill] sm:$0xff] %v9627_v15  ;;  %14659 = vst [vmem:[#allocation141_spill] sm:$0xff] %v9634_v25 }
 0x25b   : > { %3285 = vrot.lane.b32.xlu1 %v9623_v33, %s7963_s10  ;;  %3283 = vrot.lane.b32.xlu0 %v9630_v43, %s7963_s10 }
 0x25d   : > { %v9645_v15 = vpop.permute.xlu1 %1477  ;;  %v9652_v25 = vpop.permute.xlu0 %1470 }
 0x25e   : > { %14660 = vst [vmem:[#allocation142_spill] sm:$0xff] %v9645_v15  ;;  %14661 = vst [vmem:[#allocation143_spill] sm:$0xff] %v9652_v25 }
 0x25f   : > { %3289 = vrot.lane.b32.xlu1 %v9641_v8, %s7963_s10  ;;  %3287 = vrot.lane.b32.xlu0 %v9648_v1, %s7963_s10 }
 0x261   : > { %v9663_v15 = vpop.permute.xlu1 %3113  ;;  %v9670_v25 = vpop.permute.xlu0 %3111 }
 0x262   : > { %14662 = vst [vmem:[#allocation144_spill] sm:$0xff] %v9663_v15  ;;  %14663 = vst [vmem:[#allocation145_spill] sm:$0xff] %v9670_v25 }
 0x263   : > { %3293 = vrot.lane.b32.xlu1 %v9659_v38, %s7963_s10  ;;  %3291 = vrot.lane.b32.xlu0 %v9666_v40, %s7963_s10 }
 0x265   : > { %v9681_v15 = vpop.permute.xlu1 %3117  ;;  %v9688_v25 = vpop.permute.xlu0 %3115 }
 0x266   : > { %14664 = vst [vmem:[#allocation146_spill] sm:$0xff] %v9681_v15  ;;  %14665 = vst [vmem:[#allocation147_spill] sm:$0xff] %v9688_v25  ;;  %v9700_v15 = vrot.slane %v2996_v36, %v8842_v32  ;;  %v1606_v25 = vcombine.high %v9425_v18, %v14393_v21  ;;  %v1655_v18 = vcombine.high %v9450_v62, %v14393_v21 }
 0x267   : > { %3297 = vrot.lane.b32.xlu1 %v9677_v16, %s7963_s10  ;;  %3295 = vrot.lane.b32.xlu0 %v9684_v46, %s7963_s10  ;;  %v1900_v62 = vcombine.high %v9479_v37, %v14393_v21 }
 0x269   : > { %v9697_v24 = vpop.permute.xlu1 %3121  ;;  %v9702_v51 = vpop.permute.xlu0 %3119 }
 0x26a   : > { %14666 = vst [vmem:[#allocation148_spill] sm:$0xff] %v9697_v24  ;;  %14667 = vst [vmem:[#allocation149_spill] sm:$0xff] %v9702_v51  ;;  %v1557_v24 = vcombine.high %v9432_v54, %v14393_v21  ;;  %v1704_v51 = vcombine.high %v9443_v56, %v14393_v21 }
 0x26b   : > { %3301 = vrot.lane.b32.xlu1 %v9695_v12, %s7963_s10  ;;  %3299 = vrot.lane.b32.xlu0 %v9700_v15, %s7963_s10 }
 0x26d   : > { %v9708_v27 = vpop.permute.xlu1 %3125  ;;  %v9712_v48 = vpop.permute.xlu0 %3123 }
 0x26e   : > { %14668 = vst [vmem:[#allocation150_spill] sm:$0xff] %v9708_v27  ;;  %14669 = vst [vmem:[#allocation151_spill] sm:$0xff] %v9712_v48  ;;  %v14736_v48 = vld [vmem:[#allocation54_spill] sm:$0xff] }
 0x26f   : > { %3369 = vrot.lane.b32.xlu1 %v1606_v25, %s7964_s15  ;;  %3367 = vrot.lane.b32.xlu0 %v1557_v24, %s7964_s15  ;;  %v1802_v25 = vcombine.high %v9461_v23, %v14393_v21  ;;  %v2785_v27 = vcombine.high %v14736_v48, %v14393_v21 }
 0x271   : > { %v9718_v36 = vpop.permute.xlu1 %3129  ;;  %v9722_v49 = vpop.permute.xlu0 %3127 }
 0x272   : > { %14670 = vst [vmem:[#allocation152_spill] sm:$0xff] %v9718_v36  ;;  %14671 = vst [vmem:[#allocation153_spill] sm:$0xff] %v9722_v49  ;;  %v1753_v36 = vcombine.high %v9468_v31, %v14393_v21  ;;  %v1998_v31 = vcombine.high %v9497_v41, %v14393_v21 }
 0x273   : > { %3373 = vrot.lane.b32.xlu1 %v1704_v51, %s7964_s15  ;;  %3371 = vrot.lane.b32.xlu0 %v1655_v18, %s7964_s15  ;;  %v1851_v18 = vcombine.high %v9486_v42, %v14393_v21  ;;  %v2096_v42 = vcombine.high %v9515_v6, %v14393_v21 }
 0x275   : > { %v9728_v54 = vpop.permute.xlu1 %3133  ;;  %v9732_v24 = vpop.permute.xlu0 %3131 }
 0x276   : > { %14672 = vst [vmem:[#allocation154_spill] sm:$0xff] %v9728_v54  ;;  %14673 = vst [vmem:[#allocation155_spill] sm:$0xff] %v9732_v24 }
 0x277   : > { %3377 = vrot.lane.b32.xlu1 %v1802_v25, %s7964_s15  ;;  %3375 = vrot.lane.b32.xlu0 %v1753_v36, %s7964_s15  ;;  %v1949_v25 = vcombine.high %v9504_v5, %v14393_v21  ;;  %v2194_v5 = vcombine.high %v9533_v57, %v14393_v21 }
 0x279   : > { %v9738_v56 = vpop.permute.xlu1 %3137  ;;  %v9742_v51 = vpop.permute.xlu0 %3135 }
 0x27a   : > { %14674 = vst [vmem:[#allocation156_spill] sm:$0xff] %v9738_v56  ;;  %14675 = vst [vmem:[#allocation157_spill] sm:$0xff] %v9742_v51  ;;  %v14730_v56 = vld [vmem:[#allocation38_spill] sm:$0xff] }
 0x27b   : > { %3381 = vrot.lane.b32.xlu1 %v1900_v62, %s7964_s15  ;;  %3379 = vrot.lane.b32.xlu0 %v1851_v18, %s7964_s15  ;;  %v2047_v18 = vcombine.high %v9522_v2, %v14393_v21  ;;  %v2292_v2 = vcombine.high %v9551_v0, %v14393_v21  ;;  %v2687_v24 = vcombine.high %v14730_v56, %v14393_v21 }
 0x27d   : > { %v9748_v23 = vpop.permute.xlu1 %3141  ;;  %v9752_v36 = vpop.permute.xlu0 %3139 }
 0x27e   : > { %14676 = vst [vmem:[#allocation158_spill] sm:$0xff] %v9748_v23  ;;  %14677 = vst [vmem:[#allocation159_spill] sm:$0xff] %v9752_v36 }
 0x27f   : > { %3385 = vrot.lane.b32.xlu1 %v1998_v31, %s7964_s15  ;;  %3383 = vrot.lane.b32.xlu0 %v1949_v25, %s7964_s15  ;;  %v2145_v25 = vcombine.high %v9540_v59, %v14393_v21  ;;  %v2390_v59 = vcombine.high %v9569_v13, %v14393_v21 }
 0x281   : > { %v9758_v37 = vpop.permute.xlu1 %3145  ;;  %v9762_v62 = vpop.permute.xlu0 %3143 }
 0x282   : > { %14678 = vst [vmem:[#allocation160_spill] sm:$0xff] %v9758_v37  ;;  %14679 = vst [vmem:[#allocation161_spill] sm:$0xff] %v9762_v62  ;;  %v14724_v37 = vld [vmem:[#allocation36_spill] sm:$0xff] }
 0x283   : > { %3389 = vrot.lane.b32.xlu1 %v2096_v42, %s7964_s15  ;;  %3387 = vrot.lane.b32.xlu0 %v2047_v18, %s7964_s15  ;;  %v2243_v18 = vcombine.high %v9558_v52, %v14393_v21  ;;  %v2488_v52 = vcombine.high %v9587_v17, %v14393_v21  ;;  %v2589_v36 = vcombine.high %v14724_v37, %v14393_v21 }
 0x285   : > { %v9768_v41 = vpop.permute.xlu1 %3149  ;;  %v9772_v31 = vpop.permute.xlu0 %3147 }
 0x286   : > { %14680 = vst [vmem:[#allocation162_spill] sm:$0xff] %v9768_v41  ;;  %14681 = vst [vmem:[#allocation163_spill] sm:$0xff] %v9772_v31 }
 0x287   : > { %3393 = vrot.lane.b32.xlu1 %v2194_v5, %s7964_s15  ;;  %3391 = vrot.lane.b32.xlu0 %v2145_v25, %s7964_s15  ;;  %v2341_v25 = vcombine.high %v9576_v4, %v14393_v21  ;;  %v2586_v4 = vcombine.high %v9605_v29, %v14393_v21 }
 0x289   : > { %v9778_v6 = vpop.permute.xlu1 %3153  ;;  %v9782_v42 = vpop.permute.xlu0 %3151 }
 0x28a   : > { %14682 = vst [vmem:[#allocation164_spill] sm:$0xff] %v9778_v6  ;;  %14683 = vst [vmem:[#allocation165_spill] sm:$0xff] %v9782_v42  ;;  %v14720_v6 = vld [vmem:[#allocation34_spill] sm:$0xff] }
 0x28b   : > { %3397 = vrot.lane.b32.xlu1 %v2292_v2, %s7964_s15  ;;  %3395 = vrot.lane.b32.xlu0 %v2243_v18, %s7964_s15  ;;  %v2439_v18 = vcombine.high %v9594_v63, %v14393_v21  ;;  %v2684_v63 = vcombine.high %v9623_v33, %v14393_v21  ;;  %v2491_v31 = vcombine.high %v14720_v6, %v14393_v21 }
 0x28d   : > { %v9788_v57 = vpop.permute.xlu1 %3157  ;;  %v9792_v5 = vpop.permute.xlu0 %3155 }
 0x28e   : > { %14684 = vst [vmem:[#allocation166_spill] sm:$0xff] %v9788_v57  ;;  %14685 = vst [vmem:[#allocation167_spill] sm:$0xff] %v9792_v5 }
 0x28f   : > { %3401 = vrot.lane.b32.xlu1 %v2390_v59, %s7964_s15  ;;  %3399 = vrot.lane.b32.xlu0 %v2341_v25, %s7964_s15  ;;  %v2537_v25 = vcombine.high %v9612_v50, %v14393_v21  ;;  %v2782_v50 = vcombine.high %v9641_v8, %v14393_v21  ;;  %v1560_v8 = vcombine.high %v8832_v60, %v14393_v21 }
 0x290   : > { %v1658_v60 = vcombine.high %v8859_v34, %v14393_v21 }
 0x291   : > { %v9798_v0 = vpop.permute.xlu1 %3161  ;;  %v9802_v2 = vpop.permute.xlu0 %3159 }
 0x292   : > { %14686 = vst [vmem:[#allocation168_spill] sm:$0xff] %v9798_v0  ;;  %14687 = vst [vmem:[#allocation169_spill] sm:$0xff] %v9802_v2  ;;  %v14716_v0 = vld [vmem:[#allocation46_spill] sm:$0xff] }
 0x293   : > { %3405 = vrot.lane.b32.xlu1 %v2488_v52, %s7964_s15  ;;  %3403 = vrot.lane.b32.xlu0 %v2439_v18, %s7964_s15  ;;  %v2635_v18 = vcombine.high %v9630_v43, %v14393_v21  ;;  %v2880_v43 = vcombine.high %v9659_v38, %v14393_v21  ;;  %v1511_v38 = vcombine.high %v8837_v19, %v14393_v21 }
 0x294   : > { %v3076_v19 = vcombine.high %v9695_v12, %v14393_v21  ;;  %v9887_v12 = vrot.slane %v1658_v60, %v8823_v61  ;;  %v2393_v5 = vcombine.high %v14716_v0, %v14393_v21 }
 0x295   : > { %v9808_v13 = vpop.permute.xlu1 %3165  ;;  %v9812_v59 = vpop.permute.xlu0 %3163 }
 0x296   : > { %14688 = vst [vmem:[#allocation170_spill] sm:$0xff] %v9808_v13  ;;  %14689 = vst [vmem:[#allocation171_spill] sm:$0xff] %v9812_v59  ;;  %v2295_v59 = vcombine.high %v9110_v53, %v14393_v21 }
 0x297   : > { %3409 = vrot.lane.b32.xlu1 %v2586_v4, %s7964_s15  ;;  %3407 = vrot.lane.b32.xlu0 %v2537_v25, %s7964_s15  ;;  %v2733_v25 = vcombine.high %v9648_v1, %v14393_v21 }
 0x299   : > { %v9818_v17 = vpop.permute.xlu1 %3169  ;;  %v9822_v52 = vpop.permute.xlu0 %3167 }
 0x29a   : > { %14690 = vst [vmem:[#allocation172_spill] sm:$0xff] %v9818_v17  ;;  %14691 = vst [vmem:[#allocation173_spill] sm:$0xff] %v9822_v52  ;;  %v2197_v52 = vcombine.high %v9074_v10, %v14393_v21 }
 0x29b   : > { %3413 = vrot.lane.b32.xlu1 %v2684_v63, %s7964_s15  ;;  %3411 = vrot.lane.b32.xlu0 %v2635_v18, %s7964_s15  ;;  %v2831_v18 = vcombine.high %v9666_v40, %v14393_v21  ;;  %v2929_v40 = vcombine.high %v9684_v46, %v14393_v21  ;;  %v1609_v46 = vcombine.high %v8864_v7, %v14393_v21 }
 0x29d   : > { %v9828_v29 = vpop.permute.xlu1 %3173  ;;  %v9832_v4 = vpop.permute.xlu0 %3171 }
 0x29e   : > { %14692 = vst [vmem:[#allocation174_spill] sm:$0xff] %v9828_v29  ;;  %14693 = vst [vmem:[#allocation175_spill] sm:$0xff] %v9832_v4  ;;  %v2099_v4 = vcombine.high %v9038_v30, %v14393_v21 }
 0x29f   : > { %3417 = vrot.lane.b32.xlu1 %v2782_v50, %s7964_s15  ;;  %3415 = vrot.lane.b32.xlu0 %v2733_v25, %s7964_s15  ;;  %v2978_v50 = vcombine.high %v9677_v16, %v14393_v21  ;;  %v9872_v16 = vrot.slane %v1511_v38, %v8823_v61  ;;  %v1756_v38 = vcombine.high %v8891_v47, %v14393_v21 }
 0x2a0   : > { %v9910_v47 = vrot.slane %v9887_v12, %v8842_v32 }
 0x2a1   : > { %v9838_v33 = vpop.permute.xlu1 %3241  ;;  %v9842_v63 = vpop.permute.xlu0 %3239  ;;  %v9913_v60 = vrot.slane %v1756_v38, %v8823_v61 }
 0x2a2   : > { %14694 = vst [vmem:[#allocation176_spill] sm:$0xff] %v9838_v33  ;;  %14695 = vst [vmem:[#allocation177_spill] sm:$0xff] %v9842_v63  ;;  %v2001_v63 = vcombine.high %v9002_v35, %v14393_v21 }
 0x2a3   : > { %3421 = vrot.lane.b32.xlu1 %v2880_v43, %s7964_s15  ;;  %3419 = vrot.lane.b32.xlu0 %v2831_v18, %s7964_s15  ;;  %v9863_v43 = vrot.slane %v1560_v8, %v8823_v61  ;;  %v3027_v8 = vcombine.high %v9700_v15, %v14393_v21  ;;  %v9898_v15 = vrot.slane %v1609_v46, %v8823_v61 }
 0x2a4   : > { %v1854_v46 = vcombine.high %v8925_v20, %v14393_v21  ;;  %v9936_v20 = vrot.slane %v9913_v60, %v8842_v32 }
 0x2a5   : > { %v9850_v1 = vpop.permute.xlu1 %3245  ;;  %v9856_v25 = vpop.permute.xlu0 %3243  ;;  %v9884_v34 = vrot.slane %v9863_v43, %v8842_v32 }
 0x2a6   : > { %14696 = vst [vmem:[#allocation178_spill] sm:$0xff] %v9850_v1  ;;  %14697 = vst [vmem:[#allocation179_spill] sm:$0xff] %v9856_v25  ;;  %v9939_v38 = vrot.slane %v1854_v46, %v8823_v61  ;;  %v1903_v25 = vcombine.high %v8966_v9, %v14393_v21 }
 0x2a7   : > { %3425 = vrot.lane.b32.xlu1 %v2978_v50, %s7964_s15  ;;  %3423 = vrot.lane.b32.xlu0 %v2929_v40, %s7964_s15  ;;  %v9895_v40 = vrot.slane %v9872_v16, %v8842_v32 }
 0x2a9   : > { %v9867_v18 = vpop.permute.xlu1 %3249  ;;  %v9876_v50 = vpop.permute.xlu0 %3247 }
 0x2aa   : > { %14698 = vst [vmem:[#allocation180_spill] sm:$0xff] %v9867_v18  ;;  %14699 = vst [vmem:[#allocation181_spill] sm:$0xff] %v9876_v50  ;;  %v1805_v50 = vcombine.high %v8930_v11, %v14393_v21 }
 0x2ab   : > { %3429 = vrot.lane.b32.xlu1 %v3076_v19, %s7964_s15  ;;  %3427 = vrot.lane.b32.xlu0 %v3027_v8, %s7964_s15  ;;  %v1707_v19 = vcombine.high %v8896_v45, %v14393_v21 }
 0x2ad   : > { %v9891_v7 = vpop.permute.xlu1 %3253  ;;  %v9902_v8 = vpop.permute.xlu0 %3251 }
 0x2ae   : > { %14700 = vst [vmem:[#allocation182_spill] sm:$0xff] %v9891_v7  ;;  %14701 = vst [vmem:[#allocation183_spill] sm:$0xff] %v9902_v8  ;;  %v9921_v8 = vrot.slane %v9898_v15, %v8842_v32  ;;  %v9924_v7 = vrot.slane %v1707_v19, %v8823_v61  ;;  %v1952_v19 = vcombine.high %v8961_v28, %v14393_v21 }
 0x2af   : > { %3497 = vrot.lane.b32.xlu1 %v9884_v34, %s7965_s21  ;;  %3495 = vrot.lane.b32.xlu0 %v9895_v40, %s7965_s21  ;;  %v9962_v28 = vrot.slane %v9939_v38, %v8842_v32 }
 0x2b0   : > { %v9947_v11 = vrot.slane %v9924_v7, %v8842_v32  ;;  %v9965_v46 = vrot.slane %v1952_v19, %v8823_v61 }
 0x2b1   : > { %v9917_v45 = vpop.permute.xlu1 %3257  ;;  %v9928_v18 = vpop.permute.xlu0 %3255 }
 0x2b2   : > { %14702 = vst [vmem:[#allocation184_spill] sm:$0xff] %v9917_v45  ;;  %14703 = vst [vmem:[#allocation185_spill] sm:$0xff] %v9928_v18  ;;  %v9950_v18 = vrot.slane %v1805_v50, %v8823_v61  ;;  %v2050_v50 = vcombine.high %v8997_v55, %v14393_v21  ;;  %v9988_v55 = vrot.slane %v9965_v46, %v8842_v32 }
 0x2b3   : > { %3501 = vrot.lane.b32.xlu1 %v9910_v47, %s7965_s21  ;;  %3499 = vrot.lane.b32.xlu0 %v9921_v8, %s7965_s21 }
 0x2b4   : > { %v9973_v9 = vrot.slane %v9950_v18, %v8842_v32  ;;  %v9991_v19 = vrot.slane %v2050_v50, %v8823_v61 }
 0x2b5   : > { %v9943_v45 = vpop.permute.xlu1 %3261  ;;  %v9954_v1 = vpop.permute.xlu0 %3259 }
 0x2b6   : > { %14704 = vst [vmem:[#allocation186_spill] sm:$0xff] %v9943_v45  ;;  %14705 = vst [vmem:[#allocation187_spill] sm:$0xff] %v9954_v1  ;;  %v9976_v1 = vrot.slane %v1903_v25, %v8823_v61  ;;  %v2148_v25 = vcombine.high %v9033_v58, %v14393_v21  ;;  %v10014_v58 = vrot.slane %v9991_v19, %v8842_v32 }
 0x2b7   : > { %3505 = vrot.lane.b32.xlu1 %v9936_v20, %s7965_s21  ;;  %3503 = vrot.lane.b32.xlu0 %v9947_v11, %s7965_s21 }
 0x2b8   : > { %v9999_v35 = vrot.slane %v9976_v1, %v8842_v32  ;;  %v10017_v50 = vrot.slane %v2148_v25, %v8823_v61 }
 0x2b9   : > { %v9969_v45 = vpop.permute.xlu1 %3265  ;;  %v9980_v33 = vpop.permute.xlu0 %3263 }
 0x2ba   : > { %14706 = vst [vmem:[#allocation188_spill] sm:$0xff] %v9969_v45  ;;  %14707 = vst [vmem:[#allocation189_spill] sm:$0xff] %v9980_v33  ;;  %v10002_v33 = vrot.slane %v2001_v63, %v8823_v61  ;;  %v2246_v63 = vcombine.high %v9069_v26, %v14393_v21  ;;  %v10040_v26 = vrot.slane %v10017_v50, %v8842_v32 }
 0x2bb   : > { %3509 = vrot.lane.b32.xlu1 %v9962_v28, %s7965_s21  ;;  %3507 = vrot.lane.b32.xlu0 %v9973_v9, %s7965_s21 }
 0x2bc   : > { %v10025_v30 = vrot.slane %v10002_v33, %v8842_v32  ;;  %v10043_v25 = vrot.slane %v2246_v63, %v8823_v61 }
 0x2bd   : > { %v9995_v45 = vpop.permute.xlu1 %3269  ;;  %v10006_v29 = vpop.permute.xlu0 %3267 }
 0x2be   : > { %14708 = vst [vmem:[#allocation190_spill] sm:$0xff] %v9995_v45  ;;  %14709 = vst [vmem:[#allocation191_spill] sm:$0xff] %v10006_v29  ;;  %v10028_v29 = vrot.slane %v2099_v4, %v8823_v61  ;;  %v2344_v4 = vcombine.high %v9105_v14, %v14393_v21  ;;  %v10066_v14 = vrot.slane %v10043_v25, %v8842_v32 }
 0x2bf   : > { %3513 = vrot.lane.b32.xlu1 %v9988_v55, %s7965_s21  ;;  %3511 = vrot.lane.b32.xlu0 %v9999_v35, %s7965_s21 }
 0x2c0   : > { %v10051_v10 = vrot.slane %v10028_v29, %v8842_v32  ;;  %v10069_v63 = vrot.slane %v2344_v4, %v8823_v61 }
 0x2c1   : > { %v10021_v45 = vpop.permute.xlu1 %3273  ;;  %v10032_v17 = vpop.permute.xlu0 %3271 }
 0x2c2   : > { %14710 = vst [vmem:[#allocation192_spill] sm:$0xff] %v10021_v45  ;;  %14711 = vst [vmem:[#allocation193_spill] sm:$0xff] %v10032_v17  ;;  %v10054_v17 = vrot.slane %v2197_v52, %v8823_v61  ;;  %v14714_v52 = vld [vmem:[#allocation92_spill] sm:$0xff]  ;;  %v10092_v4 = vrot.slane %v10069_v63, %v8842_v32 }
 0x2c3   : > { %3517 = vrot.lane.b32.xlu1 %v10014_v58, %s7965_s21  ;;  %3515 = vrot.lane.b32.xlu0 %v10025_v30, %s7965_s21 }
 0x2c4   : > { %v10077_v53 = vrot.slane %v10054_v17, %v8842_v32 }
 0x2c5   : > { %v10047_v45 = vpop.permute.xlu1 %3277  ;;  %v10058_v13 = vpop.permute.xlu0 %3275 }
 0x2c6   : > { %14712 = vst [vmem:[#allocation194_spill] sm:$0xff] %v10047_v45  ;;  %14713 = vst [vmem:[#allocation195_spill] sm:$0xff] %v10058_v13  ;;  %v2442_v45 = vcombine.high %v14714_v52, %v14393_v21  ;;  %v10080_v13 = vrot.slane %v2295_v59, %v8823_v61  ;;  %v14718_v59 = vld [vmem:[#allocation47_spill] sm:$0xff] }
 0x2c7   : > { %3521 = vrot.lane.b32.xlu1 %v10040_v26, %s7965_s21  ;;  %3519 = vrot.lane.b32.xlu0 %v10051_v10, %s7965_s21 }
 0x2c8   : > { %v10095_v52 = vrot.slane %v2442_v45, %v8823_v61  ;;  %v10103_v0 = vrot.slane %v10080_v13, %v8842_v32 }
 0x2c9   : > { %v10073_v2 = vpop.permute.xlu1 %3281  ;;  %v10084_v57 = vpop.permute.xlu0 %3279 }
 0x2ca   : > { %14715 = vst [vmem:[#allocation92_spill] sm:$0xff] %v10073_v2  ;;  %14717 = vst [vmem:[#allocation46_spill] sm:$0xff] %v10084_v57  ;;  %v2540_v2 = vcombine.high %v14718_v59, %v14393_v21  ;;  %v10106_v57 = vrot.slane %v2393_v5, %v8823_v61  ;;  %v10118_v45 = vrot.slane %v10095_v52, %v8842_v32  ;;  %v14722_v5 = vld [vmem:[#allocation49_spill] sm:$0xff] }
 0x2cb   : > { %3525 = vrot.lane.b32.xlu1 %v10066_v14, %s7965_s21  ;;  %3523 = vrot.lane.b32.xlu0 %v10077_v53, %s7965_s21 }
 0x2cc   : > { %v10121_v59 = vrot.slane %v2540_v2, %v8823_v61  ;;  %v10129_v6 = vrot.slane %v10106_v57, %v8842_v32 }
 0x2cd   : > { %v10099_v42 = vpop.permute.xlu1 %3285  ;;  %v10110_v41 = vpop.permute.xlu0 %3283 }
 0x2ce   : > { %14719 = vst [vmem:[#allocation47_spill] sm:$0xff] %v10099_v42  ;;  %14721 = vst [vmem:[#allocation34_spill] sm:$0xff] %v10110_v41  ;;  %v2638_v42 = vcombine.high %v14722_v5, %v14393_v21  ;;  %v10132_v41 = vrot.slane %v2491_v31, %v8823_v61  ;;  %v10144_v2 = vrot.slane %v10121_v59, %v8842_v32  ;;  %v14727_v31 = vld [vmem:[#allocation51_spill] sm:$0xff] }
 0x2cf   : > { %3529 = vrot.lane.b32.xlu1 %v10092_v4, %s7965_s21  ;;  %3527 = vrot.lane.b32.xlu0 %v10103_v0, %s7965_s21 }
 0x2d0   : > { %v10147_v5 = vrot.slane %v2638_v42, %v8823_v61  ;;  %v10155_v37 = vrot.slane %v10132_v41, %v8842_v32 }
 0x2d1   : > { %v10125_v62 = vpop.permute.xlu1 %3289  ;;  %v10136_v23 = vpop.permute.xlu0 %3287 }
 0x2d2   : > { %14723 = vst [vmem:[#allocation49_spill] sm:$0xff] %v10125_v62  ;;  %14725 = vst [vmem:[#allocation36_spill] sm:$0xff] %v10136_v23  ;;  %v2736_v62 = vcombine.high %v14727_v31, %v14393_v21  ;;  %v10158_v23 = vrot.slane %v2589_v36, %v8823_v61  ;;  %v10170_v42 = vrot.slane %v10147_v5, %v8842_v32  ;;  %v14733_v36 = vld [vmem:[#allocation53_spill] sm:$0xff] }
 0x2d3   : > { %3533 = vrot.lane.b32.xlu1 %v10118_v45, %s7965_s21  ;;  %3531 = vrot.lane.b32.xlu0 %v10129_v6, %s7965_s21  ;;  %14726 = vst [vmem:[#allocation196_spill] sm:$0xff] %v10147_v5 }
 0x2d4   : > { %14729 = vst [vmem:[#allocation197_spill] sm:$0xff] %v10158_v23  ;;  %v10173_v31 = vrot.slane %v2736_v62, %v8823_v61  ;;  %v10181_v56 = vrot.slane %v10158_v23, %v8842_v32  ;;  %v14747_v23 = vld [vmem:[#allocation45_spill] sm:$0xff] }
 0x2d5   : > { %v10151_v51 = vpop.permute.xlu1 %3293  ;;  %v10162_v54 = vpop.permute.xlu0 %3291  ;;  %v2981_v5 = vcombine.high %v14747_v23, %v14393_v21 }
 0x2d6   : > { %14728 = vst [vmem:[#allocation51_spill] sm:$0xff] %v10151_v51  ;;  %14731 = vst [vmem:[#allocation38_spill] sm:$0xff] %v10162_v54  ;;  %v2834_v51 = vcombine.high %v14733_v36, %v14393_v21  ;;  %v10184_v54 = vrot.slane %v2687_v24, %v8823_v61  ;;  %v10196_v62 = vrot.slane %v10173_v31, %v8842_v32  ;;  %v14739_v24 = vld [vmem:[#allocation42_spill] sm:$0xff] }
 0x2d7   : > { %3537 = vrot.lane.b32.xlu1 %v10144_v2, %s7965_s21  ;;  %3535 = vrot.lane.b32.xlu0 %v10155_v37, %s7965_s21  ;;  %14732 = vst [vmem:[#allocation198_spill] sm:$0xff] %v10173_v31 }
 0x2d8   : > { %14735 = vst [vmem:[#allocation199_spill] sm:$0xff] %v10184_v54  ;;  %v10199_v36 = vrot.slane %v2834_v51, %v8823_v61  ;;  %v10207_v48 = vrot.slane %v10184_v54, %v8842_v32 }
 0x2d9   : > { %v10177_v49 = vpop.permute.xlu1 %3297  ;;  %v10188_v39 = vpop.permute.xlu0 %3295 }
 0x2da   : > { %14734 = vst [vmem:[#allocation53_spill] sm:$0xff] %v10177_v49  ;;  %14737 = vst [vmem:[#allocation54_spill] sm:$0xff] %v10188_v39  ;;  %v2932_v49 = vcombine.high %v14739_v24, %v14393_v21  ;;  %v10210_v39 = vrot.slane %v2785_v27, %v8823_v61  ;;  %v10222_v51 = vrot.slane %v10199_v36, %v8842_v32  ;;  %v14744_v27 = vld [vmem:[#allocation44_spill] sm:$0xff] }
 0x2db   : > { %3541 = vrot.lane.b32.xlu1 %v10170_v42, %s7965_s21  ;;  %3539 = vrot.lane.b32.xlu0 %v10181_v56, %s7965_s21  ;;  %14738 = vst [vmem:[#allocation200_spill] sm:$0xff] %v10199_v36 }
 0x2dc   : > { %v10225_v24 = vrot.slane %v2932_v49, %v8823_v61  ;;  %v10233_v44 = vrot.slane %v10210_v39, %v8842_v32 }
 0x2dd   : > { %v10203_v22 = vpop.permute.xlu1 %3301  ;;  %v10214_v31 = vpop.permute.xlu0 %3299 }
 0x2de   : > { %14740 = vst [vmem:[#allocation42_spill] sm:$0xff] %v10203_v22  ;;  %14742 = vst [vmem:[#allocation43_spill] sm:$0xff] %v10214_v31  ;;  %v3030_v22 = vcombine.high %v14744_v27, %v14393_v21  ;;  %v10236_v31 = vrot.slane %v2883_v3, %v8823_v61  ;;  %v10248_v49 = vrot.slane %v10225_v24, %v8842_v32 }
 0x2df   : > { %3545 = vrot.lane.b32.xlu1 %v10196_v62, %s7965_s21  ;;  %3543 = vrot.lane.b32.xlu0 %v10207_v48, %s7965_s21  ;;  %14743 = vst [vmem:[#allocation201_spill] sm:$0xff] %v10225_v24  ;;  %v10260_v21 = vrot.slane %v2981_v5, %v8823_v61 }
 0x2e0   : > { %14746 = vst [vmem:[#allocation202_spill] sm:$0xff] %v10236_v31  ;;  %v10251_v27 = vrot.slane %v3030_v22, %v8823_v61  ;;  %v10257_v23 = vrot.slane %v10236_v31, %v8842_v32  ;;  %v14756_v61 = vmov 0.0  }
 0x2e1   : > { %v10229_v54 = vpop.permute.xlu1 %3369  ;;  %v10240_v36 = vpop.permute.xlu0 %3367  ;;  %14751 = vst [vmem:[#allocation205_spill] sm:$0xff] %v10260_v21 }
 0x2e2   : > { %14745 = vst [vmem:[#allocation44_spill] sm:$0xff] %v10229_v54  ;;  %14748 = vst [vmem:[#allocation45_spill] sm:$0xff] %v10240_v36  ;;  %v10270_v22 = vrot.slane %v10251_v27, %v8842_v32  ;;  %v10276_v54 = vrot.slane %v10260_v21, %v8842_v32  ;;  %v1705_v21 = vcombine.high %v9910_v47, %v14756_v61 }
 0x2e3   : > { %3549 = vrot.lane.b32.xlu1 %v10222_v51, %s7965_s21  ;;  %3547 = vrot.lane.b32.xlu0 %v10233_v44, %s7965_s21  ;;  %14749 = vst [vmem:[#allocation203_spill] sm:$0xff] %v10251_v27  ;;  %v1607_v27 = vcombine.high %v9884_v34, %v14756_v61  ;;  %v1656_v34 = vcombine.high %v9921_v8, %v14756_v61 }
 0x2e5   : > { %v10253_v3 = vpop.permute.xlu1 %3373  ;;  %v10262_v36 = vpop.permute.xlu0 %3371 }
 0x2e6   : > { %14750 = vst [vmem:[#allocation204_spill] sm:$0xff] %v10253_v3  ;;  %14752 = vst [vmem:[#allocation206_spill] sm:$0xff] %v10262_v36 }
 0x2e7   : > { %3553 = vrot.lane.b32.xlu1 %v10248_v49, %s7965_s21  ;;  %3551 = vrot.lane.b32.xlu0 %v10257_v23, %s7965_s21 }
 0x2e9   : > { %v10272_v3 = vpop.permute.xlu1 %3377  ;;  %v10278_v5 = vpop.permute.xlu0 %3375 }
 0x2ea   : > { %14753 = vst [vmem:[#allocation207_spill] sm:$0xff] %v10272_v3  ;;  %14754 = vst [vmem:[#allocation208_spill] sm:$0xff] %v10278_v5  ;;  %v1558_v3 = vcombine.high %v9895_v40, %v14756_v61 }
 0x2eb   : > { %3557 = vrot.lane.b32.xlu1 %v10270_v22, %s7965_s21  ;;  %3555 = vrot.lane.b32.xlu0 %v10276_v54, %s7965_s21 }
 0x2ed   : > { %v10284_v36 = vpop.permute.xlu1 %3381  ;;  %v10288_v31 = vpop.permute.xlu0 %3379 }
 0x2ee   : > { %14755 = vst [vmem:[#allocation209_spill] sm:$0xff] %v10284_v36  ;;  %14757 = vst [vmem:[#allocation210_spill] sm:$0xff] %v10288_v31  ;;  %v14951_v36 = vld [vmem:[#allocation135_spill] sm:$0xff] }
 0x2ef   : > { %3625 = vrot.lane.b32.xlu1 %v1607_v27, %s7966_s19  ;;  %3623 = vrot.lane.b32.xlu0 %v1558_v3, %s7966_s19  ;;  %v1803_v27 = vcombine.high %v9936_v20, %v14756_v61 }
 0x2f1   : > { %v10294_v5 = vpop.permute.xlu1 %3385  ;;  %v10298_v24 = vpop.permute.xlu0 %3383 }
 0x2f2   : > { %14758 = vst [vmem:[#allocation211_spill] sm:$0xff] %v10294_v5  ;;  %14759 = vst [vmem:[#allocation212_spill] sm:$0xff] %v10298_v24  ;;  %v1754_v5 = vcombine.high %v9947_v11, %v14756_v61  ;;  %v1999_v11 = vcombine.high %v9988_v55, %v14756_v61 }
 0x2f3   : > { %3629 = vrot.lane.b32.xlu1 %v1705_v21, %s7966_s19  ;;  %3627 = vrot.lane.b32.xlu0 %v1656_v34, %s7966_s19  ;;  %v1901_v21 = vcombine.high %v9962_v28, %v14756_v61  ;;  %v1852_v34 = vcombine.high %v9973_v9, %v14756_v61  ;;  %v2097_v9 = vcombine.high %v10014_v58, %v14756_v61 }
 0x2f5   : > { %v10304_v40 = vpop.permute.xlu1 %3389  ;;  %v10308_v3 = vpop.permute.xlu0 %3387 }
 0x2f6   : > { %14760 = vst [vmem:[#allocation213_spill] sm:$0xff] %v10304_v40  ;;  %14761 = vst [vmem:[#allocation214_spill] sm:$0xff] %v10308_v3  ;;  %v14941_v40 = vld [vmem:[#allocation133_spill] sm:$0xff] }
 0x2f7   : > { %3633 = vrot.lane.b32.xlu1 %v1803_v27, %s7966_s19  ;;  %3631 = vrot.lane.b32.xlu0 %v1754_v5, %s7966_s19  ;;  %v1950_v27 = vcombine.high %v9999_v35, %v14756_v61  ;;  %v2195_v35 = vcombine.high %v10040_v26, %v14756_v61 }
 0x2f9   : > { %v10314_v47 = vpop.permute.xlu1 %3393  ;;  %v10318_v8 = vpop.permute.xlu0 %3391 }
 0x2fa   : > { %14762 = vst [vmem:[#allocation215_spill] sm:$0xff] %v10314_v47  ;;  %14763 = vst [vmem:[#allocation216_spill] sm:$0xff] %v10318_v8 }
 0x2fb   : > { %3637 = vrot.lane.b32.xlu1 %v1901_v21, %s7966_s19  ;;  %3635 = vrot.lane.b32.xlu0 %v1852_v34, %s7966_s19  ;;  %v2048_v34 = vcombine.high %v10025_v30, %v14756_v61  ;;  %v2293_v30 = vcombine.high %v10066_v14, %v14756_v61 }
 0x2fd   : > { %v10324_v20 = vpop.permute.xlu1 %3397  ;;  %v10328_v5 = vpop.permute.xlu0 %3395 }
 0x2fe   : > { %14764 = vst [vmem:[#allocation217_spill] sm:$0xff] %v10324_v20  ;;  %14765 = vst [vmem:[#allocation218_spill] sm:$0xff] %v10328_v5  ;;  %v14931_v20 = vld [vmem:[#allocation131_spill] sm:$0xff] }
 0x2ff   : > { %3641 = vrot.lane.b32.xlu1 %v1999_v11, %s7966_s19  ;;  %3639 = vrot.lane.b32.xlu0 %v1950_v27, %s7966_s19  ;;  %v2146_v27 = vcombine.high %v10051_v10, %v14756_v61  ;;  %v2391_v10 = vcombine.high %v10092_v4, %v14756_v61 }
 0x301   : > { %v10334_v28 = vpop.permute.xlu1 %3401  ;;  %v10338_v21 = vpop.permute.xlu0 %3399 }
 0x302   : > { %14766 = vst [vmem:[#allocation219_spill] sm:$0xff] %v10334_v28  ;;  %14767 = vst [vmem:[#allocation220_spill] sm:$0xff] %v10338_v21 }
 0x303   : > { %3645 = vrot.lane.b32.xlu1 %v2097_v9, %s7966_s19  ;;  %3643 = vrot.lane.b32.xlu0 %v2048_v34, %s7966_s19  ;;  %v2244_v34 = vcombine.high %v10077_v53, %v14756_v61  ;;  %v2489_v53 = vcombine.high %v10118_v45, %v14756_v61 }
 0x305   : > { %v10344_v55 = vpop.permute.xlu1 %3405  ;;  %v10348_v11 = vpop.permute.xlu0 %3403 }
 0x306   : > { %14768 = vst [vmem:[#allocation221_spill] sm:$0xff] %v10344_v55  ;;  %14769 = vst [vmem:[#allocation222_spill] sm:$0xff] %v10348_v11  ;;  %v14922_v11 = vld [vmem:[#allocation129_spill] sm:$0xff] }
 0x307   : > { %3649 = vrot.lane.b32.xlu1 %v2195_v35, %s7966_s19  ;;  %3647 = vrot.lane.b32.xlu0 %v2146_v27, %s7966_s19  ;;  %v2342_v27 = vcombine.high %v10103_v0, %v14756_v61  ;;  %v2587_v0 = vcombine.high %v10144_v2, %v14756_v61 }
 0x309   : > { %v10354_v58 = vpop.permute.xlu1 %3409  ;;  %v10358_v9 = vpop.permute.xlu0 %3407 }
 0x30a   : > { %14770 = vst [vmem:[#allocation223_spill] sm:$0xff] %v10354_v58  ;;  %14771 = vst [vmem:[#allocation224_spill] sm:$0xff] %v10358_v9 }
 0x30b   : > { %3653 = vrot.lane.b32.xlu1 %v2293_v30, %s7966_s19  ;;  %3651 = vrot.lane.b32.xlu0 %v2244_v34, %s7966_s19  ;;  %v2440_v34 = vcombine.high %v10129_v6, %v14756_v61  ;;  %v2685_v6 = vcombine.high %v10170_v42, %v14756_v61 }
 0x30d   : > { %v10364_v26 = vpop.permute.xlu1 %3413  ;;  %v10368_v35 = vpop.permute.xlu0 %3411 }
 0x30e   : > { %14772 = vst [vmem:[#allocation225_spill] sm:$0xff] %v10364_v26  ;;  %14773 = vst [vmem:[#allocation226_spill] sm:$0xff] %v10368_v35 }
 0x30f   : > { %3657 = vrot.lane.b32.xlu1 %v2391_v10, %s7966_s19  ;;  %3655 = vrot.lane.b32.xlu0 %v2342_v27, %s7966_s19  ;;  %v2538_v27 = vcombine.high %v10155_v37, %v14756_v61  ;;  %v2783_v37 = vcombine.high %v10196_v62, %v14756_v61 }
 0x311   : > { %v10374_v14 = vpop.permute.xlu1 %3417  ;;  %v10378_v30 = vpop.permute.xlu0 %3415 }
 0x312   : > { %14774 = vst [vmem:[#allocation227_spill] sm:$0xff] %v10374_v14  ;;  %14775 = vst [vmem:[#allocation228_spill] sm:$0xff] %v10378_v30  ;;  %v14914_v14 = vld [vmem:[#allocation127_spill] sm:$0xff] }
 0x313   : > { %3661 = vrot.lane.b32.xlu1 %v2489_v53, %s7966_s19  ;;  %3659 = vrot.lane.b32.xlu0 %v2440_v34, %s7966_s19  ;;  %v2636_v34 = vcombine.high %v10181_v56, %v14756_v61  ;;  %v2881_v56 = vcombine.high %v10222_v51, %v14756_v61  ;;  %v1590_v51 = vcombine.high %v9863_v43, %v14756_v61 }
 0x314   : > { %v1688_v43 = vcombine.high %v9887_v12, %v14756_v61 }
 0x315   : > { %v10384_v4 = vpop.permute.xlu1 %3421  ;;  %v10388_v10 = vpop.permute.xlu0 %3419 }
 0x316   : > { %14776 = vst [vmem:[#allocation229_spill] sm:$0xff] %v10384_v4  ;;  %14777 = vst [vmem:[#allocation230_spill] sm:$0xff] %v10388_v10 }
 0x317   : > { %3665 = vrot.lane.b32.xlu1 %v2587_v0, %s7966_s19  ;;  %3663 = vrot.lane.b32.xlu0 %v2538_v27, %s7966_s19  ;;  %v2734_v27 = vcombine.high %v10207_v48, %v14756_v61  ;;  %v2979_v48 = vcombine.high %v10248_v49, %v14756_v61  ;;  %v1541_v49 = vcombine.high %v9872_v16, %v14756_v61 }
 0x318   : > { %v1639_v16 = vcombine.high %v9898_v15, %v14756_v61  ;;  %v1737_v15 = vcombine.high %v9924_v7, %v14756_v61  ;;  %v1835_v7 = vcombine.high %v9950_v18, %v14756_v61  ;;  %v1933_v18 = vcombine.high %v9976_v1, %v14756_v61 }
 0x319   : > { %v10394_v45 = vpop.permute.xlu1 %3425  ;;  %v10398_v53 = vpop.permute.xlu0 %3423  ;;  %v2031_v1 = vcombine.high %v10002_v33, %v14756_v61  ;;  %v2129_v33 = vcombine.high %v10028_v29, %v14756_v61  ;;  %v2227_v29 = vcombine.high %v10054_v17, %v14756_v61  ;;  %v2325_v17 = vcombine.high %v10080_v13, %v14756_v61 }
 0x31a   : > { %14778 = vst [vmem:[#allocation231_spill] sm:$0xff] %v10394_v45  ;;  %14779 = vst [vmem:[#allocation232_spill] sm:$0xff] %v10398_v53  ;;  %v2423_v13 = vcombine.high %v10106_v57, %v14756_v61  ;;  %v2521_v57 = vcombine.high %v10132_v41, %v14756_v61  ;;  %v14810_v41 = vld [vmem:[#allocation197_spill] sm:$0xff] }
 0x31b   : > { %3669 = vrot.lane.b32.xlu1 %v2685_v6, %s7966_s19  ;;  %3667 = vrot.lane.b32.xlu0 %v2636_v34, %s7966_s19  ;;  %v2832_v34 = vcombine.high %v10233_v44, %v14756_v61  ;;  %v14906_v53 = vld [vmem:[#allocation125_spill] sm:$0xff] }
 0x31d   : > { %v10404_v2 = vpop.permute.xlu1 %3429  ;;  %v10408_v0 = vpop.permute.xlu0 %3427 }
 0x31e   : > { %14780 = vst [vmem:[#allocation233_spill] sm:$0xff] %v10404_v2  ;;  %14781 = vst [vmem:[#allocation234_spill] sm:$0xff] %v10408_v0 }
 0x31f   : > { %3673 = vrot.lane.b32.xlu1 %v2783_v37, %s7966_s19  ;;  %3671 = vrot.lane.b32.xlu0 %v2734_v27, %s7966_s19  ;;  %v2930_v27 = vcombine.high %v10257_v23, %v14756_v61  ;;  %v3028_v23 = vcombine.high %v10276_v54, %v14756_v61  ;;  %v1786_v54 = vcombine.high %v9913_v60, %v14756_v61 }
 0x320   : > { %v1884_v60 = vcombine.high %v9939_v38, %v14756_v61  ;;  %v1982_v38 = vcombine.high %v9965_v46, %v14756_v61  ;;  %v2080_v46 = vcombine.high %v9991_v19, %v14756_v61  ;;  %v2178_v19 = vcombine.high %v10017_v50, %v14756_v61 }
 0x321   : > { %v10414_v42 = vpop.permute.xlu1 %3497  ;;  %v10418_v6 = vpop.permute.xlu0 %3495  ;;  %v2276_v50 = vcombine.high %v10043_v25, %v14756_v61  ;;  %v2374_v25 = vcombine.high %v10069_v63, %v14756_v61  ;;  %v2472_v63 = vcombine.high %v10095_v52, %v14756_v61  ;;  %v2570_v52 = vcombine.high %v10121_v59, %v14756_v61  ;;  %v14808_v59 = vld [vmem:[#allocation196_spill] sm:$0xff] }
 0x322   : > { %14782 = vst [vmem:[#allocation235_spill] sm:$0xff] %v10414_v42  ;;  %14783 = vst [vmem:[#allocation236_spill] sm:$0xff] %v10418_v6 }
 0x323   : > { %3677 = vrot.lane.b32.xlu1 %v2881_v56, %s7966_s19  ;;  %3675 = vrot.lane.b32.xlu0 %v2832_v34, %s7966_s19  ;;  %v3077_v56 = vcombine.high %v10270_v22, %v14756_v61 }
 0x325   : > { %v10424_v62 = vpop.permute.xlu1 %3501  ;;  %v10428_v37 = vpop.permute.xlu0 %3499 }
 0x326   : > { %14784 = vst [vmem:[#allocation237_spill] sm:$0xff] %v10424_v62  ;;  %14785 = vst [vmem:[#allocation238_spill] sm:$0xff] %v10428_v37 }
 0x327   : > { %3681 = vrot.lane.b32.xlu1 %v2979_v48, %s7966_s19  ;;  %3679 = vrot.lane.b32.xlu0 %v2930_v27, %s7966_s19  ;;  %v10453_v27 = vrot.slane %v1590_v51, %v8842_v32  ;;  %v10471_v51 = vrot.slane %v1688_v43, %v8842_v32  ;;  %v10489_v43 = vrot.slane %v1786_v54, %v8842_v32 }
 0x328   : > { %v10507_v54 = vrot.slane %v1884_v60, %v8842_v32  ;;  %v10525_v60 = vrot.slane %v1982_v38, %v8842_v32  ;;  %v10543_v38 = vrot.slane %v2080_v46, %v8842_v32  ;;  %v10561_v46 = vrot.slane %v2178_v19, %v8842_v32 }
 0x329   : > { %v10436_v44 = vpop.permute.xlu1 %3505  ;;  %v10442_v34 = vpop.permute.xlu0 %3503  ;;  %v10579_v19 = vrot.slane %v2276_v50, %v8842_v32  ;;  %v10597_v50 = vrot.slane %v2374_v25, %v8842_v32  ;;  %v10615_v25 = vrot.slane %v2472_v63, %v8842_v32  ;;  %v10633_v63 = vrot.slane %v2570_v52, %v8842_v32 }
 0x32a   : > { %14786 = vst [vmem:[#allocation239_spill] sm:$0xff] %v10436_v44  ;;  %14787 = vst [vmem:[#allocation240_spill] sm:$0xff] %v10442_v34  ;;  %v10460_v34 = vrot.slane %v1541_v49, %v8842_v32  ;;  %v10478_v49 = vrot.slane %v1639_v16, %v8842_v32  ;;  %v10496_v16 = vrot.slane %v1737_v15, %v8842_v32 }
 0x32b   : > { %3685 = vrot.lane.b32.xlu1 %v3077_v56, %s7966_s19  ;;  %3683 = vrot.lane.b32.xlu0 %v3028_v23, %s7966_s19  ;;  %v10514_v15 = vrot.slane %v1835_v7, %v8842_v32  ;;  %v10532_v7 = vrot.slane %v1933_v18, %v8842_v32  ;;  %v10550_v18 = vrot.slane %v2031_v1, %v8842_v32 }
 0x32c   : > { %v10568_v1 = vrot.slane %v2129_v33, %v8842_v32  ;;  %v10586_v33 = vrot.slane %v2227_v29, %v8842_v32  ;;  %v10604_v29 = vrot.slane %v2325_v17, %v8842_v32  ;;  %v10622_v17 = vrot.slane %v2423_v13, %v8842_v32 }
 0x32d   : > { %v10450_v48 = vpop.permute.xlu1 %3509  ;;  %v10457_v22 = vpop.permute.xlu0 %3507  ;;  %v10640_v13 = vrot.slane %v2521_v57, %v8842_v32 }
 0x32e   : > { %14788 = vst [vmem:[#allocation241_spill] sm:$0xff] %v10450_v48  ;;  %14789 = vst [vmem:[#allocation242_spill] sm:$0xff] %v10457_v22 }
 0x32f   : > { %3753 = vrot.lane.b32.xlu1 %v10453_v27, %s7967_s12  ;;  %3751 = vrot.lane.b32.xlu0 %v10460_v34, %s7967_s12 }
 0x331   : > { %v10468_v12 = vpop.permute.xlu1 %3513  ;;  %v10475_v56 = vpop.permute.xlu0 %3511 }
 0x332   : > { %14790 = vst [vmem:[#allocation243_spill] sm:$0xff] %v10468_v12  ;;  %14791 = vst [vmem:[#allocation244_spill] sm:$0xff] %v10475_v56 }
 0x333   : > { %3757 = vrot.lane.b32.xlu1 %v10471_v51, %s7967_s12  ;;  %3755 = vrot.lane.b32.xlu0 %v10478_v49, %s7967_s12 }
 0x335   : > { %v10486_v23 = vpop.permute.xlu1 %3517  ;;  %v10493_v56 = vpop.permute.xlu0 %3515 }
 0x336   : > { %14792 = vst [vmem:[#allocation245_spill] sm:$0xff] %v10486_v23  ;;  %14793 = vst [vmem:[#allocation246_spill] sm:$0xff] %v10493_v56 }
 0x337   : > { %3761 = vrot.lane.b32.xlu1 %v10489_v43, %s7967_s12  ;;  %3759 = vrot.lane.b32.xlu0 %v10496_v16, %s7967_s12 }
 0x339   : > { %v10504_v23 = vpop.permute.xlu1 %3521  ;;  %v10511_v56 = vpop.permute.xlu0 %3519 }
 0x33a   : > { %14794 = vst [vmem:[#allocation247_spill] sm:$0xff] %v10504_v23  ;;  %14795 = vst [vmem:[#allocation248_spill] sm:$0xff] %v10511_v56 }
 0x33b   : > { %3765 = vrot.lane.b32.xlu1 %v10507_v54, %s7967_s12  ;;  %3763 = vrot.lane.b32.xlu0 %v10514_v15, %s7967_s12 }
 0x33d   : > { %v10522_v23 = vpop.permute.xlu1 %3525  ;;  %v10529_v56 = vpop.permute.xlu0 %3523 }
 0x33e   : > { %14796 = vst [vmem:[#allocation249_spill] sm:$0xff] %v10522_v23  ;;  %14797 = vst [vmem:[#allocation250_spill] sm:$0xff] %v10529_v56 }
 0x33f   : > { %3769 = vrot.lane.b32.xlu1 %v10525_v60, %s7967_s12  ;;  %3767 = vrot.lane.b32.xlu0 %v10532_v7, %s7967_s12 }
 0x341   : > { %v10540_v23 = vpop.permute.xlu1 %3529  ;;  %v10547_v56 = vpop.permute.xlu0 %3527 }
 0x342   : > { %14798 = vst [vmem:[#allocation251_spill] sm:$0xff] %v10540_v23  ;;  %14799 = vst [vmem:[#allocation252_spill] sm:$0xff] %v10547_v56 }
 0x343   : > { %3773 = vrot.lane.b32.xlu1 %v10543_v38, %s7967_s12  ;;  %3771 = vrot.lane.b32.xlu0 %v10550_v18, %s7967_s12 }
 0x345   : > { %v10558_v23 = vpop.permute.xlu1 %3533  ;;  %v10565_v56 = vpop.permute.xlu0 %3531 }
 0x346   : > { %14800 = vst [vmem:[#allocation253_spill] sm:$0xff] %v10558_v23  ;;  %14801 = vst [vmem:[#allocation254_spill] sm:$0xff] %v10565_v56 }
 0x347   : > { %3777 = vrot.lane.b32.xlu1 %v10561_v46, %s7967_s12  ;;  %3775 = vrot.lane.b32.xlu0 %v10568_v1, %s7967_s12 }
 0x349   : > { %v10576_v23 = vpop.permute.xlu1 %3537  ;;  %v10583_v56 = vpop.permute.xlu0 %3535 }
 0x34a   : > { %14802 = vst [vmem:[#allocation255_spill] sm:$0xff] %v10576_v23  ;;  %14803 = vst [vmem:[#allocation256_spill] sm:$0xff] %v10583_v56 }
 0x34b   : > { %3781 = vrot.lane.b32.xlu1 %v10579_v19, %s7967_s12  ;;  %3779 = vrot.lane.b32.xlu0 %v10586_v33, %s7967_s12 }
 0x34d   : > { %v10594_v23 = vpop.permute.xlu1 %3541  ;;  %v10601_v56 = vpop.permute.xlu0 %3539 }
 0x34e   : > { %14804 = vst [vmem:[#allocation257_spill] sm:$0xff] %v10594_v23  ;;  %14805 = vst [vmem:[#allocation258_spill] sm:$0xff] %v10601_v56 }
 0x34f   : > { %3785 = vrot.lane.b32.xlu1 %v10597_v50, %s7967_s12  ;;  %3783 = vrot.lane.b32.xlu0 %v10604_v29, %s7967_s12 }
 0x351   : > { %v10612_v23 = vpop.permute.xlu1 %3545  ;;  %v10619_v56 = vpop.permute.xlu0 %3543 }
 0x352   : > { %14806 = vst [vmem:[#allocation259_spill] sm:$0xff] %v10612_v23  ;;  %14807 = vst [vmem:[#allocation260_spill] sm:$0xff] %v10619_v56  ;;  %v2668_v23 = vcombine.high %v14808_v59, %v14756_v61  ;;  %v2619_v56 = vcombine.high %v14810_v41, %v14756_v61  ;;  %v14812_v59 = vld [vmem:[#allocation198_spill] sm:$0xff]  ;;  %v14814_v41 = vld [vmem:[#allocation199_spill] sm:$0xff] }
 0x353   : > { %3789 = vrot.lane.b32.xlu1 %v10615_v25, %s7967_s12  ;;  %3787 = vrot.lane.b32.xlu0 %v10622_v17, %s7967_s12 }
 0x354   : > { %v10651_v52 = vrot.slane %v2668_v23, %v8842_v32  ;;  %v10658_v57 = vrot.slane %v2619_v56, %v8842_v32 }
 0x355   : > { %v10630_v12 = vpop.permute.xlu1 %3549  ;;  %v10637_v22 = vpop.permute.xlu0 %3547 }
 0x356   : > { %14809 = vst [vmem:[#allocation196_spill] sm:$0xff] %v10630_v12  ;;  %14811 = vst [vmem:[#allocation197_spill] sm:$0xff] %v10637_v22  ;;  %v2766_v12 = vcombine.high %v14812_v59, %v14756_v61  ;;  %v2717_v22 = vcombine.high %v14814_v41, %v14756_v61  ;;  %v14816_v59 = vld [vmem:[#allocation200_spill] sm:$0xff]  ;;  %v2815_v41 = vcombine.high %v10210_v39, %v14756_v61  ;;  %v14821_v39 = vld [vmem:[#allocation202_spill] sm:$0xff] }
 0x357   : > { %3793 = vrot.lane.b32.xlu1 %v10633_v63, %s7967_s12  ;;  %3791 = vrot.lane.b32.xlu0 %v10640_v13, %s7967_s12 }
 0x358   : > { %v10669_v23 = vrot.slane %v2766_v12, %v8842_v32  ;;  %v10676_v56 = vrot.slane %v2717_v22, %v8842_v32  ;;  %v10694_v22 = vrot.slane %v2815_v41, %v8842_v32 }
 0x359   : > { %v10648_v48 = vpop.permute.xlu1 %3553  ;;  %v10655_v44 = vpop.permute.xlu0 %3551 }
 0x35a   : > { %14813 = vst [vmem:[#allocation198_spill] sm:$0xff] %v10648_v48  ;;  %14815 = vst [vmem:[#allocation199_spill] sm:$0xff] %v10655_v44  ;;  %v2864_v48 = vcombine.high %v14816_v59, %v14756_v61  ;;  %v14819_v59 = vld [vmem:[#allocation201_spill] sm:$0xff] }
 0x35b   : > { %3797 = vrot.lane.b32.xlu1 %v10651_v52, %s7967_s12  ;;  %3795 = vrot.lane.b32.xlu0 %v10658_v57, %s7967_s12 }
 0x35c   : > { %v10687_v12 = vrot.slane %v2864_v48, %v8842_v32 }
 0x35d   : > { %v10666_v37 = vpop.permute.xlu1 %3557  ;;  %v10673_v44 = vpop.permute.xlu0 %3555 }
 0x35e   : > { %14817 = vst [vmem:[#allocation200_spill] sm:$0xff] %v10666_v37  ;;  %14818 = vst [vmem:[#allocation261_spill] sm:$0xff] %v10673_v44  ;;  %v2962_v37 = vcombine.high %v14819_v59, %v14756_v61  ;;  %v2913_v44 = vcombine.high %v14821_v39, %v14756_v61  ;;  %v14823_v59 = vld [vmem:[#allocation203_spill] sm:$0xff]  ;;  %v14825_v39 = vld [vmem:[#allocation205_spill] sm:$0xff] }
 0x35f   : > { %3801 = vrot.lane.b32.xlu1 %v10669_v23, %s7967_s12  ;;  %3799 = vrot.lane.b32.xlu0 %v10676_v56, %s7967_s12 }
 0x360   : > { %v10705_v48 = vrot.slane %v2962_v37, %v8842_v32  ;;  %v10712_v41 = vrot.slane %v2913_v44, %v8842_v32 }
 0x361   : > { %v10684_v62 = vpop.permute.xlu1 %3625  ;;  %v10691_v6 = vpop.permute.xlu0 %3623 }
 0x362   : > { %14820 = vst [vmem:[#allocation201_spill] sm:$0xff] %v10684_v62  ;;  %14822 = vst [vmem:[#allocation202_spill] sm:$0xff] %v10691_v6  ;;  %v3060_v62 = vcombine.high %v14823_v59, %v14756_v61  ;;  %v3011_v6 = vcombine.high %v14825_v39, %v14756_v61 }
 0x363   : > { %3805 = vrot.lane.b32.xlu1 %v10687_v12, %s7967_s12  ;;  %3803 = vrot.lane.b32.xlu0 %v10694_v22, %s7967_s12 }
 0x364   : > { %v10726_v39 = vrot.slane %v3011_v6, %v8842_v32 }
 0x365   : > { %v10702_v42 = vpop.permute.xlu1 %3629  ;;  %v10709_v0 = vpop.permute.xlu0 %3627 }
 0x366   : > { %14824 = vst [vmem:[#allocation203_spill] sm:$0xff] %v10702_v42  ;;  %14826 = vst [vmem:[#allocation205_spill] sm:$0xff] %v10709_v0  ;;  %v10721_v42 = vrot.slane %v3060_v62, %v8842_v32  ;;  %v1608_v0 = vcombine.high %v10453_v27, %v14756_v61  ;;  %v1559_v62 = vcombine.high %v10460_v34, %v14756_v61 }
 0x367   : > { %3809 = vrot.lane.b32.xlu1 %v10705_v48, %s7967_s12  ;;  %3807 = vrot.lane.b32.xlu0 %v10712_v41, %s7967_s12  ;;  %v1657_v27 = vcombine.high %v10478_v49, %v14756_v61  ;;  %v1902_v49 = vcombine.high %v10507_v54, %v14756_v61 }
 0x369   : > { %v10718_v59 = vpop.permute.xlu1 %3633  ;;  %v10723_v37 = vpop.permute.xlu0 %3631 }
 0x36a   : > { %14827 = vst [vmem:[#allocation262_spill] sm:$0xff] %v10718_v59  ;;  %14828 = vst [vmem:[#allocation263_spill] sm:$0xff] %v10723_v37  ;;  %v1706_v37 = vcombine.high %v10471_v51, %v14756_v61 }
 0x36b   : > { %3813 = vrot.lane.b32.xlu1 %v10721_v42, %s7967_s12  ;;  %3811 = vrot.lane.b32.xlu0 %v10726_v39, %s7967_s12 }
 0x36d   : > { %v10732_v44 = vpop.permute.xlu1 %3637  ;;  %v10736_v59 = vpop.permute.xlu0 %3635 }
 0x36e   : > { %14829 = vst [vmem:[#allocation264_spill] sm:$0xff] %v10732_v44  ;;  %14830 = vst [vmem:[#allocation265_spill] sm:$0xff] %v10736_v59 }
 0x36f   : > { %3881 = vrot.lane.b32.xlu1 %v1608_v0, %s7968_s20  ;;  %3879 = vrot.lane.b32.xlu0 %v1559_v62, %s7968_s20  ;;  %v1804_v0 = vcombine.high %v10489_v43, %v14756_v61 }
 0x371   : > { %v10742_v6 = vpop.permute.xlu1 %3641  ;;  %v10746_v2 = vpop.permute.xlu0 %3639 }
 0x372   : > { %14831 = vst [vmem:[#allocation266_spill] sm:$0xff] %v10742_v6  ;;  %14832 = vst [vmem:[#allocation267_spill] sm:$0xff] %v10746_v2  ;;  %v1755_v6 = vcombine.high %v10496_v16, %v14756_v61  ;;  %v2000_v16 = vcombine.high %v10525_v60, %v14756_v61 }
 0x373   : > { %3885 = vrot.lane.b32.xlu1 %v1706_v37, %s7968_s20  ;;  %3883 = vrot.lane.b32.xlu0 %v1657_v27, %s7968_s20  ;;  %v1853_v27 = vcombine.high %v10514_v15, %v14756_v61  ;;  %v2098_v15 = vcombine.high %v10543_v38, %v14756_v61 }
 0x375   : > { %v10752_v34 = vpop.permute.xlu1 %3645  ;;  %v10756_v62 = vpop.permute.xlu0 %3643 }
 0x376   : > { %14833 = vst [vmem:[#allocation268_spill] sm:$0xff] %v10752_v34  ;;  %14834 = vst [vmem:[#allocation269_spill] sm:$0xff] %v10756_v62  ;;  %v14898_v62 = vld [vmem:[#allocation123_spill] sm:$0xff] }
 0x377   : > { %3889 = vrot.lane.b32.xlu1 %v1804_v0, %s7968_s20  ;;  %3887 = vrot.lane.b32.xlu0 %v1755_v6, %s7968_s20  ;;  %v1951_v0 = vcombine.high %v10532_v7, %v14756_v61  ;;  %v2196_v7 = vcombine.high %v10561_v46, %v14756_v61 }
 0x379   : > { %v10762_v51 = vpop.permute.xlu1 %3649  ;;  %v10766_v37 = vpop.permute.xlu0 %3647 }
 0x37a   : > { %14835 = vst [vmem:[#allocation270_spill] sm:$0xff] %v10762_v51  ;;  %14836 = vst [vmem:[#allocation271_spill] sm:$0xff] %v10766_v37 }
 0x37b   : > { %3893 = vrot.lane.b32.xlu1 %v1902_v49, %s7968_s20  ;;  %3891 = vrot.lane.b32.xlu0 %v1853_v27, %s7968_s20  ;;  %v2049_v27 = vcombine.high %v10550_v18, %v14756_v61  ;;  %v2294_v18 = vcombine.high %v10579_v19, %v14756_v61 }
 0x37d   : > { %v10772_v43 = vpop.permute.xlu1 %3653  ;;  %v10776_v6 = vpop.permute.xlu0 %3651 }
 0x37e   : > { %14837 = vst [vmem:[#allocation272_spill] sm:$0xff] %v10772_v43  ;;  %14838 = vst [vmem:[#allocation273_spill] sm:$0xff] %v10776_v6 }
 0x37f   : > { %3897 = vrot.lane.b32.xlu1 %v2000_v16, %s7968_s20  ;;  %3895 = vrot.lane.b32.xlu0 %v1951_v0, %s7968_s20  ;;  %v2147_v0 = vcombine.high %v10568_v1, %v14756_v61  ;;  %v2392_v1 = vcombine.high %v10597_v50, %v14756_v61 }
 0x381   : > { %v10782_v54 = vpop.permute.xlu1 %3657  ;;  %v10786_v49 = vpop.permute.xlu0 %3655 }
 0x382   : > { %14839 = vst [vmem:[#allocation274_spill] sm:$0xff] %v10782_v54  ;;  %14840 = vst [vmem:[#allocation275_spill] sm:$0xff] %v10786_v49  ;;  %v14890_v54 = vld [vmem:[#allocation121_spill] sm:$0xff] }
 0x383   : > { %3901 = vrot.lane.b32.xlu1 %v2098_v15, %s7968_s20  ;;  %3899 = vrot.lane.b32.xlu0 %v2049_v27, %s7968_s20  ;;  %v2245_v27 = vcombine.high %v10586_v33, %v14756_v61  ;;  %v2490_v33 = vcombine.high %v10615_v25, %v14756_v61 }
 0x385   : > { %v10792_v60 = vpop.permute.xlu1 %3661  ;;  %v10796_v16 = vpop.permute.xlu0 %3659 }
 0x386   : > { %14841 = vst [vmem:[#allocation276_spill] sm:$0xff] %v10792_v60  ;;  %14842 = vst [vmem:[#allocation277_spill] sm:$0xff] %v10796_v16 }
 0x387   : > { %3905 = vrot.lane.b32.xlu1 %v2196_v7, %s7968_s20  ;;  %3903 = vrot.lane.b32.xlu0 %v2147_v0, %s7968_s20  ;;  %v2343_v0 = vcombine.high %v10604_v29, %v14756_v61  ;;  %v2588_v29 = vcombine.high %v10633_v63, %v14756_v61 }
 0x389   : > { %v10802_v38 = vpop.permute.xlu1 %3665  ;;  %v10806_v15 = vpop.permute.xlu0 %3663 }
 0x38a   : > { %14843 = vst [vmem:[#allocation278_spill] sm:$0xff] %v10802_v38  ;;  %14844 = vst [vmem:[#allocation279_spill] sm:$0xff] %v10806_v15  ;;  %v14882_v15 = vld [vmem:[#allocation119_spill] sm:$0xff] }
 0x38b   : > { %3909 = vrot.lane.b32.xlu1 %v2294_v18, %s7968_s20  ;;  %3907 = vrot.lane.b32.xlu0 %v2245_v27, %s7968_s20  ;;  %v2441_v27 = vcombine.high %v10622_v17, %v14756_v61  ;;  %v2686_v17 = vcombine.high %v10651_v52, %v14756_v61 }
 0x38d   : > { %v10812_v46 = vpop.permute.xlu1 %3669  ;;  %v10816_v7 = vpop.permute.xlu0 %3667 }
 0x38e   : > { %14845 = vst [vmem:[#allocation280_spill] sm:$0xff] %v10812_v46  ;;  %14846 = vst [vmem:[#allocation281_spill] sm:$0xff] %v10816_v7 }
 0x38f   : > { %3913 = vrot.lane.b32.xlu1 %v2392_v1, %s7968_s20  ;;  %3911 = vrot.lane.b32.xlu0 %v2343_v0, %s7968_s20  ;;  %v2539_v0 = vcombine.high %v10640_v13, %v14756_v61  ;;  %v2784_v13 = vcombine.high %v10669_v23, %v14756_v61 }
 0x391   : > { %v10822_v19 = vpop.permute.xlu1 %3673  ;;  %v10826_v18 = vpop.permute.xlu0 %3671 }
 0x392   : > { %14847 = vst [vmem:[#allocation282_spill] sm:$0xff] %v10822_v19  ;;  %14848 = vst [vmem:[#allocation283_spill] sm:$0xff] %v10826_v18 }
 0x393   : > { %3917 = vrot.lane.b32.xlu1 %v2490_v33, %s7968_s20  ;;  %3915 = vrot.lane.b32.xlu0 %v2441_v27, %s7968_s20  ;;  %v2637_v27 = vcombine.high %v10658_v57, %v14756_v61  ;;  %v2882_v57 = vcombine.high %v10687_v12, %v14756_v61  ;;  %v14861_v12 = vld [vmem:[#allocation55_spill] sm:$0xff] }
 0x395   : > { %v10832_v50 = vpop.permute.xlu1 %3677  ;;  %v10836_v1 = vpop.permute.xlu0 %3675 }
 0x396   : > { %14849 = vst [vmem:[#allocation284_spill] sm:$0xff] %v10832_v50  ;;  %14850 = vst [vmem:[#allocation285_spill] sm:$0xff] %v10836_v1  ;;  %v14874_v50 = vld [vmem:[#allocation117_spill] sm:$0xff] }
 0x397   : > { %3921 = vrot.lane.b32.xlu1 %v2588_v29, %s7968_s20  ;;  %3919 = vrot.lane.b32.xlu0 %v2539_v0, %s7968_s20  ;;  %v2735_v0 = vcombine.high %v10676_v56, %v14756_v61  ;;  %v14859_v56 = vld [vmem:[#allocation111_spill] sm:$0xff] }
 0x399   : > { %v10842_v25 = vpop.permute.xlu1 %3681  ;;  %v10846_v33 = vpop.permute.xlu0 %3679 }
 0x39a   : > { %14851 = vst [vmem:[#allocation286_spill] sm:$0xff] %v10842_v25  ;;  %14852 = vst [vmem:[#allocation287_spill] sm:$0xff] %v10846_v33  ;;  %v14860_v33 = vld [vmem:[#allocation57_spill] sm:$0xff] }
 0x39b   : > { %3925 = vrot.lane.b32.xlu1 %v2686_v17, %s7968_s20  ;;  %3923 = vrot.lane.b32.xlu0 %v2637_v27, %s7968_s20  ;;  %v14856_v17 = vld [vmem:[#allocation109_spill] sm:$0xff]  ;;  %v14857_v27 = vld [vmem:[#allocation56_spill] sm:$0xff] }
 0x39c   : > { %v14863_v25 = vld [vmem:[#allocation113_spill] sm:$0xff] }
 0x39d   : > { %v10852_v63 = vpop.permute.xlu1 %3685  ;;  %v10856_v29 = vpop.permute.xlu0 %3683 }
 0x39e   : > { %14853 = vst [vmem:[#allocation288_spill] sm:$0xff] %v10852_v63  ;;  %14854 = vst [vmem:[#allocation289_spill] sm:$0xff] %v10856_v29  ;;  %v10869_v63 = vsel %vm998_vm0, %v14857_v27, %v14856_v17  ;;  %v2833_v29 = vcombine.high %v10694_v22, %v14756_v61  ;;  %v2980_v27 = vcombine.high %v10705_v48, %v14756_v61 }
 0x39f   : > { %3929 = vrot.lane.b32.xlu1 %v2784_v13, %s7968_s20  ;;  %3927 = vrot.lane.b32.xlu0 %v2735_v0, %s7968_s20  ;;  %v10878_v13 = vsel %vm998_vm0, %v14860_v33, %v14859_v56  ;;  %v10884_v0 = vrot.slane %v10869_v63, %v14861_v12  ;;  %v14864_v33 = vld [vmem:[#allocation58_spill] sm:$0xff] }
 0x3a0   : > { %v10892_v22 = vrot.slane %v10878_v13, %v14861_v12  ;;  %v10897_v56 = vsel %vm998_vm0, %v14864_v33, %v14863_v25 }
 0x3a1   : > { %v10862_v52 = vpop.permute.xlu1 %3753  ;;  %v10871_v23 = vpop.permute.xlu0 %3751  ;;  %v10912_v48 = vrot.slane %v10884_v0, %v8842_v32  ;;  %v10916_v25 = vrot.slane %v10897_v56, %v14861_v12 }
 0x3a2   : > { %14855 = vst [vmem:[#allocation290_spill] sm:$0xff] %v10862_v52  ;;  %14858 = vst [vmem:[#allocation109_spill] sm:$0xff] %v10871_v23  ;;  %v14866_v23 = vld [vmem:[#allocation115_spill] sm:$0xff] }
 0x3a3   : > { %3933 = vrot.lane.b32.xlu1 %v2882_v57, %s7968_s20  ;;  %3931 = vrot.lane.b32.xlu0 %v2833_v29, %s7968_s20  ;;  %v2931_v29 = vcombine.high %v10712_v41, %v14756_v61  ;;  %v14867_v52 = vld [vmem:[#allocation59_spill] sm:$0xff]  ;;  %14868 = vst [vmem:[#allocation57_spill] sm:$0xff] %v10912_v48  ;;  %v3078_v41 = vcombine.high %v10721_v42, %v14756_v61  ;;  %v14875_v42 = vld [vmem:[#allocation62_spill] sm:$0xff] }
 0x3a4   : > { %v10942_v18 = vsel %vm998_vm0, %v14875_v42, %v14874_v50  ;;  %v4300_v19 = vcombine.high %v10912_v48, %v14756_v61  ;;  %v14879_v42 = vld [vmem:[#allocation118_spill] sm:$0xff] }
 0x3a5   : > { %v10886_v17 = vpop.permute.xlu1 %3757  ;;  %v10899_v57 = vpop.permute.xlu0 %3755 }
 0x3a6   : > { %14862 = vst [vmem:[#allocation56_spill] sm:$0xff] %v10886_v17  ;;  %14865 = vst [vmem:[#allocation111_spill] sm:$0xff] %v10899_v57  ;;  %v10906_v17 = vsel %vm998_vm0, %v14867_v52, %v14866_v23  ;;  %v10924_v52 = vrot.slane %v10892_v22, %v8842_v32 }
 0x3a7   : > { %3937 = vrot.lane.b32.xlu1 %v2980_v27, %s7968_s20  ;;  %3935 = vrot.lane.b32.xlu0 %v2931_v29, %s7968_s20  ;;  %v10928_v23 = vrot.slane %v10906_v17, %v14861_v12  ;;  %v14871_v27 = vld [vmem:[#allocation116_spill] sm:$0xff]  ;;  %v14872_v29 = vld [vmem:[#allocation61_spill] sm:$0xff] }
 0x3a8   : > { %14870 = vst [vmem:[#allocation58_spill] sm:$0xff] %v10924_v52  ;;  %v10933_v57 = vsel %vm998_vm0, %v14872_v29, %v14871_v27  ;;  %v10950_v27 = vrot.slane %v10916_v25, %v8842_v32  ;;  %v4251_v50 = vcombine.high %v10924_v52, %v14756_v61 }
 0x3a9   : > { %v10918_v33 = vpop.permute.xlu1 %3761  ;;  %v10935_v1 = vpop.permute.xlu0 %3759  ;;  %v10954_v29 = vrot.slane %v10933_v57, %v14861_v12 }
 0x3aa   : > { %14869 = vst [vmem:[#allocation113_spill] sm:$0xff] %v10918_v33  ;;  %14873 = vst [vmem:[#allocation115_spill] sm:$0xff] %v10935_v1  ;;  %v3029_v33 = vcombine.high %v10726_v39, %v14756_v61  ;;  %v14880_v1 = vld [vmem:[#allocation65_spill] sm:$0xff]  ;;  %v4398_v16 = vcombine.high %v10950_v27, %v14756_v61 }
 0x3ab   : > { %3941 = vrot.lane.b32.xlu1 %v3078_v41, %s7968_s20  ;;  %14876 = vst [vmem:[#allocation59_spill] sm:$0xff] %v10950_v27  ;;  %v10962_v41 = vrot.slane %v10928_v23, %v8842_v32  ;;  %v10971_v7 = vsel %vm998_vm0, %v14880_v1, %v14879_v42  ;;  %v10986_v60 = vrot.slane %v10954_v29, %v8842_v32  ;;  %v14888_v27 = vld [vmem:[#allocation69_spill] sm:$0xff] }
 0x3ac   : > { %3939 = vrot.lane.b32.xlu0 %v3029_v33, %s7968_s20  ;;  %v10966_v33 = vrot.slane %v10942_v18, %v14861_v12  ;;  %v10990_v1 = vrot.slane %v10971_v7, %v14861_v12 }
 0x3ad   : > { %v10956_v39 = vpop.permute.xlu1 %3765  ;;  %14878 = vst [vmem:[#allocation61_spill] sm:$0xff] %v10962_v41  ;;  %v10973_v46 = vpop.permute.xlu0 %3763  ;;  %14884 = vst [vmem:[#allocation62_spill] sm:$0xff] %v10986_v60 }
 0x3ae   : > { %14877 = vst [vmem:[#allocation116_spill] sm:$0xff] %v10956_v39  ;;  %14881 = vst [vmem:[#allocation117_spill] sm:$0xff] %v10973_v46  ;;  %v14883_v39 = vld [vmem:[#allocation66_spill] sm:$0xff]  ;;  %v11022_v43 = vrot.slane %v10990_v1, %v8842_v32 }
 0x3af   : > { %v10978_v38 = vsel %vm998_vm0, %v14883_v39, %v14882_v15  ;;  %5808 = vrot.lane.b32.xlu1 %v4300_v19, %s7962_s29  ;;  %v4349_v15 = vcombine.high %v10962_v41, %v14756_v61  ;;  %v10998_v19 = vrot.slane %v10966_v33, %v8842_v32  ;;  %v4496_v41 = vcombine.high %v10986_v60, %v14756_v61  ;;  %v14961_v60 = vld [vmem:[#allocation137_spill] sm:$0xff] }
 0x3b0   : > { %5806 = vrot.lane.b32.xlu0 %v4251_v50, %s7962_s29  ;;  %v11002_v39 = vrot.slane %v10978_v38, %v14861_v12  ;;  %v14887_v50 = vld [vmem:[#allocation120_spill] sm:$0xff]  ;;  %14892 = vst [vmem:[#allocation66_spill] sm:$0xff] %v11022_v43  ;;  %v4594_v2 = vcombine.high %v11022_v43, %v14756_v61  ;;  %v14904_v43 = vld [vmem:[#allocation77_spill] sm:$0xff] }
 0x3b1   : > { %v10992_v42 = vpop.permute.xlu1 %3769  ;;  %14886 = vst [vmem:[#allocation65_spill] sm:$0xff] %v10998_v19  ;;  %v11007_v46 = vsel %vm998_vm0, %v14888_v27, %v14887_v50  ;;  %v11009_v49 = vpop.permute.xlu0 %3767 }
 0x3b2   : > { %14885 = vst [vmem:[#allocation118_spill] sm:$0xff] %v10992_v42  ;;  %14889 = vst [vmem:[#allocation119_spill] sm:$0xff] %v11009_v49  ;;  %v14891_v42 = vld [vmem:[#allocation70_spill] sm:$0xff]  ;;  %v11026_v27 = vrot.slane %v11007_v46, %v14861_v12  ;;  %v14896_v49 = vld [vmem:[#allocation73_spill] sm:$0xff] }
 0x3b3   : > { %v11014_v6 = vsel %vm998_vm0, %v14891_v42, %v14890_v54  ;;  %5812 = vrot.lane.b32.xlu1 %v4398_v16, %s7962_s29  ;;  %v4447_v54 = vcombine.high %v10998_v19, %v14756_v61  ;;  %v11034_v16 = vrot.slane %v11002_v39, %v8842_v32 }
 0x3b4   : > { %5810 = vrot.lane.b32.xlu0 %v4349_v15, %s7962_s29  ;;  %v11038_v42 = vrot.slane %v11014_v6, %v14861_v12  ;;  %v14895_v15 = vld [vmem:[#allocation122_spill] sm:$0xff]  ;;  %v11058_v59 = vrot.slane %v11026_v27, %v8842_v32 }
 0x3b5   : > { %v11028_v50 = vpop.permute.xlu1 %3773  ;;  %14894 = vst [vmem:[#allocation69_spill] sm:$0xff] %v11034_v16  ;;  %v11043_v37 = vsel %vm998_vm0, %v14896_v49, %v14895_v15  ;;  %v11045_v51 = vpop.permute.xlu0 %3771 }
 0x3b6   : > { %14893 = vst [vmem:[#allocation120_spill] sm:$0xff] %v11028_v50  ;;  %14897 = vst [vmem:[#allocation121_spill] sm:$0xff] %v11045_v51  ;;  %v14899_v50 = vld [vmem:[#allocation74_spill] sm:$0xff]  ;;  %v11062_v49 = vrot.slane %v11043_v37, %v14861_v12 }
 0x3b7   : > { %v11050_v34 = vsel %vm998_vm0, %v14899_v50, %v14898_v62  ;;  %5816 = vrot.lane.b32.xlu1 %v4496_v41, %s7962_s29  ;;  %14900 = vst [vmem:[#allocation70_spill] sm:$0xff] %v11058_v59  ;;  %v4545_v62 = vcombine.high %v11034_v16, %v14756_v61  ;;  %v11070_v41 = vrot.slane %v11038_v42, %v8842_v32 }
 0x3b8   : > { %5814 = vrot.lane.b32.xlu0 %v4447_v54, %s7962_s29  ;;  %v11074_v50 = vrot.slane %v11050_v34, %v14861_v12  ;;  %v14903_v54 = vld [vmem:[#allocation124_spill] sm:$0xff]  ;;  %v4692_v16 = vcombine.high %v11058_v59, %v14756_v61  ;;  %v11094_v10 = vrot.slane %v11062_v49, %v8842_v32 }
 0x3b9   : > { %v11064_v15 = vpop.permute.xlu1 %3777  ;;  %14902 = vst [vmem:[#allocation73_spill] sm:$0xff] %v11070_v41  ;;  %v11079_v51 = vsel %vm998_vm0, %v14904_v43, %v14903_v54  ;;  %v11081_v44 = vpop.permute.xlu0 %3775 }
 0x3ba   : > { %14901 = vst [vmem:[#allocation122_spill] sm:$0xff] %v11064_v15  ;;  %14905 = vst [vmem:[#allocation123_spill] sm:$0xff] %v11081_v44  ;;  %v14907_v15 = vld [vmem:[#allocation78_spill] sm:$0xff]  ;;  %v11098_v43 = vrot.slane %v11079_v51, %v14861_v12  ;;  %v14912_v44 = vld [vmem:[#allocation81_spill] sm:$0xff]  ;;  %v4790_v26 = vcombine.high %v11094_v10, %v14756_v61 }
 0x3bb   : > { %v11086_v45 = vsel %vm998_vm0, %v14907_v15, %v14906_v53  ;;  %5820 = vrot.lane.b32.xlu1 %v4594_v2, %s7962_s29  ;;  %14908 = vst [vmem:[#allocation74_spill] sm:$0xff] %v11094_v10  ;;  %v4643_v53 = vcombine.high %v11070_v41, %v14756_v61  ;;  %v11106_v2 = vrot.slane %v11074_v50, %v8842_v32  ;;  %v14920_v10 = vld [vmem:[#allocation85_spill] sm:$0xff] }
 0x3bc   : > { %5818 = vrot.lane.b32.xlu0 %v4545_v62, %s7962_s29  ;;  %v11110_v15 = vrot.slane %v11086_v45, %v14861_v12  ;;  %v14911_v62 = vld [vmem:[#allocation126_spill] sm:$0xff]  ;;  %v11130_v9 = vrot.slane %v11098_v43, %v8842_v32 }
 0x3bd   : > { %v11100_v54 = vpop.permute.xlu1 %3781  ;;  %14910 = vst [vmem:[#allocation77_spill] sm:$0xff] %v11106_v2  ;;  %v11115_v4 = vsel %vm998_vm0, %v14912_v44, %v14911_v62  ;;  %v11117_v30 = vpop.permute.xlu0 %3779 }
 0x3be   : > { %14909 = vst [vmem:[#allocation124_spill] sm:$0xff] %v11100_v54  ;;  %14913 = vst [vmem:[#allocation125_spill] sm:$0xff] %v11117_v30  ;;  %v14915_v54 = vld [vmem:[#allocation82_spill] sm:$0xff]  ;;  %v11134_v44 = vrot.slane %v11115_v4, %v14861_v12 }
 0x3bf   : > { %v11122_v35 = vsel %vm998_vm0, %v14915_v54, %v14914_v14  ;;  %5824 = vrot.lane.b32.xlu1 %v4692_v16, %s7962_s29  ;;  %14916 = vst [vmem:[#allocation78_spill] sm:$0xff] %v11130_v9  ;;  %v4741_v14 = vcombine.high %v11106_v2, %v14756_v61  ;;  %v11142_v16 = vrot.slane %v11110_v15, %v8842_v32 }
 0x3c0   : > { %5822 = vrot.lane.b32.xlu0 %v4643_v53, %s7962_s29  ;;  %v11146_v54 = vrot.slane %v11122_v35, %v14861_v12  ;;  %v14919_v53 = vld [vmem:[#allocation128_spill] sm:$0xff]  ;;  %v4888_v2 = vcombine.high %v11130_v9, %v14756_v61  ;;  %v11166_v21 = vrot.slane %v11134_v44, %v8842_v32 }
 0x3c1   : > { %v11136_v62 = vpop.permute.xlu1 %3785  ;;  %14918 = vst [vmem:[#allocation81_spill] sm:$0xff] %v11142_v16  ;;  %v11151_v30 = vsel %vm998_vm0, %v14920_v10, %v14919_v53  ;;  %v11153_v58 = vpop.permute.xlu0 %3783 }
 0x3c2   : > { %14917 = vst [vmem:[#allocation126_spill] sm:$0xff] %v11136_v62  ;;  %14921 = vst [vmem:[#allocation127_spill] sm:$0xff] %v11153_v58  ;;  %v14923_v62 = vld [vmem:[#allocation86_spill] sm:$0xff]  ;;  %v11170_v10 = vrot.slane %v11151_v30, %v14861_v12  ;;  %v14928_v58 = vld [vmem:[#allocation89_spill] sm:$0xff]  ;;  %v4986_v47 = vcombine.high %v11166_v21, %v14756_v61 }
 0x3c3   : > { %v11158_v55 = vsel %vm998_vm0, %v14923_v62, %v14922_v11  ;;  %5828 = vrot.lane.b32.xlu1 %v4790_v26, %s7962_s29  ;;  %14924 = vst [vmem:[#allocation82_spill] sm:$0xff] %v11166_v21  ;;  %v4839_v11 = vcombine.high %v11142_v16, %v14756_v61  ;;  %v11178_v26 = vrot.slane %v11146_v54, %v8842_v32  ;;  %v14938_v21 = vld [vmem:[#allocation93_spill] sm:$0xff] }
 0x3c4   : > { %5826 = vrot.lane.b32.xlu0 %v4741_v14, %s7962_s29  ;;  %v11182_v62 = vrot.slane %v11158_v55, %v14861_v12  ;;  %v14927_v14 = vld [vmem:[#allocation130_spill] sm:$0xff]  ;;  %v11202_v3 = vrot.slane %v11170_v10, %v8842_v32 }
 0x3c5   : > { %v11172_v53 = vpop.permute.xlu1 %3789  ;;  %14926 = vst [vmem:[#allocation85_spill] sm:$0xff] %v11178_v26  ;;  %v11187_v28 = vsel %vm998_vm0, %v14928_v58, %v14927_v14  ;;  %v11189_v5 = vpop.permute.xlu0 %3787 }
 0x3c6   : > { %14925 = vst [vmem:[#allocation128_spill] sm:$0xff] %v11172_v53  ;;  %14929 = vst [vmem:[#allocation129_spill] sm:$0xff] %v11187_v28  ;;  %v14932_v53 = vld [vmem:[#allocation90_spill] sm:$0xff]  ;;  %v11206_v58 = vrot.slane %v11187_v28, %v14861_v12 }
 0x3c7   : > { %14930 = vst [vmem:[#allocation86_spill] sm:$0xff] %v11189_v5  ;;  %v11194_v8 = vsel %vm998_vm0, %v14932_v53, %v14931_v20  ;;  %5832 = vrot.lane.b32.xlu1 %v4888_v2, %s7962_s29  ;;  %14934 = vst [vmem:[#allocation89_spill] sm:$0xff] %v11202_v3  ;;  %v4937_v20 = vcombine.high %v11178_v26, %v14756_v61  ;;  %v11214_v2 = vrot.slane %v11182_v62, %v8842_v32 }
 0x3c8   : > { %14933 = vst [vmem:[#allocation130_spill] sm:$0xff] %v11194_v8  ;;  %5830 = vrot.lane.b32.xlu0 %v4839_v11, %s7962_s29  ;;  %v11218_v53 = vrot.slane %v11194_v8, %v14861_v12  ;;  %v14937_v11 = vld [vmem:[#allocation132_spill] sm:$0xff]  ;;  %v5084_v26 = vcombine.high %v11202_v3, %v14756_v61  ;;  %v11238_v9 = vrot.slane %v11206_v58, %v8842_v32  ;;  %v14991_v8 = vld [vmem:[#allocation143_spill] sm:$0xff] }
 0x3c9   : > { %v11208_v14 = vpop.permute.xlu1 %3793  ;;  %14936 = vst [vmem:[#allocation90_spill] sm:$0xff] %v11214_v2  ;;  %v11223_v5 = vsel %vm998_vm0, %v14938_v21, %v14937_v11  ;;  %v11225_v16 = vpop.permute.xlu0 %3791 }
 0x3ca   : > { %14935 = vst [vmem:[#allocation131_spill] sm:$0xff] %v11208_v14  ;;  %14939 = vst [vmem:[#allocation132_spill] sm:$0xff] %v11223_v5  ;;  %v14942_v14 = vld [vmem:[#allocation94_spill] sm:$0xff]  ;;  %v11242_v21 = vrot.slane %v11223_v5, %v14861_v12 }
 0x3cb   : > { %14940 = vst [vmem:[#allocation93_spill] sm:$0xff] %v11225_v16  ;;  %v11230_v24 = vsel %vm998_vm0, %v14942_v14, %v14941_v40  ;;  %5836 = vrot.lane.b32.xlu1 %v4986_v47, %s7962_s29  ;;  %14944 = vst [vmem:[#allocation94_spill] sm:$0xff] %v11238_v9  ;;  %v5035_v40 = vcombine.high %v11214_v2, %v14756_v61  ;;  %v11250_v47 = vrot.slane %v11218_v53, %v8842_v32  ;;  %v14948_v16 = vld [vmem:[#allocation35_spill] sm:$0xff] }
 0x3cc   : > { %14943 = vst [vmem:[#allocation133_spill] sm:$0xff] %v11230_v24  ;;  %5834 = vrot.lane.b32.xlu0 %v4937_v20, %s7962_s29  ;;  %v11254_v14 = vrot.slane %v11230_v24, %v14861_v12  ;;  %v14947_v20 = vld [vmem:[#allocation134_spill] sm:$0xff]  ;;  %v5182_v2 = vcombine.high %v11238_v9, %v14756_v61  ;;  %v11274_v59 = vrot.slane %v11242_v21, %v8842_v32  ;;  %v14958_v9 = vld [vmem:[#allocation37_spill] sm:$0xff] }
 0x3cd   : > { %v11244_v11 = vpop.permute.xlu1 %3797  ;;  %14946 = vst [vmem:[#allocation292_spill] sm:$0xff] %v11250_v47  ;;  %v11259_v3 = vsel %vm998_vm0, %v14948_v16, %v14947_v20  ;;  %v11261_v31 = vpop.permute.xlu0 %3795  ;;  %v14981_v24 = vld [vmem:[#allocation141_spill] sm:$0xff] }
 0x3ce   : > { %14945 = vst [vmem:[#allocation291_spill] sm:$0xff] %v11244_v11  ;;  %14949 = vst [vmem:[#allocation134_spill] sm:$0xff] %v11259_v3  ;;  %v14952_v11 = vld [vmem:[#allocation96_spill] sm:$0xff]  ;;  %v11278_v16 = vrot.slane %v11259_v3, %v14861_v12 }
 0x3cf   : > { %14950 = vst [vmem:[#allocation35_spill] sm:$0xff] %v11261_v31  ;;  %v11266_v41 = vsel %vm998_vm0, %v14952_v11, %v14951_v36  ;;  %5840 = vrot.lane.b32.xlu1 %v5084_v26, %s7962_s29  ;;  %14954 = vst [vmem:[#allocation96_spill] sm:$0xff] %v11274_v59  ;;  %v5133_v36 = vcombine.high %v11250_v47, %v14756_v61  ;;  %v11286_v26 = vrot.slane %v11254_v14, %v8842_v32 }
 0x3d0   : > { %14953 = vst [vmem:[#allocation135_spill] sm:$0xff] %v11266_v41  ;;  %5838 = vrot.lane.b32.xlu0 %v5035_v40, %s7962_s29  ;;  %v11290_v11 = vrot.slane %v11266_v41, %v14861_v12  ;;  %v14957_v40 = vld [vmem:[#allocation136_spill] sm:$0xff]  ;;  %v5280_v47 = vcombine.high %v11274_v59, %v14756_v61  ;;  %v11310_v48 = vrot.slane %v11278_v16, %v8842_v32  ;;  %v14971_v41 = vld [vmem:[#allocation139_spill] sm:$0xff] }
 0x3d1   : > { %v11280_v20 = vpop.permute.xlu1 %3801  ;;  %14956 = vst [vmem:[#allocation294_spill] sm:$0xff] %v11286_v26  ;;  %v11295_v31 = vsel %vm998_vm0, %v14958_v9, %v14957_v40  ;;  %v11297_v19 = vpop.permute.xlu0 %3799 }
 0x3d2   : > { %14955 = vst [vmem:[#allocation293_spill] sm:$0xff] %v11280_v20  ;;  %14959 = vst [vmem:[#allocation136_spill] sm:$0xff] %v11295_v31  ;;  %v14962_v20 = vld [vmem:[#allocation98_spill] sm:$0xff]  ;;  %v11314_v9 = vrot.slane %v11295_v31, %v14861_v12 }
 0x3d3   : > { %14960 = vst [vmem:[#allocation37_spill] sm:$0xff] %v11297_v19  ;;  %v11302_v52 = vsel %vm998_vm0, %v14962_v20, %v14961_v60  ;;  %5844 = vrot.lane.b32.xlu1 %v5182_v2, %s7962_s29  ;;  %14964 = vst [vmem:[#allocation98_spill] sm:$0xff] %v11310_v48  ;;  %v5231_v60 = vcombine.high %v11286_v26, %v14756_v61  ;;  %v11322_v2 = vrot.slane %v11290_v11, %v8842_v32  ;;  %v14968_v19 = vld [vmem:[#allocation39_spill] sm:$0xff] }
 0x3d4   : > { %14963 = vst [vmem:[#allocation137_spill] sm:$0xff] %v11302_v52  ;;  %5842 = vrot.lane.b32.xlu0 %v5133_v36, %s7962_s29  ;;  %v11326_v20 = vrot.slane %v11302_v52, %v14861_v12  ;;  %v14967_v36 = vld [vmem:[#allocation138_spill] sm:$0xff]  ;;  %v5378_v26 = vcombine.high %v11310_v48, %v14756_v61  ;;  %v11346_v52 = vrot.slane %v11314_v9, %v8842_v32 }
 0x3d5   : > { %v11316_v40 = vpop.permute.xlu1 %3805  ;;  %14966 = vst [vmem:[#allocation296_spill] sm:$0xff] %v11322_v2  ;;  %v11331_v59 = vsel %vm998_vm0, %v14968_v19, %v14967_v36  ;;  %v11333_v31 = vpop.permute.xlu0 %3803 }
 0x3d6   : > { %14965 = vst [vmem:[#allocation295_spill] sm:$0xff] %v11316_v40  ;;  %14969 = vst [vmem:[#allocation138_spill] sm:$0xff] %v11331_v59  ;;  %v14972_v40 = vld [vmem:[#allocation40_spill] sm:$0xff]  ;;  %v11350_v19 = vrot.slane %v11331_v59, %v14861_v12 }
 0x3d7   : > { %14970 = vst [vmem:[#allocation39_spill] sm:$0xff] %v11333_v31  ;;  %v11338_v3 = vsel %vm998_vm0, %v14972_v40, %v14971_v41  ;;  %5848 = vrot.lane.b32.xlu1 %v5280_v47, %s7962_s29  ;;  %14974 = vst [vmem:[#allocation40_spill] sm:$0xff] %v11346_v52  ;;  %v5329_v41 = vcombine.high %v11322_v2, %v14756_v61  ;;  %v11358_v47 = vrot.slane %v11326_v20, %v8842_v32  ;;  %v14978_v31 = vld [vmem:[#allocation101_spill] sm:$0xff] }
 0x3d8   : > { %14973 = vst [vmem:[#allocation139_spill] sm:$0xff] %v11338_v3  ;;  %5846 = vrot.lane.b32.xlu0 %v5231_v60, %s7962_s29  ;;  %v11362_v40 = vrot.slane %v11338_v3, %v14861_v12  ;;  %v14977_v60 = vld [vmem:[#allocation140_spill] sm:$0xff]  ;;  %v5476_v2 = vcombine.high %v11346_v52, %v14756_v61  ;;  %v11382_v3 = vrot.slane %v11350_v19, %v8842_v32 }
 0x3d9   : > { %v11352_v36 = vpop.permute.xlu1 %3809  ;;  %14976 = vst [vmem:[#allocation298_spill] sm:$0xff] %v11358_v47  ;;  %v11367_v48 = vsel %vm998_vm0, %v14978_v31, %v14977_v60  ;;  %v11369_v59 = vpop.permute.xlu0 %3807 }
 0x3da   : > { %14975 = vst [vmem:[#allocation297_spill] sm:$0xff] %v11352_v36  ;;  %14979 = vst [vmem:[#allocation140_spill] sm:$0xff] %v11367_v48  ;;  %v14982_v36 = vld [vmem:[#allocation103_spill] sm:$0xff]  ;;  %v11386_v31 = vrot.slane %v11367_v48, %v14861_v12 }
 0x3db   : > { %14980 = vst [vmem:[#allocation101_spill] sm:$0xff] %v11369_v59  ;;  %v11374_v5 = vsel %vm998_vm0, %v14982_v36, %v14981_v24  ;;  %5852 = vrot.lane.b32.xlu1 %v5378_v26, %s7962_s29  ;;  %14984 = vst [vmem:[#allocation103_spill] sm:$0xff] %v11382_v3  ;;  %v5427_v24 = vcombine.high %v11358_v47, %v14756_v61  ;;  %v11394_v26 = vrot.slane %v11362_v40, %v8842_v32  ;;  %v14988_v59 = vld [vmem:[#allocation105_spill] sm:$0xff] }
 0x3dc   : > { %14983 = vst [vmem:[#allocation141_spill] sm:$0xff] %v11374_v5  ;;  %5850 = vrot.lane.b32.xlu0 %v5329_v41, %s7962_s29  ;;  %v11398_v36 = vrot.slane %v11374_v5, %v14861_v12  ;;  %v14987_v41 = vld [vmem:[#allocation142_spill] sm:$0xff]  ;;  %v5574_v47 = vcombine.high %v11382_v3, %v14756_v61  ;;  %v11418_v5 = vrot.slane %v11386_v31, %v8842_v32 }
 0x3dd   : > { %v11388_v60 = vpop.permute.xlu1 %3813  ;;  %14986 = vst [vmem:[#allocation300_spill] sm:$0xff] %v11394_v26  ;;  %v11403_v52 = vsel %vm998_vm0, %v14988_v59, %v14987_v41  ;;  %v11405_v48 = vpop.permute.xlu0 %3811 }
 0x3de   : > { %14985 = vst [vmem:[#allocation299_spill] sm:$0xff] %v11388_v60  ;;  %14989 = vst [vmem:[#allocation142_spill] sm:$0xff] %v11403_v52  ;;  %v14992_v60 = vld [vmem:[#allocation107_spill] sm:$0xff]  ;;  %v11422_v59 = vrot.slane %v11403_v52, %v14861_v12 }
 0x3df   : > { %14990 = vst [vmem:[#allocation105_spill] sm:$0xff] %v11405_v48  ;;  %v11410_v28 = vsel %vm998_vm0, %v14992_v60, %v14991_v8  ;;  %5856 = vrot.lane.b32.xlu1 %v5476_v2, %s7962_s29  ;;  %14994 = vst [vmem:[#allocation107_spill] sm:$0xff] %v11418_v5  ;;  %v5525_v8 = vcombine.high %v11394_v26, %v14756_v61  ;;  %v11430_v2 = vrot.slane %v11398_v36, %v8842_v32 }
 0x3e0   : > { %14993 = vst [vmem:[#allocation143_spill] sm:$0xff] %v11410_v28  ;;  %5854 = vrot.lane.b32.xlu0 %v5427_v24, %s7962_s29  ;;  %v11434_v60 = vrot.slane %v11410_v28, %v14861_v12  ;;  %v5672_v48 = vcombine.high %v11418_v5, %v14756_v61  ;;  %v11444_v26 = vrot.slane %v11422_v59, %v8842_v32 }
 0x3e1   : > { %v11424_v41 = vpop.permute.xlu1 %3881  ;;  %14996 = vst [vmem:[#allocation302_spill] sm:$0xff] %v11430_v2  ;;  %v11436_v24 = vpop.permute.xlu0 %3879 }
 0x3e2   : > { %14995 = vst [vmem:[#allocation301_spill] sm:$0xff] %v11424_v41  ;;  %14997 = vst [vmem:[#allocation303_spill] sm:$0xff] %v11436_v24  ;;  %v5623_v41 = vcombine.high %v11430_v2, %v14756_v61  ;;  %v11452_v28 = vrot.slane %v11434_v60, %v8842_v32  ;;  %v4221_v2 = vcombine.high %v10892_v22, %v14756_v61 }
 0x3e3   : > { %5860 = vrot.lane.b32.xlu1 %v5574_v47, %s7962_s29  ;;  %14998 = vst [vmem:[#allocation304_spill] sm:$0xff] %v11444_v26  ;;  %v4270_v47 = vcombine.high %v10884_v0, %v14756_v61  ;;  %v4368_v0 = vcombine.high %v10916_v25, %v14756_v61  ;;  %v4319_v22 = vcombine.high %v10928_v23, %v14756_v61 }
 0x3e4   : > { %5858 = vrot.lane.b32.xlu0 %v5525_v8, %s7962_s29  ;;  %15000 = vst [vmem:[#allocation306_spill] sm:$0xff] %v11452_v28  ;;  %v5770_v8 = vcombine.high %v11444_v26, %v14756_v61  ;;  %v5721_v5 = vcombine.high %v11452_v28, %v14756_v61  ;;  %v4466_v25 = vcombine.high %v10954_v29, %v14756_v61  ;;  %v15109_v26 = vld [vmem:[#allocation141_spill] sm:$0xff] }
 0x3e5   : > { %v11446_v3 = vpop.permute.xlu1 %3885  ;;  %v11454_v24 = vpop.permute.xlu0 %3883  ;;  %v4417_v23 = vcombine.high %v10966_v33, %v14756_v61  ;;  %v4564_v29 = vcombine.high %v10990_v1, %v14756_v61  ;;  %v4515_v33 = vcombine.high %v11002_v39, %v14756_v61  ;;  %v4662_v1 = vcombine.high %v11026_v27, %v14756_v61 }
 0x3e6   : > { %14999 = vst [vmem:[#allocation305_spill] sm:$0xff] %v11446_v3  ;;  %15001 = vst [vmem:[#allocation307_spill] sm:$0xff] %v11454_v24  ;;  %v4613_v39 = vcombine.high %v11038_v42, %v14756_v61  ;;  %v4760_v27 = vcombine.high %v11062_v49, %v14756_v61  ;;  %v4711_v42 = vcombine.high %v11074_v50, %v14756_v61 }
 0x3e7   : > { %5864 = vrot.lane.b32.xlu1 %v5672_v48, %s7962_s29  ;;  %v11473_v48 = vrot.slane %v4270_v47, %v8842_v32  ;;  %v4858_v49 = vcombine.high %v11098_v43, %v14756_v61  ;;  %v4809_v50 = vcombine.high %v11110_v15, %v14756_v61  ;;  %v4956_v43 = vcombine.high %v11134_v44, %v14756_v61 }
 0x3e8   : > { %5862 = vrot.lane.b32.xlu0 %v5623_v41, %s7962_s29  ;;  %v4907_v15 = vcombine.high %v11146_v54, %v14756_v61  ;;  %v5054_v44 = vcombine.high %v11170_v10, %v14756_v61  ;;  %v5005_v54 = vcombine.high %v11182_v62, %v14756_v61  ;;  %v5152_v10 = vcombine.high %v11206_v58, %v14756_v61 }
 0x3e9   : > { %v11462_v3 = vpop.permute.xlu1 %3889  ;;  %v11468_v52 = vpop.permute.xlu0 %3887  ;;  %v5103_v62 = vcombine.high %v11218_v53, %v14756_v61  ;;  %v5250_v58 = vcombine.high %v11242_v21, %v14756_v61  ;;  %v5201_v53 = vcombine.high %v11254_v14, %v14756_v61  ;;  %v5348_v21 = vcombine.high %v11278_v16, %v14756_v61 }
 0x3ea   : > { %15002 = vst [vmem:[#allocation308_spill] sm:$0xff] %v11462_v3  ;;  %15003 = vst [vmem:[#allocation309_spill] sm:$0xff] %v11468_v52  ;;  %v11480_v3 = vrot.slane %v4221_v2, %v8842_v32  ;;  %v11498_v2 = vrot.slane %v4319_v22, %v8842_v32  ;;  %v11516_v22 = vrot.slane %v4417_v23, %v8842_v32 }
 0x3eb   : > { %5868 = vrot.lane.b32.xlu1 %v5770_v8, %s7962_s29  ;;  %v11534_v23 = vrot.slane %v4515_v33, %v8842_v32  ;;  %v11552_v33 = vrot.slane %v4613_v39, %v8842_v32  ;;  %v11570_v39 = vrot.slane %v4711_v42, %v8842_v32  ;;  %v11588_v42 = vrot.slane %v4809_v50, %v8842_v32 }
 0x3ec   : > { %5866 = vrot.lane.b32.xlu0 %v5721_v5, %s7962_s29  ;;  %v11491_v5 = vrot.slane %v4368_v0, %v8842_v32  ;;  %v11509_v0 = vrot.slane %v4466_v25, %v8842_v32  ;;  %v11527_v25 = vrot.slane %v4564_v29, %v8842_v32  ;;  %v11545_v29 = vrot.slane %v4662_v1, %v8842_v32 }
 0x3ed   : > { %v11477_v41 = vpop.permute.xlu1 %3893  ;;  %v11484_v24 = vpop.permute.xlu0 %3891  ;;  %v11563_v1 = vrot.slane %v4760_v27, %v8842_v32  ;;  %v11581_v27 = vrot.slane %v4858_v49, %v8842_v32  ;;  %v11599_v49 = vrot.slane %v4956_v43, %v8842_v32  ;;  %v11606_v50 = vrot.slane %v4907_v15, %v8842_v32 }
 0x3ee   : > { %15004 = vst [vmem:[#allocation310_spill] sm:$0xff] %v11477_v41  ;;  %15005 = vst [vmem:[#allocation311_spill] sm:$0xff] %v11484_v24  ;;  %v11617_v43 = vrot.slane %v5054_v44, %v8842_v32  ;;  %v11624_v15 = vrot.slane %v5005_v54, %v8842_v32  ;;  %v11635_v44 = vrot.slane %v5152_v10, %v8842_v32 }
 0x3ef   : > { %5936 = vrot.lane.b32.xlu1 %v11473_v48, %s7963_s10  ;;  %v11642_v54 = vrot.slane %v5103_v62, %v8842_v32  ;;  %v11653_v10 = vrot.slane %v5250_v58, %v8842_v32  ;;  %v11660_v62 = vrot.slane %v5201_v53, %v8842_v32  ;;  %v5299_v14 = vcombine.high %v11290_v11, %v14756_v61 }
 0x3f0   : > { %5934 = vrot.lane.b32.xlu0 %v11480_v3, %s7963_s10  ;;  %v11671_v58 = vrot.slane %v5348_v21, %v8842_v32  ;;  %v5446_v16 = vcombine.high %v11314_v9, %v14756_v61  ;;  %v5397_v11 = vcombine.high %v11326_v20, %v14756_v61  ;;  %v5544_v9 = vcombine.high %v11350_v19, %v14756_v61 }
 0x3f1   : > { %v11495_v47 = vpop.permute.xlu1 %3897  ;;  %v11502_v8 = vpop.permute.xlu0 %3895  ;;  %v11678_v53 = vrot.slane %v5299_v14, %v8842_v32  ;;  %v5495_v20 = vcombine.high %v11362_v40, %v14756_v61  ;;  %v5642_v19 = vcombine.high %v11386_v31, %v14756_v61  ;;  %v5593_v40 = vcombine.high %v11398_v36, %v14756_v61 }
 0x3f2   : > { %15006 = vst [vmem:[#allocation312_spill] sm:$0xff] %v11495_v47  ;;  %15007 = vst [vmem:[#allocation313_spill] sm:$0xff] %v11502_v8  ;;  %v11689_v21 = vrot.slane %v5446_v16, %v8842_v32  ;;  %v11696_v14 = vrot.slane %v5397_v11, %v8842_v32  ;;  %v11707_v16 = vrot.slane %v5544_v9, %v8842_v32 }
 0x3f3   : > { %5940 = vrot.lane.b32.xlu1 %v11491_v5, %s7963_s10  ;;  %v11714_v11 = vrot.slane %v5495_v20, %v8842_v32  ;;  %v11725_v9 = vrot.slane %v5642_v19, %v8842_v32  ;;  %v5740_v31 = vcombine.high %v11422_v59, %v14756_v61  ;;  %v11732_v20 = vrot.slane %v5593_v40, %v8842_v32 }
 0x3f4   : > { %5938 = vrot.lane.b32.xlu0 %v11498_v2, %s7963_s10  ;;  %v5691_v36 = vcombine.high %v11434_v60, %v14756_v61 }
 0x3f5   : > { %v11513_v47 = vpop.permute.xlu1 %3901  ;;  %v11520_v8 = vpop.permute.xlu0 %3899  ;;  %v11743_v19 = vrot.slane %v5740_v31, %v8842_v32 }
 0x3f6   : > { %15008 = vst [vmem:[#allocation314_spill] sm:$0xff] %v11513_v47  ;;  %15009 = vst [vmem:[#allocation315_spill] sm:$0xff] %v11520_v8  ;;  %v11748_v52 = vrot.slane %v5691_v36, %v8842_v32 }
 0x3f7   : > { %5944 = vrot.lane.b32.xlu1 %v11509_v0, %s7963_s10 }
 0x3f8   : > { %5942 = vrot.lane.b32.xlu0 %v11516_v22, %s7963_s10 }
 0x3f9   : > { %v11531_v47 = vpop.permute.xlu1 %3905  ;;  %v11538_v8 = vpop.permute.xlu0 %3903 }
 0x3fa   : > { %15010 = vst [vmem:[#allocation316_spill] sm:$0xff] %v11531_v47  ;;  %15011 = vst [vmem:[#allocation317_spill] sm:$0xff] %v11538_v8 }
 0x3fb   : > { %5948 = vrot.lane.b32.xlu1 %v11527_v25, %s7963_s10 }
 0x3fc   : > { %5946 = vrot.lane.b32.xlu0 %v11534_v23, %s7963_s10 }
 0x3fd   : > { %v11549_v47 = vpop.permute.xlu1 %3909  ;;  %v11556_v8 = vpop.permute.xlu0 %3907 }
 0x3fe   : > { %15012 = vst [vmem:[#allocation318_spill] sm:$0xff] %v11549_v47  ;;  %15013 = vst [vmem:[#allocation319_spill] sm:$0xff] %v11556_v8 }
 0x3ff   : > { %5952 = vrot.lane.b32.xlu1 %v11545_v29, %s7963_s10 }
 0x400   : > { %5950 = vrot.lane.b32.xlu0 %v11552_v33, %s7963_s10 }
 0x401   : > { %v11567_v47 = vpop.permute.xlu1 %3913  ;;  %v11574_v8 = vpop.permute.xlu0 %3911 }
 0x402   : > { %15014 = vst [vmem:[#allocation320_spill] sm:$0xff] %v11567_v47  ;;  %15015 = vst [vmem:[#allocation321_spill] sm:$0xff] %v11574_v8 }
 0x403   : > { %5956 = vrot.lane.b32.xlu1 %v11563_v1, %s7963_s10 }
 0x404   : > { %5954 = vrot.lane.b32.xlu0 %v11570_v39, %s7963_s10 }
 0x405   : > { %v11585_v47 = vpop.permute.xlu1 %3917  ;;  %v11592_v8 = vpop.permute.xlu0 %3915 }
 0x406   : > { %15016 = vst [vmem:[#allocation322_spill] sm:$0xff] %v11585_v47  ;;  %15017 = vst [vmem:[#allocation323_spill] sm:$0xff] %v11592_v8 }
 0x407   : > { %5960 = vrot.lane.b32.xlu1 %v11581_v27, %s7963_s10 }
 0x408   : > { %5958 = vrot.lane.b32.xlu0 %v11588_v42, %s7963_s10 }
 0x409   : > { %v11603_v47 = vpop.permute.xlu1 %3921  ;;  %v11610_v8 = vpop.permute.xlu0 %3919 }
 0x40a   : > { %15018 = vst [vmem:[#allocation324_spill] sm:$0xff] %v11603_v47  ;;  %15019 = vst [vmem:[#allocation325_spill] sm:$0xff] %v11610_v8 }
 0x40b   : > { %5964 = vrot.lane.b32.xlu1 %v11599_v49, %s7963_s10 }
 0x40c   : > { %5962 = vrot.lane.b32.xlu0 %v11606_v50, %s7963_s10 }
 0x40d   : > { %v11621_v47 = vpop.permute.xlu1 %3925  ;;  %v11628_v8 = vpop.permute.xlu0 %3923 }
 0x40e   : > { %15020 = vst [vmem:[#allocation326_spill] sm:$0xff] %v11621_v47  ;;  %15021 = vst [vmem:[#allocation327_spill] sm:$0xff] %v11628_v8 }
 0x40f   : > { %5968 = vrot.lane.b32.xlu1 %v11617_v43, %s7963_s10 }
 0x410   : > { %5966 = vrot.lane.b32.xlu0 %v11624_v15, %s7963_s10 }
 0x411   : > { %v11639_v47 = vpop.permute.xlu1 %3929  ;;  %v11646_v8 = vpop.permute.xlu0 %3927 }
 0x412   : > { %15022 = vst [vmem:[#allocation328_spill] sm:$0xff] %v11639_v47  ;;  %15023 = vst [vmem:[#allocation329_spill] sm:$0xff] %v11646_v8 }
 0x413   : > { %5972 = vrot.lane.b32.xlu1 %v11635_v44, %s7963_s10 }
 0x414   : > { %5970 = vrot.lane.b32.xlu0 %v11642_v54, %s7963_s10 }
 0x415   : > { %v11657_v47 = vpop.permute.xlu1 %3933  ;;  %v11664_v8 = vpop.permute.xlu0 %3931 }
 0x416   : > { %15024 = vst [vmem:[#allocation330_spill] sm:$0xff] %v11657_v47  ;;  %15025 = vst [vmem:[#allocation331_spill] sm:$0xff] %v11664_v8 }
 0x417   : > { %5976 = vrot.lane.b32.xlu1 %v11653_v10, %s7963_s10 }
 0x418   : > { %5974 = vrot.lane.b32.xlu0 %v11660_v62, %s7963_s10 }
 0x419   : > { %v11675_v47 = vpop.permute.xlu1 %3937  ;;  %v11682_v8 = vpop.permute.xlu0 %3935 }
 0x41a   : > { %15026 = vst [vmem:[#allocation332_spill] sm:$0xff] %v11675_v47  ;;  %15027 = vst [vmem:[#allocation333_spill] sm:$0xff] %v11682_v8 }
 0x41b   : > { %5980 = vrot.lane.b32.xlu1 %v11671_v58, %s7963_s10 }
 0x41c   : > { %5978 = vrot.lane.b32.xlu0 %v11678_v53, %s7963_s10 }
 0x41d   : > { %v11693_v47 = vpop.permute.xlu1 %3941 }
 0x41e   : > { %15028 = vst [vmem:[#allocation334_spill] sm:$0xff] %v11693_v47  ;;  %v11700_v8 = vpop.permute.xlu0 %3939 }
 0x41f   : > { %15029 = vst [vmem:[#allocation335_spill] sm:$0xff] %v11700_v8  ;;  %5984 = vrot.lane.b32.xlu1 %v11689_v21, %s7963_s10 }
 0x420   : > { %5982 = vrot.lane.b32.xlu0 %v11696_v14, %s7963_s10 }
 0x421   : > { %v11711_v47 = vpop.permute.xlu1 %5808 }
 0x422   : > { %15030 = vst [vmem:[#allocation336_spill] sm:$0xff] %v11711_v47  ;;  %v11718_v8 = vpop.permute.xlu0 %5806 }
 0x423   : > { %15031 = vst [vmem:[#allocation337_spill] sm:$0xff] %v11718_v8  ;;  %5988 = vrot.lane.b32.xlu1 %v11707_v16, %s7963_s10  ;;  %v15104_v8 = vld [vmem:[#allocation139_spill] sm:$0xff] }
 0x424   : > { %5986 = vrot.lane.b32.xlu0 %v11714_v11, %s7963_s10  ;;  %v5480_v47 = vcombine.high %v15104_v8, %v14756_v61 }
 0x425   : > { %v11729_v24 = vpop.permute.xlu1 %5812 }
 0x426   : > { %15032 = vst [vmem:[#allocation338_spill] sm:$0xff] %v11729_v24  ;;  %v11736_v41 = vpop.permute.xlu0 %5810  ;;  %v4252_v24 = vcombine.high %v11480_v3, %v14756_v61  ;;  %v4497_v3 = vcombine.high %v11509_v0, %v14756_v61 }
 0x427   : > { %15033 = vst [vmem:[#allocation339_spill] sm:$0xff] %v11736_v41  ;;  %5992 = vrot.lane.b32.xlu1 %v11725_v9, %s7963_s10  ;;  %v4301_v41 = vcombine.high %v11473_v48, %v14756_v61 }
 0x428   : > { %5990 = vrot.lane.b32.xlu0 %v11732_v20, %s7963_s10 }
 0x429   : > { %v11745_v59 = vpop.permute.xlu1 %5816 }
 0x42a   : > { %15034 = vst [vmem:[#allocation340_spill] sm:$0xff] %v11745_v59  ;;  %v11750_v40 = vpop.permute.xlu0 %5814 }
 0x42b   : > { %15035 = vst [vmem:[#allocation341_spill] sm:$0xff] %v11750_v40  ;;  %5996 = vrot.lane.b32.xlu1 %v11743_v19, %s7963_s10  ;;  %v4399_v40 = vcombine.high %v11491_v5, %v14756_v61 }
 0x42c   : > { %5994 = vrot.lane.b32.xlu0 %v11748_v52, %s7963_s10 }
 0x42d   : > { %v11756_v60 = vpop.permute.xlu1 %5820 }
 0x42e   : > { %15036 = vst [vmem:[#allocation342_spill] sm:$0xff] %v11756_v60  ;;  %v11760_v31 = vpop.permute.xlu0 %5818  ;;  %v4350_v60 = vcombine.high %v11498_v2, %v14756_v61  ;;  %v4595_v2 = vcombine.high %v11527_v25, %v14756_v61 }
 0x42f   : > { %15037 = vst [vmem:[#allocation343_spill] sm:$0xff] %v11760_v31  ;;  %6064 = vrot.lane.b32.xlu1 %v4301_v41, %s7964_s15  ;;  %v4448_v41 = vcombine.high %v11516_v22, %v14756_v61  ;;  %v4693_v22 = vcombine.high %v11545_v29, %v14756_v61  ;;  %v4794_v31 = vcombine.high %v11086_v45, %v14756_v61 }
 0x430   : > { %6062 = vrot.lane.b32.xlu0 %v4252_v24, %s7964_s15 }
 0x431   : > { %v11766_v36 = vpop.permute.xlu1 %5824 }
 0x432   : > { %15038 = vst [vmem:[#allocation344_spill] sm:$0xff] %v11766_v36  ;;  %v11770_v59 = vpop.permute.xlu0 %5822 }
 0x433   : > { %15039 = vst [vmem:[#allocation345_spill] sm:$0xff] %v11770_v59  ;;  %6068 = vrot.lane.b32.xlu1 %v4399_v40, %s7964_s15 }
 0x434   : > { %6066 = vrot.lane.b32.xlu0 %v4350_v60, %s7964_s15  ;;  %v4546_v60 = vcombine.high %v11534_v23, %v14756_v61  ;;  %v4791_v23 = vcombine.high %v11563_v1, %v14756_v61 }
 0x435   : > { %v11776_v48 = vpop.permute.xlu1 %5828 }
 0x436   : > { %15040 = vst [vmem:[#allocation346_spill] sm:$0xff] %v11776_v48  ;;  %v11780_v24 = vpop.permute.xlu0 %5826 }
 0x437   : > { %15041 = vst [vmem:[#allocation347_spill] sm:$0xff] %v11780_v24  ;;  %6072 = vrot.lane.b32.xlu1 %v4497_v3, %s7964_s15  ;;  %v4696_v24 = vcombine.high %v11050_v34, %v14756_v61 }
 0x438   : > { %6070 = vrot.lane.b32.xlu0 %v4448_v41, %s7964_s15  ;;  %v4644_v41 = vcombine.high %v11552_v33, %v14756_v61  ;;  %v4889_v33 = vcombine.high %v11581_v27, %v14756_v61 }
 0x439   : > { %v11786_v5 = vpop.permute.xlu1 %5832 }
 0x43a   : > { %15042 = vst [vmem:[#allocation348_spill] sm:$0xff] %v11786_v5  ;;  %v11790_v40 = vpop.permute.xlu0 %5830 }
 0x43b   : > { %15043 = vst [vmem:[#allocation349_spill] sm:$0xff] %v11790_v40  ;;  %6076 = vrot.lane.b32.xlu1 %v4595_v2, %s7964_s15 }
 0x43c   : > { %6074 = vrot.lane.b32.xlu0 %v4546_v60, %s7964_s15  ;;  %v4742_v60 = vcombine.high %v11570_v39, %v14756_v61  ;;  %v4987_v39 = vcombine.high %v11599_v49, %v14756_v61 }
 0x43d   : > { %v11796_v0 = vpop.permute.xlu1 %5836 }
 0x43e   : > { %15044 = vst [vmem:[#allocation350_spill] sm:$0xff] %v11796_v0  ;;  %v11800_v3 = vpop.permute.xlu0 %5834 }
 0x43f   : > { %15045 = vst [vmem:[#allocation351_spill] sm:$0xff] %v11800_v3  ;;  %6080 = vrot.lane.b32.xlu1 %v4693_v22, %s7964_s15  ;;  %v4598_v3 = vcombine.high %v11014_v6, %v14756_v61 }
 0x440   : > { %6078 = vrot.lane.b32.xlu0 %v4644_v41, %s7964_s15  ;;  %v4840_v41 = vcombine.high %v11588_v42, %v14756_v61  ;;  %v5085_v42 = vcombine.high %v11617_v43, %v14756_v61 }
 0x441   : > { %v11806_v25 = vpop.permute.xlu1 %5840 }
 0x442   : > { %15046 = vst [vmem:[#allocation352_spill] sm:$0xff] %v11806_v25  ;;  %v11810_v2 = vpop.permute.xlu0 %5838 }
 0x443   : > { %15047 = vst [vmem:[#allocation353_spill] sm:$0xff] %v11810_v2  ;;  %6084 = vrot.lane.b32.xlu1 %v4791_v23, %s7964_s15 }
 0x444   : > { %6082 = vrot.lane.b32.xlu0 %v4742_v60, %s7964_s15  ;;  %v4938_v60 = vcombine.high %v11606_v50, %v14756_v61  ;;  %v5183_v50 = vcombine.high %v11635_v44, %v14756_v61 }
 0x445   : > { %v11816_v29 = vpop.permute.xlu1 %5844 }
 0x446   : > { %15048 = vst [vmem:[#allocation354_spill] sm:$0xff] %v11816_v29  ;;  %v11820_v22 = vpop.permute.xlu0 %5842 }
 0x447   : > { %15049 = vst [vmem:[#allocation355_spill] sm:$0xff] %v11820_v22  ;;  %6088 = vrot.lane.b32.xlu1 %v4889_v33, %s7964_s15 }
 0x448   : > { %6086 = vrot.lane.b32.xlu0 %v4840_v41, %s7964_s15  ;;  %v5036_v41 = vcombine.high %v11624_v15, %v14756_v61  ;;  %v5281_v15 = vcombine.high %v11653_v10, %v14756_v61 }
 0x449   : > { %v11826_v1 = vpop.permute.xlu1 %5848 }
 0x44a   : > { %15050 = vst [vmem:[#allocation356_spill] sm:$0xff] %v11826_v1  ;;  %v11830_v23 = vpop.permute.xlu0 %5846 }
 0x44b   : > { %15051 = vst [vmem:[#allocation357_spill] sm:$0xff] %v11830_v23  ;;  %6092 = vrot.lane.b32.xlu1 %v4987_v39, %s7964_s15 }
 0x44c   : > { %6090 = vrot.lane.b32.xlu0 %v4938_v60, %s7964_s15  ;;  %v5134_v60 = vcombine.high %v11642_v54, %v14756_v61  ;;  %v5379_v54 = vcombine.high %v11671_v58, %v14756_v61 }
 0x44d   : > { %v11836_v27 = vpop.permute.xlu1 %5852 }
 0x44e   : > { %15052 = vst [vmem:[#allocation358_spill] sm:$0xff] %v11836_v27  ;;  %v11840_v33 = vpop.permute.xlu0 %5850 }
 0x44f   : > { %15053 = vst [vmem:[#allocation359_spill] sm:$0xff] %v11840_v33  ;;  %6096 = vrot.lane.b32.xlu1 %v5085_v42, %s7964_s15  ;;  %v4500_v33 = vcombine.high %v10978_v38, %v14756_v61 }
 0x450   : > { %6094 = vrot.lane.b32.xlu0 %v5036_v41, %s7964_s15  ;;  %v5232_v41 = vcombine.high %v11660_v62, %v14756_v61  ;;  %v5477_v62 = vcombine.high %v11689_v21, %v14756_v61  ;;  %v4255_v21 = vcombine.high %v10869_v63, %v14756_v61  ;;  %v4353_v63 = vcombine.high %v10897_v56, %v14756_v61 }
 0x451   : > { %v11846_v49 = vpop.permute.xlu1 %5856  ;;  %v11998_v29 = vrot.slane %v4500_v33, %v14861_v12  ;;  %v4745_v33 = vcombine.high %v11043_v37, %v14756_v61 }
 0x452   : > { %15054 = vst [vmem:[#allocation360_spill] sm:$0xff] %v11846_v49  ;;  %v11850_v39 = vpop.permute.xlu0 %5854  ;;  %v4990_v49 = vcombine.high %v11158_v55, %v14756_v61 }
 0x453   : > { %15055 = vst [vmem:[#allocation361_spill] sm:$0xff] %v11850_v39  ;;  %6100 = vrot.lane.b32.xlu1 %v5183_v50, %s7964_s15  ;;  %v12021_v6 = vrot.slane %v11998_v29, %v8842_v32 }
 0x454   : > { %6098 = vrot.lane.b32.xlu0 %v5134_v60, %s7964_s15  ;;  %v5330_v60 = vcombine.high %v11678_v53, %v14756_v61  ;;  %v5575_v53 = vcombine.high %v11707_v16, %v14756_v61  ;;  %v4206_v16 = vcombine.high %v10878_v13, %v14756_v61  ;;  %v5771_v13 = vcombine.high %v11743_v19, %v14756_v61 }
 0x455   : > { %v11856_v43 = vpop.permute.xlu1 %5860  ;;  %v11935_v19 = vrot.slane %v4353_v63, %v14861_v12 }
 0x456   : > { %15056 = vst [vmem:[#allocation362_spill] sm:$0xff] %v11856_v43  ;;  %v11860_v42 = vpop.permute.xlu0 %5858 }
 0x457   : > { %15057 = vst [vmem:[#allocation363_spill] sm:$0xff] %v11860_v42  ;;  %6104 = vrot.lane.b32.xlu1 %v5281_v15, %s7964_s15 }
 0x458   : > { %6102 = vrot.lane.b32.xlu0 %v5232_v41, %s7964_s15  ;;  %v5428_v41 = vcombine.high %v11696_v14, %v14756_v61 }
 0x459   : > { %v11866_v44 = vpop.permute.xlu1 %5864 }
 0x45a   : > { %15058 = vst [vmem:[#allocation364_spill] sm:$0xff] %v11866_v44  ;;  %v11870_v50 = vpop.permute.xlu0 %5862 }
 0x45b   : > { %15059 = vst [vmem:[#allocation365_spill] sm:$0xff] %v11870_v50  ;;  %6108 = vrot.lane.b32.xlu1 %v5379_v54, %s7964_s15 }
 0x45c   : > { %6106 = vrot.lane.b32.xlu0 %v5330_v60, %s7964_s15  ;;  %v5526_v60 = vcombine.high %v11714_v11, %v14756_v61  ;;  %v5624_v11 = vcombine.high %v11732_v20, %v14756_v61  ;;  %v4304_v20 = vcombine.high %v10906_v17, %v14756_v61 }
 0x45d   : > { %v11876_v10 = vpop.permute.xlu1 %5868 }
 0x45e   : > { %15060 = vst [vmem:[#allocation366_spill] sm:$0xff] %v11876_v10  ;;  %v11880_v15 = vpop.permute.xlu0 %5866  ;;  %v5578_v10 = vcombine.high %v15109_v26, %v14756_v61 }
 0x45f   : > { %15061 = vst [vmem:[#allocation367_spill] sm:$0xff] %v11880_v15  ;;  %6112 = vrot.lane.b32.xlu1 %v5477_v62, %s7964_s15  ;;  %v5673_v62 = vcombine.high %v11725_v9, %v14756_v61  ;;  %v11920_v9 = vrot.slane %v4206_v16, %v14861_v12  ;;  %v4451_v16 = vcombine.high %v10933_v57, %v14756_v61 }
 0x460   : > { %6110 = vrot.lane.b32.xlu0 %v5428_v41, %s7964_s15  ;;  %v11958_v57 = vrot.slane %v11935_v19, %v8842_v32 }
 0x461   : > { %v11886_v58 = vpop.permute.xlu1 %5936  ;;  %v11961_v63 = vrot.slane %v4451_v16, %v14861_v12 }
 0x462   : > { %15062 = vst [vmem:[#allocation368_spill] sm:$0xff] %v11886_v58  ;;  %v11890_v54 = vpop.permute.xlu0 %5934 }
 0x463   : > { %15063 = vst [vmem:[#allocation369_spill] sm:$0xff] %v11890_v54  ;;  %6116 = vrot.lane.b32.xlu1 %v5575_v53, %s7964_s15  ;;  %v11911_v53 = vrot.slane %v4255_v21, %v14861_v12  ;;  %v5722_v21 = vcombine.high %v11748_v52, %v14756_v61  ;;  %v11946_v52 = vrot.slane %v4304_v20, %v14861_v12 }
 0x464   : > { %6114 = vrot.lane.b32.xlu0 %v5526_v60, %s7964_s15  ;;  %v4549_v20 = vcombine.high %v10971_v7, %v14756_v61  ;;  %v11984_v7 = vrot.slane %v11961_v63, %v8842_v32 }
 0x465   : > { %v11898_v14 = vpop.permute.xlu1 %5940  ;;  %v11932_v56 = vrot.slane %v11911_v53, %v8842_v32 }
 0x466   : > { %15064 = vst [vmem:[#allocation370_spill] sm:$0xff] %v11898_v14  ;;  %v11904_v41 = vpop.permute.xlu0 %5938  ;;  %v11987_v16 = vrot.slane %v4549_v20, %v14861_v12  ;;  %v4892_v14 = vcombine.high %v11122_v35, %v14756_v61 }
 0x467   : > { %15065 = vst [vmem:[#allocation371_spill] sm:$0xff] %v11904_v41  ;;  %6120 = vrot.lane.b32.xlu1 %v5673_v62, %s7964_s15 }
 0x468   : > { %6118 = vrot.lane.b32.xlu0 %v5624_v11, %s7964_s15  ;;  %v11943_v11 = vrot.slane %v11920_v9, %v8842_v32  ;;  %v12102_v39 = vrot.slane %v4892_v14, %v14861_v12  ;;  %v15082_v14 = vld [vmem:[#allocation129_spill] sm:$0xff] }
 0x469   : > { %v11915_v60 = vpop.permute.xlu1 %5944 }
 0x46a   : > { %15066 = vst [vmem:[#allocation372_spill] sm:$0xff] %v11915_v60  ;;  %v11924_v62 = vpop.permute.xlu0 %5942  ;;  %v12125_v55 = vrot.slane %v12102_v39, %v8842_v32 }
 0x46b   : > { %15067 = vst [vmem:[#allocation373_spill] sm:$0xff] %v11924_v62  ;;  %6124 = vrot.lane.b32.xlu1 %v5771_v13, %s7964_s15  ;;  %v4402_v13 = vcombine.high %v10942_v18, %v14756_v61  ;;  %v11969_v18 = vrot.slane %v11946_v52, %v8842_v32  ;;  %v15098_v62 = vld [vmem:[#allocation137_spill] sm:$0xff] }
 0x46c   : > { %6122 = vrot.lane.b32.xlu0 %v5722_v21, %s7964_s15  ;;  %v5382_v60 = vcombine.high %v15098_v62, %v14756_v61 }
 0x46d   : > { %v11939_v17 = vpop.permute.xlu1 %5948  ;;  %v11972_v43 = vrot.slane %v4402_v13, %v14861_v12  ;;  %v4647_v13 = vcombine.high %v11007_v46, %v14756_v61  ;;  %v12010_v46 = vrot.slane %v11987_v16, %v8842_v32 }
 0x46e   : > { %15068 = vst [vmem:[#allocation374_spill] sm:$0xff] %v11939_v17  ;;  %v11950_v21 = vpop.permute.xlu0 %5946  ;;  %v12050_v17 = vrot.slane %v4696_v24, %v14861_v12  ;;  %v4941_v24 = vcombine.high %v11115_v4, %v14756_v61 }
 0x46f   : > { %15069 = vst [vmem:[#allocation375_spill] sm:$0xff] %v11950_v21  ;;  %6192 = vrot.lane.b32.xlu1 %v11932_v56, %s7965_s21  ;;  %v11995_v38 = vrot.slane %v11972_v43, %v8842_v32  ;;  %v12013_v20 = vrot.slane %v4647_v13, %v14861_v12  ;;  %v12039_v13 = vrot.slane %v4745_v33, %v14861_v12 }
 0x470   : > { %6190 = vrot.lane.b32.xlu0 %v11943_v11, %s7965_s21  ;;  %v12073_v45 = vrot.slane %v12050_v17, %v8842_v32 }
 0x471   : > { %v11965_v42 = vpop.permute.xlu1 %5952  ;;  %v12036_v37 = vrot.slane %v12013_v20, %v8842_v32 }
 0x472   : > { %15070 = vst [vmem:[#allocation376_spill] sm:$0xff] %v11965_v42  ;;  %v11976_v27 = vpop.permute.xlu0 %5950 }
 0x473   : > { %15071 = vst [vmem:[#allocation377_spill] sm:$0xff] %v11976_v27  ;;  %6196 = vrot.lane.b32.xlu1 %v11958_v57, %s7965_s21  ;;  %v15092_v27 = vld [vmem:[#allocation135_spill] sm:$0xff] }
 0x474   : > { %6194 = vrot.lane.b32.xlu0 %v11969_v18, %s7965_s21  ;;  %v5284_v42 = vcombine.high %v15092_v27, %v14756_v61 }
 0x475   : > { %v11991_v22 = vpop.permute.xlu1 %5956 }
 0x476   : > { %15072 = vst [vmem:[#allocation378_spill] sm:$0xff] %v11991_v22  ;;  %v12002_v0 = vpop.permute.xlu0 %5954 }
 0x477   : > { %15073 = vst [vmem:[#allocation379_spill] sm:$0xff] %v12002_v0  ;;  %6200 = vrot.lane.b32.xlu1 %v11984_v7, %s7965_s21  ;;  %v12024_v0 = vrot.slane %v4598_v3, %v14861_v12  ;;  %v4843_v3 = vcombine.high %v11079_v51, %v14756_v61  ;;  %v12062_v51 = vrot.slane %v12039_v13, %v8842_v32 }
 0x478   : > { %6198 = vrot.lane.b32.xlu0 %v11995_v38, %s7965_s21 }
 0x479   : > { %v12017_v22 = vpop.permute.xlu1 %5960  ;;  %v12047_v34 = vrot.slane %v12024_v0, %v8842_v32  ;;  %v12065_v33 = vrot.slane %v4843_v3, %v14861_v12  ;;  %v12091_v3 = vrot.slane %v4941_v24, %v14861_v12 }
 0x47a   : > { %15074 = vst [vmem:[#allocation380_spill] sm:$0xff] %v12017_v22  ;;  %v12028_v48 = vpop.permute.xlu0 %5958 }
 0x47b   : > { %15075 = vst [vmem:[#allocation381_spill] sm:$0xff] %v12028_v48  ;;  %6204 = vrot.lane.b32.xlu1 %v12010_v46, %s7965_s21  ;;  %v12088_v4 = vrot.slane %v12065_v33, %v8842_v32  ;;  %v15088_v48 = vld [vmem:[#allocation133_spill] sm:$0xff] }
 0x47c   : > { %6202 = vrot.lane.b32.xlu0 %v12021_v6, %s7965_s21  ;;  %v5186_v22 = vcombine.high %v15088_v48, %v14756_v61 }
 0x47d   : > { %v12043_v21 = vpop.permute.xlu1 %5964 }
 0x47e   : > { %15076 = vst [vmem:[#allocation382_spill] sm:$0xff] %v12043_v21  ;;  %v12054_v41 = vpop.permute.xlu0 %5962 }
 0x47f   : > { %15077 = vst [vmem:[#allocation383_spill] sm:$0xff] %v12054_v41  ;;  %6208 = vrot.lane.b32.xlu1 %v12036_v37, %s7965_s21  ;;  %v12076_v41 = vrot.slane %v4794_v31, %v14861_v12  ;;  %v5039_v31 = vcombine.high %v11151_v30, %v14756_v61  ;;  %v12114_v30 = vrot.slane %v12091_v3, %v8842_v32 }
 0x480   : > { %6206 = vrot.lane.b32.xlu0 %v12047_v34, %s7965_s21 }
 0x481   : > { %v12069_v21 = vpop.permute.xlu1 %5968  ;;  %v12099_v35 = vrot.slane %v12076_v41, %v8842_v32  ;;  %v12117_v24 = vrot.slane %v5039_v31, %v14861_v12 }
 0x482   : > { %15078 = vst [vmem:[#allocation384_spill] sm:$0xff] %v12069_v21  ;;  %v12080_v50 = vpop.permute.xlu0 %5966 }
 0x483   : > { %15079 = vst [vmem:[#allocation385_spill] sm:$0xff] %v12080_v50  ;;  %6212 = vrot.lane.b32.xlu1 %v12062_v51, %s7965_s21  ;;  %v15084_v50 = vld [vmem:[#allocation130_spill] sm:$0xff]  ;;  %v12140_v31 = vrot.slane %v12117_v24, %v8842_v32 }
 0x484   : > { %6210 = vrot.lane.b32.xlu0 %v12073_v45, %s7965_s21  ;;  %v5088_v21 = vcombine.high %v15084_v50, %v14756_v61 }
 0x485   : > { %v12095_v44 = vpop.permute.xlu1 %5972 }
 0x486   : > { %15080 = vst [vmem:[#allocation386_spill] sm:$0xff] %v12095_v44  ;;  %v12106_v23 = vpop.permute.xlu0 %5970  ;;  %v5137_v44 = vcombine.high %v15082_v14, %v14756_v61 }
 0x487   : > { %15081 = vst [vmem:[#allocation387_spill] sm:$0xff] %v12106_v23  ;;  %6216 = vrot.lane.b32.xlu1 %v12088_v4, %s7965_s21  ;;  %v12128_v23 = vrot.slane %v4990_v49, %v14861_v12  ;;  %v15086_v49 = vld [vmem:[#allocation132_spill] sm:$0xff] }
 0x488   : > { %6214 = vrot.lane.b32.xlu0 %v12099_v35, %s7965_s21  ;;  %v12143_v14 = vrot.slane %v5137_v44, %v14861_v12 }
 0x489   : > { %v12121_v1 = vpop.permute.xlu1 %5976  ;;  %v12151_v50 = vrot.slane %v12128_v23, %v8842_v32 }
 0x48a   : > { %15083 = vst [vmem:[#allocation129_spill] sm:$0xff] %v12121_v1  ;;  %v12132_v2 = vpop.permute.xlu0 %5974  ;;  %v5235_v1 = vcombine.high %v15086_v49, %v14756_v61  ;;  %v12166_v44 = vrot.slane %v12143_v14, %v8842_v32 }
 0x48b   : > { %15085 = vst [vmem:[#allocation130_spill] sm:$0xff] %v12132_v2  ;;  %6220 = vrot.lane.b32.xlu1 %v12114_v30, %s7965_s21  ;;  %v12154_v2 = vrot.slane %v5088_v21, %v14861_v12  ;;  %v15090_v21 = vld [vmem:[#allocation134_spill] sm:$0xff] }
 0x48c   : > { %6218 = vrot.lane.b32.xlu0 %v12125_v55, %s7965_s21  ;;  %v12169_v49 = vrot.slane %v5235_v1, %v14861_v12 }
 0x48d   : > { %v12147_v25 = vpop.permute.xlu1 %5980  ;;  %v12177_v48 = vrot.slane %v12154_v2, %v8842_v32 }
 0x48e   : > { %15087 = vst [vmem:[#allocation132_spill] sm:$0xff] %v12147_v25  ;;  %v12158_v40 = vpop.permute.xlu0 %5978  ;;  %v5333_v25 = vcombine.high %v15090_v21, %v14756_v61  ;;  %v12192_v1 = vrot.slane %v12169_v49, %v8842_v32 }
 0x48f   : > { %15089 = vst [vmem:[#allocation133_spill] sm:$0xff] %v12158_v40  ;;  %6224 = vrot.lane.b32.xlu1 %v12140_v31, %s7965_s21  ;;  %v12180_v40 = vrot.slane %v5186_v22, %v14861_v12  ;;  %v15095_v22 = vld [vmem:[#allocation136_spill] sm:$0xff] }
 0x490   : > { %6222 = vrot.lane.b32.xlu0 %v12151_v50, %s7965_s21  ;;  %v12195_v21 = vrot.slane %v5333_v25, %v14861_v12 }
 0x491   : > { %v12173_v5 = vpop.permute.xlu1 %5984  ;;  %v12203_v27 = vrot.slane %v12180_v40, %v8842_v32 }
 0x492   : > { %15091 = vst [vmem:[#allocation134_spill] sm:$0xff] %v12173_v5  ;;  %v12184_v59 = vpop.permute.xlu0 %5982  ;;  %15094 = vst [vmem:[#allocation388_spill] sm:$0xff] %v12195_v21  ;;  %v5431_v5 = vcombine.high %v15095_v22, %v14756_v61  ;;  %v12218_v25 = vrot.slane %v12195_v21, %v8842_v32 }
 0x493   : > { %15093 = vst [vmem:[#allocation135_spill] sm:$0xff] %v12184_v59  ;;  %6228 = vrot.lane.b32.xlu1 %v12166_v44, %s7965_s21  ;;  %v12206_v59 = vrot.slane %v5284_v42, %v14861_v12  ;;  %v15101_v42 = vld [vmem:[#allocation138_spill] sm:$0xff] }
 0x494   : > { %6226 = vrot.lane.b32.xlu0 %v12177_v48, %s7965_s21  ;;  %v12221_v22 = vrot.slane %v5431_v5, %v14861_v12 }
 0x495   : > { %v12199_v36 = vpop.permute.xlu1 %5988  ;;  %15097 = vst [vmem:[#allocation389_spill] sm:$0xff] %v12206_v59  ;;  %v12229_v62 = vrot.slane %v12206_v59, %v8842_v32  ;;  %v15115_v59 = vld [vmem:[#allocation143_spill] sm:$0xff] }
 0x496   : > { %15096 = vst [vmem:[#allocation136_spill] sm:$0xff] %v12199_v36  ;;  %v12210_v54 = vpop.permute.xlu0 %5986  ;;  %15100 = vst [vmem:[#allocation390_spill] sm:$0xff] %v12221_v22  ;;  %v5529_v36 = vcombine.high %v15101_v42, %v14756_v61  ;;  %v12244_v5 = vrot.slane %v12221_v22, %v8842_v32  ;;  %v5676_v21 = vcombine.high %v15115_v59, %v14756_v61 }
 0x497   : > { %15099 = vst [vmem:[#allocation137_spill] sm:$0xff] %v12210_v54  ;;  %6232 = vrot.lane.b32.xlu1 %v12192_v1, %s7965_s21  ;;  %v12232_v54 = vrot.slane %v5382_v60, %v14861_v12  ;;  %v15107_v60 = vld [vmem:[#allocation140_spill] sm:$0xff] }
 0x498   : > { %6230 = vrot.lane.b32.xlu0 %v12203_v27, %s7965_s21  ;;  %v12247_v42 = vrot.slane %v5529_v36, %v14861_v12 }
 0x499   : > { %v12225_v58 = vpop.permute.xlu1 %5992  ;;  %15103 = vst [vmem:[#allocation391_spill] sm:$0xff] %v12232_v54  ;;  %v12255_v8 = vrot.slane %v12232_v54, %v8842_v32 }
 0x49a   : > { %15102 = vst [vmem:[#allocation138_spill] sm:$0xff] %v12225_v58  ;;  %v12236_v28 = vpop.permute.xlu0 %5990  ;;  %15106 = vst [vmem:[#allocation392_spill] sm:$0xff] %v12247_v42  ;;  %v5627_v58 = vcombine.high %v15107_v60, %v14756_v61  ;;  %v12270_v36 = vrot.slane %v12247_v42, %v8842_v32 }
 0x49b   : > { %15105 = vst [vmem:[#allocation139_spill] sm:$0xff] %v12236_v28  ;;  %6236 = vrot.lane.b32.xlu1 %v12218_v25, %s7965_s21  ;;  %v12258_v28 = vrot.slane %v5480_v47, %v14861_v12  ;;  %v15112_v47 = vld [vmem:[#allocation142_spill] sm:$0xff] }
 0x49c   : > { %6234 = vrot.lane.b32.xlu0 %v12229_v62, %s7965_s21  ;;  %v12273_v60 = vrot.slane %v5627_v58, %v14861_v12 }
 0x49d   : > { %v12251_v15 = vpop.permute.xlu1 %5996  ;;  %v12281_v26 = vrot.slane %v12258_v28, %v8842_v32 }
 0x49e   : > { %15108 = vst [vmem:[#allocation140_spill] sm:$0xff] %v12251_v15  ;;  %v12262_v22 = vpop.permute.xlu0 %5994  ;;  %15111 = vst [vmem:[#allocation393_spill] sm:$0xff] %v12273_v60  ;;  %v5725_v15 = vcombine.high %v15112_v47, %v14756_v61  ;;  %v12296_v58 = vrot.slane %v12273_v60, %v8842_v32 }
 0x49f   : > { %15110 = vst [vmem:[#allocation141_spill] sm:$0xff] %v12262_v22  ;;  %6240 = vrot.lane.b32.xlu1 %v12244_v5, %s7965_s21  ;;  %v12284_v22 = vrot.slane %v5578_v10, %v14861_v12 }
 0x4a0   : > { %6238 = vrot.lane.b32.xlu0 %v12255_v8, %s7965_s21  ;;  %v12299_v47 = vrot.slane %v5725_v15, %v14861_v12 }
 0x4a1   : > { %v12277_v54 = vpop.permute.xlu1 %6064  ;;  %15114 = vst [vmem:[#allocation394_spill] sm:$0xff] %v12284_v22  ;;  %v12305_v59 = vrot.slane %v12284_v22, %v8842_v32 }
 0x4a2   : > { %15113 = vst [vmem:[#allocation142_spill] sm:$0xff] %v12277_v54  ;;  %v12288_v42 = vpop.permute.xlu0 %6062  ;;  %15117 = vst [vmem:[#allocation395_spill] sm:$0xff] %v12299_v47  ;;  %v12318_v15 = vrot.slane %v12299_v47, %v8842_v32 }
 0x4a3   : > { %15116 = vst [vmem:[#allocation143_spill] sm:$0xff] %v12288_v42  ;;  %6244 = vrot.lane.b32.xlu1 %v12270_v36, %s7965_s21  ;;  %v12308_v42 = vrot.slane %v5676_v21, %v14861_v12 }
 0x4a4   : > { %6242 = vrot.lane.b32.xlu0 %v12281_v26, %s7965_s21 }
 0x4a5   : > { %v12301_v10 = vpop.permute.xlu1 %6068  ;;  %15119 = vst [vmem:[#allocation397_spill] sm:$0xff] %v12308_v42  ;;  %v12324_v22 = vrot.slane %v12308_v42, %v8842_v32  ;;  %v4400_v42 = vcombine.high %v11958_v57, %v14756_v61 }
 0x4a6   : > { %15118 = vst [vmem:[#allocation396_spill] sm:$0xff] %v12301_v10  ;;  %v12310_v54 = vpop.permute.xlu0 %6066 }
 0x4a7   : > { %15120 = vst [vmem:[#allocation398_spill] sm:$0xff] %v12310_v54  ;;  %6248 = vrot.lane.b32.xlu1 %v12296_v58, %s7965_s21  ;;  %v4302_v54 = vcombine.high %v11932_v56, %v14756_v61 }
 0x4a8   : > { %6246 = vrot.lane.b32.xlu0 %v12305_v59, %s7965_s21 }
 0x4a9   : > { %v12320_v10 = vpop.permute.xlu1 %6072 }
 0x4aa   : > { %15121 = vst [vmem:[#allocation399_spill] sm:$0xff] %v12320_v10  ;;  %v12326_v21 = vpop.permute.xlu0 %6070  ;;  %v4253_v10 = vcombine.high %v11943_v11, %v14756_v61 }
 0x4ab   : > { %15122 = vst [vmem:[#allocation400_spill] sm:$0xff] %v12326_v21  ;;  %6252 = vrot.lane.b32.xlu1 %v12318_v15, %s7965_s21 }
 0x4ac   : > { %6250 = vrot.lane.b32.xlu0 %v12324_v22, %s7965_s21 }
 0x4ad   : > { %v12332_v12 = vpop.permute.xlu1 %6076 }
 0x4ae   : > { %15123 = vst [vmem:[#allocation401_spill] sm:$0xff] %v12332_v12  ;;  %v12336_v47 = vpop.permute.xlu0 %6074  ;;  %v4351_v12 = vcombine.high %v11969_v18, %v14756_v61  ;;  %v4596_v18 = vcombine.high %v12010_v46, %v14756_v61 }
 0x4af   : > { %15124 = vst [vmem:[#allocation402_spill] sm:$0xff] %v12336_v47  ;;  %6320 = vrot.lane.b32.xlu1 %v4302_v54, %s7966_s19  ;;  %v4498_v54 = vcombine.high %v11984_v7, %v14756_v61 }
 0x4b0   : > { %6318 = vrot.lane.b32.xlu0 %v4253_v10, %s7966_s19  ;;  %v4449_v10 = vcombine.high %v11995_v38, %v14756_v61  ;;  %v4694_v38 = vcombine.high %v12036_v37, %v14756_v61 }
 0x4b1   : > { %v12342_v21 = vpop.permute.xlu1 %6080 }
 0x4b2   : > { %v12346_v60 = vpop.permute.xlu0 %6078 }
 0x4b3   : > { %6324 = vrot.lane.b32.xlu1 %v4400_v42, %s7966_s19  ;;  %v4547_v42 = vcombine.high %v12021_v6, %v14756_v61  ;;  %v4792_v6 = vcombine.high %v12062_v51, %v14756_v61 }
 0x4b4   : > { %6322 = vrot.lane.b32.xlu0 %v4351_v12, %s7966_s19 }
 0x4b5   : > { %v12352_v56 = vpop.permute.xlu1 %6084 }
 0x4b6   : > { %15125 = vst [vmem:[#allocation403_spill] sm:$0xff] %v12352_v56  ;;  %v12356_v11 = vpop.permute.xlu0 %6082 }
 0x4b7   : > { %15126 = vst [vmem:[#allocation404_spill] sm:$0xff] %v12356_v11  ;;  %6328 = vrot.lane.b32.xlu1 %v4498_v54, %s7966_s19 }
 0x4b8   : > { %6326 = vrot.lane.b32.xlu0 %v4449_v10, %s7966_s19  ;;  %v4645_v10 = vcombine.high %v12047_v34, %v14756_v61  ;;  %v4890_v34 = vcombine.high %v12088_v4, %v14756_v61 }
 0x4b9   : > { %v12362_v57 = vpop.permute.xlu1 %6088 }
 0x4ba   : > { %15127 = vst [vmem:[#allocation405_spill] sm:$0xff] %v12362_v57  ;;  %v12366_v12 = vpop.permute.xlu0 %6086 }
 0x4bb   : > { %15128 = vst [vmem:[#allocation406_spill] sm:$0xff] %v12366_v12  ;;  %6332 = vrot.lane.b32.xlu1 %v4596_v18, %s7966_s19 }
 0x4bc   : > { %6330 = vrot.lane.b32.xlu0 %v4547_v42, %s7966_s19  ;;  %v4743_v42 = vcombine.high %v12073_v45, %v14756_v61  ;;  %v4988_v45 = vcombine.high %v12114_v30, %v14756_v61 }
 0x4bd   : > { %v12372_v7 = vpop.permute.xlu1 %6092 }
 0x4be   : > { %15129 = vst [vmem:[#allocation407_spill] sm:$0xff] %v12372_v7  ;;  %v12376_v54 = vpop.permute.xlu0 %6090 }
 0x4bf   : > { %15130 = vst [vmem:[#allocation408_spill] sm:$0xff] %v12376_v54  ;;  %6336 = vrot.lane.b32.xlu1 %v4694_v38, %s7966_s19 }
 0x4c0   : > { %6334 = vrot.lane.b32.xlu0 %v4645_v10, %s7966_s19  ;;  %v4841_v10 = vcombine.high %v12099_v35, %v14756_v61  ;;  %v5086_v35 = vcombine.high %v12140_v31, %v14756_v61 }
 0x4c1   : > { %v12382_v46 = vpop.permute.xlu1 %6096 }
 0x4c2   : > { %15131 = vst [vmem:[#allocation409_spill] sm:$0xff] %v12382_v46  ;;  %v12386_v18 = vpop.permute.xlu0 %6094  ;;  %v15239_v46 = vld [vmem:[#allocation163_spill] sm:$0xff] }
 0x4c3   : > { %15132 = vst [vmem:[#allocation410_spill] sm:$0xff] %v12386_v18  ;;  %6340 = vrot.lane.b32.xlu1 %v4792_v6, %s7966_s19  ;;  %v15237_v18 = vld [vmem:[#allocation162_spill] sm:$0xff] }
 0x4c4   : > { %6338 = vrot.lane.b32.xlu0 %v4743_v42, %s7966_s19  ;;  %v4939_v42 = vcombine.high %v12125_v55, %v14756_v61  ;;  %v5184_v55 = vcombine.high %v12166_v44, %v14756_v61 }
 0x4c5   : > { %v12392_v37 = vpop.permute.xlu1 %6100 }
 0x4c6   : > { %15133 = vst [vmem:[#allocation411_spill] sm:$0xff] %v12392_v37  ;;  %v12396_v38 = vpop.permute.xlu0 %6098 }
 0x4c7   : > { %15134 = vst [vmem:[#allocation412_spill] sm:$0xff] %v12396_v38  ;;  %6344 = vrot.lane.b32.xlu1 %v4890_v34, %s7966_s19 }
 0x4c8   : > { %6342 = vrot.lane.b32.xlu0 %v4841_v10, %s7966_s19  ;;  %v5037_v10 = vcombine.high %v12151_v50, %v14756_v61  ;;  %v5282_v50 = vcombine.high %v12192_v1, %v14756_v61 }
 0x4c9   : > { %v12402_v51 = vpop.permute.xlu1 %6104 }
 0x4ca   : > { %15135 = vst [vmem:[#allocation413_spill] sm:$0xff] %v12402_v51  ;;  %v12406_v6 = vpop.permute.xlu0 %6102 }
 0x4cb   : > { %15136 = vst [vmem:[#allocation414_spill] sm:$0xff] %v12406_v6  ;;  %6348 = vrot.lane.b32.xlu1 %v4988_v45, %s7966_s19 }
 0x4cc   : > { %6346 = vrot.lane.b32.xlu0 %v4939_v42, %s7966_s19  ;;  %v5135_v42 = vcombine.high %v12177_v48, %v14756_v61  ;;  %v5380_v48 = vcombine.high %v12218_v25, %v14756_v61 }
 0x4cd   : > { %v12412_v4 = vpop.permute.xlu1 %6108 }
 0x4ce   : > { %15137 = vst [vmem:[#allocation415_spill] sm:$0xff] %v12412_v4  ;;  %v12416_v34 = vpop.permute.xlu0 %6106 }
 0x4cf   : > { %15138 = vst [vmem:[#allocation416_spill] sm:$0xff] %v12416_v34  ;;  %6352 = vrot.lane.b32.xlu1 %v5086_v35, %s7966_s19 }
 0x4d0   : > { %6350 = vrot.lane.b32.xlu0 %v5037_v10, %s7966_s19  ;;  %v5233_v10 = vcombine.high %v12203_v27, %v14756_v61  ;;  %v5478_v27 = vcombine.high %v12244_v5, %v14756_v61 }
 0x4d1   : > { %v12422_v30 = vpop.permute.xlu1 %6112 }
 0x4d2   : > { %15139 = vst [vmem:[#allocation417_spill] sm:$0xff] %v12422_v30  ;;  %v12426_v45 = vpop.permute.xlu0 %6110 }
 0x4d3   : > { %15140 = vst [vmem:[#allocation418_spill] sm:$0xff] %v12426_v45  ;;  %6356 = vrot.lane.b32.xlu1 %v5184_v55, %s7966_s19 }
 0x4d4   : > { %6354 = vrot.lane.b32.xlu0 %v5135_v42, %s7966_s19  ;;  %v5331_v42 = vcombine.high %v12229_v62, %v14756_v61  ;;  %v5576_v62 = vcombine.high %v12270_v36, %v14756_v61  ;;  %v4285_v36 = vcombine.high %v11911_v53, %v14756_v61  ;;  %v4383_v53 = vcombine.high %v11935_v19, %v14756_v61 }
 0x4d5   : > { %v12432_v31 = vpop.permute.xlu1 %6116  ;;  %v4481_v19 = vcombine.high %v11961_v63, %v14756_v61  ;;  %v4579_v63 = vcombine.high %v11987_v16, %v14756_v61  ;;  %v4677_v16 = vcombine.high %v12013_v20, %v14756_v61  ;;  %v4775_v20 = vcombine.high %v12039_v13, %v14756_v61 }
 0x4d6   : > { %15141 = vst [vmem:[#allocation419_spill] sm:$0xff] %v12432_v31  ;;  %v12436_v35 = vpop.permute.xlu0 %6114  ;;  %v4873_v13 = vcombine.high %v12065_v33, %v14756_v61  ;;  %v4971_v33 = vcombine.high %v12091_v3, %v14756_v61  ;;  %v5069_v3 = vcombine.high %v12117_v24, %v14756_v61  ;;  %v5167_v24 = vcombine.high %v12143_v14, %v14756_v61 }
 0x4d7   : > { %15142 = vst [vmem:[#allocation420_spill] sm:$0xff] %v12436_v35  ;;  %6360 = vrot.lane.b32.xlu1 %v5282_v50, %s7966_s19  ;;  %v5265_v14 = vcombine.high %v12169_v49, %v14756_v61  ;;  %v15165_v49 = vld [vmem:[#allocation388_spill] sm:$0xff] }
 0x4d8   : > { %6358 = vrot.lane.b32.xlu0 %v5233_v10, %s7966_s19  ;;  %v5429_v10 = vcombine.high %v12255_v8, %v14756_v61  ;;  %v5674_v8 = vcombine.high %v12296_v58, %v14756_v61  ;;  %v4236_v58 = vcombine.high %v11920_v9, %v14756_v61  ;;  %v4334_v9 = vcombine.high %v11946_v52, %v14756_v61 }
 0x4d9   : > { %v12442_v44 = vpop.permute.xlu1 %6120  ;;  %v4432_v52 = vcombine.high %v11972_v43, %v14756_v61  ;;  %v4530_v43 = vcombine.high %v11998_v29, %v14756_v61  ;;  %v4628_v29 = vcombine.high %v12024_v0, %v14756_v61  ;;  %v4726_v0 = vcombine.high %v12050_v17, %v14756_v61 }
 0x4da   : > { %15143 = vst [vmem:[#allocation421_spill] sm:$0xff] %v12442_v44  ;;  %v12446_v55 = vpop.permute.xlu0 %6118  ;;  %v12508_v35 = vrot.slane %v4236_v58, %v8842_v32  ;;  %v12526_v58 = vrot.slane %v4334_v9, %v8842_v32  ;;  %v4824_v17 = vcombine.high %v12076_v41, %v14756_v61  ;;  %v4922_v41 = vcombine.high %v12102_v39, %v14756_v61 }
 0x4db   : > { %15144 = vst [vmem:[#allocation422_spill] sm:$0xff] %v12446_v55  ;;  %6364 = vrot.lane.b32.xlu1 %v5380_v48, %s7966_s19  ;;  %v12544_v9 = vrot.slane %v4432_v52, %v8842_v32  ;;  %v12562_v52 = vrot.slane %v4530_v43, %v8842_v32  ;;  %v12580_v43 = vrot.slane %v4628_v29, %v8842_v32 }
 0x4dc   : > { %6362 = vrot.lane.b32.xlu0 %v5331_v42, %s7966_s19  ;;  %v5527_v42 = vcombine.high %v12281_v26, %v14756_v61  ;;  %v12598_v29 = vrot.slane %v4726_v0, %v8842_v32  ;;  %v12616_v0 = vrot.slane %v4824_v17, %v8842_v32  ;;  %v5020_v39 = vcombine.high %v12128_v23, %v14756_v61 }
 0x4dd   : > { %v12452_v1 = vpop.permute.xlu1 %6124  ;;  %v12634_v17 = vrot.slane %v4922_v41, %v8842_v32  ;;  %v5118_v23 = vcombine.high %v12154_v2, %v14756_v61  ;;  %v5216_v2 = vcombine.high %v12180_v40, %v14756_v61  ;;  %v5363_v11 = vcombine.high %v15165_v49, %v14756_v61  ;;  %v15167_v40 = vld [vmem:[#allocation389_spill] sm:$0xff]  ;;  %v15169_v49 = vld [vmem:[#allocation390_spill] sm:$0xff] }
 0x4de   : > { %v12456_v50 = vpop.permute.xlu0 %6122  ;;  %v12652_v41 = vrot.slane %v5020_v39, %v8842_v32 }
 0x4df   : > { %6368 = vrot.lane.b32.xlu1 %v5478_v27, %s7966_s19  ;;  %v12670_v39 = vrot.slane %v5118_v23, %v8842_v32  ;;  %v12688_v23 = vrot.slane %v5216_v2, %v8842_v32 }
 0x4e0   : > { %6366 = vrot.lane.b32.xlu0 %v5429_v10, %s7966_s19  ;;  %v5625_v10 = vcombine.high %v12305_v59, %v14756_v61  ;;  %v5723_v59 = vcombine.high %v12324_v22, %v14756_v61 }
 0x4e1   : > { %v12462_v25 = vpop.permute.xlu1 %6192 }
 0x4e2   : > { %v12466_v48 = vpop.permute.xlu0 %6190 }
 0x4e3   : > { %6372 = vrot.lane.b32.xlu1 %v5576_v62, %s7966_s19  ;;  %v5772_v62 = vcombine.high %v12318_v15, %v14756_v61 }
 0x4e4   : > { %6370 = vrot.lane.b32.xlu0 %v5527_v42, %s7966_s19 }
 0x4e5   : > { %v12472_v5 = vpop.permute.xlu1 %6196 }
 0x4e6   : > { %15145 = vst [vmem:[#allocation423_spill] sm:$0xff] %v12472_v5  ;;  %v12476_v27 = vpop.permute.xlu0 %6194 }
 0x4e7   : > { %15146 = vst [vmem:[#allocation424_spill] sm:$0xff] %v12476_v27  ;;  %6376 = vrot.lane.b32.xlu1 %v5674_v8, %s7966_s19 }
 0x4e8   : > { %6374 = vrot.lane.b32.xlu0 %v5625_v10, %s7966_s19  ;;  %v12501_v10 = vrot.slane %v4285_v36, %v8842_v32  ;;  %v12519_v36 = vrot.slane %v4383_v53, %v8842_v32  ;;  %v12537_v53 = vrot.slane %v4481_v19, %v8842_v32  ;;  %v12555_v19 = vrot.slane %v4579_v63, %v8842_v32 }
 0x4e9   : > { %v12484_v26 = vpop.permute.xlu1 %6200  ;;  %v12573_v63 = vrot.slane %v4677_v16, %v8842_v32  ;;  %v12591_v16 = vrot.slane %v4775_v20, %v8842_v32  ;;  %v12609_v20 = vrot.slane %v4873_v13, %v8842_v32  ;;  %v12627_v13 = vrot.slane %v4971_v33, %v8842_v32 }
 0x4ea   : > { %v12490_v42 = vpop.permute.xlu0 %6198  ;;  %v12645_v33 = vrot.slane %v5069_v3, %v8842_v32  ;;  %v12663_v3 = vrot.slane %v5167_v24, %v8842_v32  ;;  %v12681_v24 = vrot.slane %v5265_v14, %v8842_v32  ;;  %v12699_v14 = vrot.slane %v5363_v11, %v8842_v32 }
 0x4eb   : > { %6380 = vrot.lane.b32.xlu1 %v5772_v62, %s7966_s19 }
 0x4ec   : > { %6378 = vrot.lane.b32.xlu0 %v5723_v59, %s7966_s19 }
 0x4ed   : > { %v12498_v8 = vpop.permute.xlu1 %6204 }
 0x4ee   : > { %15147 = vst [vmem:[#allocation425_spill] sm:$0xff] %v12498_v8  ;;  %v12505_v15 = vpop.permute.xlu0 %6202 }
 0x4ef   : > { %15148 = vst [vmem:[#allocation426_spill] sm:$0xff] %v12505_v15  ;;  %6448 = vrot.lane.b32.xlu1 %v12501_v10, %s7967_s12  ;;  %v5314_v15 = vcombine.high %v15167_v40, %v14756_v61  ;;  %v15171_v40 = vld [vmem:[#allocation391_spill] sm:$0xff] }
 0x4f0   : > { %6446 = vrot.lane.b32.xlu0 %v12508_v35, %s7967_s12 }
 0x4f1   : > { %v12516_v22 = vpop.permute.xlu1 %6208  ;;  %v12706_v2 = vrot.slane %v5314_v15, %v8842_v32 }
 0x4f2   : > { %v12523_v62 = vpop.permute.xlu0 %6206 }
 0x4f3   : > { %6452 = vrot.lane.b32.xlu1 %v12519_v36, %s7967_s12 }
 0x4f4   : > { %6450 = vrot.lane.b32.xlu0 %v12526_v58, %s7967_s12 }
 0x4f5   : > { %v12534_v59 = vpop.permute.xlu1 %6212 }
 0x4f6   : > { %15149 = vst [vmem:[#allocation427_spill] sm:$0xff] %v12534_v59  ;;  %v12541_v31 = vpop.permute.xlu0 %6210 }
 0x4f7   : > { %15150 = vst [vmem:[#allocation428_spill] sm:$0xff] %v12541_v31  ;;  %6456 = vrot.lane.b32.xlu1 %v12537_v53, %s7967_s12 }
 0x4f8   : > { %6454 = vrot.lane.b32.xlu0 %v12544_v9, %s7967_s12 }
 0x4f9   : > { %v12552_v34 = vpop.permute.xlu1 %6216 }
 0x4fa   : > { %15151 = vst [vmem:[#allocation429_spill] sm:$0xff] %v12552_v34  ;;  %v12559_v4 = vpop.permute.xlu0 %6214  ;;  %v15250_v34 = vld [vmem:[#allocation52_spill] sm:$0xff] }
 0x4fb   : > { %15152 = vst [vmem:[#allocation430_spill] sm:$0xff] %v12559_v4  ;;  %6460 = vrot.lane.b32.xlu1 %v12555_v19, %s7967_s12  ;;  %v15247_v4 = vld [vmem:[#allocation304_spill] sm:$0xff] }
 0x4fc   : > { %6458 = vrot.lane.b32.xlu0 %v12562_v52, %s7967_s12 }
 0x4fd   : > { %v12570_v38 = vpop.permute.xlu1 %6220 }
 0x4fe   : > { %15153 = vst [vmem:[#allocation431_spill] sm:$0xff] %v12570_v38  ;;  %v12577_v37 = vpop.permute.xlu0 %6218 }
 0x4ff   : > { %15154 = vst [vmem:[#allocation432_spill] sm:$0xff] %v12577_v37  ;;  %6464 = vrot.lane.b32.xlu1 %v12573_v63, %s7967_s12 }
 0x500   : > { %6462 = vrot.lane.b32.xlu0 %v12580_v43, %s7967_s12 }
 0x501   : > { %v12588_v38 = vpop.permute.xlu1 %6224 }
 0x502   : > { %15155 = vst [vmem:[#allocation433_spill] sm:$0xff] %v12588_v38  ;;  %v12595_v37 = vpop.permute.xlu0 %6222 }
 0x503   : > { %15156 = vst [vmem:[#allocation434_spill] sm:$0xff] %v12595_v37  ;;  %6468 = vrot.lane.b32.xlu1 %v12591_v16, %s7967_s12 }
 0x504   : > { %6466 = vrot.lane.b32.xlu0 %v12598_v29, %s7967_s12 }
 0x505   : > { %v12606_v54 = vpop.permute.xlu1 %6228 }
 0x506   : > { %15157 = vst [vmem:[#allocation435_spill] sm:$0xff] %v12606_v54  ;;  %v12613_v7 = vpop.permute.xlu0 %6226 }
 0x507   : > { %15158 = vst [vmem:[#allocation436_spill] sm:$0xff] %v12613_v7  ;;  %6472 = vrot.lane.b32.xlu1 %v12609_v20, %s7967_s12 }
 0x508   : > { %6470 = vrot.lane.b32.xlu0 %v12616_v0, %s7967_s12 }
 0x509   : > { %v12624_v54 = vpop.permute.xlu1 %6232 }
 0x50a   : > { %15159 = vst [vmem:[#allocation437_spill] sm:$0xff] %v12624_v54  ;;  %v12631_v7 = vpop.permute.xlu0 %6230 }
 0x50b   : > { %15160 = vst [vmem:[#allocation438_spill] sm:$0xff] %v12631_v7  ;;  %6476 = vrot.lane.b32.xlu1 %v12627_v13, %s7967_s12 }
 0x50c   : > { %6474 = vrot.lane.b32.xlu0 %v12634_v17, %s7967_s12 }
 0x50d   : > { %v12642_v31 = vpop.permute.xlu1 %6236 }
 0x50e   : > { %15161 = vst [vmem:[#allocation439_spill] sm:$0xff] %v12642_v31  ;;  %v12649_v59 = vpop.permute.xlu0 %6234 }
 0x50f   : > { %15162 = vst [vmem:[#allocation440_spill] sm:$0xff] %v12649_v59  ;;  %6480 = vrot.lane.b32.xlu1 %v12645_v33, %s7967_s12 }
 0x510   : > { %6478 = vrot.lane.b32.xlu0 %v12652_v41, %s7967_s12 }
 0x511   : > { %v12660_v31 = vpop.permute.xlu1 %6240 }
 0x512   : > { %15163 = vst [vmem:[#allocation441_spill] sm:$0xff] %v12660_v31  ;;  %v12667_v59 = vpop.permute.xlu0 %6238 }
 0x513   : > { %15164 = vst [vmem:[#allocation442_spill] sm:$0xff] %v12667_v59  ;;  %6484 = vrot.lane.b32.xlu1 %v12663_v3, %s7967_s12 }
 0x514   : > { %6482 = vrot.lane.b32.xlu0 %v12670_v39, %s7967_s12 }
 0x515   : > { %v12678_v56 = vpop.permute.xlu1 %6244 }
 0x516   : > { %15166 = vst [vmem:[#allocation388_spill] sm:$0xff] %v12678_v56  ;;  %v12685_v8 = vpop.permute.xlu0 %6242  ;;  %v5461_v56 = vcombine.high %v15169_v49, %v14756_v61  ;;  %v15173_v49 = vld [vmem:[#allocation392_spill] sm:$0xff] }
 0x517   : > { %15168 = vst [vmem:[#allocation389_spill] sm:$0xff] %v12685_v8  ;;  %6488 = vrot.lane.b32.xlu1 %v12681_v24, %s7967_s12  ;;  %v5412_v8 = vcombine.high %v15171_v40, %v14756_v61  ;;  %v5559_v5 = vcombine.high %v15173_v49, %v14756_v61  ;;  %v5510_v40 = vcombine.high %v12258_v28, %v14756_v61  ;;  %v15174_v49 = vld [vmem:[#allocation393_spill] sm:$0xff]  ;;  %v15175_v28 = vld [vmem:[#allocation394_spill] sm:$0xff] }
 0x518   : > { %6486 = vrot.lane.b32.xlu0 %v12688_v23, %s7967_s12  ;;  %v12717_v11 = vrot.slane %v5461_v56, %v8842_v32  ;;  %v5657_v55 = vcombine.high %v15174_v49, %v14756_v61  ;;  %v5608_v59 = vcombine.high %v15175_v28, %v14756_v61  ;;  %v15176_v49 = vld [vmem:[#allocation395_spill] sm:$0xff]  ;;  %v15178_v28 = vld [vmem:[#allocation397_spill] sm:$0xff] }
 0x519   : > { %v12696_v47 = vpop.permute.xlu1 %6248  ;;  %v12724_v15 = vrot.slane %v5412_v8, %v8842_v32  ;;  %v12735_v56 = vrot.slane %v5559_v5, %v8842_v32  ;;  %v12742_v8 = vrot.slane %v5510_v40, %v8842_v32  ;;  %v5755_v45 = vcombine.high %v15176_v49, %v14756_v61 }
 0x51a   : > { %15170 = vst [vmem:[#allocation390_spill] sm:$0xff] %v12696_v47  ;;  %v12703_v27 = vpop.permute.xlu0 %6246  ;;  %v12753_v5 = vrot.slane %v5657_v55, %v8842_v32  ;;  %v5706_v7 = vcombine.high %v15178_v28, %v14756_v61  ;;  %v12760_v40 = vrot.slane %v5608_v59, %v8842_v32 }
 0x51b   : > { %15172 = vst [vmem:[#allocation391_spill] sm:$0xff] %v12703_v27  ;;  %6492 = vrot.lane.b32.xlu1 %v12699_v14, %s7967_s12 }
 0x51c   : > { %6490 = vrot.lane.b32.xlu0 %v12706_v2, %s7967_s12  ;;  %v12774_v28 = vrot.slane %v5706_v7, %v8842_v32  ;;  %v4401_v7 = vcombine.high %v12519_v36, %v14756_v61 }
 0x51d   : > { %v12714_v47 = vpop.permute.xlu1 %6252 }
 0x51e   : > { %v12721_v27 = vpop.permute.xlu0 %6250 }
 0x51f   : > { %6496 = vrot.lane.b32.xlu1 %v12717_v11, %s7967_s12 }
 0x520   : > { %6494 = vrot.lane.b32.xlu0 %v12724_v15, %s7967_s12 }
 0x521   : > { %v12732_v44 = vpop.permute.xlu1 %6320 }
 0x522   : > { %v12739_v31 = vpop.permute.xlu0 %6318 }
 0x523   : > { %6500 = vrot.lane.b32.xlu1 %v12735_v56, %s7967_s12 }
 0x524   : > { %6498 = vrot.lane.b32.xlu0 %v12742_v8, %s7967_s12 }
 0x525   : > { %v12750_v30 = vpop.permute.xlu1 %6324 }
 0x526   : > { %15177 = vst [vmem:[#allocation392_spill] sm:$0xff] %v12750_v30  ;;  %v12757_v54 = vpop.permute.xlu0 %6322  ;;  %v12769_v30 = vrot.slane %v5755_v45, %v8842_v32  ;;  %v4254_v45 = vcombine.high %v12508_v35, %v14756_v61 }
 0x527   : > { %15179 = vst [vmem:[#allocation393_spill] sm:$0xff] %v12757_v54  ;;  %6504 = vrot.lane.b32.xlu1 %v12753_v5, %s7967_s12  ;;  %v4303_v54 = vcombine.high %v12501_v10, %v14756_v61 }
 0x528   : > { %6502 = vrot.lane.b32.xlu0 %v12760_v40, %s7967_s12 }
 0x529   : > { %v12766_v49 = vpop.permute.xlu1 %6328 }
 0x52a   : > { %v12771_v55 = vpop.permute.xlu0 %6326 }
 0x52b   : > { %6508 = vrot.lane.b32.xlu1 %v12769_v30, %s7967_s12 }
 0x52c   : > { %6506 = vrot.lane.b32.xlu0 %v12774_v28, %s7967_s12 }
 0x52d   : > { %v12780_v59 = vpop.permute.xlu1 %6332 }
 0x52e   : > { %15180 = vst [vmem:[#allocation394_spill] sm:$0xff] %v12780_v59  ;;  %v12784_v6 = vpop.permute.xlu0 %6330  ;;  %v4352_v59 = vcombine.high %v12526_v58, %v14756_v61  ;;  %v4597_v58 = vcombine.high %v12555_v19, %v14756_v61 }
 0x52f   : > { %15181 = vst [vmem:[#allocation395_spill] sm:$0xff] %v12784_v6  ;;  %6576 = vrot.lane.b32.xlu1 %v4303_v54, %s7968_s20  ;;  %v4499_v54 = vcombine.high %v12537_v53, %v14756_v61 }
 0x530   : > { %6574 = vrot.lane.b32.xlu0 %v4254_v45, %s7968_s20  ;;  %v4450_v45 = vcombine.high %v12544_v9, %v14756_v61  ;;  %v4695_v9 = vcombine.high %v12573_v63, %v14756_v61 }
 0x531   : > { %v12790_v32 = vpop.permute.xlu1 %6336 }
 0x532   : > { %v12794_v51 = vpop.permute.xlu0 %6334 }
 0x533   : > { %15182 = vst [vmem:[#allocation397_spill] sm:$0xff] %v12794_v51  ;;  %6580 = vrot.lane.b32.xlu1 %v4401_v7, %s7968_s20  ;;  %v4548_v7 = vcombine.high %v12562_v52, %v14756_v61  ;;  %v4793_v52 = vcombine.high %v12591_v16, %v14756_v61  ;;  %v15264_v51 = vld [vmem:[#allocation142_spill] sm:$0xff] }
 0x534   : > { %6578 = vrot.lane.b32.xlu0 %v4352_v59, %s7968_s20 }
 0x535   : > { %v12800_v10 = vpop.permute.xlu1 %6340 }
 0x536   : > { %15183 = vst [vmem:[#allocation443_spill] sm:$0xff] %v12800_v10  ;;  %v12804_v35 = vpop.permute.xlu0 %6338  ;;  %v15211_v10 = vld [vmem:[#allocation150_spill] sm:$0xff] }
 0x537   : > { %15184 = vst [vmem:[#allocation444_spill] sm:$0xff] %v12804_v35  ;;  %6584 = vrot.lane.b32.xlu1 %v4499_v54, %s7968_s20  ;;  %v15209_v35 = vld [vmem:[#allocation149_spill] sm:$0xff] }
 0x538   : > { %6582 = vrot.lane.b32.xlu0 %v4450_v45, %s7968_s20  ;;  %v4646_v45 = vcombine.high %v12580_v43, %v14756_v61  ;;  %v4891_v43 = vcombine.high %v12609_v20, %v14756_v61 }
 0x539   : > { %v12810_v36 = vpop.permute.xlu1 %6344 }
 0x53a   : > { %15185 = vst [vmem:[#allocation445_spill] sm:$0xff] %v12810_v36  ;;  %v12814_v59 = vpop.permute.xlu0 %6342  ;;  %v15245_v36 = vld [vmem:[#allocation99_spill] sm:$0xff] }
 0x53b   : > { %15186 = vst [vmem:[#allocation446_spill] sm:$0xff] %v12814_v59  ;;  %6588 = vrot.lane.b32.xlu1 %v4597_v58, %s7968_s20 }
 0x53c   : > { %6586 = vrot.lane.b32.xlu0 %v4548_v7, %s7968_s20  ;;  %v4744_v7 = vcombine.high %v12598_v29, %v14756_v61  ;;  %v4989_v29 = vcombine.high %v12627_v13, %v14756_v61 }
 0x53d   : > { %v12820_v53 = vpop.permute.xlu1 %6348 }
 0x53e   : > { %15187 = vst [vmem:[#allocation447_spill] sm:$0xff] %v12820_v53  ;;  %v12824_v54 = vpop.permute.xlu0 %6346 }
 0x53f   : > { %15188 = vst [vmem:[#allocation448_spill] sm:$0xff] %v12824_v54  ;;  %6592 = vrot.lane.b32.xlu1 %v4695_v9, %s7968_s20  ;;  %v15205_v54 = vld [vmem:[#allocation147_spill] sm:$0xff] }
 0x540   : > { %6590 = vrot.lane.b32.xlu0 %v4646_v45, %s7968_s20  ;;  %v4842_v45 = vcombine.high %v12616_v0, %v14756_v61  ;;  %v5087_v0 = vcombine.high %v12645_v33, %v14756_v61  ;;  %v5136_v33 = vcombine.high %v12670_v39, %v14756_v61  ;;  %v15206_v39 = vld [vmem:[#allocation67_spill] sm:$0xff] }
 0x541   : > { %v12830_v19 = vpop.permute.xlu1 %6352  ;;  %v12897_v53 = vsel %vm3975_vm1, %v15206_v39, %v15205_v54  ;;  %v5283_v54 = vcombine.high %v12681_v24, %v14756_v61  ;;  %v15215_v39 = vld [vmem:[#allocation75_spill] sm:$0xff]  ;;  %v5234_v24 = vcombine.high %v12688_v23, %v14756_v61 }
 0x542   : > { %15189 = vst [vmem:[#allocation449_spill] sm:$0xff] %v12830_v19  ;;  %v12834_v58 = vpop.permute.xlu0 %6350  ;;  %v15228_v23 = vld [vmem:[#allocation87_spill] sm:$0xff] }
 0x543   : > { %15190 = vst [vmem:[#allocation450_spill] sm:$0xff] %v12834_v58  ;;  %6596 = vrot.lane.b32.xlu1 %v4793_v52, %s7968_s20  ;;  %v15226_v58 = vld [vmem:[#allocation84_spill] sm:$0xff] }
 0x544   : > { %6594 = vrot.lane.b32.xlu0 %v4744_v7, %s7968_s20  ;;  %v4940_v7 = vcombine.high %v12634_v17, %v14756_v61  ;;  %v5185_v17 = vcombine.high %v12663_v3, %v14756_v61  ;;  %v15204_v3 = vld [vmem:[#allocation64_spill] sm:$0xff] }
 0x545   : > { %v12840_v63 = vpop.permute.xlu1 %6356 }
 0x546   : > { %15191 = vst [vmem:[#allocation451_spill] sm:$0xff] %v12840_v63  ;;  %v12844_v9 = vpop.permute.xlu0 %6354 }
 0x547   : > { %15192 = vst [vmem:[#allocation452_spill] sm:$0xff] %v12844_v9  ;;  %6600 = vrot.lane.b32.xlu1 %v4891_v43, %s7968_s20  ;;  %v15203_v9 = vld [vmem:[#allocation146_spill] sm:$0xff] }
 0x548   : > { %6598 = vrot.lane.b32.xlu0 %v4842_v45, %s7968_s20  ;;  %v5038_v45 = vcombine.high %v12652_v41, %v14756_v61  ;;  %v15200_v41 = vld [vmem:[#allocation60_spill] sm:$0xff]  ;;  %v12892_v63 = vsel %vm3975_vm1, %v15204_v3, %v15203_v9 }
 0x549   : > { %v12850_v16 = vpop.permute.xlu1 %6360  ;;  %v15212_v9 = vld [vmem:[#allocation72_spill] sm:$0xff] }
 0x54a   : > { %15193 = vst [vmem:[#allocation453_spill] sm:$0xff] %v12850_v16  ;;  %v12854_v52 = vpop.permute.xlu0 %6358  ;;  %v12913_v3 = vsel %vm3975_vm1, %v15212_v9, %v15211_v10  ;;  %v15224_v16 = vld [vmem:[#allocation83_spill] sm:$0xff] }
 0x54b   : > { %15194 = vst [vmem:[#allocation454_spill] sm:$0xff] %v12854_v52  ;;  %6604 = vrot.lane.b32.xlu1 %v4989_v29, %s7968_s20  ;;  %v15222_v52 = vld [vmem:[#allocation80_spill] sm:$0xff] }
 0x54c   : > { %6602 = vrot.lane.b32.xlu0 %v4940_v7, %s7968_s20  ;;  %v15199_v7 = vld [vmem:[#allocation144_spill] sm:$0xff] }
 0x54d   : > { %v12860_v20 = vpop.permute.xlu1 %6364 }
 0x54e   : > { %15195 = vst [vmem:[#allocation455_spill] sm:$0xff] %v12860_v20  ;;  %v12864_v43 = vpop.permute.xlu0 %6362 }
 0x54f   : > { %15196 = vst [vmem:[#allocation456_spill] sm:$0xff] %v12864_v43  ;;  %6608 = vrot.lane.b32.xlu1 %v5087_v0, %s7968_s20  ;;  %v12882_v0 = vsel %vm3975_vm1, %v15200_v41, %v15199_v7  ;;  %v15202_v43 = vld [vmem:[#allocation63_spill] sm:$0xff]  ;;  %v15208_v7 = vld [vmem:[#allocation68_spill] sm:$0xff] }
 0x550   : > { %6606 = vrot.lane.b32.xlu0 %v5038_v45, %s7968_s20  ;;  %v15201_v45 = vld [vmem:[#allocation145_spill] sm:$0xff] }
 0x551   : > { %v12870_v13 = vpop.permute.xlu1 %6368  ;;  %v12887_v20 = vsel %vm3975_vm1, %v15202_v43, %v15201_v45  ;;  %v15210_v43 = vld [vmem:[#allocation71_spill] sm:$0xff] }
 0x552   : > { %15197 = vst [vmem:[#allocation457_spill] sm:$0xff] %v12870_v13  ;;  %v12874_v29 = vpop.permute.xlu0 %6366  ;;  %v12908_v45 = vsel %vm3975_vm1, %v15210_v43, %v15209_v35  ;;  %v15218_v43 = vld [vmem:[#allocation153_spill] sm:$0xff]  ;;  %v15219_v13 = vld [vmem:[#allocation79_spill] sm:$0xff] }
 0x553   : > { %15198 = vst [vmem:[#allocation458_spill] sm:$0xff] %v12874_v29  ;;  %6612 = vrot.lane.b32.xlu1 %v5185_v17, %s7968_s20  ;;  %v15207_v17 = vld [vmem:[#allocation148_spill] sm:$0xff]  ;;  %v12932_v10 = vsel %vm3975_vm1, %v15219_v13, %v15218_v43  ;;  %v15227_v43 = vld [vmem:[#allocation157_spill] sm:$0xff] }
 0x554   : > { %6610 = vrot.lane.b32.xlu0 %v5136_v33, %s7968_s20  ;;  %v12903_v41 = vsel %vm3975_vm1, %v15208_v7, %v15207_v17  ;;  %v15214_v33 = vld [vmem:[#allocation151_spill] sm:$0xff]  ;;  %v15216_v7 = vld [vmem:[#allocation152_spill] sm:$0xff] }
 0x555   : > { %v12915_v6 = vpop.permute.xlu1 %6372  ;;  %v12922_v17 = vsel %vm3975_vm1, %v15215_v39, %v15214_v33  ;;  %v15217_v29 = vld [vmem:[#allocation76_spill] sm:$0xff]  ;;  %v15223_v39 = vld [vmem:[#allocation155_spill] sm:$0xff] }
 0x556   : > { %15213 = vst [vmem:[#allocation144_spill] sm:$0xff] %v12915_v6  ;;  %v12927_v35 = vsel %vm3975_vm1, %v15217_v29, %v15216_v7  ;;  %v12934_v9 = vpop.permute.xlu0 %6370  ;;  %v15221_v6 = vld [vmem:[#allocation154_spill] sm:$0xff]  ;;  %v12946_v29 = vsel %vm3975_vm1, %v15224_v16, %v15223_v39  ;;  %v15225_v7 = vld [vmem:[#allocation156_spill] sm:$0xff]  ;;  %v15231_v16 = vld [vmem:[#allocation159_spill] sm:$0xff] }
 0x557   : > { %15220 = vst [vmem:[#allocation60_spill] sm:$0xff] %v12934_v9  ;;  %v12941_v33 = vsel %vm3975_vm1, %v15222_v52, %v15221_v6  ;;  %v12951_v13 = vsel %vm3975_vm1, %v15226_v58, %v15225_v7  ;;  %6616 = vrot.lane.b32.xlu1 %v5283_v54, %s7968_s20  ;;  %v12957_v9 = vsel %vm3975_vm1, %v15228_v23, %v15227_v43  ;;  %v15229_v6 = vld [vmem:[#allocation158_spill] sm:$0xff]  ;;  %v15230_v52 = vld [vmem:[#allocation88_spill] sm:$0xff]  ;;  %v15232_v39 = vld [vmem:[#allocation91_spill] sm:$0xff] }
 0x558   : > { %v12962_v19 = vsel %vm3975_vm1, %v15230_v52, %v15229_v6  ;;  %v12967_v37 = vsel %vm3975_vm1, %v15232_v39, %v15231_v16  ;;  %v15233_v58 = vld [vmem:[#allocation160_spill] sm:$0xff]  ;;  %v15234_v7 = vld [vmem:[#allocation33_spill] sm:$0xff]  ;;  %6614 = vrot.lane.b32.xlu0 %v5234_v24, %s7968_s20  ;;  %v15236_v43 = vld [vmem:[#allocation95_spill] sm:$0xff]  ;;  %v5381_v24 = vcombine.high %v12699_v14, %v14756_v61 }
 0x559   : > { %v12972_v38 = vsel %vm3975_vm1, %v15234_v7, %v15233_v58  ;;  %v15235_v54 = vld [vmem:[#allocation161_spill] sm:$0xff]  ;;  %v15238_v6 = vld [vmem:[#allocation48_spill] sm:$0xff]  ;;  %v12990_v59 = vpop.permute.xlu1 %6376  ;;  %v15243_v7 = vld [vmem:[#allocation50_spill] sm:$0xff] }
 0x55a   : > { %v12978_v23 = vsel %vm3975_vm1, %v15236_v43, %v15235_v54  ;;  %v12983_v52 = vsel %vm3975_vm1, %v15238_v6, %v15237_v18  ;;  %v15240_v16 = vld [vmem:[#allocation97_spill] sm:$0xff]  ;;  %15241 = vst [vmem:[#allocation145_spill] sm:$0xff] %v12990_v59  ;;  %v15242_v58 = vld [vmem:[#allocation164_spill] sm:$0xff]  ;;  %v15246_v6 = vld [vmem:[#allocation366_spill] sm:$0xff]  ;;  %v5332_v59 = vcombine.high %v12706_v2, %v14756_v61 }
 0x55b   : > { %v12988_v39 = vsel %vm3975_vm1, %v15240_v16, %v15239_v46  ;;  %v12997_v54 = vsel %vm3975_vm1, %v15243_v7, %v15242_v58  ;;  %v15244_v43 = vld [vmem:[#allocation165_spill] sm:$0xff]  ;;  %v6701_v46 = vsel %vm3975_vm1, %v15247_v4, %v15246_v6  ;;  %v13007_v16 = vpop.permute.xlu0 %6374  ;;  %v15249_v14 = vld [vmem:[#allocation166_spill] sm:$0xff]  ;;  %v15251_v58 = vld [vmem:[#allocation367_spill] sm:$0xff]  ;;  %6620 = vrot.lane.b32.xlu1 %v5381_v24, %s7968_s20  ;;  %v5479_v4 = vcombine.high %v12717_v11, %v14756_v61 }
 0x55c   : > { %v13002_v18 = vsel %vm3975_vm1, %v15245_v36, %v15244_v43  ;;  %15248 = vst [vmem:[#allocation63_spill] sm:$0xff] %v13007_v16  ;;  %v13014_v12 = vsel %vm3975_vm1, %v15250_v34, %v15249_v14  ;;  %v15252_v7 = vld [vmem:[#allocation306_spill] sm:$0xff]  ;;  %v15253_v36 = vld [vmem:[#allocation140_spill] sm:$0xff]  ;;  %v15254_v6 = vld [vmem:[#allocation141_spill] sm:$0xff]  ;;  %6618 = vrot.lane.b32.xlu0 %v5332_v59, %s7968_s20  ;;  %v5430_v14 = vcombine.high %v12724_v15, %v14756_v61 }
 0x55d   : > { %v6700_v57 = vsel %vm3975_vm1, %v15252_v7, %v15251_v58  ;;  %v6733_v43 = vsel %vm4008_vm2, %v6701_v46, %v15253_v36  ;;  %v15255_v58 = vld [vmem:[#allocation336_spill] sm:$0xff]  ;;  %v15256_v46 = vld [vmem:[#allocation57_spill] sm:$0xff] }
 0x55e   : > { %v6732_v2 = vsel %vm4008_vm2, %v6700_v57, %v15254_v6  ;;  %v6765_v34 = vsel %vm4041_vm3, %v6733_v43, %v12452_v1  ;;  %v6671_v24 = vsel %vm3975_vm1, %v15256_v46, %v15255_v58  ;;  %v6381_v57 = vpop.permute.xlu1 %6380  ;;  %v15257_v36 = vld [vmem:[#allocation337_spill] sm:$0xff]  ;;  %v15258_v6 = vld [vmem:[#allocation58_spill] sm:$0xff]  ;;  %v15259_v59 = vld [vmem:[#allocation368_spill] sm:$0xff] }
 0x55f   : > { %v6764_v11 = vsel %vm4041_vm3, %v6732_v2, %v12456_v50  ;;  %v6797_v7 = vsel %vm4074_vm4, %v6765_v34, %v12714_v47  ;;  %v6670_v1 = vsel %vm3975_vm1, %v15258_v6, %v15257_v36  ;;  %v6703_v43 = vsel %vm4008_vm2, %v6671_v24, %v15259_v59  ;;  %v6379_v58 = vpop.permute.xlu0 %6378  ;;  %v15261_v46 = vld [vmem:[#allocation167_spill] sm:$0xff]  ;;  %v15262_v50 = vld [vmem:[#allocation100_spill] sm:$0xff]  ;;  %v15263_v47 = vld [vmem:[#allocation369_spill] sm:$0xff]  ;;  %6624 = vrot.lane.b32.xlu1 %v5479_v4, %s7968_s20 }
 0x560   : > { %v6796_v15 = vsel %vm4074_vm4, %v6764_v11, %v12721_v27  ;;  %v13046_v16 = vsel %vm4107_vm5, %v6797_v7, %v6381_v57  ;;  %v13051_v2 = vsel %vm3975_vm1, %v15262_v50, %v15261_v46  ;;  %v6702_v34 = vsel %vm4008_vm2, %v6670_v1, %v15263_v47  ;;  %v15266_v27 = vld [vmem:[#allocation168_spill] sm:$0xff]  ;;  %v15267_v11 = vld [vmem:[#allocation41_spill] sm:$0xff]  ;;  %v15269_v6 = vld [vmem:[#allocation102_spill] sm:$0xff]  ;;  %6622 = vrot.lane.b32.xlu0 %v5430_v14, %s7968_s20 }
 0x561   : > { %15260 = vst [vmem:[#allocation146_spill] sm:$0xff] %v13046_v16  ;;  %v6735_v36 = vsel %vm4041_vm3, %v6703_v43, %v15264_v51  ;;  %v13058_v24 = vsel %vm4107_vm5, %v6796_v15, %v6379_v58  ;;  %v13064_v7 = vsel %vm3975_vm1, %v15267_v11, %v15266_v27  ;;  %v15268_v57 = vld [vmem:[#allocation169_spill] sm:$0xff]  ;;  %v15270_v46 = vld [vmem:[#allocation143_spill] sm:$0xff]  ;;  %v5577_v58 = vcombine.high %v12735_v56, %v14756_v61  ;;  %v15271_v50 = vld [vmem:[#allocation170_spill] sm:$0xff] }
 0x562   : > { %15265 = vst [vmem:[#allocation64_spill] sm:$0xff] %v13058_v24  ;;  %v13069_v59 = vsel %vm3975_vm1, %v15269_v6, %v15268_v57  ;;  %v6734_v1 = vsel %vm4041_vm3, %v6702_v34, %v15270_v46  ;;  %v6767_v51 = vsel %vm4074_vm4, %v6735_v36, %v12462_v25  ;;  %v6449_v15 = vpop.permute.xlu1 %6448  ;;  %v15272_v47 = vld [vmem:[#allocation104_spill] sm:$0xff]  ;;  %v15274_v27 = vld [vmem:[#allocation106_spill] sm:$0xff] }
 0x563   : > { %v6766_v4 = vsel %vm4074_vm4, %v6734_v1, %v12466_v48  ;;  %v6799_v43 = vsel %vm4107_vm5, %v6767_v51, %v12732_v44  ;;  %v13085_v34 = vsel %vm3975_vm1, %v15272_v47, %v15271_v50  ;;  %v6447_v36 = vpop.permute.xlu0 %6446  ;;  %v5528_v48 = vcombine.high %v12742_v8, %v14756_v61  ;;  %v15273_v44 = vld [vmem:[#allocation171_spill] sm:$0xff]  ;;  %v15275_v56 = vld [vmem:[#allocation172_spill] sm:$0xff]  ;;  %6628 = vrot.lane.b32.xlu1 %v5577_v58, %s7968_s20  ;;  %v15277_v1 = vld [vmem:[#allocation173_spill] sm:$0xff] }
 0x564   : > { %v6798_v25 = vsel %vm4107_vm5, %v6766_v4, %v12739_v31  ;;  %v13090_v14 = vsel %vm4140_vm6, %v6799_v43, %v6449_v15  ;;  %v13097_v11 = vsel %vm3975_vm1, %v15274_v27, %v15273_v44  ;;  %v15276_v57 = vld [vmem:[#allocation108_spill] sm:$0xff]  ;;  %v5675_v31 = vcombine.high %v12753_v5, %v14756_v61  ;;  %v15278_v8 = vld [vmem:[#allocation110_spill] sm:$0xff]  ;;  %v15281_v47 = vld [vmem:[#allocation175_spill] sm:$0xff] }
 0x565   : > { %v13102_v6 = vsel %vm3975_vm1, %v15276_v57, %v15275_v56  ;;  %v13105_v46 = vsel %vm4140_vm6, %v6798_v25, %v6447_v36  ;;  %v13113_v51 = vsel %vm3975_vm1, %v15278_v8, %v15277_v1  ;;  %6626 = vrot.lane.b32.xlu0 %v5528_v48, %s7968_s20  ;;  %v5626_v4 = vcombine.high %v12760_v40, %v14756_v61  ;;  %v15279_v58 = vld [vmem:[#allocation174_spill] sm:$0xff]  ;;  %v15280_v50 = vld [vmem:[#allocation112_spill] sm:$0xff]  ;;  %v15288_v8 = vld [vmem:[#allocation341_spill] sm:$0xff] }
 0x566   : > { %v5773_v43 = vcombine.high %v12769_v30, %v14756_v61  ;;  %v5724_v15 = vcombine.high %v12774_v28, %v14756_v61  ;;  %v13125_v5 = vsel %vm3975_vm1, %v15280_v50, %v15279_v58  ;;  %v15282_v25 = vld [vmem:[#allocation114_spill] sm:$0xff]  ;;  %v15283_v48 = vld [vmem:[#allocation176_spill] sm:$0xff]  ;;  %v13140_v61 = vpop.permute.xlu1 %6452  ;;  %v15286_v28 = vld [vmem:[#allocation177_spill] sm:$0xff] }
 0x567   : > { %v13130_v36 = vsel %vm3975_vm1, %v15282_v25, %v15281_v47  ;;  %v13135_v40 = vsel %vm4008_vm2, %v12882_v0, %v15283_v48  ;;  %v15284_v44 = vld [vmem:[#allocation340_spill] sm:$0xff]  ;;  %v15285_v30 = vld [vmem:[#allocation62_spill] sm:$0xff]  ;;  %v13145_v56 = vsel %vm4008_vm2, %v12887_v20, %v15286_v28  ;;  %v15289_v58 = vld [vmem:[#allocation65_spill] sm:$0xff]  ;;  %v13157_v25 = vpop.permute.xlu0 %6450  ;;  %6632 = vrot.lane.b32.xlu1 %v5675_v31, %s7968_s20 }
 0x568   : > { %v6675_v27 = vsel %vm3975_vm1, %v15285_v30, %v15284_v44  ;;  %v15287_v57 = vld [vmem:[#allocation178_spill] sm:$0xff]  ;;  %v6674_v0 = vsel %vm3975_vm1, %v15289_v58, %v15288_v8  ;;  %v15290_v50 = vld [vmem:[#allocation372_spill] sm:$0xff]  ;;  %v15291_v48 = vld [vmem:[#allocation179_spill] sm:$0xff] }
 0x569   : > { %v13150_v1 = vsel %vm4008_vm2, %v12892_v63, %v15287_v57  ;;  %v6707_v47 = vsel %vm4008_vm2, %v6675_v27, %v15290_v50  ;;  %v13162_v44 = vsel %vm4008_vm2, %v12897_v53, %v15291_v48  ;;  %v15292_v20 = vld [vmem:[#allocation180_spill] sm:$0xff]  ;;  %v15293_v63 = vld [vmem:[#allocation373_spill] sm:$0xff]  ;;  %v15294_v57 = vld [vmem:[#allocation399_spill] sm:$0xff]  ;;  %6630 = vrot.lane.b32.xlu0 %v5626_v4, %s7968_s20 }
 0x56a   : > { %v13167_v30 = vsel %vm4008_vm2, %v12903_v41, %v15292_v20  ;;  %v6706_v28 = vsel %vm4008_vm2, %v6674_v0, %v15293_v63  ;;  %v6739_v8 = vsel %vm4041_vm3, %v6707_v47, %v15294_v57  ;;  %v15295_v27 = vld [vmem:[#allocation181_spill] sm:$0xff]  ;;  %v15296_v50 = vld [vmem:[#allocation182_spill] sm:$0xff]  ;;  %v15297_v48 = vld [vmem:[#allocation400_spill] sm:$0xff] }
 0x56b   : > { %v4013_v58 = vsel %vm4008_vm2, %v12908_v45, %v15295_v27  ;;  %v4016_v53 = vsel %vm4008_vm2, %v12913_v3, %v15296_v50  ;;  %v6738_v41 = vsel %vm4041_vm3, %v6706_v28, %v15297_v48  ;;  %v6771_v20 = vsel %vm4074_vm4, %v6739_v8, %v12484_v26  ;;  %v15298_v0 = vld [vmem:[#allocation183_spill] sm:$0xff]  ;;  %v15299_v47 = vld [vmem:[#allocation184_spill] sm:$0xff]  ;;  %v6457_v28 = vpop.permute.xlu1 %6456  ;;  %v15300_v57 = vld [vmem:[#allocation185_spill] sm:$0xff]  ;;  %v6455_v27 = vpop.permute.xlu0 %6454  ;;  %6636 = vrot.lane.b32.xlu1 %v5773_v43, %s7968_s20 }
 0x56c   : > { %v4015_v31 = vsel %vm4008_vm2, %v12922_v17, %v15298_v0  ;;  %v4018_v45 = vsel %vm4008_vm2, %v12927_v35, %v15299_v47  ;;  %v6770_v63 = vsel %vm4074_vm4, %v6738_v41, %v12490_v42  ;;  %v6803_v3 = vsel %vm4107_vm5, %v6771_v20, %v12766_v49  ;;  %v15301_v4 = vld [vmem:[#allocation186_spill] sm:$0xff]  ;;  %v15302_v42 = vld [vmem:[#allocation187_spill] sm:$0xff]  ;;  %v15303_v50 = vld [vmem:[#allocation188_spill] sm:$0xff] }
 0x56d   : > { %v4017_v26 = vsel %vm4008_vm2, %v12932_v10, %v15300_v57  ;;  %v4020_v8 = vsel %vm4008_vm2, %v12941_v33, %v15301_v4  ;;  %v6802_v17 = vsel %vm4107_vm5, %v6770_v63, %v12771_v55  ;;  %v13204_v35 = vsel %vm4140_vm6, %v6803_v3, %v6457_v28  ;;  %v15304_v10 = vld [vmem:[#allocation189_spill] sm:$0xff]  ;;  %v15305_v55 = vld [vmem:[#allocation190_spill] sm:$0xff]  ;;  %v15306_v0 = vld [vmem:[#allocation191_spill] sm:$0xff]  ;;  %6634 = vrot.lane.b32.xlu0 %v5724_v15, %s7968_s20 }
 0x56e   : > { %v4019_v49 = vsel %vm4008_vm2, %v12946_v29, %v15302_v42  ;;  %v4022_v48 = vsel %vm4008_vm2, %v12951_v13, %v15303_v50  ;;  %v4021_v41 = vsel %vm4008_vm2, %v12957_v9, %v15304_v10  ;;  %v13216_v33 = vsel %vm4140_vm6, %v6802_v17, %v6455_v27  ;;  %v15307_v47 = vld [vmem:[#allocation192_spill] sm:$0xff]  ;;  %v15308_v63 = vld [vmem:[#allocation193_spill] sm:$0xff]  ;;  %v15309_v3 = vld [vmem:[#allocation194_spill] sm:$0xff] }
 0x56f   : > { %v4024_v20 = vsel %vm4008_vm2, %v12962_v19, %v15305_v55  ;;  %v4023_v29 = vsel %vm4008_vm2, %v12967_v37, %v15306_v0  ;;  %v4026_v13 = vsel %vm4008_vm2, %v12972_v38, %v15307_v47  ;;  %v4025_v9 = vsel %vm4008_vm2, %v12978_v23, %v15308_v63  ;;  %v15310_v28 = vld [vmem:[#allocation195_spill] sm:$0xff]  ;;  %v15311_v37 = vld [vmem:[#allocation92_spill] sm:$0xff]  ;;  %v15313_v4 = vld [vmem:[#allocation70_spill] sm:$0xff]  ;;  %v13248_v17 = vpop.permute.xlu1 %6460  ;;  %v13263_v0 = vpop.permute.xlu0 %6458 }
 0x570   : > { %v4028_v43 = vsel %vm4008_vm2, %v12983_v52, %v15309_v3  ;;  %v13238_v19 = vsel %vm4008_vm2, %v12988_v39, %v15310_v28  ;;  %v13243_v57 = vsel %vm4008_vm2, %v12997_v54, %v15311_v37  ;;  %v15312_v38 = vld [vmem:[#allocation344_spill] sm:$0xff]  ;;  %v15314_v15 = vld [vmem:[#allocation46_spill] sm:$0xff]  ;;  %v15315_v27 = vld [vmem:[#allocation47_spill] sm:$0xff] }
 0x571   : > { %v6679_v23 = vsel %vm3975_vm1, %v15313_v4, %v15312_v38  ;;  %v4029_v52 = vsel %vm4008_vm2, %v13002_v18, %v15314_v15  ;;  %v13256_v39 = vsel %vm4008_vm2, %v13014_v12, %v15315_v27  ;;  %v15316_v42 = vld [vmem:[#allocation345_spill] sm:$0xff]  ;;  %v15318_v10 = vld [vmem:[#allocation376_spill] sm:$0xff]  ;;  %v15319_v47 = vld [vmem:[#allocation34_spill] sm:$0xff] }
 0x572   : > { %v15317_v50 = vld [vmem:[#allocation73_spill] sm:$0xff]  ;;  %v6711_v55 = vsel %vm4008_vm2, %v6679_v23, %v15318_v10  ;;  %v4031_v63 = vsel %vm4008_vm2, %v13051_v2, %v15319_v47  ;;  %v15322_v38 = vld [vmem:[#allocation36_spill] sm:$0xff]  ;;  %v15323_v23 = vld [vmem:[#allocation51_spill] sm:$0xff] }
 0x573   : > { %v6678_v54 = vsel %vm3975_vm1, %v15317_v50, %v15316_v42  ;;  %v15320_v3 = vld [vmem:[#allocation49_spill] sm:$0xff]  ;;  %v6743_v37 = vsel %vm4041_vm3, %v6711_v55, %v12342_v21  ;;  %v4033_v4 = vsel %vm4008_vm2, %v13069_v59, %v15322_v38  ;;  %v4036_v15 = vsel %vm4008_vm2, %v13085_v34, %v15323_v23  ;;  %v15324_v27 = vld [vmem:[#allocation38_spill] sm:$0xff]  ;;  %v15332_v38 = vld [vmem:[#allocation204_spill] sm:$0xff] }
 0x574   : > { %v4034_v18 = vsel %vm4008_vm2, %v13064_v7, %v15320_v3  ;;  %v15321_v28 = vld [vmem:[#allocation377_spill] sm:$0xff]  ;;  %v6775_v7 = vsel %vm4074_vm4, %v6743_v37, %v12516_v22  ;;  %v4035_v42 = vsel %vm4008_vm2, %v13097_v11, %v15324_v27  ;;  %v15326_v10 = vld [vmem:[#allocation54_spill] sm:$0xff]  ;;  %v6463_v3 = vpop.permute.xlu0 %6462  ;;  %v4045_v23 = vsel %vm4041_vm3, %v13150_v1, %v15332_v38  ;;  %v15383_v24 = vld [vmem:[#allocation236_spill] sm:$0xff] }
 0x575   : > { %v6710_v12 = vsel %vm4008_vm2, %v6678_v54, %v15321_v28  ;;  %v15325_v50 = vld [vmem:[#allocation53_spill] sm:$0xff]  ;;  %v6807_v34 = vsel %vm4107_vm5, %v6775_v7, %v12790_v32  ;;  %v6465_v54 = vpop.permute.xlu1 %6464  ;;  %v15327_v22 = vld [vmem:[#allocation42_spill] sm:$0xff]  ;;  %v15330_v28 = vld [vmem:[#allocation44_spill] sm:$0xff] }
 0x576   : > { %v6742_v2 = vsel %vm4041_vm3, %v6710_v12, %v12346_v60  ;;  %v4038_v21 = vsel %vm4008_vm2, %v13102_v6, %v15325_v50  ;;  %v4037_v60 = vsel %vm4008_vm2, %v13113_v51, %v15326_v10  ;;  %v4040_v55 = vsel %vm4008_vm2, %v13125_v5, %v15327_v22  ;;  %v15328_v11 = vld [vmem:[#allocation397_spill] sm:$0xff]  ;;  %v15338_v10 = vld [vmem:[#allocation211_spill] sm:$0xff]  ;;  %v15339_v22 = vld [vmem:[#allocation348_spill] sm:$0xff] }
 0x577   : > { %v6774_v59 = vsel %vm4074_vm4, %v6742_v2, %v12523_v62  ;;  %v13304_v6 = vsel %vm4140_vm6, %v6807_v34, %v6465_v54  ;;  %v15329_v62 = vld [vmem:[#allocation43_spill] sm:$0xff]  ;;  %v4043_v12 = vsel %vm4041_vm3, %v13135_v40, %v15330_v28  ;;  %v15331_v51 = vld [vmem:[#allocation45_spill] sm:$0xff]  ;;  %v15333_v2 = vld [vmem:[#allocation206_spill] sm:$0xff]  ;;  %v13337_v1 = vsel %vm4041_vm3, %v4018_v45, %v15338_v10 }
 0x578   : > { %v6806_v47 = vsel %vm4107_vm5, %v6774_v59, %v15328_v11  ;;  %v4039_v32 = vsel %vm4008_vm2, %v13130_v36, %v15329_v62  ;;  %v4042_v37 = vsel %vm4041_vm3, %v13145_v56, %v15331_v51  ;;  %v4044_v7 = vsel %vm4041_vm3, %v13162_v44, %v15333_v2  ;;  %v15334_v36 = vld [vmem:[#allocation207_spill] sm:$0xff]  ;;  %v15335_v40 = vld [vmem:[#allocation208_spill] sm:$0xff]  ;;  %v15336_v59 = vld [vmem:[#allocation209_spill] sm:$0xff]  ;;  %v13355_v38 = vpop.permute.xlu0 %6466 }
 0x579   : > { %v13316_v5 = vsel %vm4140_vm6, %v6806_v47, %v6463_v3  ;;  %v4047_v27 = vsel %vm4041_vm3, %v13167_v30, %v15334_v36  ;;  %v4046_v50 = vsel %vm4041_vm3, %v4013_v58, %v15335_v40  ;;  %v4049_v56 = vsel %vm4041_vm3, %v4016_v53, %v15336_v59  ;;  %v15337_v34 = vld [vmem:[#allocation210_spill] sm:$0xff]  ;;  %v13342_v47 = vpop.permute.xlu1 %6468  ;;  %v15341_v30 = vld [vmem:[#allocation212_spill] sm:$0xff]  ;;  %v15342_v3 = vld [vmem:[#allocation213_spill] sm:$0xff] }
 0x57a   : > { %v13333_v54 = vsel %vm4041_vm3, %v4015_v31, %v15337_v34  ;;  %v15340_v44 = vld [vmem:[#allocation78_spill] sm:$0xff]  ;;  %v4050_v58 = vsel %vm4041_vm3, %v4017_v26, %v15341_v30  ;;  %v13348_v53 = vsel %vm4041_vm3, %v4020_v8, %v15342_v3  ;;  %v15343_v62 = vld [vmem:[#allocation349_spill] sm:$0xff]  ;;  %v15345_v51 = vld [vmem:[#allocation380_spill] sm:$0xff] }
 0x57b   : > { %v6683_v11 = vsel %vm3975_vm1, %v15340_v44, %v15339_v22  ;;  %v15344_v31 = vld [vmem:[#allocation81_spill] sm:$0xff]  ;;  %v15346_v2 = vld [vmem:[#allocation214_spill] sm:$0xff]  ;;  %v15347_v40 = vld [vmem:[#allocation215_spill] sm:$0xff] }
 0x57c   : > { %v6682_v28 = vsel %vm3975_vm1, %v15344_v31, %v15343_v62  ;;  %v6715_v45 = vsel %vm4008_vm2, %v6683_v11, %v15345_v51  ;;  %v4052_v36 = vsel %vm4041_vm3, %v4019_v49, %v15346_v2  ;;  %v4055_v59 = vsel %vm4041_vm3, %v4022_v48, %v15347_v40  ;;  %v15348_v26 = vld [vmem:[#allocation381_spill] sm:$0xff]  ;;  %v15350_v22 = vld [vmem:[#allocation216_spill] sm:$0xff]  ;;  %v15352_v3 = vld [vmem:[#allocation406_spill] sm:$0xff] }
 0x57d   : > { %v6714_v34 = vsel %vm4008_vm2, %v6682_v28, %v15348_v26  ;;  %v15349_v8 = vld [vmem:[#allocation405_spill] sm:$0xff]  ;;  %v4054_v44 = vsel %vm4041_vm3, %v4021_v41, %v15350_v22  ;;  %v15354_v51 = vld [vmem:[#allocation218_spill] sm:$0xff]  ;;  %v15355_v2 = vld [vmem:[#allocation219_spill] sm:$0xff] }
 0x57e   : > { %v6747_v10 = vsel %vm4041_vm3, %v6715_v45, %v15349_v8  ;;  %v15351_v30 = vld [vmem:[#allocation217_spill] sm:$0xff]  ;;  %v6746_v62 = vsel %vm4041_vm3, %v6714_v34, %v15352_v3  ;;  %v4056_v48 = vsel %vm4041_vm3, %v4023_v29, %v15354_v51  ;;  %v4059_v28 = vsel %vm4041_vm3, %v4026_v13, %v15355_v2  ;;  %v15356_v40 = vld [vmem:[#allocation430_spill] sm:$0xff]  ;;  %v6473_v8 = vpop.permute.xlu1 %6472  ;;  %v6471_v13 = vpop.permute.xlu0 %6470  ;;  %v15362_v51 = vld [vmem:[#allocation223_spill] sm:$0xff] }
 0x57f   : > { %v4057_v11 = vsel %vm4041_vm3, %v4024_v20, %v15351_v30  ;;  %v15353_v31 = vld [vmem:[#allocation429_spill] sm:$0xff]  ;;  %v6778_v45 = vsel %vm4074_vm4, %v6746_v62, %v15356_v40  ;;  %v15358_v20 = vld [vmem:[#allocation220_spill] sm:$0xff] }
 0x580   : > { %v6779_v49 = vsel %vm4074_vm4, %v6747_v10, %v15353_v31  ;;  %v15357_v26 = vld [vmem:[#allocation445_spill] sm:$0xff]  ;;  %v4058_v22 = vsel %vm4041_vm3, %v4025_v9, %v15358_v20  ;;  %v15360_v10 = vld [vmem:[#allocation446_spill] sm:$0xff]  ;;  %v15363_v2 = vld [vmem:[#allocation224_spill] sm:$0xff] }
 0x581   : > { %v6811_v41 = vsel %vm4107_vm5, %v6779_v49, %v15357_v26  ;;  %v15359_v34 = vld [vmem:[#allocation221_spill] sm:$0xff]  ;;  %v6810_v3 = vsel %vm4107_vm5, %v6778_v45, %v15360_v10  ;;  %v15361_v31 = vld [vmem:[#allocation222_spill] sm:$0xff]  ;;  %v4063_v49 = vsel %vm4041_vm3, %v13243_v57, %v15362_v51  ;;  %v4062_v9 = vsel %vm4041_vm3, %v4029_v52, %v15363_v2  ;;  %v15367_v20 = vld [vmem:[#allocation228_spill] sm:$0xff] }
 0x582   : > { %v4061_v30 = vsel %vm4041_vm3, %v4028_v43, %v15359_v34  ;;  %v13388_v29 = vsel %vm4140_vm6, %v6811_v41, %v6473_v8  ;;  %v4060_v62 = vsel %vm4041_vm3, %v13238_v19, %v15361_v31  ;;  %v13399_v43 = vsel %vm4140_vm6, %v6810_v3, %v6471_v13  ;;  %v15364_v40 = vld [vmem:[#allocation225_spill] sm:$0xff]  ;;  %v15365_v26 = vld [vmem:[#allocation226_spill] sm:$0xff]  ;;  %v15366_v8 = vld [vmem:[#allocation227_spill] sm:$0xff]  ;;  %v13423_v2 = vpop.permute.xlu1 %6476 }
 0x583   : > { %v4065_v45 = vsel %vm4041_vm3, %v13256_v39, %v15364_v40  ;;  %v4064_v41 = vsel %vm4041_vm3, %v4031_v63, %v15365_v26  ;;  %v4067_v19 = vsel %vm4041_vm3, %v4034_v18, %v15366_v8  ;;  %v4066_v34 = vsel %vm4041_vm3, %v4033_v4, %v15367_v20  ;;  %v15368_v57 = vld [vmem:[#allocation229_spill] sm:$0xff]  ;;  %v15369_v52 = vld [vmem:[#allocation230_spill] sm:$0xff]  ;;  %v15370_v13 = vld [vmem:[#allocation231_spill] sm:$0xff] }
 0x584   : > { %v4069_v10 = vsel %vm4041_vm3, %v4036_v15, %v15368_v57  ;;  %v13414_v3 = vsel %vm4041_vm3, %v4035_v42, %v15369_v52  ;;  %v13418_v31 = vsel %vm4041_vm3, %v4038_v21, %v15370_v13  ;;  %v15371_v39 = vld [vmem:[#allocation352_spill] sm:$0xff]  ;;  %v15372_v51 = vld [vmem:[#allocation89_spill] sm:$0xff]  ;;  %v15376_v42 = vld [vmem:[#allocation90_spill] sm:$0xff]  ;;  %v13436_v57 = vpop.permute.xlu0 %6474 }
 0x585   : > { %v6687_v63 = vsel %vm3975_vm1, %v15372_v51, %v15371_v39  ;;  %v15373_v18 = vld [vmem:[#allocation232_spill] sm:$0xff]  ;;  %v15374_v40 = vld [vmem:[#allocation233_spill] sm:$0xff]  ;;  %v15378_v52 = vld [vmem:[#allocation234_spill] sm:$0xff] }
 0x586   : > { %v4070_v4 = vsel %vm4041_vm3, %v4037_v60, %v15373_v18  ;;  %v13429_v15 = vsel %vm4041_vm3, %v4040_v55, %v15374_v40  ;;  %v15375_v26 = vld [vmem:[#allocation353_spill] sm:$0xff]  ;;  %v15377_v20 = vld [vmem:[#allocation384_spill] sm:$0xff]  ;;  %v13440_v13 = vsel %vm4041_vm3, %v4039_v32, %v15378_v52  ;;  %v15380_v39 = vld [vmem:[#allocation235_spill] sm:$0xff] }
 0x587   : > { %v6686_v8 = vsel %vm3975_vm1, %v15376_v42, %v15375_v26  ;;  %v6719_v21 = vsel %vm4008_vm2, %v6687_v63, %v15377_v20  ;;  %15379 = vst [vmem:[#allocation147_spill] sm:$0xff] %v13440_v13  ;;  %v4076_v60 = vsel %vm4074_vm4, %v4043_v12, %v15380_v39  ;;  %v15381_v51 = vld [vmem:[#allocation385_spill] sm:$0xff]  ;;  %v4075_v26 = vsel %vm4074_vm4, %v4042_v37, %v15383_v24  ;;  %v15385_v20 = vld [vmem:[#allocation410_spill] sm:$0xff]  ;;  %v15388_v39 = vld [vmem:[#allocation239_spill] sm:$0xff]  ;;  %v6481_v37 = vpop.permute.xlu1 %6480 }
 0x588   : > { %v6718_v55 = vsel %vm4008_vm2, %v6686_v8, %v15381_v51  ;;  %v15382_v18 = vld [vmem:[#allocation409_spill] sm:$0xff]  ;;  %v15387_v13 = vld [vmem:[#allocation238_spill] sm:$0xff]  ;;  %v4080_v8 = vsel %vm4074_vm4, %v4047_v27, %v15388_v39  ;;  %v6479_v27 = vpop.permute.xlu0 %6478  ;;  %v15396_v39 = vld [vmem:[#allocation243_spill] sm:$0xff] }
 0x589   : > { %v6751_v40 = vsel %vm4041_vm3, %v6719_v21, %v15382_v18  ;;  %v15384_v42 = vld [vmem:[#allocation237_spill] sm:$0xff]  ;;  %v6750_v16 = vsel %vm4041_vm3, %v6718_v55, %v15385_v20  ;;  %v4077_v12 = vsel %vm4074_vm4, %v4044_v7, %v15387_v13  ;;  %v15389_v51 = vld [vmem:[#allocation434_spill] sm:$0xff] }
 0x58a   : > { %v4078_v63 = vsel %vm4074_vm4, %v4045_v23, %v15384_v42  ;;  %v15386_v32 = vld [vmem:[#allocation433_spill] sm:$0xff]  ;;  %v6782_v21 = vsel %vm4074_vm4, %v6750_v16, %v15389_v51  ;;  %v15391_v23 = vld [vmem:[#allocation240_spill] sm:$0xff]  ;;  %v15395_v13 = vld [vmem:[#allocation242_spill] sm:$0xff] }
 0x58b   : > { %v6783_v52 = vsel %vm4074_vm4, %v6751_v40, %v15386_v32  ;;  %v15390_v18 = vld [vmem:[#allocation449_spill] sm:$0xff]  ;;  %v4079_v42 = vsel %vm4074_vm4, %v4046_v50, %v15391_v23  ;;  %v15393_v40 = vld [vmem:[#allocation450_spill] sm:$0xff]  ;;  %v4081_v16 = vsel %vm4074_vm4, %v13333_v54, %v15395_v13  ;;  %v15397_v51 = vld [vmem:[#allocation244_spill] sm:$0xff] }
 0x58c   : > { %v6815_v24 = vsel %vm4107_vm5, %v6783_v52, %v15390_v18  ;;  %v15392_v55 = vld [vmem:[#allocation241_spill] sm:$0xff]  ;;  %v6814_v32 = vsel %vm4107_vm5, %v6782_v21, %v15393_v40  ;;  %v4084_v52 = vsel %vm4074_vm4, %v13337_v1, %v15396_v39  ;;  %v4083_v50 = vsel %vm4074_vm4, %v4050_v58, %v15397_v51  ;;  %v15401_v23 = vld [vmem:[#allocation247_spill] sm:$0xff]  ;;  %v15404_v58 = vld [vmem:[#allocation250_spill] sm:$0xff] }
 0x58d   : > { %v4082_v20 = vsel %vm4074_vm4, %v4049_v56, %v15392_v55  ;;  %v13471_v7 = vsel %vm4140_vm6, %v6815_v24, %v6481_v37  ;;  %v13482_v56 = vsel %vm4140_vm6, %v6814_v32, %v6479_v27  ;;  %v15399_v18 = vld [vmem:[#allocation245_spill] sm:$0xff]  ;;  %v15400_v24 = vld [vmem:[#allocation246_spill] sm:$0xff]  ;;  %v4088_v54 = vsel %vm4074_vm4, %v4055_v59, %v15401_v23  ;;  %v15402_v55 = vld [vmem:[#allocation248_spill] sm:$0xff] }
 0x58e   : > { %15394 = vst [vmem:[#allocation67_spill] sm:$0xff] %v13471_v7  ;;  %15398 = vst [vmem:[#allocation148_spill] sm:$0xff] %v13482_v56  ;;  %v4086_v21 = vsel %vm4074_vm4, %v13348_v53, %v15399_v18  ;;  %v4085_v37 = vsel %vm4074_vm4, %v4052_v36, %v15400_v24  ;;  %v4087_v40 = vsel %vm4074_vm4, %v4054_v44, %v15402_v55  ;;  %v15403_v1 = vld [vmem:[#allocation249_spill] sm:$0xff]  ;;  %v15405_v27 = vld [vmem:[#allocation251_spill] sm:$0xff]  ;;  %v13504_v18 = vpop.permute.xlu1 %6484 }
 0x58f   : > { %v4090_v13 = vsel %vm4074_vm4, %v4057_v11, %v15403_v1  ;;  %v4089_v32 = vsel %vm4074_vm4, %v4056_v48, %v15404_v58  ;;  %v13499_v39 = vsel %vm4074_vm4, %v4059_v28, %v15405_v27  ;;  %v15406_v53 = vld [vmem:[#allocation356_spill] sm:$0xff]  ;;  %15408 = vst [vmem:[#allocation68_spill] sm:$0xff] %v13504_v18  ;;  %v15410_v44 = vld [vmem:[#allocation253_spill] sm:$0xff]  ;;  %v15412_v55 = vld [vmem:[#allocation294_spill] sm:$0xff]  ;;  %v13515_v58 = vpop.permute.xlu0 %6482 }
 0x590   : > { %v15407_v51 = vld [vmem:[#allocation96_spill] sm:$0xff]  ;;  %v4094_v23 = vsel %vm4074_vm4, %v4061_v30, %v15410_v44  ;;  %v15411_v11 = vld [vmem:[#allocation357_spill] sm:$0xff]  ;;  %15414 = vst [vmem:[#allocation149_spill] sm:$0xff] %v13515_v58  ;;  %v15415_v27 = vld [vmem:[#allocation254_spill] sm:$0xff] }
 0x591   : > { %v6691_v36 = vsel %vm3975_vm1, %v15407_v51, %v15406_v53  ;;  %v15409_v59 = vld [vmem:[#allocation252_spill] sm:$0xff]  ;;  %v6690_v48 = vsel %vm3975_vm1, %v15412_v55, %v15411_v11  ;;  %v15413_v1 = vld [vmem:[#allocation129_spill] sm:$0xff]  ;;  %v4093_v53 = vsel %vm4074_vm4, %v4060_v62, %v15415_v27  ;;  %v15416_v51 = vld [vmem:[#allocation255_spill] sm:$0xff] }
 0x592   : > { %v4091_v24 = vsel %vm4074_vm4, %v4058_v22, %v15409_v59  ;;  %v6723_v28 = vsel %vm4008_vm2, %v6691_v36, %v15413_v1  ;;  %v4096_v18 = vsel %vm4074_vm4, %v4063_v49, %v15416_v51  ;;  %v15417_v56 = vld [vmem:[#allocation130_spill] sm:$0xff]  ;;  %v15418_v59 = vld [vmem:[#allocation413_spill] sm:$0xff]  ;;  %v15419_v44 = vld [vmem:[#allocation256_spill] sm:$0xff] }
 0x593   : > { %v6722_v22 = vsel %vm4008_vm2, %v6690_v48, %v15417_v56  ;;  %v6755_v30 = vsel %vm4041_vm3, %v6723_v28, %v15418_v59  ;;  %v4095_v11 = vsel %vm4074_vm4, %v4062_v9, %v15419_v44  ;;  %v15420_v55 = vld [vmem:[#allocation257_spill] sm:$0xff]  ;;  %v15421_v1 = vld [vmem:[#allocation414_spill] sm:$0xff]  ;;  %v15424_v51 = vld [vmem:[#allocation259_spill] sm:$0xff]  ;;  %v6489_v44 = vpop.permute.xlu1 %6488 }
 0x594   : > { %v4098_v36 = vsel %vm4074_vm4, %v4065_v45, %v15420_v55  ;;  %v6754_v58 = vsel %vm4041_vm3, %v6722_v22, %v15421_v1  ;;  %v15422_v7 = vld [vmem:[#allocation437_spill] sm:$0xff]  ;;  %v15423_v27 = vld [vmem:[#allocation258_spill] sm:$0xff]  ;;  %v4100_v56 = vsel %vm4074_vm4, %v4067_v19, %v15424_v51  ;;  %v15427_v45 = vld [vmem:[#allocation260_spill] sm:$0xff]  ;;  %v6487_v19 = vpop.permute.xlu0 %6486 }
 0x595   : > { %v6787_v62 = vsel %vm4074_vm4, %v6755_v30, %v15422_v7  ;;  %v4097_v49 = vsel %vm4074_vm4, %v4064_v41, %v15423_v27  ;;  %v15425_v48 = vld [vmem:[#allocation438_spill] sm:$0xff]  ;;  %v15426_v59 = vld [vmem:[#allocation453_spill] sm:$0xff]  ;;  %v4099_v55 = vsel %vm4074_vm4, %v4066_v34, %v15427_v45  ;;  %v15428_v22 = vld [vmem:[#allocation196_spill] sm:$0xff] }
 0x596   : > { %v6786_v28 = vsel %vm4074_vm4, %v6754_v58, %v15425_v48  ;;  %v6819_v9 = vsel %vm4107_vm5, %v6787_v62, %v15426_v59  ;;  %v4102_v1 = vsel %vm4074_vm4, %v4069_v10, %v15428_v22  ;;  %v15429_v7 = vld [vmem:[#allocation454_spill] sm:$0xff]  ;;  %v15430_v27 = vld [vmem:[#allocation197_spill] sm:$0xff]  ;;  %v15433_v34 = vld [vmem:[#allocation199_spill] sm:$0xff] }
 0x597   : > { %v6818_v30 = vsel %vm4107_vm5, %v6786_v28, %v15429_v7  ;;  %v13548_v41 = vsel %vm4140_vm6, %v6819_v9, %v6489_v44  ;;  %v4101_v58 = vsel %vm4074_vm4, %v13414_v3, %v15430_v27  ;;  %v15431_v51 = vld [vmem:[#allocation198_spill] sm:$0xff]  ;;  %v13560_v48 = vsel %vm4074_vm4, %v4070_v4, %v15433_v34  ;;  %v15435_v28 = vld [vmem:[#allocation200_spill] sm:$0xff]  ;;  %v15437_v9 = vld [vmem:[#allocation201_spill] sm:$0xff] }
 0x598   : > { %v13556_v62 = vsel %vm4074_vm4, %v13418_v31, %v15431_v51  ;;  %15434 = vst [vmem:[#allocation150_spill] sm:$0xff] %v13560_v48  ;;  %v13563_v10 = vsel %vm4140_vm6, %v6818_v30, %v6487_v19  ;;  %v13568_v59 = vsel %vm4074_vm4, %v13429_v15, %v15435_v28  ;;  %v4109_v3 = vsel %vm4107_vm5, %v4076_v60, %v15437_v9  ;;  %v15438_v44 = vld [vmem:[#allocation202_spill] sm:$0xff]  ;;  %v15439_v31 = vld [vmem:[#allocation203_spill] sm:$0xff]  ;;  %v15440_v7 = vld [vmem:[#allocation205_spill] sm:$0xff]  ;;  %v13585_v60 = vpop.permute.xlu1 %6492 }
 0x599   : > { %15432 = vst [vmem:[#allocation71_spill] sm:$0xff] %v13556_v62  ;;  %15436 = vst [vmem:[#allocation72_spill] sm:$0xff] %v13568_v59  ;;  %v4108_v45 = vsel %vm4107_vm5, %v4075_v26, %v15438_v44  ;;  %v4111_v22 = vsel %vm4107_vm5, %v4078_v63, %v15439_v31  ;;  %v4110_v4 = vsel %vm4107_vm5, %v4077_v12, %v15440_v7  ;;  %v15441_v27 = vld [vmem:[#allocation262_spill] sm:$0xff]  ;;  %v15442_v19 = vld [vmem:[#allocation263_spill] sm:$0xff] }
 0x59a   : > { %v4113_v30 = vsel %vm4107_vm5, %v4080_v8, %v15441_v27  ;;  %v4112_v51 = vsel %vm4107_vm5, %v4079_v42, %v15442_v19  ;;  %v15443_v15 = vld [vmem:[#allocation360_spill] sm:$0xff]  ;;  %v15446_v44 = vld [vmem:[#allocation265_spill] sm:$0xff]  ;;  %v15448_v12 = vld [vmem:[#allocation298_spill] sm:$0xff]  ;;  %v13596_v42 = vpop.permute.xlu0 %6490 }
 0x59b   : > { %v15444_v34 = vld [vmem:[#allocation40_spill] sm:$0xff]  ;;  %v4114_v63 = vsel %vm4107_vm5, %v4081_v16, %v15446_v44  ;;  %v15447_v31 = vld [vmem:[#allocation361_spill] sm:$0xff]  ;;  %v15449_v8 = vld [vmem:[#allocation134_spill] sm:$0xff]  ;;  %15450 = vst [vmem:[#allocation151_spill] sm:$0xff] %v13596_v42 }
 0x59c   : > { %v6695_v28 = vsel %vm3975_vm1, %v15444_v34, %v15443_v15  ;;  %v15445_v9 = vld [vmem:[#allocation264_spill] sm:$0xff]  ;;  %v6694_v7 = vsel %vm3975_vm1, %v15448_v12, %v15447_v31  ;;  %v15451_v19 = vld [vmem:[#allocation266_spill] sm:$0xff]  ;;  %v15452_v34 = vld [vmem:[#allocation267_spill] sm:$0xff] }
 0x59d   : > { %v4115_v26 = vsel %vm4107_vm5, %v4082_v20, %v15445_v9  ;;  %v6727_v27 = vsel %vm4008_vm2, %v6695_v28, %v15449_v8  ;;  %v4117_v15 = vsel %vm4107_vm5, %v4084_v52, %v15451_v19  ;;  %v4116_v59 = vsel %vm4107_vm5, %v4083_v50, %v15452_v34  ;;  %v15453_v48 = vld [vmem:[#allocation135_spill] sm:$0xff]  ;;  %v15454_v9 = vld [vmem:[#allocation417_spill] sm:$0xff]  ;;  %v15455_v44 = vld [vmem:[#allocation268_spill] sm:$0xff] }
 0x59e   : > { %v6726_v20 = vsel %vm4008_vm2, %v6694_v7, %v15453_v48  ;;  %v6759_v16 = vsel %vm4041_vm3, %v6727_v27, %v15454_v9  ;;  %v4119_v31 = vsel %vm4107_vm5, %v4086_v21, %v15455_v44  ;;  %v15456_v12 = vld [vmem:[#allocation269_spill] sm:$0xff]  ;;  %v15457_v8 = vld [vmem:[#allocation418_spill] sm:$0xff]  ;;  %v15460_v34 = vld [vmem:[#allocation271_spill] sm:$0xff]  ;;  %v6497_v44 = vpop.permute.xlu1 %6496 }
 0x59f   : > { %v4118_v28 = vsel %vm4107_vm5, %v4085_v37, %v15456_v12  ;;  %v6758_v62 = vsel %vm4041_vm3, %v6726_v20, %v15457_v8  ;;  %v15458_v42 = vld [vmem:[#allocation441_spill] sm:$0xff]  ;;  %v15459_v19 = vld [vmem:[#allocation270_spill] sm:$0xff]  ;;  %v4120_v48 = vsel %vm4107_vm5, %v4087_v40, %v15460_v34  ;;  %v15463_v37 = vld [vmem:[#allocation272_spill] sm:$0xff]  ;;  %v6495_v40 = vpop.permute.xlu0 %6494 }
 0x5a0   : > { %v6791_v52 = vsel %vm4074_vm4, %v6759_v16, %v15458_v42  ;;  %v4121_v50 = vsel %vm4107_vm5, %v4088_v54, %v15459_v19  ;;  %v15461_v7 = vld [vmem:[#allocation442_spill] sm:$0xff]  ;;  %v15462_v9 = vld [vmem:[#allocation457_spill] sm:$0xff]  ;;  %v4123_v12 = vsel %vm4107_vm5, %v4090_v13, %v15463_v37  ;;  %v15467_v34 = vld [vmem:[#allocation275_spill] sm:$0xff] }
 0x5a1   : > { %v6790_v27 = vsel %vm4074_vm4, %v6758_v62, %v15461_v7  ;;  %v6823_v21 = vsel %vm4107_vm5, %v6791_v52, %v15462_v9  ;;  %v15464_v20 = vld [vmem:[#allocation273_spill] sm:$0xff]  ;;  %v15465_v42 = vld [vmem:[#allocation458_spill] sm:$0xff]  ;;  %v4124_v52 = vsel %vm4107_vm5, %v4091_v24, %v15467_v34  ;;  %v15468_v7 = vld [vmem:[#allocation276_spill] sm:$0xff] }
 0x5a2   : > { %v4122_v8 = vsel %vm4107_vm5, %v4089_v32, %v15464_v20  ;;  %v6822_v16 = vsel %vm4107_vm5, %v6790_v27, %v15465_v42  ;;  %v13629_v54 = vsel %vm4140_vm6, %v6823_v21, %v6497_v44  ;;  %v15466_v19 = vld [vmem:[#allocation274_spill] sm:$0xff]  ;;  %v4127_v13 = vsel %vm4107_vm5, %v4094_v23, %v15468_v7  ;;  %v15469_v32 = vld [vmem:[#allocation277_spill] sm:$0xff]  ;;  %v15471_v44 = vld [vmem:[#allocation279_spill] sm:$0xff] }
 0x5a3   : > { %v4125_v62 = vsel %vm4107_vm5, %v13499_v39, %v15466_v19  ;;  %v13639_v9 = vsel %vm4140_vm6, %v6822_v16, %v6495_v40  ;;  %v4126_v27 = vsel %vm4107_vm5, %v4093_v53, %v15469_v32  ;;  %v15470_v37 = vld [vmem:[#allocation278_spill] sm:$0xff]  ;;  %v4128_v20 = vsel %vm4107_vm5, %v4095_v11, %v15471_v44  ;;  %v15472_v42 = vld [vmem:[#allocation280_spill] sm:$0xff]  ;;  %v15473_v24 = vld [vmem:[#allocation281_spill] sm:$0xff]  ;;  %v13658_v32 = vpop.permute.xlu1 %6500 }
 0x5a4   : > { %v4129_v21 = vsel %vm4107_vm5, %v4096_v18, %v15470_v37  ;;  %v4131_v39 = vsel %vm4107_vm5, %v4098_v36, %v15472_v42  ;;  %v4130_v19 = vsel %vm4107_vm5, %v4097_v49, %v15473_v24  ;;  %v15474_v23 = vld [vmem:[#allocation282_spill] sm:$0xff]  ;;  %v15475_v40 = vld [vmem:[#allocation283_spill] sm:$0xff]  ;;  %v15476_v53 = vld [vmem:[#allocation364_spill] sm:$0xff]  ;;  %15478 = vst [vmem:[#allocation75_spill] sm:$0xff] %v13658_v32 }
 0x5a5   : > { %v4133_v16 = vsel %vm4107_vm5, %v4100_v56, %v15474_v23  ;;  %v4132_v34 = vsel %vm4107_vm5, %v4099_v55, %v15475_v40  ;;  %v15477_v7 = vld [vmem:[#allocation107_spill] sm:$0xff]  ;;  %v15479_v11 = vld [vmem:[#allocation284_spill] sm:$0xff]  ;;  %v15481_v36 = vld [vmem:[#allocation285_spill] sm:$0xff]  ;;  %v13673_v23 = vpop.permute.xlu0 %6498 }
 0x5a6   : > { %v6699_v18 = vsel %vm3975_vm1, %v15477_v7, %v15476_v53  ;;  %v13662_v37 = vsel %vm4107_vm5, %v4102_v1, %v15479_v11  ;;  %v13666_v44 = vsel %vm4107_vm5, %v4101_v58, %v15481_v36  ;;  %v15483_v49 = vld [vmem:[#allocation365_spill] sm:$0xff]  ;;  %v15484_v42 = vld [vmem:[#allocation302_spill] sm:$0xff]  ;;  %15486 = vst [vmem:[#allocation153_spill] sm:$0xff] %v13673_v23  ;;  %v15489_v11 = vld [vmem:[#allocation139_spill] sm:$0xff] }
 0x5a7   : > { %15480 = vst [vmem:[#allocation152_spill] sm:$0xff] %v13662_v37  ;;  %15482 = vst [vmem:[#allocation76_spill] sm:$0xff] %v13666_v44  ;;  %v6698_v56 = vsel %vm3975_vm1, %v15484_v42, %v15483_v49  ;;  %v15485_v24 = vld [vmem:[#allocation138_spill] sm:$0xff]  ;;  %v15488_v7 = vld [vmem:[#allocation109_spill] sm:$0xff] }
 0x5a8   : > { %v6731_v55 = vsel %vm4008_vm2, %v6699_v18, %v15485_v24  ;;  %v15487_v40 = vld [vmem:[#allocation290_spill] sm:$0xff]  ;;  %v4141_v1 = vsel %vm4140_vm6, %v4108_v45, %v15488_v7  ;;  %v6730_v37 = vsel %vm4008_vm2, %v6698_v56, %v15489_v11  ;;  %v15490_v58 = vld [vmem:[#allocation421_spill] sm:$0xff]  ;;  %v15491_v44 = vld [vmem:[#allocation56_spill] sm:$0xff] }
 0x5a9   : > { %v4142_v53 = vsel %vm4140_vm6, %v4109_v3, %v15487_v40  ;;  %v6763_v36 = vsel %vm4041_vm3, %v6731_v55, %v15490_v58  ;;  %v4144_v49 = vsel %vm4140_vm6, %v4111_v22, %v15491_v44  ;;  %v15492_v42 = vld [vmem:[#allocation111_spill] sm:$0xff]  ;;  %v15493_v24 = vld [vmem:[#allocation422_spill] sm:$0xff]  ;;  %v15495_v40 = vld [vmem:[#allocation113_spill] sm:$0xff]  ;;  %v6505_v44 = vpop.permute.xlu1 %6504 }
 0x5aa   : > { %v4143_v18 = vsel %vm4140_vm6, %v4110_v4, %v15492_v42  ;;  %v6762_v23 = vsel %vm4041_vm3, %v6730_v37, %v15493_v24  ;;  %v15494_v32 = vld [vmem:[#allocation390_spill] sm:$0xff]  ;;  %v4146_v45 = vsel %vm4140_vm6, %v4113_v30, %v15495_v40  ;;  %v15496_v7 = vld [vmem:[#allocation115_spill] sm:$0xff]  ;;  %v15498_v58 = vld [vmem:[#allocation145_spill] sm:$0xff] }
 0x5ab   : > { %v6795_v3 = vsel %vm4074_vm4, %v6763_v36, %v15494_v32  ;;  %v4145_v56 = vsel %vm4140_vm6, %v4112_v51, %v15496_v7  ;;  %v15497_v11 = vld [vmem:[#allocation391_spill] sm:$0xff]  ;;  %v15499_v4 = vld [vmem:[#allocation116_spill] sm:$0xff]  ;;  %v15500_v37 = vld [vmem:[#allocation117_spill] sm:$0xff]  ;;  %v6503_v51 = vpop.permute.xlu0 %6502 }
 0x5ac   : > { %v6794_v55 = vsel %vm4074_vm4, %v6762_v23, %v15497_v11  ;;  %v6827_v22 = vsel %vm4107_vm5, %v6795_v3, %v15498_v58  ;;  %v4148_v42 = vsel %vm4140_vm6, %v4115_v26, %v15499_v4  ;;  %v4147_v24 = vsel %vm4140_vm6, %v4114_v63, %v15500_v37  ;;  %v15501_v32 = vld [vmem:[#allocation63_spill] sm:$0xff]  ;;  %v15503_v40 = vld [vmem:[#allocation118_spill] sm:$0xff]  ;;  %v15505_v11 = vld [vmem:[#allocation120_spill] sm:$0xff] }
 0x5ad   : > { %v6826_v36 = vsel %vm4107_vm5, %v6794_v55, %v15501_v32  ;;  %v13706_v30 = vsel %vm4140_vm6, %v6827_v22, %v6505_v44  ;;  %v4150_v23 = vsel %vm4140_vm6, %v4117_v15, %v15503_v40  ;;  %v15504_v7 = vld [vmem:[#allocation119_spill] sm:$0xff]  ;;  %v4152_v58 = vsel %vm4140_vm6, %v4119_v31, %v15505_v11  ;;  %v15507_v63 = vld [vmem:[#allocation121_spill] sm:$0xff]  ;;  %v15508_v55 = vld [vmem:[#allocation122_spill] sm:$0xff] }
 0x5ae   : > { %15502 = vst [vmem:[#allocation79_spill] sm:$0xff] %v13706_v30  ;;  %v4149_v3 = vsel %vm4140_vm6, %v4116_v59, %v15504_v7  ;;  %v13715_v26 = vsel %vm4140_vm6, %v6826_v36, %v6503_v51  ;;  %v13719_v4 = vsel %vm4140_vm6, %v4118_v28, %v15507_v63  ;;  %v13723_v22 = vsel %vm4140_vm6, %v4121_v50, %v15508_v55  ;;  %v15509_v44 = vld [vmem:[#allocation123_spill] sm:$0xff]  ;;  %v15510_v37 = vld [vmem:[#allocation124_spill] sm:$0xff]  ;;  %v15511_v31 = vld [vmem:[#allocation125_spill] sm:$0xff]  ;;  %v13749_v7 = vpop.permute.xlu1 %6508 }
 0x5af   : > { %15506 = vst [vmem:[#allocation154_spill] sm:$0xff] %v13715_v26  ;;  %v13727_v15 = vsel %vm4140_vm6, %v4120_v48, %v15509_v44  ;;  %v13731_v59 = vsel %vm4140_vm6, %v4123_v12, %v15510_v37  ;;  %v13735_v32 = vsel %vm4140_vm6, %v4122_v8, %v15511_v31  ;;  %v15512_v36 = vld [vmem:[#allocation126_spill] sm:$0xff]  ;;  %v15513_v51 = vld [vmem:[#allocation127_spill] sm:$0xff]  ;;  %v15514_v40 = vld [vmem:[#allocation128_spill] sm:$0xff] }
 0x5b0   : > { %v13739_v28 = vsel %vm4140_vm6, %v4125_v62, %v15512_v36  ;;  %v13743_v50 = vsel %vm4140_vm6, %v4124_v52, %v15513_v51  ;;  %v13747_v48 = vsel %vm4140_vm6, %v4127_v13, %v15514_v40  ;;  %15515 = vst [vmem:[#allocation80_spill] sm:$0xff] %v13749_v7  ;;  %v15516_v12 = vld [vmem:[#allocation86_spill] sm:$0xff]  ;;  %v15517_v8 = vld [vmem:[#allocation131_spill] sm:$0xff]  ;;  %v15518_v62 = vld [vmem:[#allocation93_spill] sm:$0xff]  ;;  %v13767_v13 = vpop.permute.xlu0 %6506 }
 0x5b1   : > { %v13753_v11 = vsel %vm4140_vm6, %v4126_v27, %v15516_v12  ;;  %v13757_v63 = vsel %vm4140_vm6, %v4129_v21, %v15517_v8  ;;  %v13761_v55 = vsel %vm4140_vm6, %v4128_v20, %v15518_v62  ;;  %v15519_v52 = vld [vmem:[#allocation291_spill] sm:$0xff]  ;;  %15520 = vst [vmem:[#allocation155_spill] sm:$0xff] %v13767_v13  ;;  %v15522_v27 = vld [vmem:[#allocation293_spill] sm:$0xff] }
 0x5b2   : > { %v13765_v44 = vsel %vm4140_vm6, %v4131_v39, %v15519_v52  ;;  %v15521_v37 = vld [vmem:[#allocation35_spill] sm:$0xff]  ;;  %v13775_v36 = vsel %vm4140_vm6, %v4133_v16, %v15522_v27  ;;  %v15523_v21 = vld [vmem:[#allocation37_spill] sm:$0xff]  ;;  %v15530_v27 = vld [vmem:[#allocation308_spill] sm:$0xff] }
 0x5b3   : > { %v13771_v31 = vsel %vm4140_vm6, %v4130_v19, %v15521_v37  ;;  %v13779_v51 = vsel %vm4140_vm6, %v4132_v34, %v15523_v21  ;;  %v15524_v20 = vld [vmem:[#allocation301_spill] sm:$0xff]  ;;  %v15525_v12 = vld [vmem:[#allocation303_spill] sm:$0xff]  ;;  %v15528_v37 = vld [vmem:[#allocation338_spill] sm:$0xff]  ;;  %v4179_v34 = vsel %vm4173_vm7, %v4146_v45, %v15530_v27 }
 0x5b4   : > { %v4175_v40 = vsel %vm4173_vm7, %v4142_v53, %v15524_v20  ;;  %v4174_v39 = vsel %vm4173_vm7, %v4141_v1, %v15525_v12  ;;  %v15526_v8 = vld [vmem:[#allocation305_spill] sm:$0xff]  ;;  %v15527_v52 = vld [vmem:[#allocation307_spill] sm:$0xff]  ;;  %v15534_v12 = vld [vmem:[#allocation370_spill] sm:$0xff] }
 0x5b5   : > { %v4177_v62 = vsel %vm4173_vm7, %v4144_v49, %v15526_v8  ;;  %v4176_v19 = vsel %vm4173_vm7, %v4143_v18, %v15527_v52  ;;  %v15529_v13 = vld [vmem:[#allocation59_spill] sm:$0xff]  ;;  %v15531_v21 = vld [vmem:[#allocation309_spill] sm:$0xff]  ;;  %v6577_v8 = vpop.permute.xlu1 %6576  ;;  %v15536_v52 = vld [vmem:[#allocation396_spill] sm:$0xff] }
 0x5b6   : > { %v6673_v16 = vsel %vm3975_vm1, %v15529_v13, %v15528_v37  ;;  %v4178_v7 = vsel %vm4173_vm7, %v4145_v56, %v15531_v21  ;;  %v15532_v53 = vld [vmem:[#allocation339_spill] sm:$0xff]  ;;  %v15533_v20 = vld [vmem:[#allocation61_spill] sm:$0xff]  ;;  %v6863_v45 = vsel %vm4173_vm7, %v13090_v14, %v6577_v8  ;;  %v6575_v37 = vpop.permute.xlu0 %6574  ;;  %v15537_v56 = vld [vmem:[#allocation398_spill] sm:$0xff] }
 0x5b7   : > { %v6672_v1 = vsel %vm3975_vm1, %v15533_v20, %v15532_v53  ;;  %v6705_v49 = vsel %vm4008_vm2, %v6673_v16, %v15534_v12  ;;  %v15535_v26 = vld [vmem:[#allocation371_spill] sm:$0xff]  ;;  %v6927_v20 = vrot.slane %v6863_v45, 7  ;;  %v6862_v16 = vsel %vm4173_vm7, %v13105_v46, %v6575_v37  ;;  %v15539_v12 = vld [vmem:[#allocation310_spill] sm:$0xff] }
 0x5b8   : > { %v6704_v18 = vsel %vm4008_vm2, %v6672_v1, %v15535_v26  ;;  %v6737_v13 = vsel %vm4041_vm3, %v6705_v49, %v15536_v52  ;;  %v15538_v21 = vld [vmem:[#allocation423_spill] sm:$0xff]  ;;  %v13815_v26 = vsel %vm4173_vm7, %v4148_v42, %v15539_v12  ;;  %v15540_v1 = vld [vmem:[#allocation424_spill] sm:$0xff]  ;;  %v6926_v8 = vrot.slane %v6862_v16, 7  ;;  %v15545_v16 = vld [vmem:[#allocation342_spill] sm:$0xff] }
 0x5b9   : > { %v6736_v27 = vsel %vm4041_vm3, %v6704_v18, %v15537_v56  ;;  %v6769_v53 = vsel %vm4074_vm4, %v6737_v13, %v15538_v21  ;;  %v15541_v52 = vld [vmem:[#allocation392_spill] sm:$0xff]  ;;  %v15542_v30 = vld [vmem:[#allocation311_spill] sm:$0xff]  ;;  %v15543_v13 = vld [vmem:[#allocation393_spill] sm:$0xff]  ;;  %v6992_v42 = vsel %vm6990_vm8, %v4175_v40, %v6927_v20  ;;  %v6581_v37 = vpop.permute.xlu1 %6580 }
 0x5ba   : > { %v6768_v49 = vsel %vm4074_vm4, %v6736_v27, %v15540_v1  ;;  %v6801_v14 = vsel %vm4107_vm5, %v6769_v53, %v15541_v52  ;;  %v13823_v18 = vsel %vm4173_vm7, %v4147_v24, %v15542_v30  ;;  %v15544_v56 = vld [vmem:[#allocation312_spill] sm:$0xff]  ;;  %v6991_v53 = vsel %vm6990_vm8, %v4174_v39, %v6926_v8  ;;  %v6579_v30 = vpop.permute.xlu0 %6578  ;;  %v15546_v12 = vld [vmem:[#allocation66_spill] sm:$0xff]  ;;  %v15547_v20 = vld [vmem:[#allocation313_spill] sm:$0xff] }
 0x5bb   : > { %v6800_v45 = vsel %vm4107_vm5, %v6768_v49, %v15543_v13  ;;  %v6833_v46 = vsel %vm4140_vm6, %v6801_v14, %v13140_v61  ;;  %v13832_v27 = vsel %vm4173_vm7, %v4150_v23, %v15544_v56  ;;  %v6677_v1 = vsel %vm3975_vm1, %v15546_v12, %v15545_v16  ;;  %v15548_v52 = vld [vmem:[#allocation343_spill] sm:$0xff]  ;;  %v15549_v14 = vld [vmem:[#allocation69_spill] sm:$0xff]  ;;  %v15550_v39 = vld [vmem:[#allocation374_spill] sm:$0xff] }
 0x5bc   : > { %v6832_v21 = vsel %vm4140_vm6, %v6800_v45, %v13157_v25  ;;  %v6865_v24 = vsel %vm4173_vm7, %v6833_v46, %v6581_v37  ;;  %v7055_v61 = vcombine.low %v6991_v53, %v6992_v42  ;;  %v13844_v23 = vsel %vm4173_vm7, %v4149_v3, %v15547_v20  ;;  %v15551_v45 = vld [vmem:[#allocation314_spill] sm:$0xff]  ;;  %v15552_v42 = vld [vmem:[#allocation375_spill] sm:$0xff]  ;;  %v15553_v56 = vld [vmem:[#allocation401_spill] sm:$0xff] }
 0x5bd   : > { %v6929_v49 = vrot.slane %v6865_v24, 7  ;;  %v6864_v40 = vsel %vm4173_vm7, %v6832_v21, %v6579_v30  ;;  %v6676_v25 = vsel %vm3975_vm1, %v15549_v14, %v15548_v52  ;;  %v6709_v8 = vsel %vm4008_vm2, %v6677_v1, %v15550_v39  ;;  %v6585_v53 = vpop.permute.xlu1 %6584  ;;  %v15554_v24 = vld [vmem:[#allocation402_spill] sm:$0xff]  ;;  %v15555_v16 = vld [vmem:[#allocation425_spill] sm:$0xff] }
 0x5be   : > { %v6928_v13 = vrot.slane %v6864_v40, 7  ;;  %v13853_v46 = vsel %vm4173_vm7, %v4152_v58, %v15551_v45  ;;  %v6708_v37 = vsel %vm4008_vm2, %v6676_v25, %v15552_v42  ;;  %v6741_v21 = vsel %vm4041_vm3, %v6709_v8, %v15553_v56  ;;  %v6583_v40 = vpop.permute.xlu0 %6582  ;;  %v15556_v20 = vld [vmem:[#allocation426_spill] sm:$0xff]  ;;  %v15561_v56 = vld [vmem:[#allocation55_spill] sm:$0xff] }
 0x5bf   : > { %v6994_v3 = vsel %vm6990_vm8, %v4177_v62, %v6929_v49  ;;  %v6740_v30 = vsel %vm4041_vm3, %v6708_v37, %v15554_v24  ;;  %v6773_v12 = vsel %vm4074_vm4, %v6741_v21, %v15555_v16  ;;  %v6867_v58 = vsel %vm4173_vm7, %v13204_v35, %v6585_v53  ;;  %v15557_v49 = vld [vmem:[#allocation346_spill] sm:$0xff] }
 0x5c0   : > { %v6993_v1 = vsel %vm6990_vm8, %v4176_v19, %v6928_v13  ;;  %v6772_v52 = vsel %vm4074_vm4, %v6740_v30, %v15556_v20  ;;  %v6931_v25 = vrot.slane %v6867_v58, 7  ;;  %v6866_v62 = vsel %vm4173_vm7, %v13216_v33, %v6583_v40  ;;  %v15558_v39 = vld [vmem:[#allocation74_spill] sm:$0xff]  ;;  %v15560_v19 = vld [vmem:[#allocation395_spill] sm:$0xff] }
 0x5c1   : > { %v7056_v14 = vcombine.low %v6993_v1, %v6994_v3  ;;  %v6681_v8 = vsel %vm3975_vm1, %v15558_v39, %v15557_v49  ;;  %v15559_v45 = vld [vmem:[#allocation394_spill] sm:$0xff]  ;;  %v6804_v13 = vsel %vm4107_vm5, %v6772_v52, %v15560_v19  ;;  %v6930_v35 = vrot.slane %v6866_v62, 7  ;;  %v6589_v53 = vpop.permute.xlu1 %6588  ;;  %v15562_v40 = vld [vmem:[#allocation315_spill] sm:$0xff]  ;;  %v15564_v52 = vld [vmem:[#allocation77_spill] sm:$0xff] }
 0x5c2   : > { %v6805_v42 = vsel %vm4107_vm5, %v6773_v12, %v15559_v45  ;;  %v7063_v21 = vrot.slane %v7055_v61, %v15561_v56  ;;  %v6996_v33 = vsel %vm6990_vm8, %v4179_v34, %v6931_v25  ;;  %v6836_v24 = vsel %vm4140_vm6, %v6804_v13, %v13263_v0  ;;  %v6587_v12 = vpop.permute.xlu0 %6586  ;;  %v15563_v20 = vld [vmem:[#allocation347_spill] sm:$0xff]  ;;  %v15566_v62 = vld [vmem:[#allocation316_spill] sm:$0xff] }
 0x5c3   : > { %v6837_v37 = vsel %vm4140_vm6, %v6805_v42, %v13248_v17  ;;  %v7070_v3 = vrot.slane %v7056_v14, %v15561_v56  ;;  %v6995_v30 = vsel %vm6990_vm8, %v4178_v7, %v6930_v35  ;;  %v6868_v61 = vsel %vm4173_vm7, %v6836_v24, %v6587_v12  ;;  %v15565_v14 = vld [vmem:[#allocation378_spill] sm:$0xff]  ;;  %v15567_v39 = vld [vmem:[#allocation379_spill] sm:$0xff]  ;;  %v15569_v35 = vld [vmem:[#allocation404_spill] sm:$0xff] }
 0x5c4   : > { %v6869_v16 = vsel %vm4173_vm7, %v6837_v37, %v6589_v53  ;;  %v7072_v58 = vcombine.low %v6995_v30, %v6996_v33  ;;  %v4184_v34 = vsel %vm4173_vm7, %v13719_v4, %v15562_v40  ;;  %v6680_v0 = vsel %vm3975_vm1, %v15564_v52, %v15563_v20  ;;  %v15568_v42 = vld [vmem:[#allocation403_spill] sm:$0xff]  ;;  %v15571_v53 = vld [vmem:[#allocation428_spill] sm:$0xff]  ;;  %v15572_v12 = vld [vmem:[#allocation317_spill] sm:$0xff] }
 0x5c5   : > { %v7071_v1 = vcombine.low %v7063_v21, %v7070_v3  ;;  %v6933_v17 = vrot.slane %v6869_v16, 7  ;;  %v6713_v25 = vsel %vm4008_vm2, %v6681_v8, %v15565_v14  ;;  %v6932_v7 = vrot.slane %v6868_v61, 7  ;;  %v6593_v13 = vpop.permute.xlu1 %6592  ;;  %v15570_v37 = vld [vmem:[#allocation427_spill] sm:$0xff] }
 0x5c6   : > { %v4187_v49 = vsel %vm4173_vm7, %v13723_v22, %v15566_v62  ;;  %v6712_v45 = vsel %vm4008_vm2, %v6680_v0, %v15567_v39  ;;  %v6745_v19 = vsel %vm4041_vm3, %v6713_v25, %v15568_v42  ;;  %v6871_v3 = vsel %vm4173_vm7, %v13304_v6, %v6593_v13  ;;  %v6591_v33 = vpop.permute.xlu0 %6590  ;;  %v15575_v25 = vld [vmem:[#allocation350_spill] sm:$0xff] }
 0x5c7   : > { %7200 = vst.msk [vmem:[%s8405_s17] sm:$0xff] %vm7199_vm9, %v7071_v1  ;;  %v6998_v4 = vsel %vm6990_vm8, %v13815_v26, %v6933_v17  ;;  %v6744_v8 = vsel %vm4041_vm3, %v6712_v45, %v15569_v35  ;;  %v6777_v21 = vsel %vm4074_vm4, %v6745_v19, %v15570_v37  ;;  %v6997_v22 = vsel %vm6990_vm8, %v13823_v18, %v6932_v7  ;;  %v15573_v17 = vld [vmem:[#allocation443_spill] sm:$0xff]  ;;  %v15574_v18 = vld [vmem:[#allocation444_spill] sm:$0xff] }
 0x5c8   : > { %v6776_v24 = vsel %vm4074_vm4, %v6744_v8, %v15571_v53  ;;  %v7073_v30 = vcombine.low %v6997_v22, %v6998_v4  ;;  %v6935_v16 = vrot.slane %v6871_v3, 7  ;;  %v6870_v26 = vsel %vm4173_vm7, %v13316_v5, %v6591_v33  ;;  %v15577_v4 = vld [vmem:[#allocation318_spill] sm:$0xff]  ;;  %v15578_v35 = vld [vmem:[#allocation351_spill] sm:$0xff]  ;;  %v15579_v8 = vld [vmem:[#allocation85_spill] sm:$0xff] }
 0x5c9   : > { %v4186_v1 = vsel %vm4173_vm7, %v13727_v15, %v15572_v12  ;;  %v6809_v61 = vsel %vm4107_vm5, %v6777_v21, %v15573_v17  ;;  %v6808_v40 = vsel %vm4107_vm5, %v6776_v24, %v15574_v18  ;;  %v6934_v6 = vrot.slane %v6870_v26, 7  ;;  %v6597_v14 = vpop.permute.xlu1 %6596  ;;  %v15576_v15 = vld [vmem:[#allocation82_spill] sm:$0xff]  ;;  %v15581_v22 = vld [vmem:[#allocation319_spill] sm:$0xff]  ;;  %v15584_v26 = vld [vmem:[#allocation408_spill] sm:$0xff] }
 0x5ca   : > { %v6841_v20 = vsel %vm4140_vm6, %v6809_v61, %v13342_v47  ;;  %v7080_v52 = vrot.slane %v7072_v58, %v15561_v56  ;;  %v7087_v0 = vrot.slane %v7073_v30, %v15561_v56  ;;  %v7000_v5 = vsel %vm6990_vm8, %v13832_v27, %v6935_v16  ;;  %v6595_v58 = vpop.permute.xlu0 %6594  ;;  %v15582_v33 = vld [vmem:[#allocation383_spill] sm:$0xff] }
 0x5cb   : > { %v6685_v7 = vsel %vm3975_vm1, %v15576_v15, %v15575_v25  ;;  %v6840_v62 = vsel %vm4140_vm6, %v6808_v40, %v13355_v38  ;;  %v6999_v39 = vsel %vm6990_vm8, %v13844_v23, %v6934_v6  ;;  %v6873_v47 = vsel %vm4173_vm7, %v6841_v20, %v6597_v14  ;;  %v15580_v38 = vld [vmem:[#allocation382_spill] sm:$0xff]  ;;  %v15583_v24 = vld [vmem:[#allocation407_spill] sm:$0xff]  ;;  %v15586_v6 = vld [vmem:[#allocation432_spill] sm:$0xff] }
 0x5cc   : > { %v7088_v45 = vcombine.low %v7080_v52, %v7087_v0  ;;  %v7089_v42 = vcombine.low %v6999_v39, %v7000_v5  ;;  %v6937_v19 = vrot.slane %v6873_v47, 7  ;;  %v6872_v27 = vsel %vm4173_vm7, %v6840_v62, %v6595_v58  ;;  %v15585_v17 = vld [vmem:[#allocation431_spill] sm:$0xff]  ;;  %v15587_v5 = vld [vmem:[#allocation320_spill] sm:$0xff] }
 0x5cd   : > { %v4189_v13 = vsel %vm4173_vm7, %v13731_v59, %v15577_v4  ;;  %v6684_v37 = vsel %vm3975_vm1, %v15579_v8, %v15578_v35  ;;  %v6717_v21 = vsel %vm4008_vm2, %v6685_v7, %v15580_v38  ;;  %v6936_v23 = vrot.slane %v6872_v27, 7  ;;  %v6601_v16 = vpop.permute.xlu1 %6600  ;;  %v15588_v25 = vld [vmem:[#allocation447_spill] sm:$0xff] }
 0x5ce   : > { %v4188_v3 = vsel %vm4173_vm7, %v13735_v32, %v15581_v22  ;;  %v6716_v53 = vsel %vm4008_vm2, %v6684_v37, %v15582_v33  ;;  %v6749_v30 = vsel %vm4041_vm3, %v6717_v21, %v15583_v24  ;;  %7201 = vst.msk [vmem:[%s8405_s17 + $0x8] sm:$0xff] %vm7199_vm9, %v7088_v45  ;;  %v7002_v59 = vsel %vm6990_vm8, %v13853_v46, %v6937_v19  ;;  %v6599_v40 = vpop.permute.xlu0 %6598  ;;  %v15590_v45 = vld [vmem:[#allocation354_spill] sm:$0xff]  ;;  %v15594_v22 = vld [vmem:[#allocation292_spill] sm:$0xff] }
 0x5cf   : > { %v6748_v12 = vsel %vm4041_vm3, %v6716_v53, %v15584_v26  ;;  %v6781_v61 = vsel %vm4074_vm4, %v6749_v30, %v15585_v17  ;;  %v7001_v32 = vsel %vm6990_vm8, %v4184_v34, %v6936_v23  ;;  %v6875_v18 = vsel %vm4173_vm7, %v13388_v29, %v6601_v16  ;;  %v15589_v34 = vld [vmem:[#allocation448_spill] sm:$0xff]  ;;  %v15591_v19 = vld [vmem:[#allocation94_spill] sm:$0xff]  ;;  %v15593_v23 = vld [vmem:[#allocation355_spill] sm:$0xff] }
 0x5d0   : > { %v6780_v20 = vsel %vm4074_vm4, %v6748_v12, %v15586_v6  ;;  %v7090_v52 = vcombine.low %v7001_v32, %v7002_v59  ;;  %v6939_v0 = vrot.slane %v6875_v18, 7  ;;  %v6874_v46 = vsel %vm4173_vm7, %v13399_v43, %v6599_v40  ;;  %v15595_v53 = vld [vmem:[#allocation386_spill] sm:$0xff]  ;;  %v15597_v59 = vld [vmem:[#allocation387_spill] sm:$0xff] }
 0x5d1   : > { %v4191_v14 = vsel %vm4173_vm7, %v13739_v28, %v15587_v5  ;;  %v6813_v15 = vsel %vm4107_vm5, %v6781_v61, %v15588_v25  ;;  %v6812_v7 = vsel %vm4107_vm5, %v6780_v20, %v15589_v34  ;;  %v6938_v29 = vrot.slane %v6874_v46, 7  ;;  %v6605_v58 = vpop.permute.xlu1 %6604  ;;  %v15596_v24 = vld [vmem:[#allocation322_spill] sm:$0xff]  ;;  %v15598_v26 = vld [vmem:[#allocation411_spill] sm:$0xff]  ;;  %v15599_v61 = vld [vmem:[#allocation412_spill] sm:$0xff] }
 0x5d2   : > { %v6845_v62 = vsel %vm4140_vm6, %v6813_v15, %v13423_v2  ;;  %v7097_v39 = vrot.slane %v7089_v42, %v15561_v56  ;;  %v7104_v47 = vrot.slane %v7090_v52, %v15561_v56  ;;  %v7004_v43 = vsel %vm6990_vm8, %v4187_v49, %v6939_v0  ;;  %v6603_v2 = vpop.permute.xlu0 %6602  ;;  %v15592_v49 = vld [vmem:[#allocation321_spill] sm:$0xff]  ;;  %v15600_v18 = vld [vmem:[#allocation435_spill] sm:$0xff]  ;;  %v15602_v0 = vld [vmem:[#allocation436_spill] sm:$0xff] }
 0x5d3   : > { %v6689_v28 = vsel %vm3975_vm1, %v15591_v19, %v15590_v45  ;;  %v6844_v27 = vsel %vm4140_vm6, %v6812_v7, %v13436_v57  ;;  %v7003_v4 = vsel %vm6990_vm8, %v4186_v1, %v6938_v29  ;;  %v6877_v35 = vsel %vm4173_vm7, %v6845_v62, %v6605_v58  ;;  %v15603_v15 = vld [vmem:[#allocation148_spill] sm:$0xff]  ;;  %v15604_v34 = vld [vmem:[#allocation323_spill] sm:$0xff] }
 0x5d4   : > { %v7105_v8 = vcombine.low %v7097_v39, %v7104_v47  ;;  %v7106_v42 = vcombine.low %v7003_v4, %v7004_v43  ;;  %v6941_v37 = vrot.slane %v6877_v35, 7  ;;  %v6876_v38 = vsel %vm4173_vm7, %v6844_v27, %v6603_v2  ;;  %v15605_v29 = vld [vmem:[#allocation451_spill] sm:$0xff]  ;;  %v15607_v43 = vld [vmem:[#allocation68_spill] sm:$0xff]  ;;  %v15608_v4 = vld [vmem:[#allocation358_spill] sm:$0xff] }
 0x5d5   : > { %v4190_v21 = vsel %vm4173_vm7, %v13743_v50, %v15592_v49  ;;  %v6688_v33 = vsel %vm3975_vm1, %v15594_v22, %v15593_v23  ;;  %v6721_v57 = vsel %vm4008_vm2, %v6689_v28, %v15595_v53  ;;  %v6940_v1 = vrot.slane %v6876_v38, 7  ;;  %v6609_v17 = vpop.permute.xlu1 %6608  ;;  %v15609_v35 = vld [vmem:[#allocation98_spill] sm:$0xff]  ;;  %v15610_v2 = vld [vmem:[#allocation149_spill] sm:$0xff] }
 0x5d6   : > { %v4193_v30 = vsel %vm4173_vm7, %v13747_v48, %v15596_v24  ;;  %v6720_v16 = vsel %vm4008_vm2, %v6688_v33, %v15597_v59  ;;  %v6753_v12 = vsel %vm4041_vm3, %v6721_v57, %v15598_v26  ;;  %7202 = vst.msk [vmem:[%s8405_s17 + $0x10] sm:$0xff] %vm7199_vm9, %v7105_v8  ;;  %v7006_v50 = vsel %vm6990_vm8, %v4189_v13, %v6941_v37  ;;  %v15601_v48 = vld [vmem:[#allocation67_spill] sm:$0xff]  ;;  %v6607_v52 = vpop.permute.xlu0 %6606  ;;  %v15614_v59 = vld [vmem:[#allocation132_spill] sm:$0xff]  ;;  %v15615_v26 = vld [vmem:[#allocation325_spill] sm:$0xff] }
 0x5d7   : > { %v6752_v32 = vsel %vm4041_vm3, %v6720_v16, %v15599_v61  ;;  %v6785_v40 = vsel %vm4074_vm4, %v6753_v12, %v15600_v18  ;;  %v7005_v6 = vsel %vm6990_vm8, %v4188_v3, %v6940_v1  ;;  %v6879_v20 = vsel %vm4173_vm7, %v15601_v48, %v6609_v17  ;;  %v15606_v3 = vld [vmem:[#allocation452_spill] sm:$0xff]  ;;  %v15612_v57 = vld [vmem:[#allocation359_spill] sm:$0xff] }
 0x5d8   : > { %v6784_v46 = vsel %vm4074_vm4, %v6752_v32, %v15602_v0  ;;  %v7107_v5 = vcombine.low %v7005_v6, %v7006_v50  ;;  %v6943_v25 = vrot.slane %v6879_v20, 7  ;;  %v6878_v13 = vsel %vm4173_vm7, %v15603_v15, %v6607_v52  ;;  %v15613_v1 = vld [vmem:[#allocation296_spill] sm:$0xff]  ;;  %v15616_v50 = vld [vmem:[#allocation133_spill] sm:$0xff]  ;;  %v15617_v61 = vld [vmem:[#allocation415_spill] sm:$0xff] }
 0x5d9   : > { %v4192_v7 = vsel %vm4173_vm7, %v13753_v11, %v15604_v34  ;;  %v6817_v62 = vsel %vm4107_vm5, %v6785_v40, %v15605_v29  ;;  %v6816_v39 = vsel %vm4107_vm5, %v6784_v46, %v15606_v3  ;;  %v6942_v47 = vrot.slane %v6878_v13, 7  ;;  %v6613_v27 = vpop.permute.xlu1 %6612  ;;  %v15618_v40 = vld [vmem:[#allocation416_spill] sm:$0xff]  ;;  %v15619_v48 = vld [vmem:[#allocation439_spill] sm:$0xff]  ;;  %v15621_v13 = vld [vmem:[#allocation326_spill] sm:$0xff] }
 0x5da   : > { %v6849_v58 = vsel %vm4140_vm6, %v6817_v62, %v15607_v43  ;;  %v7114_v45 = vrot.slane %v7106_v42, %v15561_v56  ;;  %v7121_v19 = vrot.slane %v7107_v5, %v15561_v56  ;;  %v7008_v28 = vsel %vm6990_vm8, %v4191_v14, %v6943_v25  ;;  %v6611_v49 = vpop.permute.xlu0 %6610  ;;  %v15611_v14 = vld [vmem:[#allocation324_spill] sm:$0xff]  ;;  %v15622_v29 = vld [vmem:[#allocation455_spill] sm:$0xff] }
 0x5db   : > { %v6693_v11 = vsel %vm3975_vm1, %v15609_v35, %v15608_v4  ;;  %v6848_v8 = vsel %vm4140_vm6, %v6816_v39, %v15610_v2  ;;  %v7007_v37 = vsel %vm6990_vm8, %v4190_v21, %v6942_v47  ;;  %v6881_v38 = vsel %vm4173_vm7, %v6849_v58, %v6613_v27  ;;  %v15620_v46 = vld [vmem:[#allocation440_spill] sm:$0xff] }
 0x5dc   : > { %v7122_v23 = vcombine.low %v7114_v45, %v7121_v19  ;;  %v7123_v42 = vcombine.low %v7007_v37, %v7008_v28  ;;  %v6945_v22 = vrot.slane %v6881_v38, 7  ;;  %v6880_v33 = vsel %vm4173_vm7, %v6848_v8, %v6611_v49  ;;  %v15624_v45 = vld [vmem:[#allocation362_spill] sm:$0xff]  ;;  %v15625_v19 = vld [vmem:[#allocation103_spill] sm:$0xff] }
 0x5dd   : > { %v4195_v53 = vsel %vm4173_vm7, %v13757_v63, %v15611_v14  ;;  %v6692_v24 = vsel %vm3975_vm1, %v15613_v1, %v15612_v57  ;;  %v6725_v16 = vsel %vm4008_vm2, %v6693_v11, %v15614_v59  ;;  %v6944_v21 = vrot.slane %v6880_v33, 7  ;;  %v6617_v18 = vpop.permute.xlu1 %6616  ;;  %v15626_v28 = vld [vmem:[#allocation151_spill] sm:$0xff]  ;;  %v15630_v33 = vld [vmem:[#allocation136_spill] sm:$0xff] }
 0x5de   : > { %v4194_v12 = vsel %vm4173_vm7, %v13761_v55, %v15615_v26  ;;  %v6724_v17 = vsel %vm4008_vm2, %v6692_v24, %v15616_v50  ;;  %v6757_v32 = vsel %vm4041_vm3, %v6725_v16, %v15617_v61  ;;  %7203 = vst.msk [vmem:[%s8405_s17 + $0x18] sm:$0xff] %vm7199_vm9, %v7122_v23  ;;  %v7010_v63 = vsel %vm6990_vm8, %v4193_v30, %v6945_v22  ;;  %v6615_v0 = vpop.permute.xlu0 %6614  ;;  %v15627_v38 = vld [vmem:[#allocation327_spill] sm:$0xff]  ;;  %v15631_v57 = vld [vmem:[#allocation328_spill] sm:$0xff]  ;;  %v15632_v24 = vld [vmem:[#allocation137_spill] sm:$0xff] }
 0x5df   : > { %v6756_v6 = vsel %vm4041_vm3, %v6724_v17, %v15618_v40  ;;  %v6789_v20 = vsel %vm4074_vm4, %v6757_v32, %v15619_v48  ;;  %v7009_v52 = vsel %vm6990_vm8, %v4192_v7, %v6944_v21  ;;  %v6883_v55 = vsel %vm4173_vm7, %v13548_v41, %v6617_v18  ;;  %v15623_v7 = vld [vmem:[#allocation456_spill] sm:$0xff]  ;;  %v15628_v23 = vld [vmem:[#allocation363_spill] sm:$0xff]  ;;  %v15636_v18 = vld [vmem:[#allocation389_spill] sm:$0xff] }
 0x5e0   : > { %v6788_v5 = vsel %vm4074_vm4, %v6756_v6, %v15620_v46  ;;  %v7124_v25 = vcombine.low %v7009_v52, %v7010_v63  ;;  %v6947_v15 = vrot.slane %v6883_v55, 7  ;;  %v6882_v30 = vsel %vm4173_vm7, %v13563_v10, %v6615_v0  ;;  %v15633_v16 = vld [vmem:[#allocation419_spill] sm:$0xff]  ;;  %v15635_v17 = vld [vmem:[#allocation388_spill] sm:$0xff]  ;;  %v15637_v52 = vld [vmem:[#allocation329_spill] sm:$0xff] }
 0x5e1   : > { %v4197_v34 = vsel %vm4173_vm7, %v13765_v44, %v15621_v13  ;;  %v6821_v62 = vsel %vm4107_vm5, %v6789_v20, %v15622_v29  ;;  %v6820_v3 = vsel %vm4107_vm5, %v6788_v5, %v15623_v7  ;;  %v6946_v41 = vrot.slane %v6882_v30, 7  ;;  %v6621_v58 = vpop.permute.xlu1 %6620  ;;  %v15638_v0 = vld [vmem:[#allocation144_spill] sm:$0xff] }
 0x5e2   : > { %v6853_v39 = vsel %vm4140_vm6, %v6821_v62, %v13585_v60  ;;  %v7131_v47 = vrot.slane %v7123_v42, %v15561_v56  ;;  %v7138_v43 = vrot.slane %v7124_v25, %v15561_v56  ;;  %v7012_v10 = vsel %vm6990_vm8, %v4195_v53, %v6947_v15  ;;  %v6619_v60 = vpop.permute.xlu0 %6618  ;;  %v15629_v42 = vld [vmem:[#allocation300_spill] sm:$0xff]  ;;  %v15640_v15 = vld [vmem:[#allocation75_spill] sm:$0xff] }
 0x5e3   : > { %v6697_v44 = vsel %vm3975_vm1, %v15625_v19, %v15624_v45  ;;  %v6852_v27 = vsel %vm4140_vm6, %v6820_v3, %v15626_v28  ;;  %v7011_v4 = vsel %vm6990_vm8, %v4194_v12, %v6946_v41  ;;  %v6885_v35 = vsel %vm4173_vm7, %v6853_v39, %v6621_v58  ;;  %v15634_v12 = vld [vmem:[#allocation420_spill] sm:$0xff]  ;;  %v15641_v62 = vld [vmem:[#allocation295_spill] sm:$0xff]  ;;  %v15643_v3 = vld [vmem:[#allocation153_spill] sm:$0xff] }
 0x5e4   : > { %v7139_v11 = vcombine.low %v7131_v47, %v7138_v43  ;;  %v7140_v2 = vcombine.low %v7011_v4, %v7012_v10  ;;  %v6949_v8 = vrot.slane %v6885_v35, 7  ;;  %v6884_v37 = vsel %vm4173_vm7, %v6852_v27, %v6619_v60  ;;  %v15639_v5 = vld [vmem:[#allocation60_spill] sm:$0xff]  ;;  %v15645_v28 = vld [vmem:[#allocation147_spill] sm:$0xff] }
 0x5e5   : > { %v4196_v49 = vsel %vm4173_vm7, %v13771_v31, %v15627_v38  ;;  %v6696_v22 = vsel %vm3975_vm1, %v15629_v42, %v15628_v23  ;;  %v6729_v14 = vsel %vm4008_vm2, %v6697_v44, %v15630_v33  ;;  %v6948_v53 = vrot.slane %v6884_v37, 7  ;;  %v6625_v26 = vpop.permute.xlu1 %6624  ;;  %v15642_v7 = vld [vmem:[#allocation152_spill] sm:$0xff]  ;;  %v15644_v44 = vld [vmem:[#allocation261_spill] sm:$0xff]  ;;  %v15646_v4 = vld [vmem:[#allocation39_spill] sm:$0xff] }
 0x5e6   : > { %v4199_v1 = vsel %vm4173_vm7, %v13775_v36, %v15631_v57  ;;  %v6728_v59 = vsel %vm4008_vm2, %v6696_v22, %v15632_v24  ;;  %v6761_v21 = vsel %vm4041_vm3, %v6729_v14, %v15633_v16  ;;  %7204 = vst.msk [vmem:[%s8405_s17 + $0x20] sm:$0xff] %vm7199_vm9, %v7139_v11  ;;  %v7014_v31 = vsel %vm6990_vm8, %v4197_v34, %v6949_v8  ;;  %v6623_v63 = vpop.permute.xlu0 %6622  ;;  %v15647_v35 = vld [vmem:[#allocation76_spill] sm:$0xff]  ;;  %v15648_v11 = vld [vmem:[#allocation330_spill] sm:$0xff]  ;;  %v15650_v38 = vld [vmem:[#allocation71_spill] sm:$0xff] }
 0x5e7   : > { %v6760_v50 = vsel %vm4041_vm3, %v6728_v59, %v15634_v12  ;;  %v6793_v61 = vsel %vm4074_vm4, %v6761_v21, %v15635_v17  ;;  %v7013_v32 = vsel %vm6990_vm8, %v4196_v49, %v6948_v53  ;;  %v6887_v36 = vsel %vm4173_vm7, %v13629_v54, %v6625_v26  ;;  %v15649_v37 = vld [vmem:[#allocation286_spill] sm:$0xff]  ;;  %v15651_v23 = vld [vmem:[#allocation287_spill] sm:$0xff]  ;;  %v15655_v24 = vld [vmem:[#allocation72_spill] sm:$0xff] }
 0x5e8   : > { %v6792_v40 = vsel %vm4074_vm4, %v6760_v50, %v15636_v18  ;;  %v7141_v6 = vcombine.low %v7013_v32, %v7014_v31  ;;  %v6951_v48 = vrot.slane %v6887_v36, 7  ;;  %v6886_v20 = vsel %vm4173_vm7, %v13639_v9, %v6623_v63  ;;  %v15652_v42 = vld [vmem:[#allocation150_spill] sm:$0xff]  ;;  %v15653_v33 = vld [vmem:[#allocation331_spill] sm:$0xff]  ;;  %v15656_v16 = vld [vmem:[#allocation297_spill] sm:$0xff] }
 0x5e9   : > { %v4198_v55 = vsel %vm4173_vm7, %v13779_v51, %v15637_v52  ;;  %v6825_v46 = vsel %vm4107_vm5, %v6793_v61, %v15638_v0  ;;  %v6824_v25 = vsel %vm4107_vm5, %v6792_v40, %v15639_v5  ;;  %v6950_v54 = vrot.slane %v6886_v20, 7  ;;  %v6629_v29 = vpop.permute.xlu1 %6628  ;;  %v15657_v26 = vld [vmem:[#allocation79_spill] sm:$0xff]  ;;  %v15658_v17 = vld [vmem:[#allocation101_spill] sm:$0xff]  ;;  %v15659_v63 = vld [vmem:[#allocation154_spill] sm:$0xff] }
 0x5ea   : > { %v6857_v30 = vsel %vm4140_vm6, %v6825_v46, %v15640_v15  ;;  %v7148_v13 = vrot.slane %v7140_v2, %v15561_v56  ;;  %v7155_v34 = vrot.slane %v7141_v6, %v15561_v56  ;;  %v7016_v9 = vsel %vm6990_vm8, %v4199_v1, %v6951_v48  ;;  %v6627_v43 = vpop.permute.xlu0 %6626  ;;  %v15654_v1 = vld [vmem:[#allocation288_spill] sm:$0xff]  ;;  %v15660_v40 = vld [vmem:[#allocation289_spill] sm:$0xff]  ;;  %v15664_v5 = vld [vmem:[#allocation146_spill] sm:$0xff] }
 0x5eb   : > { %v4168_v51 = vsel %vm4140_vm6, %v15642_v7, %v15641_v62  ;;  %v6856_v41 = vsel %vm4140_vm6, %v6824_v25, %v15643_v3  ;;  %v7015_v39 = vsel %vm6990_vm8, %v4198_v55, %v6950_v54  ;;  %v6889_v47 = vsel %vm4173_vm7, %v6857_v30, %v6629_v29  ;;  %v15661_v48 = vld [vmem:[#allocation332_spill] sm:$0xff]  ;;  %v15662_v52 = vld [vmem:[#allocation333_spill] sm:$0xff]  ;;  %v15666_v29 = vld [vmem:[#allocation155_spill] sm:$0xff] }
 0x5ec   : > { %v7156_v10 = vcombine.low %v7148_v13, %v7155_v34  ;;  %v7157_v58 = vcombine.low %v7015_v39, %v7016_v9  ;;  %v6953_v45 = vrot.slane %v6889_v47, 7  ;;  %v6888_v19 = vsel %vm4173_vm7, %v6856_v41, %v6627_v43  ;;  %v15663_v46 = vld [vmem:[#allocation80_spill] sm:$0xff]  ;;  %v15665_v34 = vld [vmem:[#allocation299_spill] sm:$0xff] }
 0x5ed   : > { %v4105_v27 = vsel %vm4074_vm4, %v15645_v28, %v15644_v44  ;;  %v4167_v60 = vsel %vm4140_vm6, %v15647_v35, %v15646_v4  ;;  %v4201_v2 = vsel %vm4173_vm7, %v4168_v51, %v15648_v11  ;;  %v6952_v8 = vrot.slane %v6888_v19, 7  ;;  %v6633_v57 = vpop.permute.xlu1 %6632  ;;  %v15667_v62 = vld [vmem:[#allocation64_spill] sm:$0xff]  ;;  %v15669_v19 = vld [vmem:[#allocation334_spill] sm:$0xff] }
 0x5ee   : > { %v4137_v49 = vsel %vm4107_vm5, %v15650_v38, %v15649_v37  ;;  %v4136_v22 = vsel %vm4107_vm5, %v15652_v42, %v15651_v23  ;;  %v4200_v14 = vsel %vm4173_vm7, %v4167_v60, %v15653_v33  ;;  %7205 = vst.msk [vmem:[%s8405_s17 + $0x28] sm:$0xff] %vm7199_vm9, %v7156_v10  ;;  %v7018_v53 = vsel %vm6990_vm8, %v4201_v2, %v6953_v45  ;;  %v6631_v50 = vpop.permute.xlu0 %6630 }
 0x5ef   : > { %v4139_v59 = vsel %vm4107_vm5, %v15655_v24, %v15654_v1  ;;  %v4170_v21 = vsel %vm4140_vm6, %v4137_v49, %v15656_v16  ;;  %v7017_v31 = vsel %vm6990_vm8, %v4200_v14, %v6952_v8  ;;  %v6891_v12 = vsel %vm4173_vm7, %v15657_v26, %v6633_v57 }
 0x5f0   : > { %v4169_v61 = vsel %vm4140_vm6, %v4136_v22, %v15658_v17  ;;  %v7158_v32 = vcombine.low %v7017_v31, %v7018_v53  ;;  %v6955_v36 = vrot.slane %v6891_v12, 7  ;;  %v6890_v18 = vsel %vm4173_vm7, %v15659_v63, %v6631_v50 }
 0x5f1   : > { %v4138_v6 = vsel %vm4107_vm5, %v4105_v27, %v15660_v40  ;;  %v4203_v20 = vsel %vm4173_vm7, %v4170_v21, %v15661_v48  ;;  %v4202_v55 = vsel %vm4173_vm7, %v4169_v61, %v15662_v52  ;;  %v6954_v0 = vrot.slane %v6890_v18, 7  ;;  %v6637_v13 = vpop.permute.xlu1 %6636  ;;  %v15670_v27 = vld [vmem:[#allocation335_spill] sm:$0xff] }
 0x5f2   : > { %v6861_v25 = vsel %vm4140_vm6, %v15664_v5, %v15663_v46  ;;  %v7165_v54 = vrot.slane %v7157_v58, %v15561_v56  ;;  %v7172_v15 = vrot.slane %v7158_v32, %v15561_v56  ;;  %v7020_v30 = vsel %vm6990_vm8, %v4203_v20, %v6955_v36  ;;  %v6635_v41 = vpop.permute.xlu0 %6634  ;;  %v15668_v58 = vld [vmem:[#allocation105_spill] sm:$0xff] }
 0x5f3   : > { %v4172_v9 = vsel %vm4140_vm6, %v4139_v59, %v15665_v34  ;;  %v6860_v7 = vsel %vm4140_vm6, %v15667_v62, %v15666_v29  ;;  %v7019_v51 = vsel %vm6990_vm8, %v4202_v55, %v6954_v0  ;;  %v6893_v3 = vsel %vm4173_vm7, %v6861_v25, %v6637_v13 }
 0x5f4   : > { %v7173_v39 = vcombine.low %v7165_v54, %v7172_v15  ;;  %v7174_v47 = vcombine.low %v7019_v51, %v7020_v30  ;;  %v6957_v43 = vrot.slane %v6893_v3, 7  ;;  %v6892_v10 = vsel %vm4173_vm7, %v6860_v7, %v6635_v41 }
 0x5f5   : > { %v4171_v45 = vsel %vm4140_vm6, %v4138_v6, %v15668_v58  ;;  %v4205_v44 = vsel %vm4173_vm7, %v4172_v9, %v15669_v19  ;;  %v6956_v28 = vrot.slane %v6892_v10, 7 }
 0x5f6   : > { %v4204_v4 = vsel %vm4173_vm7, %v4171_v45, %v15670_v27  ;;  %7206 = vst.msk [vmem:[%s8405_s17 + $0x30] sm:$0xff] %vm7199_vm9, %v7173_v39  ;;  %v7022_v35 = vsel %vm6990_vm8, %v4205_v44, %v6957_v43  ;;  %v7182_v2 = vrot.slane %v7174_v47, %v15561_v56 }
 0x5f7   : > { %v7021_v60 = vsel %vm6990_vm8, %v4204_v4, %v6956_v28 }
 0x5f8   : > { %v7175_v11 = vcombine.low %v7021_v60, %v7022_v35 }
 0x5fa   : > { %v7189_v8 = vrot.slane %v7175_v11, %v15561_v56 }
 0x5fc   : > { %v7190_v37 = vcombine.low %v7182_v2, %v7189_v8 }
 0x5fe   : > { %7207 = vst.msk [vmem:[%s8405_s17 + $0x38] sm:$0xff] %vm7199_vm9, %v7190_v37 }
 0x5ff PF: > { %s15671_s3 = sld [smem:[#allocation21_spill]] }
 0x605   : > { %p7470_p7 = scmp.lt.s32.totalorder %s15671_s3, 1 }
 0x606   : > { %v7212_v56 = vld [vmem:[%s8396_s28] sm:$0xff] (!%p7470_p7)  ;;  %vm7220_vm10 = vcmask (!%p7470_p7), 130048   ;;  %v7213_v38 = vld [vmem:[%s8396_s28 + $0x8] sm:$0xff] (!%p7470_p7)  ;;  %v7214_v49 = vld [vmem:[%s8396_s28 + $0x10] sm:$0xff] (!%p7470_p7) }
 0x607   : > { %7211 = sbr.rel (%p7470_p7) target bundleno = 1550 (0x60e), region = 68  ;;  %7221 = vst.msk [vmem:[%s8405_s17] sm:$0xff] (!%p7470_p7), %vm7220_vm10, %v7212_v56  ;;  %7222 = vst.msk [vmem:[%s8405_s17 + $0x8] sm:$0xff] (!%p7470_p7), %vm7220_vm10, %v7213_v38  ;;  %v7215_v23 = vld [vmem:[%s8396_s28 + $0x18] sm:$0xff] (!%p7470_p7)  ;;  %v7216_v42 = vld [vmem:[%s8396_s28 + $0x20] sm:$0xff] (!%p7470_p7) }
 0x608   : > { %7223 = vst.msk [vmem:[%s8405_s17 + $0x10] sm:$0xff] (!%p7470_p7), %vm7220_vm10, %v7214_v49  ;;  %v7217_v22 = vld [vmem:[%s8396_s28 + $0x28] sm:$0xff] (!%p7470_p7)  ;;  %7224 = vst.msk [vmem:[%s8405_s17 + $0x18] sm:$0xff] (!%p7470_p7), %vm7220_vm10, %v7215_v23  ;;  %v7218_v33 = vld [vmem:[%s8396_s28 + $0x30] sm:$0xff] (!%p7470_p7) }
 0x609   : > { %7225 = vst.msk [vmem:[%s8405_s17 + $0x20] sm:$0xff] (!%p7470_p7), %vm7220_vm10, %v7216_v42  ;;  %7226 = vst.msk [vmem:[%s8405_s17 + $0x28] sm:$0xff] (!%p7470_p7), %vm7220_vm10, %v7217_v22  ;;  %v7219_v14 = vld [vmem:[%s8396_s28 + $0x38] sm:$0xff] (!%p7470_p7) }
 0x60a   : > { %7227 = vst.msk [vmem:[%s8405_s17 + $0x30] sm:$0xff] (!%p7470_p7), %vm7220_vm10, %v7218_v33  ;;  %7228 = vst.msk [vmem:[%s8405_s17 + $0x38] sm:$0xff] (!%p7470_p7), %vm7220_vm10, %v7219_v14 }
 0x60e PF: > { %s15672_s14 = sld [smem:[#allocation21_spill]]  ;;  %s15673_s25 = sld [smem:[#allocation22_spill]] }
 0x60f   : > { %s15675_s18 = sld [smem:[#allocation29_spill]]  ;;  %s7246_s7 = sshll.u32 %s8405_s17, 4  ;;  %s14223_s7 = int_to_ptr.vmem [resolvable:$true] %s7246_s7 }
 0x610   : > { %s15676_s11 = sld [smem:[#allocation461_spill]]  ;;  %s14232_s10 = scalar_lea.sflag [#allocation4], %s462_s1 }
 0x611   : > { %s7790_s15 = scalar_lea.vmem %s14223_s7, 1024  ;;  %s7969_s17 = smov [#allocation11]  }
 0x612   : > { %p7791_p13 = scmp.ne.s32.totalorder %s14223_s7, %s7790_s15  ;;  %s7794_s21 = sshll.u32 %s7969_s17, 4  ;;  %s7795_s21 = int_to_ptr.vmem [resolvable:$false] %s7794_s21 }
 0x613   : > { %s7796_s19 = scalar_lea.vmem %s7795_s21, 2048  ;;  %p7797_p4 = scmp.lt.s32.totalorder %s14223_s7, %s7795_s21 }
 0x614   : > { %s7479_s9 = sshll.u32 %s15672_s14, 3  ;;  %s7474_s13 = sshll.u32 %s15673_s25, 4 }
 0x615   : > { %s7243_s16 = sadd.s32 %s7479_s9, %s7474_s13  ;;  %p15677_p5 = scmp.ne.s32.totalorder %s15675_s18, 0 }
 0x616   : > { %s7475_s8 = sshll.u32 %s7243_s16, 7  ;;  %p7798_p1 = scmp.lt.s32.totalorder %s7796_s19, %s7790_s15 }
 0x617   : > { %s14228_s29 = scalar_lea.hbm %s15676_s11, %s7475_s8  ;;  %p7792_p12 = pnand %p7791_p13, %p15677_p5 }
 0x618   : > { %p7799_p0 = por %p7798_p1, %p7797_p4 }
 0x619   : > { %p7793_p2 = pneg %p7792_p12 }
 0x61b   : > { %p7800_p8 = pnand %p7799_p0, %p7793_p2 }
 0x61d   : > { %7803 = shalt.err (!%p7800_p8)
}
 0x61e   : > { %s7804_s1 = scalar_lea.hbm %s14228_s29, 1024  ;;  %s7808_s3 = scalar_lea.hbm %s15676_s11, 4096 }
 0x61f   : > { %p7805_p10 = scmp.ne.s32.totalorder %s14228_s29, %s7804_s1  ;;  %p7809_p6 = scmp.lt.u32.totalorder %s14228_s29, %s15676_s11 }
 0x620   : > { %p7810_p11 = scmp.lt.u32.totalorder %s7808_s3, %s7804_s1  ;;  %p7812_p13 = scmp.lt.u32.totalorder %s7804_s1, %s14228_s29 }
 0x621   : > { %p7806_p3 = pnand %p7805_p10, %p15677_p5 }
 0x622   : > { %p7811_p7 = por %p7810_p11, %p7809_p6 }
 0x623   : > { %p7807_p9 = pneg %p7806_p3 }
 0x624   : > { %p7813_p12 = por %p7812_p13, %p7811_p7 }
 0x626   : > { %p7814_p2 = pnand %p7813_p12, %p7807_p9 }
 0x628   : > { %7817 = shalt.err (!%p7814_p2)
}
 0x629   : > { %s7970_s27 = smov 128   ;;  %s7971_s9 = smov 8  }
 0x62a   : > { %7490 = dma.vmem_to_hbm [thread:$0]  (%p15677_p5), %s14223_s7, 1024, %s14228_s29, %s14232_s10, %s7970_s27, %s7970_s27, %s7971_s9  }
 0x62b PF: > { %s15678_s13 = sld [smem:[#allocation17_spill]]  ;;  %s15679_s16 = sld [smem:[#allocation30_spill]] }
 0x62c   : > { %p7513_p4 = scmp.ge.s32.totalorder %s7950_s6, 2 }
 0x631   : > { %s7261_s8 = sand.u32 1, %s15678_s13   ;;  %p15680_p1 = scmp.ne.s32.totalorder %s15679_s16, 0 }
 0x632   : > { %s7262_s5 = scalar_lea.sflag [#allocation4], %s7261_s8 }
 0x633   : > { %p7509_p0 = pnand %p7513_p4, %p15680_p1 }
 0x635   : > { %7891 = dma.done.wait (!%p7509_p0), %s7262_s5, 1024  }
 0x636   : > { %7893 = vsyncadd (!%p7509_p0), %s7262_s5, 4294966272  ;;  %s27_s6 = sadd.s32 1, %s7950_s6   ;;  %s15682_s18 = sld [smem:[#allocation18_spill]] }
 0x637   : > { %p14261_p8 = scmp.ge.s32.totalorder %s27_s6, 6   ;;  %s15683_s19 = sld [smem:[#allocation19_spill]] }
 0x638   : > { %s15684_s20 = sld [smem:[#allocation28_spill]]  ;;  %s15685_s7 = sld [smem:[#allocation20_spill]] }
 0x639   : > { %s15686_s29 = sld [smem:[#allocation27_spill]]  ;;  %s15687_s27 = sld [smem:[#allocation23_spill]] }
 0x63a   : > { %s15688_s10 = sld [smem:[#allocation24_spill]]  ;;  %s15689_s15 = sld [smem:[#allocation25_spill]] }
 0x63b   : > { %s15691_s21 = smov %s7914_s22  ;;  %s15692_s22 = smov %s7918_s23 }
 0x63c   : > { %s15693_s23 = smov %s8326_s24  ;;  %s15695_s25 = smov %s7930_s26 }
 0x63d   : > { %s15697_s28 = smov %s7946_s30  ;;  %26 = sbr.rel (!%p14261_p8) target bundleno = 18 (0x12), region = 141 }
 0x63e   : > { %s15694_s24 = smov %s15685_s7 }
 0x63f   : > { %s15696_s26 = smov %s15686_s29 }
 0x640   : > { %s15698_s29 = smov %s15688_s10  ;;  %s15699_s30 = smov %s15689_s15 }
 0x644   :  { %7267 = vsyncpa [#allocation3], 1 }
 0x645   :  { %7269 = vsyncpa [#allocation3 + $0x1], 1 }
 0x646   :  { %7270 = vsyncpa [#allocation6], 1 }
 0x647   :  { %7272 = vsyncpa [#allocation6 + $0x1], 1 }
 0x648   :  { %7273 = vsyncpa [#allocation9], 1 }
 0x649   :  { %7275 = vsyncpa [#allocation9 + $0x1], 1 }
 0x64a   :  { %7276 = vsyncpa [#allocation4], 1 }
 0x64b   :  { %7278 = vsyncpa [#allocation4 + $0x1], 1 }

</bundles_post_ra>
